<compile_context>
chip_gen: v7x
topology: tpu7x:2x2x1
jax: 0.10.0
libtpu: 0.0.40
codegen_flags: <defaults>
</compile_context>

<pallas_src>
import functools
import numpy as np

import jax
import jax.numpy as jnp
from jax.experimental import pallas as pl
from jax.experimental.pallas import tpu as pltpu

EMB_DIM = 1000  # hard-coded in the PyTorch module (nn.Embedding(vocab, 1000))


def _round_up(x, m):
    return (x + m - 1) // m * m


# ----------------------------------------------------------------------------
# Tiled matmul + bias:  o = x @ w + b   (bf16 operands, f32 accumulation)
# ----------------------------------------------------------------------------
def _matmul_bias_kernel(x_ref, w_ref, b_ref, o_ref, acc_ref):
    @pl.when(pl.program_id(2) == 0)
    def _():
        acc_ref[...] = jnp.zeros_like(acc_ref)

    acc_ref[...] += jnp.dot(
        x_ref[...], w_ref[...], preferred_element_type=jnp.float32
    )

    @pl.when(pl.program_id(2) == pl.num_programs(2) - 1)
    def _():
        o_ref[...] = (acc_ref[...] + b_ref[...]).astype(o_ref.dtype)


def matmul_bias(x, w, b, *, tm=512, tn=512, tk=512):
    """x: (M, K), w: (K, N), b: (N,) -> (M, N) f32. bf16 MXU feed, f32 acc."""
    M, K = x.shape
    K2, N = w.shape
    assert K == K2 and b.shape == (N,)
    x = x.astype(jnp.bfloat16)
    w = w.astype(jnp.bfloat16)
    b = b.astype(jnp.float32)

    tm = min(tm, _round_up(M, 8))
    tn = min(tn, _round_up(N, 128))
    tk = min(tk, _round_up(K, 128))
    Mp, Np, Kp = _round_up(M, tm), _round_up(N, tn), _round_up(K, tk)

    xp = x if (Mp == M and Kp == K) else jnp.pad(x, ((0, Mp - M), (0, Kp - K)))
    wp = w if (Kp == K and Np == N) else jnp.pad(w, ((0, Kp - K), (0, Np - N)))
    bp = (b if Np == N else jnp.pad(b, (0, Np - N))).reshape(1, Np)

    out = pl.pallas_call(
        _matmul_bias_kernel,
        out_shape=jax.ShapeDtypeStruct((Mp, Np), jnp.float32),
        grid_spec=pltpu.PrefetchScalarGridSpec(
            num_scalar_prefetch=0,
            grid=(Mp // tm, Np // tn, Kp // tk),
            in_specs=[
                pl.BlockSpec((tm, tk), lambda i, j, k: (i, k)),
                pl.BlockSpec((tk, tn), lambda i, j, k: (k, j)),
                pl.BlockSpec((1, tn), lambda i, j, k: (0, j)),
            ],
            out_specs=pl.BlockSpec((tm, tn), lambda i, j, k: (i, j)),
            scratch_shapes=[pltpu.VMEM((tm, tn), jnp.float32)],
        ),
        compiler_params=pltpu.CompilerParams(
            dimension_semantics=("parallel", "parallel", "arbitrary"),
        ),
    )(xp, wp, bp)
    return out[:M, :N]


# ----------------------------------------------------------------------------
# Fused LSTM: input projection + recurrence, TT timesteps per grid step,
# carries resident in VMEM scratch, batch blocks shard across cores.
# ----------------------------------------------------------------------------
def _sigmoid(x):
    # One EUP push (tanh) per gate instead of exp + reciprocal.
    return 0.5 * (jnp.tanh(0.5 * x) + 1.0)


def _lstm_kernel(x_ref, wih_ref, whh_ref, b_ref, h_out_ref, h_sc, c_sc, *,
                 hidden, tt):
    # x_ref:    (TT, TB, E_pad)   bf16 time-major raw inputs
    # wih_ref:  (E_pad, 4*H_pad)  bf16 W_ih^T  (constant block -> resident)
    # whh_ref:  (H_pad, 4*H_pad)  bf16 W_hh^T  (constant block -> resident)
    # b_ref:    (1, 4*H_pad)      f32  b_ih + b_hh
    # h_out_ref:(TT, TB, H_pad)   bf16 hidden outputs for this block
    # h_sc/c_sc:(TB, H_pad)       f32  recurrent carries (persist over time)
    @pl.when(pl.program_id(1) == 0)  # new batch block -> reset carries
    def _():
        h_sc[...] = jnp.zeros_like(h_sc)
        c_sc[...] = jnp.zeros_like(c_sc)

    H = hidden

    def step(s, carry):
        xt = x_ref[s]                                     # (TB, E_pad) bf16
        h_b = h_sc[...].astype(jnp.bfloat16)
        # Weight refs indexed inside the step (not hoisted across the unroll)
        # so no huge weight value stays live in vregs between steps.
        gates = (
            jnp.dot(xt, wih_ref[...], preferred_element_type=jnp.float32)
            + jnp.dot(h_b, whh_ref[...], preferred_element_type=jnp.float32)
            + b_ref[...]
        )
        # H is a multiple of 128 -> every gate slice is lane-aligned.
        i = _sigmoid(gates[:, 0 * H:1 * H])
        f = _sigmoid(gates[:, 1 * H:2 * H])
        g = jnp.tanh(gates[:, 2 * H:3 * H])
        o = _sigmoid(gates[:, 3 * H:4 * H])
        c = f * c_sc[...] + i * g
        h = o * jnp.tanh(c)
        c_sc[...] = c
        h_sc[...] = h
        h_out_ref[s] = h.astype(h_out_ref.dtype)
        return carry

    jax.lax.fori_loop(0, tt, step, 0, unroll=True)


def lstm_forward(inputs_tm, w_ih_t, w_hh_t, b_gate, hidden_pad, *, tt=8, tb=8):
    """inputs_tm: (S_pad, B_pad, E_pad) bf16 time-major raw LSTM inputs."""
    S_pad, B_pad, E_pad = inputs_tm.shape
    H = hidden_pad
    G = 4 * H
    assert S_pad % tt == 0 and B_pad % tb == 0
    assert w_ih_t.shape == (E_pad, G) and w_hh_t.shape == (H, G)
    b2 = b_gate.reshape(1, G).astype(jnp.float32)
    # TODO(synk): on v7x (64 MiB VMEM) drop tt to 4 at production sizes and use
    # pipeline_mode=pl.Buffered(1) on the constant weight BlockSpecs to avoid
    # double-buffering the resident W_ih^T / W_hh^T tiles.
    return pl.pallas_call(
        functools.partial(_lstm_kernel, hidden=H, tt=tt),
        out_shape=jax.ShapeDtypeStruct((S_pad, B_pad, H), jnp.bfloat16),
        grid_spec=pltpu.PrefetchScalarGridSpec(
            num_scalar_prefetch=0,
            grid=(B_pad // tb, S_pad // tt),
            in_specs=[
                pl.BlockSpec((tt, tb, E_pad), lambda b, t: (t, b, 0)),
                pl.BlockSpec((E_pad, G), lambda b, t: (0, 0)),
                pl.BlockSpec((H, G), lambda b, t: (0, 0)),
                pl.BlockSpec((1, G), lambda b, t: (0, 0)),
            ],
            out_specs=pl.BlockSpec((tt, tb, H), lambda b, t: (t, b, 0)),
            scratch_shapes=[
                pltpu.VMEM((tb, H), jnp.float32),
                pltpu.VMEM((tb, H), jnp.float32),
            ],
        ),
        compiler_params=pltpu.CompilerParams(
            # batch blocks independent (megacore), time is a serial recurrence
            dimension_semantics=("parallel", "arbitrary"),
        ),
    )(inputs_tm, w_ih_t, w_hh_t, b2)


# ----------------------------------------------------------------------------
# Parameters (PyTorch-equivalent) + one-time padding / transpose / bf16 prep
# ----------------------------------------------------------------------------
def init_params(key, hidden_size, vocab_size):
    ks = jax.random.split(key, 7)
    s_rnn = 1.0 / np.sqrt(hidden_size)
    s_lin = 1.0 / np.sqrt(hidden_size)
    return {
        # nn.Embedding(vocab_size, 1000)
        "emb": jax.random.normal(ks[0], (vocab_size, EMB_DIM), jnp.float32) * 0.02,
        # nn.LSTM(1000, hidden, 1, batch_first=True) — PyTorch gate order i,f,g,o
        "w_ih": jax.random.uniform(ks[1], (4 * hidden_size, EMB_DIM), jnp.float32, -s_rnn, s_rnn),
        "w_hh": jax.random.uniform(ks[2], (4 * hidden_size, hidden_size), jnp.float32, -s_rnn, s_rnn),
        "b_ih": jax.random.uniform(ks[3], (4 * hidden_size,), jnp.float32, -s_rnn, s_rnn),
        "b_hh": jax.random.uniform(ks[4], (4 * hidden_size,), jnp.float32, -s_rnn, s_rnn),
        # nn.Linear(hidden, vocab)
        "w_out": jax.random.uniform(ks[5], (vocab_size, hidden_size), jnp.float32, -s_lin, s_lin),
        "b_out": jax.random.uniform(ks[6], (vocab_size,), jnp.float32, -s_lin, s_lin),
    }


def _pad_gates(w, H, H_pad):
    """Zero-pad each of the 4 PyTorch gate blocks (i,f,g,o) from H to H_pad rows."""
    parts = []
    for g in range(4):
        blk = w[g * H:(g + 1) * H]
        parts.append(jnp.pad(blk, ((0, H_pad - H),) + ((0, 0),) * (w.ndim - 1)))
    return jnp.concatenate(parts, axis=0)


def prepare_params(params, hidden_size):
    """One-time weight prep: gate-block zero padding to lane multiples,
    pre-transpose, bf16 cast of MXU operands (biases stay f32). Padding is
    all zeros so the math is exact; padded rows/cols are sliced away later."""
    H = hidden_size
    V = params["w_out"].shape[0]
    H_pad = _round_up(H, 128)
    E_pad = _round_up(EMB_DIM, 128)   # 1000 -> 1024
    V_pad = _round_up(V, 128)

    emb_p = jnp.pad(params["emb"], ((0, 0), (0, E_pad - EMB_DIM))).astype(jnp.bfloat16)
    w_ih_t = jnp.pad(_pad_gates(params["w_ih"], H, H_pad),
                     ((0, 0), (0, E_pad - EMB_DIM))).T.astype(jnp.bfloat16)
    w_hh_t = jnp.pad(_pad_gates(params["w_hh"], H, H_pad),
                     ((0, 0), (0, H_pad - H))).T.astype(jnp.bfloat16)
    b_gate = _pad_gates(params["b_ih"] + params["b_hh"], H, H_pad).astype(jnp.float32)
    w_out_t = jnp.pad(params["w_out"],
                      ((0, V_pad - V), (0, H_pad - H))).T.astype(jnp.bfloat16)
    b_out_p = jnp.pad(params["b_out"], (0, V_pad - V)).astype(jnp.float32)

    return {
        "emb": emb_p, "w_ih_t": w_ih_t, "w_hh_t": w_hh_t, "b_gate": b_gate,
        "w_out_t": w_out_t, "b_out": b_out_p,
        "H": H, "H_pad": H_pad, "E_pad": E_pad, "V": V, "V_pad": V_pad,
    }


def packed_indices(lengths, batch, batch_stride):
    """pack_padded_sequence(batch_first=True) data ordering: time-major over the
    batches with lengths > t (lengths sorted decreasing). Returns flat indices
    into a (S, batch_stride, ...) time-major tensor."""
    assert all(lengths[i] >= lengths[i + 1] for i in range(len(lengths) - 1))
    idx = []
    for t in range(max(lengths)):
        for b in range(batch):
            if lengths[b] > t:
                idx.append(t * batch_stride + b)
    return np.asarray(idx, dtype=np.int32)


# ----------------------------------------------------------------------------
# Forward pass (Pallas path)
# ----------------------------------------------------------------------------
def rnn_forward(prep, features, captions, lengths, *, tt=8, tb=8):
    """
    features: (B, 1000) f32   captions: (B, T) int32   lengths: python list (sorted desc)
    returns:  (sum(lengths), vocab) f32   — matches PyTorch RNN.forward()
    """
    B, T = captions.shape
    S = T + 1  # features prepended as timestep 0
    H_pad, E_pad, V = prep["H_pad"], prep["E_pad"], prep["V"]
    B_pad = _round_up(B, tb)
    S_pad = _round_up(S, tt)

    # Time-major bf16 inputs (halves the HBM stream into the fused LSTM kernel).
    emb_tm = jnp.take(prep["emb"], captions.T, axis=0)                   # (T, B, E_pad)
    feat_p = jnp.pad(features, ((0, 0), (0, E_pad - EMB_DIM))).astype(jnp.bfloat16)
    inputs_tm = jnp.concatenate([feat_p[None], emb_tm], axis=0)          # (S, B, E_pad)
    inputs_tm = jnp.pad(inputs_tm, ((0, S_pad - S), (0, B_pad - B), (0, 0)))

    # Fused input-projection + LSTM recurrence (no xg round-trip through HBM).
    hiddens = lstm_forward(inputs_tm, prep["w_ih_t"], prep["w_hh_t"],
                           prep["b_gate"], H_pad, tt=tt, tb=tb)          # (S_pad, B_pad, H_pad) bf16

    # --- pack_padded_sequence ordering, then output projection ---
    # TODO(synk): fuse this gather into the output GEMM via scalar-prefetched
    # row indices (PrefetchScalarGridSpec + in-kernel DMA row gather) so
    # `hiddens` is read exactly once; kept as an XLA gather here.
    idx = packed_indices(lengths, B, B_pad)
    packed = hiddens.reshape(S_pad * B_pad, H_pad)[idx]                  # (sum(len), H_pad) bf16
    out = matmul_bias(packed, prep["w_out_t"], prep["b_out"])            # (sum(len), V_pad) f32
    return out[:, :V]


# ----------------------------------------------------------------------------
# Pure-JAX f32 reference (for correctness check)
# ----------------------------------------------------------------------------
def rnn_forward_ref(params, features, captions, lengths, hidden_size):
    B, T = captions.shape
    emb = jnp.take(params["emb"], captions, axis=0)
    inputs = jnp.concatenate([features[:, None, :], emb], axis=1)

    def step(carry, xt):
        h, c = carry
        gates = (xt @ params["w_ih"].T + params["b_ih"]
                 + h @ params["w_hh"].T + params["b_hh"])
        i, f, g, o = jnp.split(gates, 4, axis=-1)
        i, f, o = jax.nn.sigmoid(i), jax.nn.sigmoid(f), jax.nn.sigmoid(o)
        g = jnp.tanh(g)
        c = f * c + i * g
        h = o * jnp.tanh(c)
        return (h, c), h

    h0 = jnp.zeros((B, hidden_size), jnp.float32)
    c0 = jnp.zeros((B, hidden_size), jnp.float32)
    _, hs = jax.lax.scan(step, (h0, c0), jnp.swapaxes(inputs, 0, 1))  # (T+1, B, H)

    idx = packed_indices(lengths, B, B)
    packed = hs.reshape((T + 1) * B, hidden_size)[idx]
    return packed @ params["w_out"].T + params["b_out"]


# ----------------------------------------------------------------------------
if __name__ == "__main__":
    B, T = 2, 8
    HIDDEN = 32
    VOCAB = 128

    key = jax.random.PRNGKey(0)
    k_par, k_feat, k_cap = jax.random.split(key, 3)

    params = init_params(k_par, HIDDEN, VOCAB)
    features = jax.random.normal(k_feat, (B, EMB_DIM), jnp.float32)
    captions = jax.random.randint(k_cap, (B, T), 0, VOCAB, jnp.int32)
    lengths = [9, 6]  # sorted decreasing, <= T+1 (feature prepended as step 0)

    prep = prepare_params(params, HIDDEN)
    out = rnn_forward(prep, features, captions, lengths)
    out = jax.block_until_ready(out)

    ref = rnn_forward_ref(params, features, captions, lengths, HIDDEN)
    assert out.shape == (sum(lengths), VOCAB), out.shape
    # bf16 MXU operands + bf16 hidden storage -> tolerance looser than pure f32;
    # still far below the O(0.3+) error a structural bug would produce.
    np.testing.assert_allclose(np.asarray(out), np.asarray(ref), atol=5e-2, rtol=5e-2)

    print("KERNEL_OK")
</pallas_src>

<mosaic_0001>
module attributes {stable_mosaic.version = 11 : i64} {
  func.func @_lstm_kernel(%arg0: i32, %arg1: i32, %arg2: memref<8x8x1024xbf16, #tpu.memory_space<vmem>>, %arg3: memref<1024x512xbf16, #tpu.memory_space<vmem>>, %arg4: memref<128x512xbf16, #tpu.memory_space<vmem>>, %arg5: memref<1x512xf32, #tpu.memory_space<vmem>>, %arg6: memref<8x8x128xbf16, #tpu.memory_space<vmem>>, %arg7: memref<8x128xf32, #tpu.memory_space<vmem>>, %arg8: memref<8x128xf32, #tpu.memory_space<vmem>>) attributes {dimension_semantics = [#tpu.dimension_semantics<parallel>, #tpu.dimension_semantics<arbitrary>], iteration_bounds = array<i64: 1, 2>, scalar_prefetch = 0 : i64, scratch_operands = 2 : i64, tpu.core_type = #tpu.core_type<tc>, window_params = [{transform_indices = @transform_0, window_bounds = array<i64: 8, 8, 1024>}, {pipeline_mode = #tpu.pipeline_mode<synchronous>, transform_indices = @transform_1, window_bounds = array<i64: 1024, 512>}, {pipeline_mode = #tpu.pipeline_mode<synchronous>, transform_indices = @transform_2, window_bounds = array<i64: 128, 512>}, {pipeline_mode = #tpu.pipeline_mode<synchronous>, transform_indices = @transform_3, window_bounds = array<i64: 1, 512>}, {transform_indices = @transform_4, window_bounds = array<i64: 8, 8, 128>}]} {
    %c0_i32 = arith.constant 0 : i32
    %0 = arith.cmpi eq, %arg1, %c0_i32 : i32
    %1 = arith.extui %0 : i1 to i32
    %c0_i32_0 = arith.constant 0 : i32
    %2 = arith.cmpi ne, %1, %c0_i32_0 : i32
    scf.if %2 {
      %cst_232 = arith.constant 0.000000e+00 : f32
      %419 = vector.broadcast %cst_232 : f32 to vector<8x128xf32>
      %c0_233 = arith.constant 0 : index
      %c0_234 = arith.constant 0 : index
      %420 = vector.load %arg7[%c0_233, %c0_234] : memref<8x128xf32, #tpu.memory_space<vmem>>, vector<8x128xf32>
      tpu.vector_store %arg7[%c0_233, %c0_234], %419 {strides = array<i32>} : memref<8x128xf32, #tpu.memory_space<vmem>>, vector<8x128xf32>,
      %cst_235 = arith.constant 0.000000e+00 : f32
      %421 = vector.broadcast %cst_235 : f32 to vector<8x128xf32>
      %c0_236 = arith.constant 0 : index
      %c0_237 = arith.constant 0 : index
      %422 = vector.load %arg8[%c0_236, %c0_237] : memref<8x128xf32, #tpu.memory_space<vmem>>, vector<8x128xf32>
      tpu.vector_store %arg8[%c0_236, %c0_237], %421 {strides = array<i32>} : memref<8x128xf32, #tpu.memory_space<vmem>>, vector<8x128xf32>,
    } else {
    }
    %c0_i32_1 = arith.constant 0 : i32
    %3 = arith.index_cast %c0_i32_1 : i32 to index
    %c0 = arith.constant 0 : index
    %c0_2 = arith.constant 0 : index
    %4 = vector.load %arg2[%3, %c0, %c0_2] : memref<8x8x1024xbf16, #tpu.memory_space<vmem>>, vector<1x8x1024xbf16>
    %5 = vector.shape_cast %4 : vector<1x8x1024xbf16> to vector<8x1024xbf16>
    %c0_3 = arith.constant 0 : index
    %c0_4 = arith.constant 0 : index
    %6 = vector.load %arg7[%c0_3, %c0_4] : memref<8x128xf32, #tpu.memory_space<vmem>>, vector<8x128xf32>
    %7 = arith.truncf %6 : vector<8x128xf32> to vector<8x128xbf16>
    %c0_5 = arith.constant 0 : index
    %c0_6 = arith.constant 0 : index
    %8 = vector.load %arg3[%c0_5, %c0_6] : memref<1024x512xbf16, #tpu.memory_space<vmem>>, vector<1024x512xbf16>
    %cst = arith.constant dense<0.000000e+00> : vector<8x512xf32>
    %9 = tpu.matmul %5, %8, %cst {dimension_numbers = #tpu.dot_dimension_numbers<[1], [0], [0], [1], [0, 0, 1, 1], [], []>} : vector<8x1024xbf16>, vector<1024x512xbf16>, vector<8x512xf32> -> vector<8x512xf32>
    %c0_7 = arith.constant 0 : index
    %c0_8 = arith.constant 0 : index
    %10 = vector.load %arg4[%c0_7, %c0_8] : memref<128x512xbf16, #tpu.memory_space<vmem>>, vector<128x512xbf16>
    %cst_9 = arith.constant dense<0.000000e+00> : vector<8x512xf32>
    %11 = tpu.matmul %7, %10, %cst_9 {dimension_numbers = #tpu.dot_dimension_numbers<[1], [0], [0], [1], [0, 0, 1, 1], [], []>} : vector<8x128xbf16>, vector<128x512xbf16>, vector<8x512xf32> -> vector<8x512xf32>
    %12 = arith.addf %9, %11 : vector<8x512xf32>
    %c0_10 = arith.constant 0 : index
    %c0_11 = arith.constant 0 : index
    %13 = vector.load %arg5[%c0_10, %c0_11] : memref<1x512xf32, #tpu.memory_space<vmem>>, vector<1x512xf32>
    %14 = vector.broadcast %13 : vector<1x512xf32> to vector<8x512xf32>
    %15 = arith.addf %12, %14 : vector<8x512xf32>
    %16 = vector.extract_strided_slice %15 {offsets = [0, 0], sizes = [8, 128], strides = [1, 1]} : vector<8x512xf32> to vector<8x128xf32>
    %cst_12 = arith.constant 5.000000e-01 : f32
    %17 = vector.broadcast %cst_12 : f32 to vector<8x128xf32>
    %18 = arith.mulf %17, %16 : vector<8x128xf32>
    %19 = math.tanh %18 : vector<8x128xf32>
    %cst_13 = arith.constant 1.000000e+00 : f32
    %20 = vector.broadcast %cst_13 : f32 to vector<8x128xf32>
    %21 = arith.addf %19, %20 : vector<8x128xf32>
    %cst_14 = arith.constant 5.000000e-01 : f32
    %22 = vector.broadcast %cst_14 : f32 to vector<8x128xf32>
    %23 = arith.mulf %22, %21 : vector<8x128xf32>
    %24 = vector.extract_strided_slice %15 {offsets = [0, 128], sizes = [8, 128], strides = [1, 1]} : vector<8x512xf32> to vector<8x128xf32>
    %cst_15 = arith.constant 5.000000e-01 : f32
    %25 = vector.broadcast %cst_15 : f32 to vector<8x128xf32>
    %26 = arith.mulf %25, %24 : vector<8x128xf32>
    %27 = math.tanh %26 : vector<8x128xf32>
    %cst_16 = arith.constant 1.000000e+00 : f32
    %28 = vector.broadcast %cst_16 : f32 to vector<8x128xf32>
    %29 = arith.addf %27, %28 : vector<8x128xf32>
    %cst_17 = arith.constant 5.000000e-01 : f32
    %30 = vector.broadcast %cst_17 : f32 to vector<8x128xf32>
    %31 = arith.mulf %30, %29 : vector<8x128xf32>
    %32 = vector.extract_strided_slice %15 {offsets = [0, 256], sizes = [8, 128], strides = [1, 1]} : vector<8x512xf32> to vector<8x128xf32>
    %33 = math.tanh %32 : vector<8x128xf32>
    %34 = vector.extract_strided_slice %15 {offsets = [0, 384], sizes = [8, 128], strides = [1, 1]} : vector<8x512xf32> to vector<8x128xf32>
    %cst_18 = arith.constant 5.000000e-01 : f32
    %35 = vector.broadcast %cst_18 : f32 to vector<8x128xf32>
    %36 = arith.mulf %35, %34 : vector<8x128xf32>
    %37 = math.tanh %36 : vector<8x128xf32>
    %cst_19 = arith.constant 1.000000e+00 : f32
    %38 = vector.broadcast %cst_19 : f32 to vector<8x128xf32>
    %39 = arith.addf %37, %38 : vector<8x128xf32>
    %cst_20 = arith.constant 5.000000e-01 : f32
    %40 = vector.broadcast %cst_20 : f32 to vector<8x128xf32>
    %41 = arith.mulf %40, %39 : vector<8x128xf32>
    %c0_21 = arith.constant 0 : index
    %c0_22 = arith.constant 0 : index
    %42 = vector.load %arg8[%c0_21, %c0_22] : memref<8x128xf32, #tpu.memory_space<vmem>>, vector<8x128xf32>
    %43 = arith.mulf %31, %42 : vector<8x128xf32>
    %44 = arith.mulf %23, %33 : vector<8x128xf32>
    %45 = arith.addf %43, %44 : vector<8x128xf32>
    %46 = math.tanh %45 : vector<8x128xf32>
    %47 = arith.mulf %41, %46 : vector<8x128xf32>
    %c0_23 = arith.constant 0 : index
    %c0_24 = arith.constant 0 : index
    %48 = vector.load %arg8[%c0_23, %c0_24] : memref<8x128xf32, #tpu.memory_space<vmem>>, vector<8x128xf32>
    tpu.vector_store %arg8[%c0_23, %c0_24], %45 {strides = array<i32>} : memref<8x128xf32, #tpu.memory_space<vmem>>, vector<8x128xf32>,
    %c0_25 = arith.constant 0 : index
    %c0_26 = arith.constant 0 : index
    %49 = vector.load %arg7[%c0_25, %c0_26] : memref<8x128xf32, #tpu.memory_space<vmem>>, vector<8x128xf32>
    tpu.vector_store %arg7[%c0_25, %c0_26], %47 {strides = array<i32>} : memref<8x128xf32, #tpu.memory_space<vmem>>, vector<8x128xf32>,
    %50 = arith.truncf %47 : vector<8x128xf32> to vector<8x128xbf16>
    %51 = arith.index_cast %c0_i32_1 : i32 to index
    %c0_27 = arith.constant 0 : index
    %c0_28 = arith.constant 0 : index
    %52 = vector.load %arg6[%51, %c0_27, %c0_28] : memref<8x8x128xbf16, #tpu.memory_space<vmem>>, vector<1x8x128xbf16>
    %53 = vector.shape_cast %52 : vector<1x8x128xbf16> to vector<8x128xbf16>
    %54 = vector.shape_cast %50 : vector<8x128xbf16> to vector<1x8x128xbf16>
    tpu.vector_store %arg6[%51, %c0_27, %c0_28], %54 {strides = array<i32>} : memref<8x8x128xbf16, #tpu.memory_space<vmem>>, vector<1x8x128xbf16>,
    %c1_i32 = arith.constant 1 : i32
    %55 = arith.index_cast %c1_i32 : i32 to index
    %c0_29 = arith.constant 0 : index
    %c0_30 = arith.constant 0 : index
    %56 = vector.load %arg2[%55, %c0_29, %c0_30] : memref<8x8x1024xbf16, #tpu.memory_space<vmem>>, vector<1x8x1024xbf16>
    %57 = vector.shape_cast %56 : vector<1x8x1024xbf16> to vector<8x1024xbf16>
    %c0_31 = arith.constant 0 : index
    %c0_32 = arith.constant 0 : index
    %58 = vector.load %arg7[%c0_31, %c0_32] : memref<8x128xf32, #tpu.memory_space<vmem>>, vector<8x128xf32>
    %59 = arith.truncf %58 : vector<8x128xf32> to vector<8x128xbf16>
    %c0_33 = arith.constant 0 : index
    %c0_34 = arith.constant 0 : index
    %60 = vector.load %arg3[%c0_33, %c0_34] : memref<1024x512xbf16, #tpu.memory_space<vmem>>, vector<1024x512xbf16>
    %cst_35 = arith.constant dense<0.000000e+00> : vector<8x512xf32>
    %61 = tpu.matmul %57, %60, %cst_35 {dimension_numbers = #tpu.dot_dimension_numbers<[1], [0], [0], [1], [0, 0, 1, 1], [], []>} : vector<8x1024xbf16>, vector<1024x512xbf16>, vector<8x512xf32> -> vector<8x512xf32>
    %c0_36 = arith.constant 0 : index
    %c0_37 = arith.constant 0 : index
    %62 = vector.load %arg4[%c0_36, %c0_37] : memref<128x512xbf16, #tpu.memory_space<vmem>>, vector<128x512xbf16>
    %cst_38 = arith.constant dense<0.000000e+00> : vector<8x512xf32>
    %63 = tpu.matmul %59, %62, %cst_38 {dimension_numbers = #tpu.dot_dimension_numbers<[1], [0], [0], [1], [0, 0, 1, 1], [], []>} : vector<8x128xbf16>, vector<128x512xbf16>, vector<8x512xf32> -> vector<8x512xf32>
    %64 = arith.addf %61, %63 : vector<8x512xf32>
    %c0_39 = arith.constant 0 : index
    %c0_40 = arith.constant 0 : index
    %65 = vector.load %arg5[%c0_39, %c0_40] : memref<1x512xf32, #tpu.memory_space<vmem>>, vector<1x512xf32>
    %66 = vector.broadcast %65 : vector<1x512xf32> to vector<8x512xf32>
    %67 = arith.addf %64, %66 : vector<8x512xf32>
    %68 = vector.extract_strided_slice %67 {offsets = [0, 0], sizes = [8, 128], strides = [1, 1]} : vector<8x512xf32> to vector<8x128xf32>
    %cst_41 = arith.constant 5.000000e-01 : f32
    %69 = vector.broadcast %cst_41 : f32 to vector<8x128xf32>
    %70 = arith.mulf %69, %68 : vector<8x128xf32>
    %71 = math.tanh %70 : vector<8x128xf32>
    %cst_42 = arith.constant 1.000000e+00 : f32
    %72 = vector.broadcast %cst_42 : f32 to vector<8x128xf32>
    %73 = arith.addf %71, %72 : vector<8x128xf32>
    %cst_43 = arith.constant 5.000000e-01 : f32
    %74 = vector.broadcast %cst_43 : f32 to vector<8x128xf32>
    %75 = arith.mulf %74, %73 : vector<8x128xf32>
    %76 = vector.extract_strided_slice %67 {offsets = [0, 128], sizes = [8, 128], strides = [1, 1]} : vector<8x512xf32> to vector<8x128xf32>
    %cst_44 = arith.constant 5.000000e-01 : f32
    %77 = vector.broadcast %cst_44 : f32 to vector<8x128xf32>
    %78 = arith.mulf %77, %76 : vector<8x128xf32>
    %79 = math.tanh %78 : vector<8x128xf32>
    %cst_45 = arith.constant 1.000000e+00 : f32
    %80 = vector.broadcast %cst_45 : f32 to vector<8x128xf32>
    %81 = arith.addf %79, %80 : vector<8x128xf32>
    %cst_46 = arith.constant 5.000000e-01 : f32
    %82 = vector.broadcast %cst_46 : f32 to vector<8x128xf32>
    %83 = arith.mulf %82, %81 : vector<8x128xf32>
    %84 = vector.extract_strided_slice %67 {offsets = [0, 256], sizes = [8, 128], strides = [1, 1]} : vector<8x512xf32> to vector<8x128xf32>
    %85 = math.tanh %84 : vector<8x128xf32>
    %86 = vector.extract_strided_slice %67 {offsets = [0, 384], sizes = [8, 128], strides = [1, 1]} : vector<8x512xf32> to vector<8x128xf32>
    %cst_47 = arith.constant 5.000000e-01 : f32
    %87 = vector.broadcast %cst_47 : f32 to vector<8x128xf32>
    %88 = arith.mulf %87, %86 : vector<8x128xf32>
    %89 = math.tanh %88 : vector<8x128xf32>
    %cst_48 = arith.constant 1.000000e+00 : f32
    %90 = vector.broadcast %cst_48 : f32 to vector<8x128xf32>
    %91 = arith.addf %89, %90 : vector<8x128xf32>
    %cst_49 = arith.constant 5.000000e-01 : f32
    %92 = vector.broadcast %cst_49 : f32 to vector<8x128xf32>
    %93 = arith.mulf %92, %91 : vector<8x128xf32>
    %c0_50 = arith.constant 0 : index
    %c0_51 = arith.constant 0 : index
    %94 = vector.load %arg8[%c0_50, %c0_51] : memref<8x128xf32, #tpu.memory_space<vmem>>, vector<8x128xf32>
    %95 = arith.mulf %83, %94 : vector<8x128xf32>
    %96 = arith.mulf %75, %85 : vector<8x128xf32>
    %97 = arith.addf %95, %96 : vector<8x128xf32>
    %98 = math.tanh %97 : vector<8x128xf32>
    %99 = arith.mulf %93, %98 : vector<8x128xf32>
    %c0_52 = arith.constant 0 : index
    %c0_53 = arith.constant 0 : index
    %100 = vector.load %arg8[%c0_52, %c0_53] : memref<8x128xf32, #tpu.memory_space<vmem>>, vector<8x128xf32>
    tpu.vector_store %arg8[%c0_52, %c0_53], %97 {strides = array<i32>} : memref<8x128xf32, #tpu.memory_space<vmem>>, vector<8x128xf32>,
    %c0_54 = arith.constant 0 : index
    %c0_55 = arith.constant 0 : index
    %101 = vector.load %arg7[%c0_54, %c0_55] : memref<8x128xf32, #tpu.memory_space<vmem>>, vector<8x128xf32>
    tpu.vector_store %arg7[%c0_54, %c0_55], %99 {strides = array<i32>} : memref<8x128xf32, #tpu.memory_space<vmem>>, vector<8x128xf32>,
    %102 = arith.truncf %99 : vector<8x128xf32> to vector<8x128xbf16>
    %103 = arith.index_cast %c1_i32 : i32 to index
    %c0_56 = arith.constant 0 : index
    %c0_57 = arith.constant 0 : index
    %104 = vector.load %arg6[%103, %c0_56, %c0_57] : memref<8x8x128xbf16, #tpu.memory_space<vmem>>, vector<1x8x128xbf16>
    %105 = vector.shape_cast %104 : vector<1x8x128xbf16> to vector<8x128xbf16>
    %106 = vector.shape_cast %102 : vector<8x128xbf16> to vector<1x8x128xbf16>
    tpu.vector_store %arg6[%103, %c0_56, %c0_57], %106 {strides = array<i32>} : memref<8x8x128xbf16, #tpu.memory_space<vmem>>, vector<1x8x128xbf16>,
    %c2_i32 = arith.constant 2 : i32
    %107 = arith.index_cast %c2_i32 : i32 to index
    %c0_58 = arith.constant 0 : index
    %c0_59 = arith.constant 0 : index
    %108 = vector.load %arg2[%107, %c0_58, %c0_59] : memref<8x8x1024xbf16, #tpu.memory_space<vmem>>, vector<1x8x1024xbf16>
    %109 = vector.shape_cast %108 : vector<1x8x1024xbf16> to vector<8x1024xbf16>
    %c0_60 = arith.constant 0 : index
    %c0_61 = arith.constant 0 : index
    %110 = vector.load %arg7[%c0_60, %c0_61] : memref<8x128xf32, #tpu.memory_space<vmem>>, vector<8x128xf32>
    %111 = arith.truncf %110 : vector<8x128xf32> to vector<8x128xbf16>
    %c0_62 = arith.constant 0 : index
    %c0_63 = arith.constant 0 : index
    %112 = vector.load %arg3[%c0_62, %c0_63] : memref<1024x512xbf16, #tpu.memory_space<vmem>>, vector<1024x512xbf16>
    %cst_64 = arith.constant dense<0.000000e+00> : vector<8x512xf32>
    %113 = tpu.matmul %109, %112, %cst_64 {dimension_numbers = #tpu.dot_dimension_numbers<[1], [0], [0], [1], [0, 0, 1, 1], [], []>} : vector<8x1024xbf16>, vector<1024x512xbf16>, vector<8x512xf32> -> vector<8x512xf32>
    %c0_65 = arith.constant 0 : index
    %c0_66 = arith.constant 0 : index
    %114 = vector.load %arg4[%c0_65, %c0_66] : memref<128x512xbf16, #tpu.memory_space<vmem>>, vector<128x512xbf16>
    %cst_67 = arith.constant dense<0.000000e+00> : vector<8x512xf32>
    %115 = tpu.matmul %111, %114, %cst_67 {dimension_numbers = #tpu.dot_dimension_numbers<[1], [0], [0], [1], [0, 0, 1, 1], [], []>} : vector<8x128xbf16>, vector<128x512xbf16>, vector<8x512xf32> -> vector<8x512xf32>
    %116 = arith.addf %113, %115 : vector<8x512xf32>
    %c0_68 = arith.constant 0 : index
    %c0_69 = arith.constant 0 : index
    %117 = vector.load %arg5[%c0_68, %c0_69] : memref<1x512xf32, #tpu.memory_space<vmem>>, vector<1x512xf32>
    %118 = vector.broadcast %117 : vector<1x512xf32> to vector<8x512xf32>
    %119 = arith.addf %116, %118 : vector<8x512xf32>
    %120 = vector.extract_strided_slice %119 {offsets = [0, 0], sizes = [8, 128], strides = [1, 1]} : vector<8x512xf32> to vector<8x128xf32>
    %cst_70 = arith.constant 5.000000e-01 : f32
    %121 = vector.broadcast %cst_70 : f32 to vector<8x128xf32>
    %122 = arith.mulf %121, %120 : vector<8x128xf32>
    %123 = math.tanh %122 : vector<8x128xf32>
    %cst_71 = arith.constant 1.000000e+00 : f32
    %124 = vector.broadcast %cst_71 : f32 to vector<8x128xf32>
    %125 = arith.addf %123, %124 : vector<8x128xf32>
    %cst_72 = arith.constant 5.000000e-01 : f32
    %126 = vector.broadcast %cst_72 : f32 to vector<8x128xf32>
    %127 = arith.mulf %126, %125 : vector<8x128xf32>
    %128 = vector.extract_strided_slice %119 {offsets = [0, 128], sizes = [8, 128], strides = [1, 1]} : vector<8x512xf32> to vector<8x128xf32>
    %cst_73 = arith.constant 5.000000e-01 : f32
    %129 = vector.broadcast %cst_73 : f32 to vector<8x128xf32>
    %130 = arith.mulf %129, %128 : vector<8x128xf32>
    %131 = math.tanh %130 : vector<8x128xf32>
    %cst_74 = arith.constant 1.000000e+00 : f32
    %132 = vector.broadcast %cst_74 : f32 to vector<8x128xf32>
    %133 = arith.addf %131, %132 : vector<8x128xf32>
    %cst_75 = arith.constant 5.000000e-01 : f32
    %134 = vector.broadcast %cst_75 : f32 to vector<8x128xf32>
    %135 = arith.mulf %134, %133 : vector<8x128xf32>
    %136 = vector.extract_strided_slice %119 {offsets = [0, 256], sizes = [8, 128], strides = [1, 1]} : vector<8x512xf32> to vector<8x128xf32>
    %137 = math.tanh %136 : vector<8x128xf32>
    %138 = vector.extract_strided_slice %119 {offsets = [0, 384], sizes = [8, 128], strides = [1, 1]} : vector<8x512xf32> to vector<8x128xf32>
    %cst_76 = arith.constant 5.000000e-01 : f32
    %139 = vector.broadcast %cst_76 : f32 to vector<8x128xf32>
    %140 = arith.mulf %139, %138 : vector<8x128xf32>
    %141 = math.tanh %140 : vector<8x128xf32>
    %cst_77 = arith.constant 1.000000e+00 : f32
    %142 = vector.broadcast %cst_77 : f32 to vector<8x128xf32>
    %143 = arith.addf %141, %142 : vector<8x128xf32>
    %cst_78 = arith.constant 5.000000e-01 : f32
    %144 = vector.broadcast %cst_78 : f32 to vector<8x128xf32>
    %145 = arith.mulf %144, %143 : vector<8x128xf32>
    %c0_79 = arith.constant 0 : index
    %c0_80 = arith.constant 0 : index
    %146 = vector.load %arg8[%c0_79, %c0_80] : memref<8x128xf32, #tpu.memory_space<vmem>>, vector<8x128xf32>
    %147 = arith.mulf %135, %146 : vector<8x128xf32>
    %148 = arith.mulf %127, %137 : vector<8x128xf32>
    %149 = arith.addf %147, %148 : vector<8x128xf32>
    %150 = math.tanh %149 : vector<8x128xf32>
    %151 = arith.mulf %145, %150 : vector<8x128xf32>
    %c0_81 = arith.constant 0 : index
    %c0_82 = arith.constant 0 : index
    %152 = vector.load %arg8[%c0_81, %c0_82] : memref<8x128xf32, #tpu.memory_space<vmem>>, vector<8x128xf32>
    tpu.vector_store %arg8[%c0_81, %c0_82], %149 {strides = array<i32>} : memref<8x128xf32, #tpu.memory_space<vmem>>, vector<8x128xf32>,
    %c0_83 = arith.constant 0 : index
    %c0_84 = arith.constant 0 : index
    %153 = vector.load %arg7[%c0_83, %c0_84] : memref<8x128xf32, #tpu.memory_space<vmem>>, vector<8x128xf32>
    tpu.vector_store %arg7[%c0_83, %c0_84], %151 {strides = array<i32>} : memref<8x128xf32, #tpu.memory_space<vmem>>, vector<8x128xf32>,
    %154 = arith.truncf %151 : vector<8x128xf32> to vector<8x128xbf16>
    %155 = arith.index_cast %c2_i32 : i32 to index
    %c0_85 = arith.constant 0 : index
    %c0_86 = arith.constant 0 : index
    %156 = vector.load %arg6[%155, %c0_85, %c0_86] : memref<8x8x128xbf16, #tpu.memory_space<vmem>>, vector<1x8x128xbf16>
    %157 = vector.shape_cast %156 : vector<1x8x128xbf16> to vector<8x128xbf16>
    %158 = vector.shape_cast %154 : vector<8x128xbf16> to vector<1x8x128xbf16>
    tpu.vector_store %arg6[%155, %c0_85, %c0_86], %158 {strides = array<i32>} : memref<8x8x128xbf16, #tpu.memory_space<vmem>>, vector<1x8x128xbf16>,
    %c3_i32 = arith.constant 3 : i32
    %159 = arith.index_cast %c3_i32 : i32 to index
    %c0_87 = arith.constant 0 : index
    %c0_88 = arith.constant 0 : index
    %160 = vector.load %arg2[%159, %c0_87, %c0_88] : memref<8x8x1024xbf16, #tpu.memory_space<vmem>>, vector<1x8x1024xbf16>
    %161 = vector.shape_cast %160 : vector<1x8x1024xbf16> to vector<8x1024xbf16>
    %c0_89 = arith.constant 0 : index
    %c0_90 = arith.constant 0 : index
    %162 = vector.load %arg7[%c0_89, %c0_90] : memref<8x128xf32, #tpu.memory_space<vmem>>, vector<8x128xf32>
    %163 = arith.truncf %162 : vector<8x128xf32> to vector<8x128xbf16>
    %c0_91 = arith.constant 0 : index
    %c0_92 = arith.constant 0 : index
    %164 = vector.load %arg3[%c0_91, %c0_92] : memref<1024x512xbf16, #tpu.memory_space<vmem>>, vector<1024x512xbf16>
    %cst_93 = arith.constant dense<0.000000e+00> : vector<8x512xf32>
    %165 = tpu.matmul %161, %164, %cst_93 {dimension_numbers = #tpu.dot_dimension_numbers<[1], [0], [0], [1], [0, 0, 1, 1], [], []>} : vector<8x1024xbf16>, vector<1024x512xbf16>, vector<8x512xf32> -> vector<8x512xf32>
    %c0_94 = arith.constant 0 : index
    %c0_95 = arith.constant 0 : index
    %166 = vector.load %arg4[%c0_94, %c0_95] : memref<128x512xbf16, #tpu.memory_space<vmem>>, vector<128x512xbf16>
    %cst_96 = arith.constant dense<0.000000e+00> : vector<8x512xf32>
    %167 = tpu.matmul %163, %166, %cst_96 {dimension_numbers = #tpu.dot_dimension_numbers<[1], [0], [0], [1], [0, 0, 1, 1], [], []>} : vector<8x128xbf16>, vector<128x512xbf16>, vector<8x512xf32> -> vector<8x512xf32>
    %168 = arith.addf %165, %167 : vector<8x512xf32>
    %c0_97 = arith.constant 0 : index
    %c0_98 = arith.constant 0 : index
    %169 = vector.load %arg5[%c0_97, %c0_98] : memref<1x512xf32, #tpu.memory_space<vmem>>, vector<1x512xf32>
    %170 = vector.broadcast %169 : vector<1x512xf32> to vector<8x512xf32>
    %171 = arith.addf %168, %170 : vector<8x512xf32>
    %172 = vector.extract_strided_slice %171 {offsets = [0, 0], sizes = [8, 128], strides = [1, 1]} : vector<8x512xf32> to vector<8x128xf32>
    %cst_99 = arith.constant 5.000000e-01 : f32
    %173 = vector.broadcast %cst_99 : f32 to vector<8x128xf32>
    %174 = arith.mulf %173, %172 : vector<8x128xf32>
    %175 = math.tanh %174 : vector<8x128xf32>
    %cst_100 = arith.constant 1.000000e+00 : f32
    %176 = vector.broadcast %cst_100 : f32 to vector<8x128xf32>
    %177 = arith.addf %175, %176 : vector<8x128xf32>
    %cst_101 = arith.constant 5.000000e-01 : f32
    %178 = vector.broadcast %cst_101 : f32 to vector<8x128xf32>
    %179 = arith.mulf %178, %177 : vector<8x128xf32>
    %180 = vector.extract_strided_slice %171 {offsets = [0, 128], sizes = [8, 128], strides = [1, 1]} : vector<8x512xf32> to vector<8x128xf32>
    %cst_102 = arith.constant 5.000000e-01 : f32
    %181 = vector.broadcast %cst_102 : f32 to vector<8x128xf32>
    %182 = arith.mulf %181, %180 : vector<8x128xf32>
    %183 = math.tanh %182 : vector<8x128xf32>
    %cst_103 = arith.constant 1.000000e+00 : f32
    %184 = vector.broadcast %cst_103 : f32 to vector<8x128xf32>
    %185 = arith.addf %183, %184 : vector<8x128xf32>
    %cst_104 = arith.constant 5.000000e-01 : f32
    %186 = vector.broadcast %cst_104 : f32 to vector<8x128xf32>
    %187 = arith.mulf %186, %185 : vector<8x128xf32>
    %188 = vector.extract_strided_slice %171 {offsets = [0, 256], sizes = [8, 128], strides = [1, 1]} : vector<8x512xf32> to vector<8x128xf32>
    %189 = math.tanh %188 : vector<8x128xf32>
    %190 = vector.extract_strided_slice %171 {offsets = [0, 384], sizes = [8, 128], strides = [1, 1]} : vector<8x512xf32> to vector<8x128xf32>
    %cst_105 = arith.constant 5.000000e-01 : f32
    %191 = vector.broadcast %cst_105 : f32 to vector<8x128xf32>
    %192 = arith.mulf %191, %190 : vector<8x128xf32>
    %193 = math.tanh %192 : vector<8x128xf32>
    %cst_106 = arith.constant 1.000000e+00 : f32
    %194 = vector.broadcast %cst_106 : f32 to vector<8x128xf32>
    %195 = arith.addf %193, %194 : vector<8x128xf32>
    %cst_107 = arith.constant 5.000000e-01 : f32
    %196 = vector.broadcast %cst_107 : f32 to vector<8x128xf32>
    %197 = arith.mulf %196, %195 : vector<8x128xf32>
    %c0_108 = arith.constant 0 : index
    %c0_109 = arith.constant 0 : index
    %198 = vector.load %arg8[%c0_108, %c0_109] : memref<8x128xf32, #tpu.memory_space<vmem>>, vector<8x128xf32>
    %199 = arith.mulf %187, %198 : vector<8x128xf32>
    %200 = arith.mulf %179, %189 : vector<8x128xf32>
    %201 = arith.addf %199, %200 : vector<8x128xf32>
    %202 = math.tanh %201 : vector<8x128xf32>
    %203 = arith.mulf %197, %202 : vector<8x128xf32>
    %c0_110 = arith.constant 0 : index
    %c0_111 = arith.constant 0 : index
    %204 = vector.load %arg8[%c0_110, %c0_111] : memref<8x128xf32, #tpu.memory_space<vmem>>, vector<8x128xf32>
    tpu.vector_store %arg8[%c0_110, %c0_111], %201 {strides = array<i32>} : memref<8x128xf32, #tpu.memory_space<vmem>>, vector<8x128xf32>,
    %c0_112 = arith.constant 0 : index
    %c0_113 = arith.constant 0 : index
    %205 = vector.load %arg7[%c0_112, %c0_113] : memref<8x128xf32, #tpu.memory_space<vmem>>, vector<8x128xf32>
    tpu.vector_store %arg7[%c0_112, %c0_113], %203 {strides = array<i32>} : memref<8x128xf32, #tpu.memory_space<vmem>>, vector<8x128xf32>,
    %206 = arith.truncf %203 : vector<8x128xf32> to vector<8x128xbf16>
    %207 = arith.index_cast %c3_i32 : i32 to index
    %c0_114 = arith.constant 0 : index
    %c0_115 = arith.constant 0 : index
    %208 = vector.load %arg6[%207, %c0_114, %c0_115] : memref<8x8x128xbf16, #tpu.memory_space<vmem>>, vector<1x8x128xbf16>
    %209 = vector.shape_cast %208 : vector<1x8x128xbf16> to vector<8x128xbf16>
    %210 = vector.shape_cast %206 : vector<8x128xbf16> to vector<1x8x128xbf16>
    tpu.vector_store %arg6[%207, %c0_114, %c0_115], %210 {strides = array<i32>} : memref<8x8x128xbf16, #tpu.memory_space<vmem>>, vector<1x8x128xbf16>,
    %c4_i32 = arith.constant 4 : i32
    %211 = arith.index_cast %c4_i32 : i32 to index
    %c0_116 = arith.constant 0 : index
    %c0_117 = arith.constant 0 : index
    %212 = vector.load %arg2[%211, %c0_116, %c0_117] : memref<8x8x1024xbf16, #tpu.memory_space<vmem>>, vector<1x8x1024xbf16>
    %213 = vector.shape_cast %212 : vector<1x8x1024xbf16> to vector<8x1024xbf16>
    %c0_118 = arith.constant 0 : index
    %c0_119 = arith.constant 0 : index
    %214 = vector.load %arg7[%c0_118, %c0_119] : memref<8x128xf32, #tpu.memory_space<vmem>>, vector<8x128xf32>
    %215 = arith.truncf %214 : vector<8x128xf32> to vector<8x128xbf16>
    %c0_120 = arith.constant 0 : index
    %c0_121 = arith.constant 0 : index
    %216 = vector.load %arg3[%c0_120, %c0_121] : memref<1024x512xbf16, #tpu.memory_space<vmem>>, vector<1024x512xbf16>
    %cst_122 = arith.constant dense<0.000000e+00> : vector<8x512xf32>
    %217 = tpu.matmul %213, %216, %cst_122 {dimension_numbers = #tpu.dot_dimension_numbers<[1], [0], [0], [1], [0, 0, 1, 1], [], []>} : vector<8x1024xbf16>, vector<1024x512xbf16>, vector<8x512xf32> -> vector<8x512xf32>
    %c0_123 = arith.constant 0 : index
    %c0_124 = arith.constant 0 : index
    %218 = vector.load %arg4[%c0_123, %c0_124] : memref<128x512xbf16, #tpu.memory_space<vmem>>, vector<128x512xbf16>
    %cst_125 = arith.constant dense<0.000000e+00> : vector<8x512xf32>
    %219 = tpu.matmul %215, %218, %cst_125 {dimension_numbers = #tpu.dot_dimension_numbers<[1], [0], [0], [1], [0, 0, 1, 1], [], []>} : vector<8x128xbf16>, vector<128x512xbf16>, vector<8x512xf32> -> vector<8x512xf32>
    %220 = arith.addf %217, %219 : vector<8x512xf32>
    %c0_126 = arith.constant 0 : index
    %c0_127 = arith.constant 0 : index
    %221 = vector.load %arg5[%c0_126, %c0_127] : memref<1x512xf32, #tpu.memory_space<vmem>>, vector<1x512xf32>
    %222 = vector.broadcast %221 : vector<1x512xf32> to vector<8x512xf32>
    %223 = arith.addf %220, %222 : vector<8x512xf32>
    %224 = vector.extract_strided_slice %223 {offsets = [0, 0], sizes = [8, 128], strides = [1, 1]} : vector<8x512xf32> to vector<8x128xf32>
    %cst_128 = arith.constant 5.000000e-01 : f32
    %225 = vector.broadcast %cst_128 : f32 to vector<8x128xf32>
    %226 = arith.mulf %225, %224 : vector<8x128xf32>
    %227 = math.tanh %226 : vector<8x128xf32>
    %cst_129 = arith.constant 1.000000e+00 : f32
    %228 = vector.broadcast %cst_129 : f32 to vector<8x128xf32>
    %229 = arith.addf %227, %228 : vector<8x128xf32>
    %cst_130 = arith.constant 5.000000e-01 : f32
    %230 = vector.broadcast %cst_130 : f32 to vector<8x128xf32>
    %231 = arith.mulf %230, %229 : vector<8x128xf32>
    %232 = vector.extract_strided_slice %223 {offsets = [0, 128], sizes = [8, 128], strides = [1, 1]} : vector<8x512xf32> to vector<8x128xf32>
    %cst_131 = arith.constant 5.000000e-01 : f32
    %233 = vector.broadcast %cst_131 : f32 to vector<8x128xf32>
    %234 = arith.mulf %233, %232 : vector<8x128xf32>
    %235 = math.tanh %234 : vector<8x128xf32>
    %cst_132 = arith.constant 1.000000e+00 : f32
    %236 = vector.broadcast %cst_132 : f32 to vector<8x128xf32>
    %237 = arith.addf %235, %236 : vector<8x128xf32>
    %cst_133 = arith.constant 5.000000e-01 : f32
    %238 = vector.broadcast %cst_133 : f32 to vector<8x128xf32>
    %239 = arith.mulf %238, %237 : vector<8x128xf32>
    %240 = vector.extract_strided_slice %223 {offsets = [0, 256], sizes = [8, 128], strides = [1, 1]} : vector<8x512xf32> to vector<8x128xf32>
    %241 = math.tanh %240 : vector<8x128xf32>
    %242 = vector.extract_strided_slice %223 {offsets = [0, 384], sizes = [8, 128], strides = [1, 1]} : vector<8x512xf32> to vector<8x128xf32>
    %cst_134 = arith.constant 5.000000e-01 : f32
    %243 = vector.broadcast %cst_134 : f32 to vector<8x128xf32>
    %244 = arith.mulf %243, %242 : vector<8x128xf32>
    %245 = math.tanh %244 : vector<8x128xf32>
    %cst_135 = arith.constant 1.000000e+00 : f32
    %246 = vector.broadcast %cst_135 : f32 to vector<8x128xf32>
    %247 = arith.addf %245, %246 : vector<8x128xf32>
    %cst_136 = arith.constant 5.000000e-01 : f32
    %248 = vector.broadcast %cst_136 : f32 to vector<8x128xf32>
    %249 = arith.mulf %248, %247 : vector<8x128xf32>
    %c0_137 = arith.constant 0 : index
    %c0_138 = arith.constant 0 : index
    %250 = vector.load %arg8[%c0_137, %c0_138] : memref<8x128xf32, #tpu.memory_space<vmem>>, vector<8x128xf32>
    %251 = arith.mulf %239, %250 : vector<8x128xf32>
    %252 = arith.mulf %231, %241 : vector<8x128xf32>
    %253 = arith.addf %251, %252 : vector<8x128xf32>
    %254 = math.tanh %253 : vector<8x128xf32>
    %255 = arith.mulf %249, %254 : vector<8x128xf32>
    %c0_139 = arith.constant 0 : index
    %c0_140 = arith.constant 0 : index
    %256 = vector.load %arg8[%c0_139, %c0_140] : memref<8x128xf32, #tpu.memory_space<vmem>>, vector<8x128xf32>
    tpu.vector_store %arg8[%c0_139, %c0_140], %253 {strides = array<i32>} : memref<8x128xf32, #tpu.memory_space<vmem>>, vector<8x128xf32>,
    %c0_141 = arith.constant 0 : index
    %c0_142 = arith.constant 0 : index
    %257 = vector.load %arg7[%c0_141, %c0_142] : memref<8x128xf32, #tpu.memory_space<vmem>>, vector<8x128xf32>
    tpu.vector_store %arg7[%c0_141, %c0_142], %255 {strides = array<i32>} : memref<8x128xf32, #tpu.memory_space<vmem>>, vector<8x128xf32>,
    %258 = arith.truncf %255 : vector<8x128xf32> to vector<8x128xbf16>
    %259 = arith.index_cast %c4_i32 : i32 to index
    %c0_143 = arith.constant 0 : index
    %c0_144 = arith.constant 0 : index
    %260 = vector.load %arg6[%259, %c0_143, %c0_144] : memref<8x8x128xbf16, #tpu.memory_space<vmem>>, vector<1x8x128xbf16>
    %261 = vector.shape_cast %260 : vector<1x8x128xbf16> to vector<8x128xbf16>
    %262 = vector.shape_cast %258 : vector<8x128xbf16> to vector<1x8x128xbf16>
    tpu.vector_store %arg6[%259, %c0_143, %c0_144], %262 {strides = array<i32>} : memref<8x8x128xbf16, #tpu.memory_space<vmem>>, vector<1x8x128xbf16>,
    %c5_i32 = arith.constant 5 : i32
    %263 = arith.index_cast %c5_i32 : i32 to index
    %c0_145 = arith.constant 0 : index
    %c0_146 = arith.constant 0 : index
    %264 = vector.load %arg2[%263, %c0_145, %c0_146] : memref<8x8x1024xbf16, #tpu.memory_space<vmem>>, vector<1x8x1024xbf16>
    %265 = vector.shape_cast %264 : vector<1x8x1024xbf16> to vector<8x1024xbf16>
    %c0_147 = arith.constant 0 : index
    %c0_148 = arith.constant 0 : index
    %266 = vector.load %arg7[%c0_147, %c0_148] : memref<8x128xf32, #tpu.memory_space<vmem>>, vector<8x128xf32>
    %267 = arith.truncf %266 : vector<8x128xf32> to vector<8x128xbf16>
    %c0_149 = arith.constant 0 : index
    %c0_150 = arith.constant 0 : index
    %268 = vector.load %arg3[%c0_149, %c0_150] : memref<1024x512xbf16, #tpu.memory_space<vmem>>, vector<1024x512xbf16>
    %cst_151 = arith.constant dense<0.000000e+00> : vector<8x512xf32>
    %269 = tpu.matmul %265, %268, %cst_151 {dimension_numbers = #tpu.dot_dimension_numbers<[1], [0], [0], [1], [0, 0, 1, 1], [], []>} : vector<8x1024xbf16>, vector<1024x512xbf16>, vector<8x512xf32> -> vector<8x512xf32>
    %c0_152 = arith.constant 0 : index
    %c0_153 = arith.constant 0 : index
    %270 = vector.load %arg4[%c0_152, %c0_153] : memref<128x512xbf16, #tpu.memory_space<vmem>>, vector<128x512xbf16>
    %cst_154 = arith.constant dense<0.000000e+00> : vector<8x512xf32>
    %271 = tpu.matmul %267, %270, %cst_154 {dimension_numbers = #tpu.dot_dimension_numbers<[1], [0], [0], [1], [0, 0, 1, 1], [], []>} : vector<8x128xbf16>, vector<128x512xbf16>, vector<8x512xf32> -> vector<8x512xf32>
    %272 = arith.addf %269, %271 : vector<8x512xf32>
    %c0_155 = arith.constant 0 : index
    %c0_156 = arith.constant 0 : index
    %273 = vector.load %arg5[%c0_155, %c0_156] : memref<1x512xf32, #tpu.memory_space<vmem>>, vector<1x512xf32>
    %274 = vector.broadcast %273 : vector<1x512xf32> to vector<8x512xf32>
    %275 = arith.addf %272, %274 : vector<8x512xf32>
    %276 = vector.extract_strided_slice %275 {offsets = [0, 0], sizes = [8, 128], strides = [1, 1]} : vector<8x512xf32> to vector<8x128xf32>
    %cst_157 = arith.constant 5.000000e-01 : f32
    %277 = vector.broadcast %cst_157 : f32 to vector<8x128xf32>
    %278 = arith.mulf %277, %276 : vector<8x128xf32>
    %279 = math.tanh %278 : vector<8x128xf32>
    %cst_158 = arith.constant 1.000000e+00 : f32
    %280 = vector.broadcast %cst_158 : f32 to vector<8x128xf32>
    %281 = arith.addf %279, %280 : vector<8x128xf32>
    %cst_159 = arith.constant 5.000000e-01 : f32
    %282 = vector.broadcast %cst_159 : f32 to vector<8x128xf32>
    %283 = arith.mulf %282, %281 : vector<8x128xf32>
    %284 = vector.extract_strided_slice %275 {offsets = [0, 128], sizes = [8, 128], strides = [1, 1]} : vector<8x512xf32> to vector<8x128xf32>
    %cst_160 = arith.constant 5.000000e-01 : f32
    %285 = vector.broadcast %cst_160 : f32 to vector<8x128xf32>
    %286 = arith.mulf %285, %284 : vector<8x128xf32>
    %287 = math.tanh %286 : vector<8x128xf32>
    %cst_161 = arith.constant 1.000000e+00 : f32
    %288 = vector.broadcast %cst_161 : f32 to vector<8x128xf32>
    %289 = arith.addf %287, %288 : vector<8x128xf32>
    %cst_162 = arith.constant 5.000000e-01 : f32
    %290 = vector.broadcast %cst_162 : f32 to vector<8x128xf32>
    %291 = arith.mulf %290, %289 : vector<8x128xf32>
    %292 = vector.extract_strided_slice %275 {offsets = [0, 256], sizes = [8, 128], strides = [1, 1]} : vector<8x512xf32> to vector<8x128xf32>
    %293 = math.tanh %292 : vector<8x128xf32>
    %294 = vector.extract_strided_slice %275 {offsets = [0, 384], sizes = [8, 128], strides = [1, 1]} : vector<8x512xf32> to vector<8x128xf32>
    %cst_163 = arith.constant 5.000000e-01 : f32
    %295 = vector.broadcast %cst_163 : f32 to vector<8x128xf32>
    %296 = arith.mulf %295, %294 : vector<8x128xf32>
    %297 = math.tanh %296 : vector<8x128xf32>
    %cst_164 = arith.constant 1.000000e+00 : f32
    %298 = vector.broadcast %cst_164 : f32 to vector<8x128xf32>
    %299 = arith.addf %297, %298 : vector<8x128xf32>
    %cst_165 = arith.constant 5.000000e-01 : f32
    %300 = vector.broadcast %cst_165 : f32 to vector<8x128xf32>
    %301 = arith.mulf %300, %299 : vector<8x128xf32>
    %c0_166 = arith.constant 0 : index
    %c0_167 = arith.constant 0 : index
    %302 = vector.load %arg8[%c0_166, %c0_167] : memref<8x128xf32, #tpu.memory_space<vmem>>, vector<8x128xf32>
    %303 = arith.mulf %291, %302 : vector<8x128xf32>
    %304 = arith.mulf %283, %293 : vector<8x128xf32>
    %305 = arith.addf %303, %304 : vector<8x128xf32>
    %306 = math.tanh %305 : vector<8x128xf32>
    %307 = arith.mulf %301, %306 : vector<8x128xf32>
    %c0_168 = arith.constant 0 : index
    %c0_169 = arith.constant 0 : index
    %308 = vector.load %arg8[%c0_168, %c0_169] : memref<8x128xf32, #tpu.memory_space<vmem>>, vector<8x128xf32>
    tpu.vector_store %arg8[%c0_168, %c0_169], %305 {strides = array<i32>} : memref<8x128xf32, #tpu.memory_space<vmem>>, vector<8x128xf32>,
    %c0_170 = arith.constant 0 : index
    %c0_171 = arith.constant 0 : index
    %309 = vector.load %arg7[%c0_170, %c0_171] : memref<8x128xf32, #tpu.memory_space<vmem>>, vector<8x128xf32>
    tpu.vector_store %arg7[%c0_170, %c0_171], %307 {strides = array<i32>} : memref<8x128xf32, #tpu.memory_space<vmem>>, vector<8x128xf32>,
    %310 = arith.truncf %307 : vector<8x128xf32> to vector<8x128xbf16>
    %311 = arith.index_cast %c5_i32 : i32 to index
    %c0_172 = arith.constant 0 : index
    %c0_173 = arith.constant 0 : index
    %312 = vector.load %arg6[%311, %c0_172, %c0_173] : memref<8x8x128xbf16, #tpu.memory_space<vmem>>, vector<1x8x128xbf16>
    %313 = vector.shape_cast %312 : vector<1x8x128xbf16> to vector<8x128xbf16>
    %314 = vector.shape_cast %310 : vector<8x128xbf16> to vector<1x8x128xbf16>
    tpu.vector_store %arg6[%311, %c0_172, %c0_173], %314 {strides = array<i32>} : memref<8x8x128xbf16, #tpu.memory_space<vmem>>, vector<1x8x128xbf16>,
    %c6_i32 = arith.constant 6 : i32
    %315 = arith.index_cast %c6_i32 : i32 to index
    %c0_174 = arith.constant 0 : index
    %c0_175 = arith.constant 0 : index
    %316 = vector.load %arg2[%315, %c0_174, %c0_175] : memref<8x8x1024xbf16, #tpu.memory_space<vmem>>, vector<1x8x1024xbf16>
    %317 = vector.shape_cast %316 : vector<1x8x1024xbf16> to vector<8x1024xbf16>
    %c0_176 = arith.constant 0 : index
    %c0_177 = arith.constant 0 : index
    %318 = vector.load %arg7[%c0_176, %c0_177] : memref<8x128xf32, #tpu.memory_space<vmem>>, vector<8x128xf32>
    %319 = arith.truncf %318 : vector<8x128xf32> to vector<8x128xbf16>
    %c0_178 = arith.constant 0 : index
    %c0_179 = arith.constant 0 : index
    %320 = vector.load %arg3[%c0_178, %c0_179] : memref<1024x512xbf16, #tpu.memory_space<vmem>>, vector<1024x512xbf16>
    %cst_180 = arith.constant dense<0.000000e+00> : vector<8x512xf32>
    %321 = tpu.matmul %317, %320, %cst_180 {dimension_numbers = #tpu.dot_dimension_numbers<[1], [0], [0], [1], [0, 0, 1, 1], [], []>} : vector<8x1024xbf16>, vector<1024x512xbf16>, vector<8x512xf32> -> vector<8x512xf32>
    %c0_181 = arith.constant 0 : index
    %c0_182 = arith.constant 0 : index
    %322 = vector.load %arg4[%c0_181, %c0_182] : memref<128x512xbf16, #tpu.memory_space<vmem>>, vector<128x512xbf16>
    %cst_183 = arith.constant dense<0.000000e+00> : vector<8x512xf32>
    %323 = tpu.matmul %319, %322, %cst_183 {dimension_numbers = #tpu.dot_dimension_numbers<[1], [0], [0], [1], [0, 0, 1, 1], [], []>} : vector<8x128xbf16>, vector<128x512xbf16>, vector<8x512xf32> -> vector<8x512xf32>
    %324 = arith.addf %321, %323 : vector<8x512xf32>
    %c0_184 = arith.constant 0 : index
    %c0_185 = arith.constant 0 : index
    %325 = vector.load %arg5[%c0_184, %c0_185] : memref<1x512xf32, #tpu.memory_space<vmem>>, vector<1x512xf32>
    %326 = vector.broadcast %325 : vector<1x512xf32> to vector<8x512xf32>
    %327 = arith.addf %324, %326 : vector<8x512xf32>
    %328 = vector.extract_strided_slice %327 {offsets = [0, 0], sizes = [8, 128], strides = [1, 1]} : vector<8x512xf32> to vector<8x128xf32>
    %cst_186 = arith.constant 5.000000e-01 : f32
    %329 = vector.broadcast %cst_186 : f32 to vector<8x128xf32>
    %330 = arith.mulf %329, %328 : vector<8x128xf32>
    %331 = math.tanh %330 : vector<8x128xf32>
    %cst_187 = arith.constant 1.000000e+00 : f32
    %332 = vector.broadcast %cst_187 : f32 to vector<8x128xf32>
    %333 = arith.addf %331, %332 : vector<8x128xf32>
    %cst_188 = arith.constant 5.000000e-01 : f32
    %334 = vector.broadcast %cst_188 : f32 to vector<8x128xf32>
    %335 = arith.mulf %334, %333 : vector<8x128xf32>
    %336 = vector.extract_strided_slice %327 {offsets = [0, 128], sizes = [8, 128], strides = [1, 1]} : vector<8x512xf32> to vector<8x128xf32>
    %cst_189 = arith.constant 5.000000e-01 : f32
    %337 = vector.broadcast %cst_189 : f32 to vector<8x128xf32>
    %338 = arith.mulf %337, %336 : vector<8x128xf32>
    %339 = math.tanh %338 : vector<8x128xf32>
    %cst_190 = arith.constant 1.000000e+00 : f32
    %340 = vector.broadcast %cst_190 : f32 to vector<8x128xf32>
    %341 = arith.addf %339, %340 : vector<8x128xf32>
    %cst_191 = arith.constant 5.000000e-01 : f32
    %342 = vector.broadcast %cst_191 : f32 to vector<8x128xf32>
    %343 = arith.mulf %342, %341 : vector<8x128xf32>
    %344 = vector.extract_strided_slice %327 {offsets = [0, 256], sizes = [8, 128], strides = [1, 1]} : vector<8x512xf32> to vector<8x128xf32>
    %345 = math.tanh %344 : vector<8x128xf32>
    %346 = vector.extract_strided_slice %327 {offsets = [0, 384], sizes = [8, 128], strides = [1, 1]} : vector<8x512xf32> to vector<8x128xf32>
    %cst_192 = arith.constant 5.000000e-01 : f32
    %347 = vector.broadcast %cst_192 : f32 to vector<8x128xf32>
    %348 = arith.mulf %347, %346 : vector<8x128xf32>
    %349 = math.tanh %348 : vector<8x128xf32>
    %cst_193 = arith.constant 1.000000e+00 : f32
    %350 = vector.broadcast %cst_193 : f32 to vector<8x128xf32>
    %351 = arith.addf %349, %350 : vector<8x128xf32>
    %cst_194 = arith.constant 5.000000e-01 : f32
    %352 = vector.broadcast %cst_194 : f32 to vector<8x128xf32>
    %353 = arith.mulf %352, %351 : vector<8x128xf32>
    %c0_195 = arith.constant 0 : index
    %c0_196 = arith.constant 0 : index
    %354 = vector.load %arg8[%c0_195, %c0_196] : memref<8x128xf32, #tpu.memory_space<vmem>>, vector<8x128xf32>
    %355 = arith.mulf %343, %354 : vector<8x128xf32>
    %356 = arith.mulf %335, %345 : vector<8x128xf32>
    %357 = arith.addf %355, %356 : vector<8x128xf32>
    %358 = math.tanh %357 : vector<8x128xf32>
    %359 = arith.mulf %353, %358 : vector<8x128xf32>
    %c0_197 = arith.constant 0 : index
    %c0_198 = arith.constant 0 : index
    %360 = vector.load %arg8[%c0_197, %c0_198] : memref<8x128xf32, #tpu.memory_space<vmem>>, vector<8x128xf32>
    tpu.vector_store %arg8[%c0_197, %c0_198], %357 {strides = array<i32>} : memref<8x128xf32, #tpu.memory_space<vmem>>, vector<8x128xf32>,
    %c0_199 = arith.constant 0 : index
    %c0_200 = arith.constant 0 : index
    %361 = vector.load %arg7[%c0_199, %c0_200] : memref<8x128xf32, #tpu.memory_space<vmem>>, vector<8x128xf32>
    tpu.vector_store %arg7[%c0_199, %c0_200], %359 {strides = array<i32>} : memref<8x128xf32, #tpu.memory_space<vmem>>, vector<8x128xf32>,
    %362 = arith.truncf %359 : vector<8x128xf32> to vector<8x128xbf16>
    %363 = arith.index_cast %c6_i32 : i32 to index
    %c0_201 = arith.constant 0 : index
    %c0_202 = arith.constant 0 : index
    %364 = vector.load %arg6[%363, %c0_201, %c0_202] : memref<8x8x128xbf16, #tpu.memory_space<vmem>>, vector<1x8x128xbf16>
    %365 = vector.shape_cast %364 : vector<1x8x128xbf16> to vector<8x128xbf16>
    %366 = vector.shape_cast %362 : vector<8x128xbf16> to vector<1x8x128xbf16>
    tpu.vector_store %arg6[%363, %c0_201, %c0_202], %366 {strides = array<i32>} : memref<8x8x128xbf16, #tpu.memory_space<vmem>>, vector<1x8x128xbf16>,
    %c7_i32 = arith.constant 7 : i32
    %367 = arith.index_cast %c7_i32 : i32 to index
    %c0_203 = arith.constant 0 : index
    %c0_204 = arith.constant 0 : index
    %368 = vector.load %arg2[%367, %c0_203, %c0_204] : memref<8x8x1024xbf16, #tpu.memory_space<vmem>>, vector<1x8x1024xbf16>
    %369 = vector.shape_cast %368 : vector<1x8x1024xbf16> to vector<8x1024xbf16>
    %c0_205 = arith.constant 0 : index
    %c0_206 = arith.constant 0 : index
    %370 = vector.load %arg7[%c0_205, %c0_206] : memref<8x128xf32, #tpu.memory_space<vmem>>, vector<8x128xf32>
    %371 = arith.truncf %370 : vector<8x128xf32> to vector<8x128xbf16>
    %c0_207 = arith.constant 0 : index
    %c0_208 = arith.constant 0 : index
    %372 = vector.load %arg3[%c0_207, %c0_208] : memref<1024x512xbf16, #tpu.memory_space<vmem>>, vector<1024x512xbf16>
    %cst_209 = arith.constant dense<0.000000e+00> : vector<8x512xf32>
    %373 = tpu.matmul %369, %372, %cst_209 {dimension_numbers = #tpu.dot_dimension_numbers<[1], [0], [0], [1], [0, 0, 1, 1], [], []>} : vector<8x1024xbf16>, vector<1024x512xbf16>, vector<8x512xf32> -> vector<8x512xf32>
    %c0_210 = arith.constant 0 : index
    %c0_211 = arith.constant 0 : index
    %374 = vector.load %arg4[%c0_210, %c0_211] : memref<128x512xbf16, #tpu.memory_space<vmem>>, vector<128x512xbf16>
    %cst_212 = arith.constant dense<0.000000e+00> : vector<8x512xf32>
    %375 = tpu.matmul %371, %374, %cst_212 {dimension_numbers = #tpu.dot_dimension_numbers<[1], [0], [0], [1], [0, 0, 1, 1], [], []>} : vector<8x128xbf16>, vector<128x512xbf16>, vector<8x512xf32> -> vector<8x512xf32>
    %376 = arith.addf %373, %375 : vector<8x512xf32>
    %c0_213 = arith.constant 0 : index
    %c0_214 = arith.constant 0 : index
    %377 = vector.load %arg5[%c0_213, %c0_214] : memref<1x512xf32, #tpu.memory_space<vmem>>, vector<1x512xf32>
    %378 = vector.broadcast %377 : vector<1x512xf32> to vector<8x512xf32>
    %379 = arith.addf %376, %378 : vector<8x512xf32>
    %380 = vector.extract_strided_slice %379 {offsets = [0, 0], sizes = [8, 128], strides = [1, 1]} : vector<8x512xf32> to vector<8x128xf32>
    %cst_215 = arith.constant 5.000000e-01 : f32
    %381 = vector.broadcast %cst_215 : f32 to vector<8x128xf32>
    %382 = arith.mulf %381, %380 : vector<8x128xf32>
    %383 = math.tanh %382 : vector<8x128xf32>
    %cst_216 = arith.constant 1.000000e+00 : f32
    %384 = vector.broadcast %cst_216 : f32 to vector<8x128xf32>
    %385 = arith.addf %383, %384 : vector<8x128xf32>
    %cst_217 = arith.constant 5.000000e-01 : f32
    %386 = vector.broadcast %cst_217 : f32 to vector<8x128xf32>
    %387 = arith.mulf %386, %385 : vector<8x128xf32>
    %388 = vector.extract_strided_slice %379 {offsets = [0, 128], sizes = [8, 128], strides = [1, 1]} : vector<8x512xf32> to vector<8x128xf32>
    %cst_218 = arith.constant 5.000000e-01 : f32
    %389 = vector.broadcast %cst_218 : f32 to vector<8x128xf32>
    %390 = arith.mulf %389, %388 : vector<8x128xf32>
    %391 = math.tanh %390 : vector<8x128xf32>
    %cst_219 = arith.constant 1.000000e+00 : f32
    %392 = vector.broadcast %cst_219 : f32 to vector<8x128xf32>
    %393 = arith.addf %391, %392 : vector<8x128xf32>
    %cst_220 = arith.constant 5.000000e-01 : f32
    %394 = vector.broadcast %cst_220 : f32 to vector<8x128xf32>
    %395 = arith.mulf %394, %393 : vector<8x128xf32>
    %396 = vector.extract_strided_slice %379 {offsets = [0, 256], sizes = [8, 128], strides = [1, 1]} : vector<8x512xf32> to vector<8x128xf32>
    %397 = math.tanh %396 : vector<8x128xf32>
    %398 = vector.extract_strided_slice %379 {offsets = [0, 384], sizes = [8, 128], strides = [1, 1]} : vector<8x512xf32> to vector<8x128xf32>
    %cst_221 = arith.constant 5.000000e-01 : f32
    %399 = vector.broadcast %cst_221 : f32 to vector<8x128xf32>
    %400 = arith.mulf %399, %398 : vector<8x128xf32>
    %401 = math.tanh %400 : vector<8x128xf32>
    %cst_222 = arith.constant 1.000000e+00 : f32
    %402 = vector.broadcast %cst_222 : f32 to vector<8x128xf32>
    %403 = arith.addf %401, %402 : vector<8x128xf32>
    %cst_223 = arith.constant 5.000000e-01 : f32
    %404 = vector.broadcast %cst_223 : f32 to vector<8x128xf32>
    %405 = arith.mulf %404, %403 : vector<8x128xf32>
    %c0_224 = arith.constant 0 : index
    %c0_225 = arith.constant 0 : index
    %406 = vector.load %arg8[%c0_224, %c0_225] : memref<8x128xf32, #tpu.memory_space<vmem>>, vector<8x128xf32>
    %407 = arith.mulf %395, %406 : vector<8x128xf32>
    %408 = arith.mulf %387, %397 : vector<8x128xf32>
    %409 = arith.addf %407, %408 : vector<8x128xf32>
    %410 = math.tanh %409 : vector<8x128xf32>
    %411 = arith.mulf %405, %410 : vector<8x128xf32>
    %c0_226 = arith.constant 0 : index
    %c0_227 = arith.constant 0 : index
    %412 = vector.load %arg8[%c0_226, %c0_227] : memref<8x128xf32, #tpu.memory_space<vmem>>, vector<8x128xf32>
    tpu.vector_store %arg8[%c0_226, %c0_227], %409 {strides = array<i32>} : memref<8x128xf32, #tpu.memory_space<vmem>>, vector<8x128xf32>,
    %c0_228 = arith.constant 0 : index
    %c0_229 = arith.constant 0 : index
    %413 = vector.load %arg7[%c0_228, %c0_229] : memref<8x128xf32, #tpu.memory_space<vmem>>, vector<8x128xf32>
    tpu.vector_store %arg7[%c0_228, %c0_229], %411 {strides = array<i32>} : memref<8x128xf32, #tpu.memory_space<vmem>>, vector<8x128xf32>,
    %414 = arith.truncf %411 : vector<8x128xf32> to vector<8x128xbf16>
    %415 = arith.index_cast %c7_i32 : i32 to index
    %c0_230 = arith.constant 0 : index
    %c0_231 = arith.constant 0 : index
    %416 = vector.load %arg6[%415, %c0_230, %c0_231] : memref<8x8x128xbf16, #tpu.memory_space<vmem>>, vector<1x8x128xbf16>
    %417 = vector.shape_cast %416 : vector<1x8x128xbf16> to vector<8x128xbf16>
    %418 = vector.shape_cast %414 : vector<8x128xbf16> to vector<1x8x128xbf16>
    tpu.vector_store %arg6[%415, %c0_230, %c0_231], %418 {strides = array<i32>} : memref<8x8x128xbf16, #tpu.memory_space<vmem>>, vector<1x8x128xbf16>,
    %c8_i32 = arith.constant 8 : i32
    return
  }
  func.func @transform_0(%arg0: i32, %arg1: i32) -> (i32, i32, i32) {
    %c0_i32 = arith.constant 0 : i32
    %c0_i32_0 = arith.constant 0 : i32
    return %arg1, %arg0, %c0_i32 : i32, i32, i32
  }
  func.func @transform_1(%arg0: i32, %arg1: i32) -> (i32, i32) {
    %c0_i32 = arith.constant 0 : i32
    %c0_i32_0 = arith.constant 0 : i32
    %c0_i32_1 = arith.constant 0 : i32
    return %c0_i32, %c0_i32_0 : i32, i32
  }
  func.func @transform_2(%arg0: i32, %arg1: i32) -> (i32, i32) {
    %c0_i32 = arith.constant 0 : i32
    %c0_i32_0 = arith.constant 0 : i32
    %c0_i32_1 = arith.constant 0 : i32
    return %c0_i32, %c0_i32_0 : i32, i32
  }
  func.func @transform_3(%arg0: i32, %arg1: i32) -> (i32, i32) {
    %c0_i32 = arith.constant 0 : i32
    %c0_i32_0 = arith.constant 0 : i32
    %c0_i32_1 = arith.constant 0 : i32
    return %c0_i32, %c0_i32_0 : i32, i32
  }
  func.func @transform_4(%arg0: i32, %arg1: i32) -> (i32, i32, i32) {
    %c0_i32 = arith.constant 0 : i32
    %c0_i32_0 = arith.constant 0 : i32
    return %arg1, %arg0, %c0_i32 : i32, i32, i32
  }
}

</mosaic_0001>

<bundles_post_ra>
// kernel: tpu_custom_call.1
= control target key start
LH: loop header
LB: loop body
LE: loop exit
PB: predicated region body
PF: predicated region fallthrough
CT: control target
= control target key end

     0   :  { %9 = vsyncpa [#allocation5], 0  ;;  %s25472_s0 = inlined_call_operand.hbm [shape: bf16[16,8,1024], index: 0, kind: input, shape index: {}]   ;;  %s25473_s1 = inlined_call_operand.hbm [shape: bf16[1024,512], index: 1, kind: input, shape index: {}]   ;;  %s25474_s2 = inlined_call_operand.hbm [shape: bf16[128,512], index: 2, kind: input, shape index: {}]   ;;  %s25475_s3 = inlined_call_operand.vmem [shape: f32[1,512], index: 3, kind: input, shape index: {}]   ;;  %s25476_s4 = inlined_call_operand.hbm [shape: bf16[16,8,128], index: 4, kind: output, shape index: {}]  }
   0x1   :  { %11 = vsyncpa [#allocation5 + $0x1], 0 }
   0x2   :  { %12 = vsyncpa [#allocation8], 0 }
   0x3   :  { %13 = vsyncpa [#allocation6], 0 }
   0x4   :  { %15 = vsyncpa [#allocation6 + $0x1], 0  ;;  %s24504_s15 = smov 0   ;;  %s24506_s16 = smov 0  }
   0x5   :  { %s24508_s17 = smov 0   ;;  %s24510_s18 = smov 0  }
   0x6   :  { %s24512_s19 = smov 0   ;;  %s24514_s20 = smov 0  }
   0x7 LB: > { %s18175_s21 = sadd.s32 4294967295, %s24465_s20   ;;  %s18176_s22 = sadd.s32 4294967294, %s24465_s20   ;;  %s24465_s20 = sphi %s24514_s20, %s21_s20   ;;  %s24461_s19 = sphi %s24512_s19, %s25498_s19   ;;  %s24457_s18 = sphi %s24510_s18, %s25497_s18   ;;  %s24453_s17 = sphi %s24508_s17, %s25496_s17   ;;  %s24449_s16 = sphi %s24506_s16, %s25495_s16   ;;  %s24445_s15 = sphi %s24504_s15, %s25494_s15  }
   0x8   : > { %p55_p0 = scmp.ne.s32.totalorder %s24449_s16, %s24445_s15  ;;  %p24538_p1 = scmp.eq.s32.totalorder %s18175_s21, 0 }
   0x9   : > { %p24542_p2 = scmp.eq.s32.totalorder %s18175_s21, 1  ;;  %p150_p3 = scmp.eq.s32.totalorder %s18176_s22, 1 }
   0xa   : > { %s25481_s23 = scalar_select %p24538_p1, 1, 0 }
   0xb   : > { %p24548_p4 = por %p24538_p1, %p55_p0  ;;  %p18177_p5 = scmp.ge.s32.totalorder %s24465_s20, 1 }
   0xc   : > { %p24553_p6 = por %p150_p3, %p55_p0  ;;  %p157_p7 = scmp.lt.s32.totalorder %s24465_s20, 3 }
   0xd   : > { %s25483_s25 = scalar_select %p24548_p4, 1, 0 }
   0xe   : > { %s25484_s26 = scalar_select %p24553_p6, 1, 0 }
   0xf   : > { %p24558_p8 = pnand %p18177_p5, %p157_p7  ;;  %s24467_s28 = smov [#allocation7]  }
  0x10   : > { %s169_s29 = sshll.u32 %s24467_s28, 4  ;;  %s24468_s5 = smov [#allocation9]   ;;  %s24562_s29 = int_to_ptr.vmem [resolvable:$true] %s169_s29 }
  0x11   : > { %p20614_p9 = pneg %p24558_p8  ;;  %s182_s6 = sshll.u32 %s24468_s5, 4  ;;  %s24573_s6 = int_to_ptr.vmem [resolvable:$true] %s182_s6 }
  0x12   : > { %s24293_s9 = scalar_lea.hbm %s25473_s1, 32768 }
  0x13   : > { %p24569_p11 = pnand %p20614_p9, %p24538_p1  ;;  %p24294_p12 = scmp.ne.s32.totalorder %s25473_s1, %s24293_s9 }
  0x14   : > { %p24300_p5 = scmp.lt.u32.totalorder %s24293_s9, %s25473_s1 }
  0x15   : > { %p24295_p13 = pneg %p24569_p11 }
  0x17   : > { %p24296_p0 = pnand %p24295_p13, %p24294_p12 }
  0x19   : > { %p24297_p3 = pneg %p24296_p0 }
  0x1b   : > { %p24302_p7 = pnand %p24300_p5, %p24297_p3 }
  0x1d   : > { %24305 = shalt.err (!%p24302_p7)
}
  0x1e   : > { %s24306_s14 = scalar_lea.vmem %s24562_s29, 32768  ;;  %p24314_p1 = scmp.lt.s32.totalorder %s24562_s29, %s24562_s29 }
  0x1f   : > { %p24307_p9 = scmp.ne.s32.totalorder %s24562_s29, %s24306_s14  ;;  %p24315_p12 = scmp.lt.s32.totalorder %s24306_s14, %s24306_s14 }
  0x21   : > { %p24309_p10 = pnand %p24307_p9, %p24295_p13  ;;  %p24316_p0 = por %p24315_p12, %p24314_p1 }
  0x23   : > { %p24310_p6 = pneg %p24309_p10 }
  0x25   : > { %p24317_p4 = pnand %p24316_p0, %p24310_p6 }
  0x27   : > { %24320 = shalt.err (!%p24317_p4)
}
  0x28   : > { %s24469_s21 = smov 256   ;;  %s24470_s22 = smov 16  }
  0x29   : > { %20617 = dma.hbm_to_vmem [thread:$0]  (!%p24569_p11), %s25473_s1, 32768, %s24562_s29, [#allocation8], %s24469_s21, %s24469_s21, %s24470_s22  }
  0x2a   : > { %s24321_s9 = scalar_lea.hbm %s25474_s2, 4096 }
  0x2b   : > { %p24322_p1 = scmp.ne.s32.totalorder %s25474_s2, %s24321_s9  ;;  %p24328_p10 = scmp.lt.u32.totalorder %s24321_s9, %s25474_s2 }
  0x2d   : > { %p24324_p4 = pnand %p24322_p1, %p24295_p13 }
  0x2f   : > { %p24325_p6 = pneg %p24324_p4 }
  0x31   : > { %p24330_p3 = pnand %p24328_p10, %p24325_p6 }
  0x33   : > { %24333 = shalt.err (!%p24330_p3)
}
  0x34   : > { %s24334_s29 = scalar_lea.vmem %s24573_s6, 4096  ;;  %p24342_p12 = scmp.lt.s32.totalorder %s24573_s6, %s24573_s6 }
  0x35   : > { %p24335_p5 = scmp.ne.s32.totalorder %s24573_s6, %s24334_s29  ;;  %p24343_p0 = scmp.lt.s32.totalorder %s24334_s29, %s24334_s29 }
  0x37   : > { %p24337_p7 = pnand %p24335_p5, %p24295_p13  ;;  %p24344_p1 = por %p24343_p0, %p24342_p12 }
  0x39   : > { %p24338_p9 = pneg %p24337_p7 }
  0x3b   : > { %p24345_p4 = pnand %p24344_p1, %p24338_p9 }
  0x3d   : > { %24348 = shalt.err (!%p24345_p4)
}
  0x3e   : > { %20620 = dma.hbm_to_vmem [thread:$0]  (!%p24569_p11), %s25474_s2, 4096, %s24573_s6, [#allocation8], %s24469_s21, %s24469_s21, %s24470_s22  }
  0x3f   : > { %s30_s5 = sadd.s32 1, %s24461_s19  ;;  %s42_s7 = sadd.s32 1, %s24453_s17 }
  0x40   : > { %p31_p13 = scmp.ge.s32.totalorder %s30_s5, 2  ;;  %p49_p6 = scmp.ne.s32.totalorder %s24453_s17, %s24449_s16 }
  0x41   : > { %p50_p10 = scmp.eq.s32.totalorder %s24465_s20, 0  ;;  %p20631_p3 = scmp.lt.s32.totalorder %s24465_s20, 2 }
  0x42   : > { %s25500_s5 = smov (%p31_p13, %s30_s5), 0  ;;  %p24637_p7 = por %p24542_p2, %p49_p6 }
  0x43   : > { %p51_p5 = por %p50_p10, %p49_p6  ;;  %s37_s8 = ssub.s32 %s24461_s19, %s25500_s5 }
  0x44   : > { %s25487_s30 = scalar_select %p24637_p7, 1, 0 }
  0x45   : > { %s199_s9 = sand.u32 1, %s24453_s17   ;;  %p40_p9 = scmp.eq.s32.totalorder %s37_s8, 0 }
  0x46   : > { %s18181_s6 = sshll.u32 %s199_s9, 8  ;;  %s20600_s21 = sshll.u32 %s24461_s19, 12 }
  0x47   : > { %s24646_s22 = scalar_select %p40_p9, %s24453_s17, %s42_s7  }
  0x48   : > { %s24651_s12 = scalar_lea.hbm %s25472_s0, %s20600_s21  ;;  %s203_s24 = scalar_lea.vmem [#allocation4], %s18181_s6 }
  0x49   : > { %s213_s13 = sshll.u32 %s203_s24, 4  ;;  %p24655_p2 = pnand %p20631_p3, %p51_p5  ;;  %s24659_s13 = int_to_ptr.vmem [resolvable:$true] %s213_s13 }
  0x4a   : > { %s24661_s14 = scalar_lea.sflag [#allocation5], %s199_s9  ;;  %s24349_s28 = scalar_lea.hbm %s24651_s12, 4096 }
  0x4b   : > { %p24350_p11 = scmp.ne.s32.totalorder %s24651_s12, %s24349_s28  ;;  %p24351_p12 = pneg %p24655_p2 }
  0x4c   : > { %s24354_s6 = scalar_lea.hbm %s25472_s0, 8192  ;;  %p24355_p4 = scmp.lt.u32.totalorder %s24651_s12, %s25472_s0 }
  0x4d   : > { %p24352_p0 = pnand %p24351_p12, %p24350_p11  ;;  %p24356_p13 = scmp.lt.u32.totalorder %s24354_s6, %s24349_s28 }
  0x4e   : > { %p24358_p10 = scmp.lt.u32.totalorder %s24349_s28, %s24651_s12 }
  0x4f   : > { %p24353_p1 = pneg %p24352_p0  ;;  %p24357_p6 = por %p24356_p13, %p24355_p4 }
  0x51   : > { %p24359_p3 = por %p24358_p10, %p24357_p6 }
  0x53   : > { %p24360_p5 = pnand %p24359_p3, %p24353_p1 }
  0x55   : > { %24363 = shalt.err (!%p24360_p5)
}
  0x56   : > { %s24364_s9 = scalar_lea.vmem %s24659_s13, 4096  ;;  %s24471_s11 = smov [#allocation4]  }
  0x57   : > { %p24365_p9 = scmp.ne.s32.totalorder %s24659_s13, %s24364_s9  ;;  %s24369_s24 = sshll.u32 %s24471_s11, 4  ;;  %s24370_s24 = int_to_ptr.vmem [resolvable:$false] %s24369_s24 }
  0x58   : > { %s24371_s7 = scalar_lea.vmem %s24370_s24, 8192  ;;  %p24372_p7 = scmp.lt.s32.totalorder %s24659_s13, %s24370_s24 }
  0x59   : > { %p24367_p11 = pnand %p24365_p9, %p24351_p12  ;;  %p24373_p4 = scmp.lt.s32.totalorder %s24371_s7, %s24364_s9 }
  0x5b   : > { %p24368_p0 = pneg %p24367_p11  ;;  %p24374_p13 = por %p24373_p4, %p24372_p7 }
  0x5d   : > { %p24375_p6 = pnand %p24374_p13, %p24368_p0 }
  0x5f   : > { %24378 = shalt.err (!%p24375_p6)
}
  0x60   : > { %s24472_s28 = smov 512   ;;  %s24473_s8 = smov 32  }
  0x61   : > { %20624 = dma.hbm_to_vmem [thread:$0]  (!%p24655_p2), %s24651_s12, 4096, %s24659_s13, %s24661_s14, %s24472_s28, %s24472_s28, %s24473_s8  }
  0x62   : > { %225 = sbr.rel (%p24558_p8) target bundleno = 4199 (0x1067), region = 36  ;;  %s24692_s6 = sand.u32 (!%p24558_p8), 1, %s24449_s16  }
  0x63   : > { %s18186_s21 = sshll.u32 (!%p24558_p8), %s24692_s6, 8  ;;  %s228_s10 = scalar_lea.sflag (!%p24558_p8), [#allocation5], %s24692_s6 }
  0x64   : > { %s24696_s9 = scalar_lea.vmem (!%p24558_p8), [#allocation4], %s18186_s21  ;;  %p25489_p7 = scmp.ne.s32.totalorder (!%p24558_p8), %s25483_s25, 0 }
  0x69   : > { %24432 = dma.done.wait (%p25489_p7), %s228_s10, 4096  }
  0x6a   : > { %24434 = vsyncadd (%p25489_p7), %s228_s10, 4294963200  ;;  %p25490_p2 = scmp.ne.s32.totalorder %s25481_s23, 0 }
  0x6c   : > { %24436 = dma.done.wait (%p25490_p2), [#allocation8], 36864  }
  0x6d   : > { %24438 = vsyncadd (%p25490_p2), [#allocation8], 4294930432  ;;  %s18189_s27 = sshll.u32 %s24692_s6, 5  ;;  %p18190_p8 = scmp.ne.s32.totalorder %s24457_s18, 0 }
  0x6e   : > { %s24707_s12 = scalar_lea.vmem [#allocation10], %s18189_s27  ;;  %v24474_v0 = vmov (!%p18190_p8), 0.0  }
  0x6f   : > { %270 = sbr.rel (%p18190_p8) target bundleno = 118 (0x76), region = 52  ;;  %271 = vst [vmem:[#allocation2] sm:$0xff] (!%p18190_p8), %v24474_v0  ;;  %272 = vst [vmem:[#allocation3] sm:$0xff] (!%p18190_p8), %v24474_v0 }
  0x76 PF: > { %v20693_v1 = vld [vmem:[#allocation9 + $0x4] ss:$16 sps:$4 sm:$0xff]   ;;  %v20695_v2 = vld [vmem:[#allocation9 + $0xc] ss:$16 sps:$4 sm:$0xff]   ;;  %v24475_v3 = vmov 0   ;;  %s20601_s13 = sshll.u32 %s24457_s18, 9 }
  0x77   : > { %759 = vmatprep.mubr.bf16.mxu0 %v24475_v3  ;;  %800 = vmatprep.mubr.bf16.mxu1 %v24475_v3  ;;  %v20697_v4 = vld [vmem:[#allocation9] ss:$16 sps:$4 sm:$0xff]   ;;  %v20698_v5 = vld [vmem:[#allocation9 + $0x8] ss:$16 sps:$4 sm:$0xff]   ;;  %v20699_v6 = vld [vmem:[#allocation9 + $0x24] ss:$16 sps:$4 sm:$0xff]   ;;  %s25420_s24 = scalar_lea.hbm %s25476_s4, %s20601_s13 }
  0x78   : > { %727 = vmatprep.subr.bf16.mxu0 %v20693_v1  ;;  %768 = vmatprep.subr.bf16.mxu1 %v20695_v2  ;;  %v20701_v7 = vld [vmem:[#allocation9 + $0x2c] ss:$16 sps:$4 sm:$0xff]   ;;  %v20703_v8 = vld [vmem:[#allocation9 + $0x20] ss:$16 sps:$4 sm:$0xff]   ;;  %v20704_v9 = vld [vmem:[#allocation9 + $0x28] ss:$16 sps:$4 sm:$0xff]  }
  0x79   : > { %728 = vmatpush1.bf16.msra.mxu0 %v20697_v4  ;;  %769 = vmatpush1.bf16.msra.mxu1 %v20698_v5  ;;  %v20705_v10 = vld [vmem:[#allocation9 + $0x44] ss:$16 sps:$4 sm:$0xff]   ;;  %v20707_v11 = vld [vmem:[#allocation9 + $0x4c] ss:$16 sps:$4 sm:$0xff]   ;;  %v20709_v12 = vld [vmem:[#allocation9 + $0x40] ss:$16 sps:$4 sm:$0xff]  }
  0x7a   : > { %729 = vmatprep.subr.bf16.mxu0 %v20699_v6  ;;  %770 = vmatprep.subr.bf16.mxu1 %v20701_v7  ;;  %v20710_v13 = vld [vmem:[#allocation9 + $0x48] ss:$16 sps:$4 sm:$0xff]   ;;  %v20711_v14 = vld [vmem:[#allocation9 + $0x64] ss:$16 sps:$4 sm:$0xff]   ;;  %v20713_v15 = vld [vmem:[#allocation9 + $0x6c] ss:$16 sps:$4 sm:$0xff]  }
  0x7b   : > { %v20715_v16 = vld [vmem:[#allocation9 + $0x60] ss:$16 sps:$4 sm:$0xff]   ;;  %v20716_v17 = vld [vmem:[#allocation9 + $0x68] ss:$16 sps:$4 sm:$0xff]   ;;  %v20717_v18 = vld [vmem:[#allocation9 + $0x84] ss:$16 sps:$4 sm:$0xff]  }
  0x7c   : > { %v20719_v19 = vld [vmem:[#allocation9 + $0x8c] ss:$16 sps:$4 sm:$0xff]   ;;  %v20721_v20 = vld [vmem:[#allocation9 + $0x80] ss:$16 sps:$4 sm:$0xff]   ;;  %v20722_v21 = vld [vmem:[#allocation9 + $0x88] ss:$16 sps:$4 sm:$0xff]  }
  0x7d   : > { %730 = vmatpush1.bf16.msra.mxu0 %v20703_v8  ;;  %771 = vmatpush1.bf16.msra.mxu1 %v20704_v9  ;;  %v20723_v22 = vld [vmem:[#allocation9 + $0xa4] ss:$16 sps:$4 sm:$0xff]   ;;  %v20725_v23 = vld [vmem:[#allocation9 + $0xac] ss:$16 sps:$4 sm:$0xff]   ;;  %v20727_v24 = vld [vmem:[#allocation9 + $0xa0] ss:$16 sps:$4 sm:$0xff]  }
  0x7e   : > { %731 = vmatprep.subr.bf16.mxu0 %v20705_v10  ;;  %772 = vmatprep.subr.bf16.mxu1 %v20707_v11  ;;  %v20728_v25 = vld [vmem:[#allocation9 + $0xa8] ss:$16 sps:$4 sm:$0xff]   ;;  %v20729_v26 = vld [vmem:[#allocation9 + $0xc4] ss:$16 sps:$4 sm:$0xff]   ;;  %v20731_v27 = vld [vmem:[#allocation9 + $0xcc] ss:$16 sps:$4 sm:$0xff]  }
  0x7f   : > { %v20733_v28 = vld [vmem:[#allocation9 + $0xc0] ss:$16 sps:$4 sm:$0xff]   ;;  %v20734_v29 = vld [vmem:[#allocation9 + $0xc8] ss:$16 sps:$4 sm:$0xff]   ;;  %v20735_v30 = vld [vmem:[#allocation9 + $0xe4] ss:$16 sps:$4 sm:$0xff]  }
  0x80   : > { %v20737_v31 = vld [vmem:[#allocation9 + $0xec] ss:$16 sps:$4 sm:$0xff]   ;;  %v20739_v32 = vld [vmem:[#allocation9 + $0xe0] ss:$16 sps:$4 sm:$0xff]   ;;  %v20740_v33 = vld [vmem:[#allocation9 + $0xe8] ss:$16 sps:$4 sm:$0xff]  }
  0x81   : > { %732 = vmatpush1.bf16.msra.mxu0 %v20709_v12  ;;  %773 = vmatpush1.bf16.msra.mxu1 %v20710_v13  ;;  %v277_v34 = vld [vmem:[#allocation2] sm:$0xff]  ;;  %v24713_v10 = vld [vmem:[%s24696_s9] sm:$0xff]  ;;  %v24716_v11 = vld [vmem:[%s24696_s9 + $0x8] sm:$0xff]  ;;  %s18070_s29 = sshll.u32 %s24707_s12, 4  ;;  %s18056_s7 = scalar_lea.sflag [#allocation6], %s24692_s6  ;;  %s25422_s29 = int_to_ptr.vmem [resolvable:$true] %s18070_s29 }
  0x82   : > { %733 = vmatprep.subr.bf16.mxu0 %v20711_v14  ;;  %774 = vmatprep.subr.bf16.mxu1 %v20713_v15  ;;  %v20743_v35 = vld [vmem:[#allocation7 + $0x4] ss:$16 sps:$4 sm:$0xff]   ;;  %v278_v37 = vpack.c.bf16 %v277_v34, %v277_v34  ;;  %v20741_v38 = vld [vmem:[#allocation7] ss:$16 sps:$4 sm:$0xff]   ;;  %v24720_v13 = vcombine.high %v24713_v10, %v24713_v10  ;;  %v24724_v14 = vcombine.high %v24716_v11, %v24716_v11  ;;  %s24379_s28 = scalar_lea.vmem %s25422_s29, 512  ;;  %p25491_p1 = scmp.ne.s32.totalorder %s25487_s30, 0 }
  0x83   : > { %v20746_v36 = vld [vmem:[#allocation7 + $0x204] ss:$16 sps:$4 sm:$0xff]   ;;  %v20744_v39 = vld [vmem:[#allocation7 + $0x200] ss:$16 sps:$4 sm:$0xff]   ;;  %p24380_p12 = scmp.ne.s32.totalorder %s25422_s29, %s24379_s28  ;;  %s24476_s18 = smov [#allocation10]  }
  0x84   : > { %v20749_v40 = vld [vmem:[#allocation7 + $0x24] ss:$16 sps:$4 sm:$0xff]   ;;  %v20747_v42 = vld [vmem:[#allocation7 + $0x20] ss:$16 sps:$4 sm:$0xff]   ;;  %s24383_s8 = sshll.u32 %s24476_s18, 4  ;;  %s24384_s8 = int_to_ptr.vmem [resolvable:$false] %s24383_s8 }
  0x85   : > { %734 = vmatpush1.bf16.msra.mxu0 %v20715_v16  ;;  %775 = vmatpush1.bf16.msra.mxu1 %v20716_v17  ;;  %v20752_v41 = vld [vmem:[#allocation7 + $0x224] ss:$16 sps:$4 sm:$0xff]   ;;  %v20750_v43 = vld [vmem:[#allocation7 + $0x220] ss:$16 sps:$4 sm:$0xff]   ;;  %p24381_p10 = pnand %p24380_p12, %p25491_p1  ;;  %s24385_s21 = scalar_lea.vmem %s24384_s8, 1024 }
  0x86   : > { %735 = vmatprep.subr.bf16.mxu0 %v20717_v18  ;;  %776 = vmatprep.subr.bf16.mxu1 %v20719_v19  ;;  %v20755_v44 = vld [vmem:[#allocation7 + $0x44] ss:$16 sps:$4 sm:$0xff]   ;;  %v20753_v46 = vld [vmem:[#allocation7 + $0x40] ss:$16 sps:$4 sm:$0xff]   ;;  %p24386_p5 = scmp.lt.s32.totalorder %s25422_s29, %s24384_s8  ;;  %p24387_p9 = scmp.lt.s32.totalorder %s24385_s21, %s24379_s28 }
  0x87   : > { %v20758_v45 = vld [vmem:[#allocation7 + $0x244] ss:$16 sps:$4 sm:$0xff]   ;;  %v20756_v47 = vld [vmem:[#allocation7 + $0x240] ss:$16 sps:$4 sm:$0xff]   ;;  %p24382_p3 = pneg %p24381_p10 }
  0x88   : > { %v20761_v48 = vld [vmem:[#allocation7 + $0x64] ss:$16 sps:$4 sm:$0xff]   ;;  %v20759_v50 = vld [vmem:[#allocation7 + $0x60] ss:$16 sps:$4 sm:$0xff]   ;;  %p24388_p11 = por %p24387_p9, %p24386_p5 }
  0x89   : > { %736 = vmatpush1.bf16.msra.mxu0 %v20721_v20  ;;  %777 = vmatpush1.bf16.msra.mxu1 %v20722_v21  ;;  %v20764_v49 = vld [vmem:[#allocation7 + $0x264] ss:$16 sps:$4 sm:$0xff]   ;;  %v20762_v51 = vld [vmem:[#allocation7 + $0x260] ss:$16 sps:$4 sm:$0xff]  }
  0x8a   : > { %737 = vmatprep.subr.bf16.mxu0 %v20723_v22  ;;  %778 = vmatprep.subr.bf16.mxu1 %v20725_v23  ;;  %v20767_v52 = vld [vmem:[#allocation7 + $0x84] ss:$16 sps:$4 sm:$0xff]   ;;  %v20765_v54 = vld [vmem:[#allocation7 + $0x80] ss:$16 sps:$4 sm:$0xff]   ;;  %p24389_p0 = pnand %p24388_p11, %p24382_p3 }
  0x8b   : > { %v20770_v53 = vld [vmem:[#allocation7 + $0x284] ss:$16 sps:$4 sm:$0xff]   ;;  %v20768_v55 = vld [vmem:[#allocation7 + $0x280] ss:$16 sps:$4 sm:$0xff]  }
  0x8c   : > { %v20773_v56 = vld [vmem:[#allocation7 + $0xa4] ss:$16 sps:$4 sm:$0xff]   ;;  %v20771_v58 = vld [vmem:[#allocation7 + $0xa0] ss:$16 sps:$4 sm:$0xff]  }
  0x8d   : > { %738 = vmatpush1.bf16.msra.mxu0 %v20727_v24  ;;  %779 = vmatpush1.bf16.msra.mxu1 %v20728_v25  ;;  %v20776_v57 = vld [vmem:[#allocation7 + $0x2a4] ss:$16 sps:$4 sm:$0xff]   ;;  %v20774_v59 = vld [vmem:[#allocation7 + $0x2a0] ss:$16 sps:$4 sm:$0xff]  }
  0x8e   : > { %739 = vmatprep.subr.bf16.mxu0 %v20729_v26  ;;  %780 = vmatprep.subr.bf16.mxu1 %v20731_v27  ;;  %v20779_v60 = vld [vmem:[#allocation7 + $0xc4] ss:$16 sps:$4 sm:$0xff]   ;;  %v20777_v62 = vld [vmem:[#allocation7 + $0xc0] ss:$16 sps:$4 sm:$0xff]  }
  0x8f   : > { %v20782_v61 = vld [vmem:[#allocation7 + $0x2c4] ss:$16 sps:$4 sm:$0xff]   ;;  %v20780_v63 = vld [vmem:[#allocation7 + $0x2c0] ss:$16 sps:$4 sm:$0xff]  }
  0x90   : > { %v20785_v0 = vld [vmem:[#allocation7 + $0xe4] ss:$16 sps:$4 sm:$0xff]   ;;  %v20783_v2 = vld [vmem:[#allocation7 + $0xe0] ss:$16 sps:$4 sm:$0xff]  }
  0x91   : > { %740 = vmatpush1.bf16.msra.mxu0 %v20733_v28  ;;  %781 = vmatpush1.bf16.msra.mxu1 %v20734_v29  ;;  %v20788_v1 = vld [vmem:[#allocation7 + $0x2e4] ss:$16 sps:$4 sm:$0xff]   ;;  %v20786_v4 = vld [vmem:[#allocation7 + $0x2e0] ss:$16 sps:$4 sm:$0xff]  }
  0x92   : > { %741 = vmatprep.subr.bf16.mxu0 %v20735_v30  ;;  %782 = vmatprep.subr.bf16.mxu1 %v20737_v31  ;;  %v20791_v5 = vld [vmem:[#allocation7 + $0x104] ss:$16 sps:$4 sm:$0xff]   ;;  %v20789_v7 = vld [vmem:[#allocation7 + $0x100] ss:$16 sps:$4 sm:$0xff]  }
  0x93   : > { %v20794_v6 = vld [vmem:[#allocation7 + $0x304] ss:$16 sps:$4 sm:$0xff]   ;;  %v20792_v8 = vld [vmem:[#allocation7 + $0x300] ss:$16 sps:$4 sm:$0xff]  }
  0x94   : > { %v20797_v9 = vld [vmem:[#allocation7 + $0x124] ss:$16 sps:$4 sm:$0xff]   ;;  %v20795_v15 = vld [vmem:[#allocation7 + $0x120] ss:$16 sps:$4 sm:$0xff]  }
  0x95   : > { %742 = vmatpush1.bf16.msra.mxu0 %v20739_v32  ;;  %783 = vmatpush1.bf16.msra.mxu1 %v20740_v33  ;;  %v20800_v12 = vld [vmem:[#allocation7 + $0x324] ss:$16 sps:$4 sm:$0xff]   ;;  %v20798_v16 = vld [vmem:[#allocation7 + $0x320] ss:$16 sps:$4 sm:$0xff]  }
  0x96   : > { %2117 = vmatprep.subr.bf16.mxu0 %v20743_v35  ;;  %2158 = vmatprep.subr.bf16.mxu1 %v20746_v36  ;;  %v20803_v17 = vld [vmem:[#allocation7 + $0x144] ss:$16 sps:$4 sm:$0xff]   ;;  %v20801_v19 = vld [vmem:[#allocation7 + $0x140] ss:$16 sps:$4 sm:$0xff]  }
  0x97   : > { %v20806_v18 = vld [vmem:[#allocation7 + $0x344] ss:$16 sps:$4 sm:$0xff]   ;;  %v20804_v20 = vld [vmem:[#allocation7 + $0x340] ss:$16 sps:$4 sm:$0xff]  }
  0x98   : > { %760 = vmatmul.mubr.bf16.vlgmr.msra.gmra.mrb[0].mxu0 %v278_v37  ;;  %801 = vmatmul.mubr.bf16.vlgmr.msra.gmra.mrb[0].mxu1 %v278_v37  ;;  %v20809_v21 = vld [vmem:[#allocation7 + $0x164] ss:$16 sps:$4 sm:$0xff]   ;;  %v20807_v23 = vld [vmem:[#allocation7 + $0x160] ss:$16 sps:$4 sm:$0xff]  }
  0x99   : > { %2118 = vmatpush1.bf16.msra.mxu0 %v20741_v38  ;;  %2159 = vmatpush1.bf16.msra.mxu1 %v20744_v39  ;;  %v20812_v22 = vld [vmem:[#allocation7 + $0x364] ss:$16 sps:$4 sm:$0xff]   ;;  %v20810_v24 = vld [vmem:[#allocation7 + $0x360] ss:$16 sps:$4 sm:$0xff]  }
  0x9a   : > { %2119 = vmatprep.subr.bf16.mxu0 %v20749_v40  ;;  %2160 = vmatprep.subr.bf16.mxu1 %v20752_v41  ;;  %v20815_v25 = vld [vmem:[#allocation7 + $0x184] ss:$16 sps:$4 sm:$0xff]   ;;  %v20813_v27 = vld [vmem:[#allocation7 + $0x180] ss:$16 sps:$4 sm:$0xff]  }
  0x9b   : > { %2149 = vmatprep.mubr.bf16.mxu0 %v24720_v13  ;;  %2190 = vmatprep.mubr.bf16.mxu1 %v24724_v14  ;;  %v20818_v26 = vld [vmem:[#allocation7 + $0x384] ss:$16 sps:$4 sm:$0xff]   ;;  %v20816_v28 = vld [vmem:[#allocation7 + $0x380] ss:$16 sps:$4 sm:$0xff]  }
  0x9c   : > { %v20821_v29 = vld [vmem:[#allocation7 + $0x1a4] ss:$16 sps:$4 sm:$0xff]   ;;  %v20819_v31 = vld [vmem:[#allocation7 + $0x1a0] ss:$16 sps:$4 sm:$0xff]  }
  0x9d   : > { %2120 = vmatpush1.bf16.msra.mxu0 %v20747_v42  ;;  %2161 = vmatpush1.bf16.msra.mxu1 %v20750_v43  ;;  %v20824_v30 = vld [vmem:[#allocation7 + $0x3a4] ss:$16 sps:$4 sm:$0xff]   ;;  %v20822_v32 = vld [vmem:[#allocation7 + $0x3a0] ss:$16 sps:$4 sm:$0xff]   ;;  %v24730_v43 = vcombine.low %v24713_v10, %v24713_v10 }
  0x9e   : > { %2121 = vmatprep.subr.bf16.mxu0 %v20755_v44  ;;  %2162 = vmatprep.subr.bf16.mxu1 %v20758_v45  ;;  %v20827_v33 = vld [vmem:[#allocation7 + $0x1c4] ss:$16 sps:$4 sm:$0xff]   ;;  %v20825_v35 = vld [vmem:[#allocation7 + $0x1c0] ss:$16 sps:$4 sm:$0xff]   ;;  %v24734_v44 = vcombine.low %v24716_v11, %v24716_v11 }
  0x9f   : > { %v20830_v34 = vld [vmem:[#allocation7 + $0x3c4] ss:$16 sps:$4 sm:$0xff]   ;;  %v20828_v36 = vld [vmem:[#allocation7 + $0x3c0] ss:$16 sps:$4 sm:$0xff]  }
  0xa0   : > { %v20833_v37 = vld [vmem:[#allocation7 + $0x1e4] ss:$16 sps:$4 sm:$0xff]   ;;  %v20831_v39 = vld [vmem:[#allocation7 + $0x1e0] ss:$16 sps:$4 sm:$0xff]  }
  0xa1   : > { %2122 = vmatpush1.bf16.msra.mxu0 %v20753_v46  ;;  %2163 = vmatpush1.bf16.msra.mxu1 %v20756_v47  ;;  %v20836_v38 = vld [vmem:[#allocation7 + $0x3e4] ss:$16 sps:$4 sm:$0xff]   ;;  %v20834_v40 = vld [vmem:[#allocation7 + $0x3e0] ss:$16 sps:$4 sm:$0xff]  }
  0xa2   : > { %2123 = vmatprep.subr.bf16.mxu0 %v20761_v48  ;;  %2164 = vmatprep.subr.bf16.mxu1 %v20764_v49  ;;  %v20843_v41 = vld [vmem:[#allocation7 + $0x404] ss:$16 sps:$4 sm:$0xff]   ;;  %v20841_v45 = vld [vmem:[#allocation7 + $0x400] ss:$16 sps:$4 sm:$0xff]  }
  0xa3   : > { %v20846_v42 = vld [vmem:[#allocation7 + $0x604] ss:$16 sps:$4 sm:$0xff]   ;;  %v20844_v46 = vld [vmem:[#allocation7 + $0x600] ss:$16 sps:$4 sm:$0xff]  }
  0xa4   : > { %v20849_v47 = vld [vmem:[#allocation7 + $0x424] ss:$16 sps:$4 sm:$0xff]   ;;  %v20847_v49 = vld [vmem:[#allocation7 + $0x420] ss:$16 sps:$4 sm:$0xff]  }
  0xa5   : > { %2124 = vmatpush1.bf16.msra.mxu0 %v20759_v50  ;;  %2165 = vmatpush1.bf16.msra.mxu1 %v20762_v51  ;;  %v20852_v48 = vld [vmem:[#allocation7 + $0x624] ss:$16 sps:$4 sm:$0xff]   ;;  %v20850_v50 = vld [vmem:[#allocation7 + $0x620] ss:$16 sps:$4 sm:$0xff]  }
  0xa6   : > { %2125 = vmatprep.subr.bf16.mxu0 %v20767_v52  ;;  %2166 = vmatprep.subr.bf16.mxu1 %v20770_v53  ;;  %v20855_v51 = vld [vmem:[#allocation7 + $0x444] ss:$16 sps:$4 sm:$0xff]   ;;  %v20853_v53 = vld [vmem:[#allocation7 + $0x440] ss:$16 sps:$4 sm:$0xff]  }
  0xa7   : > { %v20858_v52 = vld [vmem:[#allocation7 + $0x644] ss:$16 sps:$4 sm:$0xff]   ;;  %v20877_v10 = vld [vmem:[#allocation7 + $0x4c0] ss:$16 sps:$4 sm:$0xff]  }
  0xa8   : > { %v20880_v11 = vld [vmem:[#allocation7 + $0x6c0] ss:$16 sps:$4 sm:$0xff]  }
  0xa9   : > { %2126 = vmatpush1.bf16.msra.mxu0 %v20765_v54  ;;  %2167 = vmatpush1.bf16.msra.mxu1 %v20768_v55  ;;  %v20856_v54 = vld [vmem:[#allocation7 + $0x640] ss:$16 sps:$4 sm:$0xff]   ;;  %v20861_v55 = vld [vmem:[#allocation7 + $0x464] ss:$16 sps:$4 sm:$0xff]  }
  0xaa   : > { %2127 = vmatprep.subr.bf16.mxu0 %v20773_v56  ;;  %2168 = vmatprep.subr.bf16.mxu1 %v20776_v57  ;;  %v20864_v56 = vld [vmem:[#allocation7 + $0x664] ss:$16 sps:$4 sm:$0xff]   ;;  %v20859_v57 = vld [vmem:[#allocation7 + $0x460] ss:$16 sps:$4 sm:$0xff]  }
  0xad   : > { %2128 = vmatpush1.bf16.msra.mxu0 %v20771_v58  ;;  %2169 = vmatpush1.bf16.msra.mxu1 %v20774_v59  ;;  %v20862_v58 = vld [vmem:[#allocation7 + $0x660] ss:$16 sps:$4 sm:$0xff]  }
  0xae   : > { %2129 = vmatprep.subr.bf16.mxu0 %v20779_v60  ;;  %2170 = vmatprep.subr.bf16.mxu1 %v20782_v61  ;;  %v24739_v59 = vld [vmem:[%s24696_s9 + $0x10] sm:$0xff]  ;;  %v24746_v61 = vld [vmem:[%s24696_s9 + $0x18] sm:$0xff] }
  0xaf   : > { %v24743_v60 = vcombine.high %v24739_v59, %v24739_v59 }
  0xb1   : > { %2130 = vmatpush1.bf16.msra.mxu0 %v20777_v62  ;;  %2171 = vmatpush1.bf16.msra.mxu1 %v20780_v63  ;;  %v20867_v62 = vld [vmem:[#allocation7 + $0x484] ss:$16 sps:$4 sm:$0xff]  }
  0xb2   : > { %2131 = vmatprep.subr.bf16.mxu0 %v20785_v0  ;;  %2172 = vmatprep.subr.bf16.mxu1 %v20788_v1  ;;  %v20870_v63 = vld [vmem:[#allocation7 + $0x684] ss:$16 sps:$4 sm:$0xff]   ;;  %v24750_v0 = vcombine.high %v24746_v61, %v24746_v61  ;;  %v20865_v1 = vld [vmem:[#allocation7 + $0x480] ss:$16 sps:$4 sm:$0xff]  }
  0xb5   : > { %2132 = vmatpush1.bf16.msra.mxu0 %v20783_v2  ;;  %2173 = vmatpush1.bf16.msra.mxu1 %v20786_v4  ;;  %v20868_v2 = vld [vmem:[#allocation7 + $0x680] ss:$16 sps:$4 sm:$0xff]   ;;  %v20873_v4 = vld [vmem:[#allocation7 + $0x4a4] ss:$16 sps:$4 sm:$0xff]  }
  0xb6   : > { %2133 = vmatprep.subr.bf16.mxu0 %v20791_v5  ;;  %2174 = vmatprep.subr.bf16.mxu1 %v20794_v6  ;;  %v20876_v5 = vld [vmem:[#allocation7 + $0x6a4] ss:$16 sps:$4 sm:$0xff]   ;;  %v20871_v6 = vld [vmem:[#allocation7 + $0x4a0] ss:$16 sps:$4 sm:$0xff]  }
  0xb9   : > { %2134 = vmatpush1.bf16.msra.mxu0 %v20789_v7  ;;  %2175 = vmatpush1.bf16.msra.mxu1 %v20792_v8  ;;  %v20874_v7 = vld [vmem:[#allocation7 + $0x6a0] ss:$16 sps:$4 sm:$0xff]   ;;  %v20879_v8 = vld [vmem:[#allocation7 + $0x4c4] ss:$16 sps:$4 sm:$0xff]  }
  0xba   : > { %2135 = vmatprep.subr.bf16.mxu0 %v20797_v9  ;;  %2176 = vmatprep.subr.bf16.mxu1 %v20800_v12  ;;  %v20882_v9 = vld [vmem:[#allocation7 + $0x6c4] ss:$16 sps:$4 sm:$0xff]  }
  0xbb   : > { %v20885_v12 = vld [vmem:[#allocation7 + $0x4e4] ss:$16 sps:$4 sm:$0xff]  }
  0xbd   : > { %2136 = vmatpush1.bf16.msra.mxu0 %v20795_v15  ;;  %2177 = vmatpush1.bf16.msra.mxu1 %v20798_v16  ;;  %v20888_v15 = vld [vmem:[#allocation7 + $0x6e4] ss:$16 sps:$4 sm:$0xff]   ;;  %v20883_v16 = vld [vmem:[#allocation7 + $0x4e0] ss:$16 sps:$4 sm:$0xff]  }
  0xbe   : > { %2137 = vmatprep.subr.bf16.mxu0 %v20803_v17  ;;  %2178 = vmatprep.subr.bf16.mxu1 %v20806_v18  ;;  %v20886_v17 = vld [vmem:[#allocation7 + $0x6e0] ss:$16 sps:$4 sm:$0xff]   ;;  %v20891_v18 = vld [vmem:[#allocation7 + $0x504] ss:$16 sps:$4 sm:$0xff]  }
  0xc1   : > { %2138 = vmatpush1.bf16.msra.mxu0 %v20801_v19  ;;  %2179 = vmatpush1.bf16.msra.mxu1 %v20804_v20  ;;  %v20894_v19 = vld [vmem:[#allocation7 + $0x704] ss:$16 sps:$4 sm:$0xff]   ;;  %v20889_v20 = vld [vmem:[#allocation7 + $0x500] ss:$16 sps:$4 sm:$0xff]  }
  0xc2   : > { %2139 = vmatprep.subr.bf16.mxu0 %v20809_v21  ;;  %2180 = vmatprep.subr.bf16.mxu1 %v20812_v22  ;;  %v20892_v21 = vld [vmem:[#allocation7 + $0x700] ss:$16 sps:$4 sm:$0xff]   ;;  %v20897_v22 = vld [vmem:[#allocation7 + $0x524] ss:$16 sps:$4 sm:$0xff]  }
  0xc5   : > { %2140 = vmatpush1.bf16.msra.mxu0 %v20807_v23  ;;  %2181 = vmatpush1.bf16.msra.mxu1 %v20810_v24  ;;  %v20900_v23 = vld [vmem:[#allocation7 + $0x724] ss:$16 sps:$4 sm:$0xff]   ;;  %v20895_v24 = vld [vmem:[#allocation7 + $0x520] ss:$16 sps:$4 sm:$0xff]  }
  0xc6   : > { %2141 = vmatprep.subr.bf16.mxu0 %v20815_v25  ;;  %2182 = vmatprep.subr.bf16.mxu1 %v20818_v26  ;;  %v20898_v25 = vld [vmem:[#allocation7 + $0x720] ss:$16 sps:$4 sm:$0xff]   ;;  %v20903_v26 = vld [vmem:[#allocation7 + $0x544] ss:$16 sps:$4 sm:$0xff]  }
  0xc9   : > { %2142 = vmatpush1.bf16.msra.mxu0 %v20813_v27  ;;  %2183 = vmatpush1.bf16.msra.mxu1 %v20816_v28  ;;  %v20906_v27 = vld [vmem:[#allocation7 + $0x744] ss:$16 sps:$4 sm:$0xff]   ;;  %v20901_v28 = vld [vmem:[#allocation7 + $0x540] ss:$16 sps:$4 sm:$0xff]  }
  0xca   : > { %2143 = vmatprep.subr.bf16.mxu0 %v20821_v29  ;;  %2184 = vmatprep.subr.bf16.mxu1 %v20824_v30  ;;  %v20904_v29 = vld [vmem:[#allocation7 + $0x740] ss:$16 sps:$4 sm:$0xff]   ;;  %v20909_v30 = vld [vmem:[#allocation7 + $0x564] ss:$16 sps:$4 sm:$0xff]  }
  0xcd   : > { %2144 = vmatpush1.bf16.msra.mxu0 %v20819_v31  ;;  %2185 = vmatpush1.bf16.msra.mxu1 %v20822_v32  ;;  %v20912_v31 = vld [vmem:[#allocation7 + $0x764] ss:$16 sps:$4 sm:$0xff]   ;;  %v20907_v32 = vld [vmem:[#allocation7 + $0x560] ss:$16 sps:$4 sm:$0xff]  }
  0xce   : > { %2145 = vmatprep.subr.bf16.mxu0 %v20827_v33  ;;  %2186 = vmatprep.subr.bf16.mxu1 %v20830_v34  ;;  %v20910_v33 = vld [vmem:[#allocation7 + $0x760] ss:$16 sps:$4 sm:$0xff]   ;;  %v20915_v34 = vld [vmem:[#allocation7 + $0x584] ss:$16 sps:$4 sm:$0xff]  }
  0xd1   : > { %2146 = vmatpush1.bf16.msra.mxu0 %v20825_v35  ;;  %2187 = vmatpush1.bf16.msra.mxu1 %v20828_v36  ;;  %v20918_v35 = vld [vmem:[#allocation7 + $0x784] ss:$16 sps:$4 sm:$0xff]   ;;  %v20913_v36 = vld [vmem:[#allocation7 + $0x580] ss:$16 sps:$4 sm:$0xff]  }
  0xd2   : > { %2147 = vmatprep.subr.bf16.mxu0 %v20833_v37  ;;  %2188 = vmatprep.subr.bf16.mxu1 %v20836_v38  ;;  %v20916_v37 = vld [vmem:[#allocation7 + $0x780] ss:$16 sps:$4 sm:$0xff]   ;;  %v20921_v38 = vld [vmem:[#allocation7 + $0x5a4] ss:$16 sps:$4 sm:$0xff]  }
  0xd5   : > { %2148 = vmatpush1.bf16.msra.mxu0 %v20831_v39  ;;  %2189 = vmatpush1.bf16.msra.mxu1 %v20834_v40  ;;  %v20924_v39 = vld [vmem:[#allocation7 + $0x7a4] ss:$16 sps:$4 sm:$0xff]   ;;  %v20919_v40 = vld [vmem:[#allocation7 + $0x5a0] ss:$16 sps:$4 sm:$0xff]  }
  0xd6   : > { %2199 = vmatprep.subr.bf16.mxu0 %v20843_v41  ;;  %2240 = vmatprep.subr.bf16.mxu1 %v20846_v42  ;;  %v20922_v41 = vld [vmem:[#allocation7 + $0x7a0] ss:$16 sps:$4 sm:$0xff]   ;;  %v20927_v42 = vld [vmem:[#allocation7 + $0x5c4] ss:$16 sps:$4 sm:$0xff]  }
  0xd8   : > { %2150 = vmatmul.mubr.bf16.vlgmr.msra.gmra.mrb[4].mxu0 %v24730_v43  ;;  %2191 = vmatmul.mubr.bf16.vlgmr.msra.gmra.mrb[4].mxu1 %v24734_v44 }
  0xd9   : > { %2200 = vmatpush1.bf16.msra.mxu0 %v20841_v45  ;;  %2241 = vmatpush1.bf16.msra.mxu1 %v20844_v46  ;;  %v20930_v45 = vld [vmem:[#allocation7 + $0x7c4] ss:$16 sps:$4 sm:$0xff]   ;;  %v20925_v46 = vld [vmem:[#allocation7 + $0x5c0] ss:$16 sps:$4 sm:$0xff]  }
  0xda   : > { %2201 = vmatprep.subr.bf16.mxu0 %v20849_v47  ;;  %2242 = vmatprep.subr.bf16.mxu1 %v20852_v48  ;;  %v20928_v47 = vld [vmem:[#allocation7 + $0x7c0] ss:$16 sps:$4 sm:$0xff]   ;;  %v20933_v48 = vld [vmem:[#allocation7 + $0x5e4] ss:$16 sps:$4 sm:$0xff]  }
  0xdb   : > { %2231 = vmatprep.mubr.bf16.mxu0 %v24743_v60  ;;  %2272 = vmatprep.mubr.bf16.mxu1 %v24750_v0 }
  0xdd   : > { %2202 = vmatpush1.bf16.msra.mxu0 %v20847_v49  ;;  %2243 = vmatpush1.bf16.msra.mxu1 %v20850_v50  ;;  %v20936_v49 = vld [vmem:[#allocation7 + $0x7e4] ss:$16 sps:$4 sm:$0xff]   ;;  %v20931_v50 = vld [vmem:[#allocation7 + $0x5e0] ss:$16 sps:$4 sm:$0xff]  }
  0xde   : > { %2203 = vmatprep.subr.bf16.mxu0 %v20855_v51  ;;  %2244 = vmatprep.subr.bf16.mxu1 %v20858_v52  ;;  %v20934_v51 = vld [vmem:[#allocation7 + $0x7e0] ss:$16 sps:$4 sm:$0xff]   ;;  %v20943_v52 = vld [vmem:[#allocation7 + $0xc] ss:$16 sps:$4 sm:$0xff]  }
  0xe1   : > { %2204 = vmatpush1.bf16.msra.mxu0 %v20853_v53  ;;  %2245 = vmatpush1.bf16.msra.mxu1 %v20856_v54  ;;  %v20946_v53 = vld [vmem:[#allocation7 + $0x20c] ss:$16 sps:$4 sm:$0xff]   ;;  %v24756_v54 = vcombine.low %v24739_v59, %v24739_v59  ;;  %v20950_v59 = vld [vmem:[#allocation7 + $0x228] ss:$16 sps:$4 sm:$0xff]  }
  0xe2   : > { %2205 = vmatprep.subr.bf16.mxu0 %v20861_v55  ;;  %2246 = vmatprep.subr.bf16.mxu1 %v20864_v56  ;;  %v24760_v55 = vcombine.low %v24746_v61, %v24746_v61  ;;  %v20941_v56 = vld [vmem:[#allocation7 + $0x8] ss:$16 sps:$4 sm:$0xff]   ;;  %v20955_v61 = vld [vmem:[#allocation7 + $0x4c] ss:$16 sps:$4 sm:$0xff]  }
  0xe5   : > { %2206 = vmatpush1.bf16.msra.mxu0 %v20859_v57  ;;  %2247 = vmatpush1.bf16.msra.mxu1 %v20862_v58  ;;  %v20944_v57 = vld [vmem:[#allocation7 + $0x208] ss:$16 sps:$4 sm:$0xff]   ;;  %v20949_v58 = vld [vmem:[#allocation7 + $0x2c] ss:$16 sps:$4 sm:$0xff]  }
  0xe6   : > { %2207 = vmatprep.subr.bf16.mxu0 %v20867_v62  ;;  %2248 = vmatprep.subr.bf16.mxu1 %v20870_v63  ;;  %v20952_v62 = vld [vmem:[#allocation7 + $0x22c] ss:$16 sps:$4 sm:$0xff]   ;;  %v20947_v63 = vld [vmem:[#allocation7 + $0x28] ss:$16 sps:$4 sm:$0xff]  }
  0xe9   : > { %2208 = vmatpush1.bf16.msra.mxu0 %v20865_v1  ;;  %2249 = vmatpush1.bf16.msra.mxu1 %v20868_v2  ;;  %v20958_v1 = vld [vmem:[#allocation7 + $0x24c] ss:$16 sps:$4 sm:$0xff]   ;;  %v20953_v2 = vld [vmem:[#allocation7 + $0x48] ss:$16 sps:$4 sm:$0xff]  }
  0xea   : > { %2209 = vmatprep.subr.bf16.mxu0 %v20873_v4  ;;  %2250 = vmatprep.subr.bf16.mxu1 %v20876_v5  ;;  %v20956_v4 = vld [vmem:[#allocation7 + $0x248] ss:$16 sps:$4 sm:$0xff]   ;;  %v20961_v5 = vld [vmem:[#allocation7 + $0x6c] ss:$16 sps:$4 sm:$0xff]  }
  0xed   : > { %2210 = vmatpush1.bf16.msra.mxu0 %v20871_v6  ;;  %2251 = vmatpush1.bf16.msra.mxu1 %v20874_v7  ;;  %v20964_v6 = vld [vmem:[#allocation7 + $0x26c] ss:$16 sps:$4 sm:$0xff]   ;;  %v20959_v7 = vld [vmem:[#allocation7 + $0x68] ss:$16 sps:$4 sm:$0xff]  }
  0xee   : > { %2211 = vmatprep.subr.bf16.mxu0 %v20879_v8  ;;  %2252 = vmatprep.subr.bf16.mxu1 %v20882_v9  ;;  %v20962_v8 = vld [vmem:[#allocation7 + $0x268] ss:$16 sps:$4 sm:$0xff]   ;;  %v20967_v9 = vld [vmem:[#allocation7 + $0x8c] ss:$16 sps:$4 sm:$0xff]  }
  0xf1   : > { %2212 = vmatpush1.bf16.msra.mxu0 %v20877_v10  ;;  %2253 = vmatpush1.bf16.msra.mxu1 %v20880_v11  ;;  %v20970_v10 = vld [vmem:[#allocation7 + $0x28c] ss:$16 sps:$4 sm:$0xff]   ;;  %v20965_v11 = vld [vmem:[#allocation7 + $0x88] ss:$16 sps:$4 sm:$0xff]  }
  0xf2   : > { %2213 = vmatprep.subr.bf16.mxu0 %v20885_v12  ;;  %2254 = vmatprep.subr.bf16.mxu1 %v20888_v15  ;;  %v20976_v12 = vld [vmem:[#allocation7 + $0x2ac] ss:$16 sps:$4 sm:$0xff]   ;;  %v20971_v15 = vld [vmem:[#allocation7 + $0xa8] ss:$16 sps:$4 sm:$0xff]  }
  0xf5   : > { %2214 = vmatpush1.bf16.msra.mxu0 %v20883_v16  ;;  %2255 = vmatpush1.bf16.msra.mxu1 %v20886_v17  ;;  %v20974_v16 = vld [vmem:[#allocation7 + $0x2a8] ss:$16 sps:$4 sm:$0xff]   ;;  %v20979_v17 = vld [vmem:[#allocation7 + $0xcc] ss:$16 sps:$4 sm:$0xff]  }
  0xf6   : > { %2215 = vmatprep.subr.bf16.mxu0 %v20891_v18  ;;  %2256 = vmatprep.subr.bf16.mxu1 %v20894_v19  ;;  %v20982_v18 = vld [vmem:[#allocation7 + $0x2cc] ss:$16 sps:$4 sm:$0xff]   ;;  %v20977_v19 = vld [vmem:[#allocation7 + $0xc8] ss:$16 sps:$4 sm:$0xff]  }
  0xf9   : > { %2216 = vmatpush1.bf16.msra.mxu0 %v20889_v20  ;;  %2257 = vmatpush1.bf16.msra.mxu1 %v20892_v21  ;;  %v20980_v20 = vld [vmem:[#allocation7 + $0x2c8] ss:$16 sps:$4 sm:$0xff]   ;;  %v20985_v21 = vld [vmem:[#allocation7 + $0xec] ss:$16 sps:$4 sm:$0xff]  }
  0xfa   : > { %2217 = vmatprep.subr.bf16.mxu0 %v20897_v22  ;;  %2258 = vmatprep.subr.bf16.mxu1 %v20900_v23  ;;  %v20988_v22 = vld [vmem:[#allocation7 + $0x2ec] ss:$16 sps:$4 sm:$0xff]   ;;  %v20983_v23 = vld [vmem:[#allocation7 + $0xe8] ss:$16 sps:$4 sm:$0xff]  }
  0xfd   : > { %2218 = vmatpush1.bf16.msra.mxu0 %v20895_v24  ;;  %2259 = vmatpush1.bf16.msra.mxu1 %v20898_v25  ;;  %v20986_v24 = vld [vmem:[#allocation7 + $0x2e8] ss:$16 sps:$4 sm:$0xff]   ;;  %v20991_v25 = vld [vmem:[#allocation7 + $0x10c] ss:$16 sps:$4 sm:$0xff]  }
  0xfe   : > { %2219 = vmatprep.subr.bf16.mxu0 %v20903_v26  ;;  %2260 = vmatprep.subr.bf16.mxu1 %v20906_v27  ;;  %v20994_v26 = vld [vmem:[#allocation7 + $0x30c] ss:$16 sps:$4 sm:$0xff]   ;;  %v20989_v27 = vld [vmem:[#allocation7 + $0x108] ss:$16 sps:$4 sm:$0xff]  }
 0x101   : > { %2220 = vmatpush1.bf16.msra.mxu0 %v20901_v28  ;;  %2261 = vmatpush1.bf16.msra.mxu1 %v20904_v29  ;;  %v20992_v28 = vld [vmem:[#allocation7 + $0x308] ss:$16 sps:$4 sm:$0xff]   ;;  %v20997_v29 = vld [vmem:[#allocation7 + $0x12c] ss:$16 sps:$4 sm:$0xff]  }
 0x102   : > { %2221 = vmatprep.subr.bf16.mxu0 %v20909_v30  ;;  %2262 = vmatprep.subr.bf16.mxu1 %v20912_v31  ;;  %v21000_v30 = vld [vmem:[#allocation7 + $0x32c] ss:$16 sps:$4 sm:$0xff]   ;;  %v20995_v31 = vld [vmem:[#allocation7 + $0x128] ss:$16 sps:$4 sm:$0xff]  }
 0x105   : > { %2222 = vmatpush1.bf16.msra.mxu0 %v20907_v32  ;;  %2263 = vmatpush1.bf16.msra.mxu1 %v20910_v33  ;;  %v20998_v32 = vld [vmem:[#allocation7 + $0x328] ss:$16 sps:$4 sm:$0xff]   ;;  %v21003_v33 = vld [vmem:[#allocation7 + $0x14c] ss:$16 sps:$4 sm:$0xff]  }
 0x106   : > { %2223 = vmatprep.subr.bf16.mxu0 %v20915_v34  ;;  %2264 = vmatprep.subr.bf16.mxu1 %v20918_v35  ;;  %v21006_v34 = vld [vmem:[#allocation7 + $0x34c] ss:$16 sps:$4 sm:$0xff]   ;;  %v21001_v35 = vld [vmem:[#allocation7 + $0x148] ss:$16 sps:$4 sm:$0xff]  }
 0x109   : > { %2224 = vmatpush1.bf16.msra.mxu0 %v20913_v36  ;;  %2265 = vmatpush1.bf16.msra.mxu1 %v20916_v37  ;;  %v21004_v36 = vld [vmem:[#allocation7 + $0x348] ss:$16 sps:$4 sm:$0xff]   ;;  %v21009_v37 = vld [vmem:[#allocation7 + $0x16c] ss:$16 sps:$4 sm:$0xff]  }
 0x10a   : > { %2225 = vmatprep.subr.bf16.mxu0 %v20921_v38  ;;  %2266 = vmatprep.subr.bf16.mxu1 %v20924_v39  ;;  %v21012_v38 = vld [vmem:[#allocation7 + $0x36c] ss:$16 sps:$4 sm:$0xff]   ;;  %v21007_v39 = vld [vmem:[#allocation7 + $0x168] ss:$16 sps:$4 sm:$0xff]  }
 0x10d   : > { %2226 = vmatpush1.bf16.msra.mxu0 %v20919_v40  ;;  %2267 = vmatpush1.bf16.msra.mxu1 %v20922_v41  ;;  %v21010_v40 = vld [vmem:[#allocation7 + $0x368] ss:$16 sps:$4 sm:$0xff]   ;;  %v21015_v41 = vld [vmem:[#allocation7 + $0x18c] ss:$16 sps:$4 sm:$0xff]  }
 0x10e   : > { %2227 = vmatprep.subr.bf16.mxu0 %v20927_v42  ;;  %2268 = vmatprep.subr.bf16.mxu1 %v20930_v45  ;;  %v21018_v42 = vld [vmem:[#allocation7 + $0x38c] ss:$16 sps:$4 sm:$0xff]   ;;  %v21013_v45 = vld [vmem:[#allocation7 + $0x188] ss:$16 sps:$4 sm:$0xff]  }
 0x111   : > { %2228 = vmatpush1.bf16.msra.mxu0 %v20925_v46  ;;  %2269 = vmatpush1.bf16.msra.mxu1 %v20928_v47  ;;  %v21016_v46 = vld [vmem:[#allocation7 + $0x388] ss:$16 sps:$4 sm:$0xff]   ;;  %v21021_v47 = vld [vmem:[#allocation7 + $0x1ac] ss:$16 sps:$4 sm:$0xff]  }
 0x112   : > { %2229 = vmatprep.subr.bf16.mxu0 %v20933_v48  ;;  %2270 = vmatprep.subr.bf16.mxu1 %v20936_v49  ;;  %v21024_v48 = vld [vmem:[#allocation7 + $0x3ac] ss:$16 sps:$4 sm:$0xff]   ;;  %v21019_v49 = vld [vmem:[#allocation7 + $0x1a8] ss:$16 sps:$4 sm:$0xff]  }
 0x115   : > { %2230 = vmatpush1.bf16.msra.mxu0 %v20931_v50  ;;  %2271 = vmatpush1.bf16.msra.mxu1 %v20934_v51  ;;  %v21022_v50 = vld [vmem:[#allocation7 + $0x3a8] ss:$16 sps:$4 sm:$0xff]   ;;  %v21027_v51 = vld [vmem:[#allocation7 + $0x1cc] ss:$16 sps:$4 sm:$0xff]  }
 0x116   : > { %2281 = vmatprep.subr.bf16.mxu0 %v20943_v52  ;;  %2322 = vmatprep.subr.bf16.mxu1 %v20946_v53  ;;  %v21030_v52 = vld [vmem:[#allocation7 + $0x3cc] ss:$16 sps:$4 sm:$0xff]   ;;  %v21025_v53 = vld [vmem:[#allocation7 + $0x1c8] ss:$16 sps:$4 sm:$0xff]  }
 0x118   : > { %2232 = vmatmul.mubr.bf16.vlgmr.msra.gmra.mrb[8].mxu0 %v24756_v54  ;;  %2273 = vmatmul.mubr.bf16.vlgmr.msra.gmra.mrb[8].mxu1 %v24760_v55 }
 0x119   : > { %2282 = vmatpush1.bf16.msra.mxu0 %v20941_v56  ;;  %2323 = vmatpush1.bf16.msra.mxu1 %v20944_v57  ;;  %v21028_v56 = vld [vmem:[#allocation7 + $0x3c8] ss:$16 sps:$4 sm:$0xff]   ;;  %v21033_v57 = vld [vmem:[#allocation7 + $0x1ec] ss:$16 sps:$4 sm:$0xff]  }
 0x11a   : > { %2283 = vmatprep.subr.bf16.mxu0 %v20949_v58  ;;  %2324 = vmatprep.subr.bf16.mxu1 %v20952_v62  ;;  %v21036_v58 = vld [vmem:[#allocation7 + $0x3ec] ss:$16 sps:$4 sm:$0xff]   ;;  %v21031_v62 = vld [vmem:[#allocation7 + $0x1e8] ss:$16 sps:$4 sm:$0xff]  }
 0x11b   : > { %2313 = vmatprep.mubr.bf16.mxu0 %v24720_v13  ;;  %2354 = vmatprep.mubr.bf16.mxu1 %v24724_v14  ;;  %v20968_v13 = vld [vmem:[#allocation7 + $0x288] ss:$16 sps:$4 sm:$0xff]   ;;  %v20973_v14 = vld [vmem:[#allocation7 + $0xac] ss:$16 sps:$4 sm:$0xff]  }
 0x11d   : > { %2284 = vmatpush1.bf16.msra.mxu0 %v20947_v63  ;;  %2325 = vmatpush1.bf16.msra.mxu1 %v20950_v59  ;;  %v21034_v63 = vld [vmem:[#allocation7 + $0x3e8] ss:$16 sps:$4 sm:$0xff]   ;;  %v21039_v59 = vld [vmem:[#allocation7 + $0x40c] ss:$16 sps:$4 sm:$0xff]  }
 0x11e   : > { %2285 = vmatprep.subr.bf16.mxu0 %v20955_v61  ;;  %2326 = vmatprep.subr.bf16.mxu1 %v20958_v1  ;;  %v21042_v61 = vld [vmem:[#allocation7 + $0x60c] ss:$16 sps:$4 sm:$0xff]   ;;  %v21037_v1 = vld [vmem:[#allocation7 + $0x408] ss:$16 sps:$4 sm:$0xff]  }
 0x121   : > { %2286 = vmatpush1.bf16.msra.mxu0 %v20953_v2  ;;  %2327 = vmatpush1.bf16.msra.mxu1 %v20956_v4  ;;  %v21040_v2 = vld [vmem:[#allocation7 + $0x608] ss:$16 sps:$4 sm:$0xff]   ;;  %v21045_v4 = vld [vmem:[#allocation7 + $0x42c] ss:$16 sps:$4 sm:$0xff]  }
 0x122   : > { %2287 = vmatprep.subr.bf16.mxu0 %v20961_v5  ;;  %2328 = vmatprep.subr.bf16.mxu1 %v20964_v6  ;;  %v21048_v5 = vld [vmem:[#allocation7 + $0x62c] ss:$16 sps:$4 sm:$0xff]   ;;  %v21043_v6 = vld [vmem:[#allocation7 + $0x428] ss:$16 sps:$4 sm:$0xff]  }
 0x125   : > { %2288 = vmatpush1.bf16.msra.mxu0 %v20959_v7  ;;  %2329 = vmatpush1.bf16.msra.mxu1 %v20962_v8  ;;  %v21046_v7 = vld [vmem:[#allocation7 + $0x628] ss:$16 sps:$4 sm:$0xff]   ;;  %v21051_v8 = vld [vmem:[#allocation7 + $0x44c] ss:$16 sps:$4 sm:$0xff]  }
 0x126   : > { %2289 = vmatprep.subr.bf16.mxu0 %v20967_v9  ;;  %2330 = vmatprep.subr.bf16.mxu1 %v20970_v10  ;;  %v21054_v9 = vld [vmem:[#allocation7 + $0x64c] ss:$16 sps:$4 sm:$0xff]   ;;  %v21049_v10 = vld [vmem:[#allocation7 + $0x448] ss:$16 sps:$4 sm:$0xff]  }
 0x129   : > { %2290 = vmatpush1.bf16.msra.mxu0 %v20965_v11  ;;  %2331 = vmatpush1.bf16.msra.mxu1 %v20968_v13  ;;  %v21052_v11 = vld [vmem:[#allocation7 + $0x648] ss:$16 sps:$4 sm:$0xff]   ;;  %v21057_v13 = vld [vmem:[#allocation7 + $0x46c] ss:$16 sps:$4 sm:$0xff]  }
 0x12a   : > { %2291 = vmatprep.subr.bf16.mxu0 %v20973_v14  ;;  %2332 = vmatprep.subr.bf16.mxu1 %v20976_v12  ;;  %v21060_v14 = vld [vmem:[#allocation7 + $0x66c] ss:$16 sps:$4 sm:$0xff]  }
 0x12b   : > { %v21063_v12 = vld [vmem:[#allocation7 + $0x48c] ss:$16 sps:$4 sm:$0xff]  }
 0x12d   : > { %2292 = vmatpush1.bf16.msra.mxu0 %v20971_v15  ;;  %2333 = vmatpush1.bf16.msra.mxu1 %v20974_v16  ;;  %v21066_v15 = vld [vmem:[#allocation7 + $0x68c] ss:$16 sps:$4 sm:$0xff]   ;;  %v21061_v16 = vld [vmem:[#allocation7 + $0x488] ss:$16 sps:$4 sm:$0xff]  }
 0x12e   : > { %2293 = vmatprep.subr.bf16.mxu0 %v20979_v17  ;;  %2334 = vmatprep.subr.bf16.mxu1 %v20982_v18  ;;  %v21064_v17 = vld [vmem:[#allocation7 + $0x688] ss:$16 sps:$4 sm:$0xff]   ;;  %v21069_v18 = vld [vmem:[#allocation7 + $0x4ac] ss:$16 sps:$4 sm:$0xff]  }
 0x131   : > { %2294 = vmatpush1.bf16.msra.mxu0 %v20977_v19  ;;  %2335 = vmatpush1.bf16.msra.mxu1 %v20980_v20  ;;  %v21070_v19 = vld [vmem:[#allocation7 + $0x6a8] ss:$16 sps:$4 sm:$0xff]   ;;  %v21075_v20 = vld [vmem:[#allocation7 + $0x4cc] ss:$16 sps:$4 sm:$0xff]  }
 0x132   : > { %2295 = vmatprep.subr.bf16.mxu0 %v20985_v21  ;;  %2336 = vmatprep.subr.bf16.mxu1 %v20988_v22  ;;  %v21078_v21 = vld [vmem:[#allocation7 + $0x6cc] ss:$16 sps:$4 sm:$0xff]  }
 0x135   : > { %2296 = vmatpush1.bf16.msra.mxu0 %v20983_v23  ;;  %2337 = vmatpush1.bf16.msra.mxu1 %v20986_v24  ;;  %v21073_v24 = vld [vmem:[#allocation7 + $0x4c8] ss:$16 sps:$4 sm:$0xff]  }
 0x136   : > { %2297 = vmatprep.subr.bf16.mxu0 %v20991_v25  ;;  %2338 = vmatprep.subr.bf16.mxu1 %v20994_v26  ;;  %v21076_v25 = vld [vmem:[#allocation7 + $0x6c8] ss:$16 sps:$4 sm:$0xff]  }
 0x139   : > { %2298 = vmatpush1.bf16.msra.mxu0 %v20989_v27  ;;  %2339 = vmatpush1.bf16.msra.mxu1 %v20992_v28  ;;  %v21081_v28 = vld [vmem:[#allocation7 + $0x4ec] ss:$16 sps:$4 sm:$0xff]  }
 0x13a   : > { %2299 = vmatprep.subr.bf16.mxu0 %v20997_v29  ;;  %2340 = vmatprep.subr.bf16.mxu1 %v21000_v30 }
 0x13d   : > { %2300 = vmatpush1.bf16.msra.mxu0 %v20995_v31  ;;  %2341 = vmatpush1.bf16.msra.mxu1 %v20998_v32  ;;  %v21084_v31 = vld [vmem:[#allocation7 + $0x6ec] ss:$16 sps:$4 sm:$0xff]  }
 0x13e   : > { %2301 = vmatprep.subr.bf16.mxu0 %v21003_v33  ;;  %2342 = vmatprep.subr.bf16.mxu1 %v21006_v34  ;;  %v21079_v34 = vld [vmem:[#allocation7 + $0x4e8] ss:$16 sps:$4 sm:$0xff]  }
 0x141   : > { %2302 = vmatpush1.bf16.msra.mxu0 %v21001_v35  ;;  %2343 = vmatpush1.bf16.msra.mxu1 %v21004_v36  ;;  %v21082_v35 = vld [vmem:[#allocation7 + $0x6e8] ss:$16 sps:$4 sm:$0xff]   ;;  %v21087_v36 = vld [vmem:[#allocation7 + $0x50c] ss:$16 sps:$4 sm:$0xff]  }
 0x142   : > { %2303 = vmatprep.subr.bf16.mxu0 %v21009_v37  ;;  %2344 = vmatprep.subr.bf16.mxu1 %v21012_v38  ;;  %v21090_v37 = vld [vmem:[#allocation7 + $0x70c] ss:$16 sps:$4 sm:$0xff]   ;;  %v21085_v38 = vld [vmem:[#allocation7 + $0x508] ss:$16 sps:$4 sm:$0xff]  }
 0x145   : > { %2304 = vmatpush1.bf16.msra.mxu0 %v21007_v39  ;;  %2345 = vmatpush1.bf16.msra.mxu1 %v21010_v40  ;;  %v21088_v39 = vld [vmem:[#allocation7 + $0x708] ss:$16 sps:$4 sm:$0xff]   ;;  %v21093_v40 = vld [vmem:[#allocation7 + $0x52c] ss:$16 sps:$4 sm:$0xff]  }
 0x146   : > { %2305 = vmatprep.subr.bf16.mxu0 %v21015_v41  ;;  %2346 = vmatprep.subr.bf16.mxu1 %v21018_v42  ;;  %v21096_v41 = vld [vmem:[#allocation7 + $0x72c] ss:$16 sps:$4 sm:$0xff]   ;;  %v21091_v42 = vld [vmem:[#allocation7 + $0x528] ss:$16 sps:$4 sm:$0xff]  }
 0x149   : > { %2306 = vmatpush1.bf16.msra.mxu0 %v21013_v45  ;;  %2347 = vmatpush1.bf16.msra.mxu1 %v21016_v46  ;;  %v21094_v45 = vld [vmem:[#allocation7 + $0x728] ss:$16 sps:$4 sm:$0xff]   ;;  %v21099_v46 = vld [vmem:[#allocation7 + $0x54c] ss:$16 sps:$4 sm:$0xff]  }
 0x14a   : > { %2307 = vmatprep.subr.bf16.mxu0 %v21021_v47  ;;  %2348 = vmatprep.subr.bf16.mxu1 %v21024_v48  ;;  %v21102_v47 = vld [vmem:[#allocation7 + $0x74c] ss:$16 sps:$4 sm:$0xff]   ;;  %v21097_v48 = vld [vmem:[#allocation7 + $0x548] ss:$16 sps:$4 sm:$0xff]  }
 0x14d   : > { %2308 = vmatpush1.bf16.msra.mxu0 %v21019_v49  ;;  %2349 = vmatpush1.bf16.msra.mxu1 %v21022_v50  ;;  %v21100_v49 = vld [vmem:[#allocation7 + $0x748] ss:$16 sps:$4 sm:$0xff]   ;;  %v21105_v50 = vld [vmem:[#allocation7 + $0x56c] ss:$16 sps:$4 sm:$0xff]  }
 0x14e   : > { %2309 = vmatprep.subr.bf16.mxu0 %v21027_v51  ;;  %2350 = vmatprep.subr.bf16.mxu1 %v21030_v52  ;;  %v21108_v51 = vld [vmem:[#allocation7 + $0x76c] ss:$16 sps:$4 sm:$0xff]   ;;  %v21103_v52 = vld [vmem:[#allocation7 + $0x568] ss:$16 sps:$4 sm:$0xff]  }
 0x151   : > { %2310 = vmatpush1.bf16.msra.mxu0 %v21025_v53  ;;  %2351 = vmatpush1.bf16.msra.mxu1 %v21028_v56  ;;  %v21106_v53 = vld [vmem:[#allocation7 + $0x768] ss:$16 sps:$4 sm:$0xff]   ;;  %v21111_v56 = vld [vmem:[#allocation7 + $0x58c] ss:$16 sps:$4 sm:$0xff]  }
 0x152   : > { %2311 = vmatprep.subr.bf16.mxu0 %v21033_v57  ;;  %2352 = vmatprep.subr.bf16.mxu1 %v21036_v58  ;;  %v21114_v57 = vld [vmem:[#allocation7 + $0x78c] ss:$16 sps:$4 sm:$0xff]   ;;  %v21109_v58 = vld [vmem:[#allocation7 + $0x588] ss:$16 sps:$4 sm:$0xff]  }
 0x155   : > { %2312 = vmatpush1.bf16.msra.mxu0 %v21031_v62  ;;  %2353 = vmatpush1.bf16.msra.mxu1 %v21034_v63  ;;  %v21112_v62 = vld [vmem:[#allocation7 + $0x788] ss:$16 sps:$4 sm:$0xff]   ;;  %v21117_v63 = vld [vmem:[#allocation7 + $0x5ac] ss:$16 sps:$4 sm:$0xff]  }
 0x156   : > { %2363 = vmatprep.subr.bf16.mxu0 %v21039_v59  ;;  %2404 = vmatprep.subr.bf16.mxu1 %v21042_v61  ;;  %v21120_v59 = vld [vmem:[#allocation7 + $0x7ac] ss:$16 sps:$4 sm:$0xff]   ;;  %v21115_v61 = vld [vmem:[#allocation7 + $0x5a8] ss:$16 sps:$4 sm:$0xff]  }
 0x158   : > { %2314 = vmatmul.mubr.bf16.vlgmr.msra.gmra.mrb[12].mxu0 %v24730_v43  ;;  %2355 = vmatmul.mubr.bf16.vlgmr.msra.gmra.mrb[12].mxu1 %v24734_v44  ;;  %v21055_v43 = vld [vmem:[#allocation7 + $0x468] ss:$16 sps:$4 sm:$0xff]  }
 0x159   : > { %2364 = vmatpush1.bf16.msra.mxu0 %v21037_v1  ;;  %2405 = vmatpush1.bf16.msra.mxu1 %v21040_v2  ;;  %v21058_v44 = vld [vmem:[#allocation7 + $0x668] ss:$16 sps:$4 sm:$0xff]   ;;  %v21123_v2 = vld [vmem:[#allocation7 + $0x5cc] ss:$16 sps:$4 sm:$0xff]  }
 0x15a   : > { %2365 = vmatprep.subr.bf16.mxu0 %v21045_v4  ;;  %2406 = vmatprep.subr.bf16.mxu1 %v21048_v5  ;;  %v21118_v1 = vld [vmem:[#allocation7 + $0x7a8] ss:$16 sps:$4 sm:$0xff]   ;;  %v21126_v4 = vld [vmem:[#allocation7 + $0x7cc] ss:$16 sps:$4 sm:$0xff]  }
 0x15b   : > { %2395 = vmatprep.mubr.bf16.mxu0 %v24743_v60  ;;  %2436 = vmatprep.mubr.bf16.mxu1 %v24750_v0  ;;  %v21072_v60 = vld [vmem:[#allocation7 + $0x6ac] ss:$16 sps:$4 sm:$0xff]   ;;  %v21067_v0 = vld [vmem:[#allocation7 + $0x4a8] ss:$16 sps:$4 sm:$0xff]  }
 0x15c   : > { %v21121_v5 = vld [vmem:[#allocation7 + $0x5c8] ss:$16 sps:$4 sm:$0xff]  }
 0x15d   : > { %2366 = vmatpush1.bf16.msra.mxu0 %v21043_v6  ;;  %2407 = vmatpush1.bf16.msra.mxu1 %v21046_v7  ;;  %v21124_v6 = vld [vmem:[#allocation7 + $0x7c8] ss:$16 sps:$4 sm:$0xff]   ;;  %v21129_v7 = vld [vmem:[#allocation7 + $0x5ec] ss:$16 sps:$4 sm:$0xff]  }
 0x15e   : > { %2367 = vmatprep.subr.bf16.mxu0 %v21051_v8  ;;  %2408 = vmatprep.subr.bf16.mxu1 %v21054_v9  ;;  %v21132_v8 = vld [vmem:[#allocation7 + $0x7ec] ss:$16 sps:$4 sm:$0xff]   ;;  %v21127_v9 = vld [vmem:[#allocation7 + $0x5e8] ss:$16 sps:$4 sm:$0xff]  }
 0x161   : > { %2368 = vmatpush1.bf16.msra.mxu0 %v21049_v10  ;;  %2409 = vmatpush1.bf16.msra.mxu1 %v21052_v11  ;;  %v21130_v10 = vld [vmem:[#allocation7 + $0x7e8] ss:$16 sps:$4 sm:$0xff]  }
 0x162   : > { %2369 = vmatprep.subr.bf16.mxu0 %v21057_v13  ;;  %2410 = vmatprep.subr.bf16.mxu1 %v21060_v14 }
 0x165   : > { %2370 = vmatpush1.bf16.msra.mxu0 %v21055_v43  ;;  %2411 = vmatpush1.bf16.msra.mxu1 %v21058_v44 }
 0x166   : > { %2371 = vmatprep.subr.bf16.mxu0 %v21063_v12  ;;  %2412 = vmatprep.subr.bf16.mxu1 %v21066_v15 }
 0x169   : > { %2372 = vmatpush1.bf16.msra.mxu0 %v21061_v16  ;;  %2413 = vmatpush1.bf16.msra.mxu1 %v21064_v17 }
 0x16a   : > { %2373 = vmatprep.subr.bf16.mxu0 %v21069_v18  ;;  %2414 = vmatprep.subr.bf16.mxu1 %v21072_v60 }
 0x16b   : > { %v24770_v22 = vpop.f32.mrb[0].mxu0  ;;  %v24772_v23 = vpop.f32.mrb[0].mxu1 }
 0x16c   : > { %v24774_v26 = vpop.f32.mrb[1].mxu0  ;;  %v24776_v27 = vpop.f32.mrb[1].mxu1 }
 0x16d   : > { %v765_v29 = vpop.f32.mrb[2].mxu0  ;;  %v806_v30 = vpop.f32.mrb[2].mxu1  ;;  %2374 = vmatpush1.bf16.msra.mxu0 %v21067_v0  ;;  %2415 = vmatpush1.bf16.msra.mxu1 %v21070_v19 }
 0x16e   : > { %v766_v32 = vpop.f32.mrb[3].mxu0  ;;  %v807_v33 = vpop.f32.mrb[3].mxu1  ;;  %2375 = vmatprep.subr.bf16.mxu0 %v21075_v20  ;;  %2416 = vmatprep.subr.bf16.mxu1 %v21078_v21  ;;  %v21135_v29 = vld [vmem:[#allocation9 + $0x4] ss:$16 sps:$4 sm:$0xff]  }
 0x16f   : > { %v21136_v32 = vld [vmem:[#allocation9 + $0x8] ss:$16 sps:$4 sm:$0xff]  }
 0x171   : > { %2376 = vmatpush1.bf16.msra.mxu0 %v21073_v24  ;;  %2417 = vmatpush1.bf16.msra.mxu1 %v21076_v25 }
 0x172   : > { %2377 = vmatprep.subr.bf16.mxu0 %v21081_v28  ;;  %2418 = vmatprep.subr.bf16.mxu1 %v21084_v31 }
 0x175   : > { %2378 = vmatpush1.bf16.msra.mxu0 %v21079_v34  ;;  %2419 = vmatpush1.bf16.msra.mxu1 %v21082_v35  ;;  %v21138_v34 = vld [vmem:[#allocation9 + $0xc] ss:$16 sps:$4 sm:$0xff]   ;;  %v21141_v35 = vld [vmem:[#allocation9 + $0x24] ss:$16 sps:$4 sm:$0xff]  }
 0x176   : > { %2379 = vmatprep.subr.bf16.mxu0 %v21087_v36  ;;  %2420 = vmatprep.subr.bf16.mxu1 %v21090_v37  ;;  %v21144_v36 = vld [vmem:[#allocation9 + $0x2c] ss:$16 sps:$4 sm:$0xff]   ;;  %v21139_v37 = vld [vmem:[#allocation9 + $0x20] ss:$16 sps:$4 sm:$0xff]  }
 0x179   : > { %2380 = vmatpush1.bf16.msra.mxu0 %v21085_v38  ;;  %2421 = vmatpush1.bf16.msra.mxu1 %v21088_v39  ;;  %v21142_v38 = vld [vmem:[#allocation9 + $0x28] ss:$16 sps:$4 sm:$0xff]   ;;  %v21147_v39 = vld [vmem:[#allocation9 + $0x44] ss:$16 sps:$4 sm:$0xff]  }
 0x17a   : > { %2381 = vmatprep.subr.bf16.mxu0 %v21093_v40  ;;  %2422 = vmatprep.subr.bf16.mxu1 %v21096_v41  ;;  %v21150_v40 = vld [vmem:[#allocation9 + $0x4c] ss:$16 sps:$4 sm:$0xff]   ;;  %v21145_v41 = vld [vmem:[#allocation9 + $0x40] ss:$16 sps:$4 sm:$0xff]  }
 0x17d   : > { %2382 = vmatpush1.bf16.msra.mxu0 %v21091_v42  ;;  %2423 = vmatpush1.bf16.msra.mxu1 %v21094_v45  ;;  %v21148_v42 = vld [vmem:[#allocation9 + $0x48] ss:$16 sps:$4 sm:$0xff]   ;;  %v21153_v45 = vld [vmem:[#allocation9 + $0x64] ss:$16 sps:$4 sm:$0xff]  }
 0x17e   : > { %2383 = vmatprep.subr.bf16.mxu0 %v21099_v46  ;;  %2424 = vmatprep.subr.bf16.mxu1 %v21102_v47  ;;  %v21156_v46 = vld [vmem:[#allocation9 + $0x6c] ss:$16 sps:$4 sm:$0xff]   ;;  %v21151_v47 = vld [vmem:[#allocation9 + $0x60] ss:$16 sps:$4 sm:$0xff]  }
 0x181   : > { %2384 = vmatpush1.bf16.msra.mxu0 %v21097_v48  ;;  %2425 = vmatpush1.bf16.msra.mxu1 %v21100_v49  ;;  %v21154_v48 = vld [vmem:[#allocation9 + $0x68] ss:$16 sps:$4 sm:$0xff]   ;;  %v21159_v49 = vld [vmem:[#allocation9 + $0x84] ss:$16 sps:$4 sm:$0xff]  }
 0x182   : > { %2385 = vmatprep.subr.bf16.mxu0 %v21105_v50  ;;  %2426 = vmatprep.subr.bf16.mxu1 %v21108_v51  ;;  %v21162_v50 = vld [vmem:[#allocation9 + $0x8c] ss:$16 sps:$4 sm:$0xff]   ;;  %v21157_v51 = vld [vmem:[#allocation9 + $0x80] ss:$16 sps:$4 sm:$0xff]  }
 0x185   : > { %2386 = vmatpush1.bf16.msra.mxu0 %v21103_v52  ;;  %2427 = vmatpush1.bf16.msra.mxu1 %v21106_v53  ;;  %v21160_v52 = vld [vmem:[#allocation9 + $0x88] ss:$16 sps:$4 sm:$0xff]   ;;  %v21165_v53 = vld [vmem:[#allocation9 + $0xa4] ss:$16 sps:$4 sm:$0xff]  }
 0x186   : > { %2387 = vmatprep.subr.bf16.mxu0 %v21111_v56  ;;  %2428 = vmatprep.subr.bf16.mxu1 %v21114_v57  ;;  %v21168_v56 = vld [vmem:[#allocation9 + $0xac] ss:$16 sps:$4 sm:$0xff]   ;;  %v21163_v57 = vld [vmem:[#allocation9 + $0xa0] ss:$16 sps:$4 sm:$0xff]  }
 0x189   : > { %2388 = vmatpush1.bf16.msra.mxu0 %v21109_v58  ;;  %2429 = vmatpush1.bf16.msra.mxu1 %v21112_v62  ;;  %v21166_v58 = vld [vmem:[#allocation9 + $0xa8] ss:$16 sps:$4 sm:$0xff]   ;;  %v21171_v62 = vld [vmem:[#allocation9 + $0xc4] ss:$16 sps:$4 sm:$0xff]  }
 0x18a   : > { %2389 = vmatprep.subr.bf16.mxu0 %v21117_v63  ;;  %2430 = vmatprep.subr.bf16.mxu1 %v21120_v59  ;;  %v21174_v63 = vld [vmem:[#allocation9 + $0xcc] ss:$16 sps:$4 sm:$0xff]   ;;  %v21169_v59 = vld [vmem:[#allocation9 + $0xc0] ss:$16 sps:$4 sm:$0xff]  }
 0x18d   : > { %2390 = vmatpush1.bf16.msra.mxu0 %v21115_v61  ;;  %2431 = vmatpush1.bf16.msra.mxu1 %v21118_v1  ;;  %v21172_v61 = vld [vmem:[#allocation9 + $0xc8] ss:$16 sps:$4 sm:$0xff]   ;;  %v21177_v1 = vld [vmem:[#allocation9 + $0xe4] ss:$16 sps:$4 sm:$0xff]  }
 0x18e   : > { %2391 = vmatprep.subr.bf16.mxu0 %v21123_v2  ;;  %2432 = vmatprep.subr.bf16.mxu1 %v21126_v4  ;;  %v21180_v2 = vld [vmem:[#allocation9 + $0xec] ss:$16 sps:$4 sm:$0xff]   ;;  %v21175_v4 = vld [vmem:[#allocation9 + $0xe0] ss:$16 sps:$4 sm:$0xff]  }
 0x191   : > { %2392 = vmatpush1.bf16.msra.mxu0 %v21121_v5  ;;  %2433 = vmatpush1.bf16.msra.mxu1 %v21124_v6  ;;  %v21178_v5 = vld [vmem:[#allocation9 + $0xe8] ss:$16 sps:$4 sm:$0xff]   ;;  %v21183_v6 = vld [vmem:[#allocation7 + $0x4] ss:$16 sps:$4 sm:$0xff]  }
 0x192   : > { %2393 = vmatprep.subr.bf16.mxu0 %v21129_v7  ;;  %2434 = vmatprep.subr.bf16.mxu1 %v21132_v8  ;;  %v21186_v7 = vld [vmem:[#allocation7 + $0x204] ss:$16 sps:$4 sm:$0xff]  }
 0x195   : > { %2394 = vmatpush1.bf16.msra.mxu0 %v21127_v9  ;;  %2435 = vmatpush1.bf16.msra.mxu1 %v21130_v10 }
 0x196   : > { %2949 = vmatprep.subr.bf16.mxu0 %v21135_v29  ;;  %2990 = vmatprep.subr.bf16.mxu1 %v21138_v34 }
 0x198   : > { %2396 = vmatmul.mubr.bf16.vlgmr.msra.gmra.mrb[16].mxu0 %v24756_v54  ;;  %2437 = vmatmul.mubr.bf16.vlgmr.msra.gmra.mrb[16].mxu1 %v24760_v55 }
 0x199   : > { %2981 = vmatprep.mubr.bf16.mxu0 %v24475_v3  ;;  %3022 = vmatprep.mubr.bf16.mxu1 %v24475_v3 }
 0x19a   : > { %2991 = vmatpush1.bf16.msra.mxu1 %v21136_v32 }
 0x19b   : > { %2992 = vmatprep.subr.bf16.mxu1 %v21144_v36 }
 0x19e   : > { %2993 = vmatpush1.bf16.msra.mxu1 %v21142_v38 }
 0x19f   : > { %2994 = vmatprep.subr.bf16.mxu1 %v21150_v40 }
 0x1a2   : > { %2995 = vmatpush1.bf16.msra.mxu1 %v21148_v42 }
 0x1a3   : > { %2996 = vmatprep.subr.bf16.mxu1 %v21156_v46 }
 0x1a6   : > { %2997 = vmatpush1.bf16.msra.mxu1 %v21154_v48 }
 0x1a7   : > { %2998 = vmatprep.subr.bf16.mxu1 %v21162_v50 }
 0x1aa   : > { %2999 = vmatpush1.bf16.msra.mxu1 %v21160_v52 }
 0x1ab   : > { %v2151_v11 = vpop.f32.mrb[4].mxu0  ;;  %v2192_v13 = vpop.f32.mrb[4].mxu1  ;;  %3000 = vmatprep.subr.bf16.mxu1 %v21168_v56 }
 0x1ac   : > { %v2152_v14 = vadd.f32 %v2151_v11, %v24770_v22  ;;  %v2153_v43 = vpop.f32.mrb[5].mxu0  ;;  %v2194_v44 = vpop.f32.mrb[5].mxu1 }
 0x1ad   : > { %v2154_v12 = vadd.f32 %v2153_v43, %v24774_v26  ;;  %v2155_v15 = vpop.f32.mrb[6].mxu0  ;;  %v2196_v16 = vpop.f32.mrb[6].mxu1  ;;  %v21133_v26 = vld [vmem:[#allocation9] ss:$16 sps:$4 sm:$0xff]  }
 0x1ae   : > { %v2193_v17 = vadd.f32 %v2192_v13, %v2152_v14  ;;  %v2156_v18 = vpop.f32.mrb[7].mxu0  ;;  %v2197_v60 = vpop.f32.mrb[7].mxu1  ;;  %2950 = vmatpush1.bf16.msra.mxu0 %v21133_v26  ;;  %3001 = vmatpush1.bf16.msra.mxu1 %v21166_v58 }
 0x1af   : > { %v2195_v54 = vadd.f32 %v2194_v44, %v2154_v12  ;;  %2951 = vmatprep.subr.bf16.mxu0 %v21141_v35  ;;  %3002 = vmatprep.subr.bf16.mxu1 %v21174_v63  ;;  %v2447_v18 = vlaneseq }
 0x1b1   : > { %v2448_v60 = vshrl.u32 %v2447_v18, 7  ;;  %v21199_v18 = vld [vmem:[#allocation7 + $0x60] ss:$16 sps:$4 sm:$0xff]  }
 0x1b2   : > { %2952 = vmatpush1.bf16.msra.mxu0 %v21139_v37  ;;  %3003 = vmatpush1.bf16.msra.mxu1 %v21172_v61 }
 0x1b3   : > { %2953 = vmatprep.subr.bf16.mxu0 %v21147_v39  ;;  %3004 = vmatprep.subr.bf16.mxu1 %v21180_v2  ;;  %v21184_v2 = vld [vmem:[#allocation7 + $0x200] ss:$16 sps:$4 sm:$0xff]  }
 0x1b6   : > { %2954 = vmatpush1.bf16.msra.mxu0 %v21145_v41  ;;  %3005 = vmatpush1.bf16.msra.mxu1 %v21178_v5  ;;  %v24808_v5 = vld [vmem:[%s24696_s9 + $0x20] sm:$0xff] }
 0x1b7   : > { %2955 = vmatprep.subr.bf16.mxu0 %v21153_v45  ;;  %4380 = vmatprep.subr.bf16.mxu1 %v21186_v7 }
 0x1ba   : > { %2956 = vmatpush1.bf16.msra.mxu0 %v21151_v47 }
 0x1bb   : > { %2957 = vmatprep.subr.bf16.mxu0 %v21159_v49 }
 0x1be   : > { %2958 = vmatpush1.bf16.msra.mxu0 %v21157_v51  ;;  %v2484_v51 = vld [vmem:[#allocation3] sm:$0xff] }
 0x1bf   : > { %2959 = vmatprep.subr.bf16.mxu0 %v21165_v53 }
 0x1c2   : > { %2960 = vmatpush1.bf16.msra.mxu0 %v21163_v57 }
 0x1c3   : > { %2961 = vmatprep.subr.bf16.mxu0 %v21171_v62 }
 0x1c6   : > { %2962 = vmatpush1.bf16.msra.mxu0 %v21169_v59 }
 0x1c7   : > { %2963 = vmatprep.subr.bf16.mxu0 %v21177_v1  ;;  %v21181_v1 = vld [vmem:[#allocation7] ss:$16 sps:$4 sm:$0xff]  }
 0x1ca   : > { %2964 = vmatpush1.bf16.msra.mxu0 %v21175_v4 }
 0x1cb   : > { %4339 = vmatprep.subr.bf16.mxu0 %v21183_v6  ;;  %v24811_v6 = vld [vmem:[%s24696_s9 + $0x28] sm:$0xff] }
 0x1eb   : > { %v2233_v0 = vpop.f32.mrb[8].mxu0  ;;  %v2274_v55 = vpop.f32.mrb[8].mxu1 }
 0x1ec   : > { %v2234_v19 = vadd.f32 %v2233_v0, %v2193_v17  ;;  %v2235_v20 = vpop.f32.mrb[9].mxu0  ;;  %v2276_v21 = vpop.f32.mrb[9].mxu1  ;;  %v2445_v0 = vld [vmem:[%s25475_s3] sm:$0xf] }
 0x1ed   : > { %v2236_v24 = vadd.f32 %v2235_v20, %v2195_v54  ;;  %v2237_v25 = vpop.f32.mrb[10].mxu0  ;;  %v2278_v28 = vpop.f32.mrb[10].mxu1  ;;  %v24790_v54 = vsub.s32 1, %v2448_v60 }
 0x1ee   : > { %v24784_v22 = vadd.f32 %v2274_v55, %v2234_v19  ;;  %v2238_v30 = vpop.f32.mrb[11].mxu0  ;;  %v2279_v31 = vpop.f32.mrb[11].mxu1  ;;  %v24795_v55 = vsub.s32 0, %v2448_v60  ;;  %v24801_v25 = vsub.s32 2, %v2448_v60  ;;  %v24803_v28 = vsub.s32 3, %v2448_v60 }
 0x1ef   : > { %v24786_v33 = vadd.f32 %v2276_v21, %v2236_v24  ;;  %v21202_v60 = vld [vmem:[#allocation7 + $0x260] ss:$16 sps:$4 sm:$0xff]  }
 0x1f0   : > { %v2458_v26 = vrot.slane %v2445_v0, %v24801_v25 }
 0x22b   : > { %v2315_v8 = vpop.f32.mrb[12].mxu0  ;;  %v2356_v9 = vpop.f32.mrb[12].mxu1 }
 0x22c   : > { %v2316_v10 = vadd.f32 %v2315_v8, %v24772_v23  ;;  %v2317_v11 = vpop.f32.mrb[13].mxu0  ;;  %v2358_v13 = vpop.f32.mrb[13].mxu1  ;;  %v2454_v23 = vrot.slane %v2445_v0, %v24790_v54  ;;  %v21189_v8 = vld [vmem:[#allocation7 + $0x24] ss:$16 sps:$4 sm:$0xff]  }
 0x22d   : > { %v2318_v14 = vadd.f32 %v2317_v11, %v24776_v27  ;;  %v2319_v43 = vpop.f32.mrb[14].mxu0  ;;  %v2360_v44 = vpop.f32.mrb[14].mxu1  ;;  %v2450_v27 = vrot.slane %v2445_v0, %v24795_v55  ;;  %v24819_v11 = vcombine.high %v24811_v6, %v24811_v6 }
 0x22e   : > { %v2357_v12 = vadd.f32 %v2356_v9, %v2316_v10  ;;  %v2320_v15 = vpop.f32.mrb[15].mxu0  ;;  %v2361_v16 = vpop.f32.mrb[15].mxu1  ;;  %v2468_v19 = vadd.f32 %v2454_v23, %v24786_v33  ;;  %v2462_v33 = vrot.slane %v2445_v0, %v24803_v28  ;;  %v21192_v9 = vld [vmem:[#allocation7 + $0x224] ss:$16 sps:$4 sm:$0xff]   ;;  %v24815_v10 = vcombine.high %v24808_v5, %v24808_v5 }
 0x22f   : > { %v2359_v17 = vadd.f32 %v2358_v13, %v2318_v14  ;;  %v2467_v20 = vadd.f32 %v2450_v27, %v24784_v22  ;;  %v21187_v13 = vld [vmem:[#allocation7 + $0x20] ss:$16 sps:$4 sm:$0xff]   ;;  %v21195_v43 = vld [vmem:[#allocation7 + $0x44] ss:$16 sps:$4 sm:$0xff]  }
 0x230   : > { %v2475_v21 = vmul.f32 0.5, %v2468_v19  ;;  %v21190_v14 = vld [vmem:[#allocation7 + $0x220] ss:$16 sps:$4 sm:$0xff]   ;;  %v21198_v44 = vld [vmem:[#allocation7 + $0x244] ss:$16 sps:$4 sm:$0xff]  }
 0x231   : > { %v2471_v24 = vmul.f32 0.5, %v2467_v20  ;;  %v21196_v15 = vld [vmem:[#allocation7 + $0x240] ss:$16 sps:$4 sm:$0xff]   ;;  %v21201_v16 = vld [vmem:[#allocation7 + $0x64] ss:$16 sps:$4 sm:$0xff]  }
 0x232   : > { %24213 = vtanh.f32 %v2475_v21  ;;  %v21207_v0 = vld [vmem:[#allocation7 + $0x84] ss:$16 sps:$4 sm:$0xff]   ;;  %v21205_v27 = vld [vmem:[#allocation7 + $0x80] ss:$16 sps:$4 sm:$0xff]  }
 0x233   : > { %24215 = vtanh.f32 %v2471_v24  ;;  %v21210_v23 = vld [vmem:[#allocation7 + $0x284] ss:$16 sps:$4 sm:$0xff]   ;;  %v21208_v19 = vld [vmem:[#allocation7 + $0x280] ss:$16 sps:$4 sm:$0xff]  }
 0x234   : > { %v21213_v20 = vld [vmem:[#allocation7 + $0xa4] ss:$16 sps:$4 sm:$0xff]   ;;  %v21211_v24 = vld [vmem:[#allocation7 + $0xa0] ss:$16 sps:$4 sm:$0xff]  }
 0x235   : > { %v21216_v21 = vld [vmem:[#allocation7 + $0x2a4] ss:$16 sps:$4 sm:$0xff]  }
 0x23c   : > { %v24214_v45 = vpop.eup %24213 }
 0x23d   : > { %v24216_v46 = vpop.eup %24215  ;;  %v2477_v47 = vadd.f32 1.0, %v24214_v45  ;;  %v21238_v45 = vld [vmem:[#allocation7 + $0x320] ss:$16 sps:$4 sm:$0xff]  }
 0x23e   : > { %v2473_v49 = vadd.f32 1.0, %v24216_v46  ;;  %v21243_v46 = vld [vmem:[#allocation7 + $0x144] ss:$16 sps:$4 sm:$0xff]  }
 0x23f   : > { %v2478_v50 = vmul.f32 0.5, %v2477_v47  ;;  %v21246_v47 = vld [vmem:[#allocation7 + $0x344] ss:$16 sps:$4 sm:$0xff]  }
 0x240   : > { %v2474_v52 = vmul.f32 0.5, %v2473_v49  ;;  %v21244_v49 = vld [vmem:[#allocation7 + $0x340] ss:$16 sps:$4 sm:$0xff]  }
 0x241   : > { %v2485_v56 = vmul.f32 %v2484_v51, %v2478_v50  ;;  %v21249_v50 = vld [vmem:[#allocation7 + $0x164] ss:$16 sps:$4 sm:$0xff]  }
 0x242   : > { %v21252_v51 = vld [vmem:[#allocation7 + $0x364] ss:$16 sps:$4 sm:$0xff]  }
 0x26b   : > { %v2397_v29 = vpop.f32.mrb[16].mxu0  ;;  %v2438_v30 = vpop.f32.mrb[16].mxu1 }
 0x26c   : > { %v2398_v31 = vadd.f32 %v2397_v29, %v2357_v12  ;;  %v2399_v32 = vpop.f32.mrb[17].mxu0  ;;  %v2440_v34 = vpop.f32.mrb[17].mxu1  ;;  %v21193_v12 = vld [vmem:[#allocation7 + $0x40] ss:$16 sps:$4 sm:$0xff]  }
 0x26d   : > { %v2400_v35 = vadd.f32 %v2399_v32, %v2359_v17  ;;  %v2401_v36 = vpop.f32.mrb[18].mxu0  ;;  %v2442_v22 = vpop.f32.mrb[18].mxu1  ;;  %v21204_v17 = vld [vmem:[#allocation7 + $0x264] ss:$16 sps:$4 sm:$0xff]   ;;  %v21214_v29 = vld [vmem:[#allocation7 + $0x2a0] ss:$16 sps:$4 sm:$0xff]  }
 0x26e   : > { %v2439_v37 = vadd.f32 %v2438_v30, %v2398_v31  ;;  %v2402_v38 = vpop.f32.mrb[19].mxu0  ;;  %v2443_v39 = vpop.f32.mrb[19].mxu1  ;;  %v21219_v30 = vld [vmem:[#allocation7 + $0xc4] ss:$16 sps:$4 sm:$0xff]   ;;  %v21220_v32 = vld [vmem:[#allocation7 + $0x2c0] ss:$16 sps:$4 sm:$0xff]  }
 0x26f   : > { %v2441_v40 = vadd.f32 %v2440_v34, %v2400_v35  ;;  %v21222_v31 = vld [vmem:[#allocation7 + $0x2c4] ss:$16 sps:$4 sm:$0xff]   ;;  %v21226_v36 = vld [vmem:[#allocation7 + $0x2e0] ss:$16 sps:$4 sm:$0xff]  }
 0x270   : > { %v2469_v41 = vadd.f32 %v2458_v26, %v2439_v37  ;;  %v21217_v26 = vld [vmem:[#allocation7 + $0xc0] ss:$16 sps:$4 sm:$0xff]   ;;  %v21225_v34 = vld [vmem:[#allocation7 + $0xe4] ss:$16 sps:$4 sm:$0xff]  }
 0x271   : > { %v2470_v42 = vadd.f32 %v2462_v33, %v2441_v40  ;;  %v21228_v35 = vld [vmem:[#allocation7 + $0x2e4] ss:$16 sps:$4 sm:$0xff]   ;;  %v21223_v33 = vld [vmem:[#allocation7 + $0xe0] ss:$16 sps:$4 sm:$0xff]  }
 0x272   : > { %24217 = vtanh.f32 %v2469_v41  ;;  %v21231_v22 = vld [vmem:[#allocation7 + $0x104] ss:$16 sps:$4 sm:$0xff]   ;;  %v21229_v38 = vld [vmem:[#allocation7 + $0x100] ss:$16 sps:$4 sm:$0xff]  }
 0x273   : > { %v2480_v48 = vmul.f32 0.5, %v2470_v42  ;;  %v21234_v37 = vld [vmem:[#allocation7 + $0x304] ss:$16 sps:$4 sm:$0xff]   ;;  %v21232_v39 = vld [vmem:[#allocation7 + $0x300] ss:$16 sps:$4 sm:$0xff]  }
 0x274   : > { %v21237_v40 = vld [vmem:[#allocation7 + $0x124] ss:$16 sps:$4 sm:$0xff]   ;;  %v21235_v42 = vld [vmem:[#allocation7 + $0x120] ss:$16 sps:$4 sm:$0xff]  }
 0x275   : > { %24219 = vtanh.f32 %v2480_v48  ;;  %v21240_v41 = vld [vmem:[#allocation7 + $0x324] ss:$16 sps:$4 sm:$0xff]   ;;  %v21241_v48 = vld [vmem:[#allocation7 + $0x140] ss:$16 sps:$4 sm:$0xff]  }
 0x27c   : > { %v24218_v53 = vpop.eup %24217 }
 0x27d   : > { %v2486_v57 = vmul.f32 %v24218_v53, %v2474_v52  ;;  %v21247_v52 = vld [vmem:[#allocation7 + $0x160] ss:$16 sps:$4 sm:$0xff]  }
 0x27e   : > { %v21250_v53 = vld [vmem:[#allocation7 + $0x360] ss:$16 sps:$4 sm:$0xff]  }
 0x27f   : > { %v2487_v58 = vadd.f32 %v2486_v57, %v2485_v56  ;;  %v24220_v62 = vpop.eup %24219  ;;  %v21255_v56 = vld [vmem:[#allocation7 + $0x184] ss:$16 sps:$4 sm:$0xff]  }
 0x280   : > { %v2482_v63 = vadd.f32 1.0, %v24220_v62  ;;  %v21258_v57 = vld [vmem:[#allocation7 + $0x384] ss:$16 sps:$4 sm:$0xff]   ;;  %v21256_v62 = vld [vmem:[#allocation7 + $0x380] ss:$16 sps:$4 sm:$0xff]  }
 0x281   : > { %24221 = vtanh.f32 %v2487_v58  ;;  %2490 = vst [vmem:[#allocation3] sm:$0xff] %v2487_v58  ;;  %v21253_v58 = vld [vmem:[#allocation7 + $0x180] ss:$16 sps:$4 sm:$0xff]  }
 0x282   : > { %v2483_v59 = vmul.f32 0.5, %v2482_v63  ;;  %v21261_v63 = vld [vmem:[#allocation7 + $0x1a4] ss:$16 sps:$4 sm:$0xff]  }
 0x28b   : > { %v24222_v61 = vpop.eup %24221 }
 0x28c   : > { %v2489_v4 = vmul.f32 %v24222_v61, %v2483_v59  ;;  %v21264_v59 = vld [vmem:[#allocation7 + $0x3a4] ss:$16 sps:$4 sm:$0xff]   ;;  %v21259_v61 = vld [vmem:[#allocation7 + $0x1a0] ss:$16 sps:$4 sm:$0xff]  }
 0x28e   : > { %v2492_v7 = vpack.c.bf16 %v2489_v4, %v2489_v4  ;;  %v21270_v4 = vld [vmem:[#allocation7 + $0x3c4] ss:$16 sps:$4 sm:$0xff]  }
 0x290   : > { %2493 = vst [vmem:[%s24707_s12] sm:$0xf] %v2492_v7  ;;  %2982 = vmatmul.mubr.bf16.vlgmr.msra.gmra.mrb[20].mxu0 %v2492_v7  ;;  %3023 = vmatmul.mubr.bf16.vlgmr.msra.gmra.mrb[20].mxu1 %v2492_v7  ;;  %v21265_v7 = vld [vmem:[#allocation7 + $0x1c0] ss:$16 sps:$4 sm:$0xff]  }
 0x291   : > { %4340 = vmatpush1.bf16.msra.mxu0 %v21181_v1  ;;  %4381 = vmatpush1.bf16.msra.mxu1 %v21184_v2  ;;  %v21262_v1 = vld [vmem:[#allocation7 + $0x3a0] ss:$16 sps:$4 sm:$0xff]   ;;  %v21267_v2 = vld [vmem:[#allocation7 + $0x1c4] ss:$16 sps:$4 sm:$0xff]  }
 0x292   : > { %4341 = vmatprep.subr.bf16.mxu0 %v21189_v8  ;;  %4382 = vmatprep.subr.bf16.mxu1 %v21192_v9  ;;  %v21268_v8 = vld [vmem:[#allocation7 + $0x3c0] ss:$16 sps:$4 sm:$0xff]   ;;  %v21273_v9 = vld [vmem:[#allocation7 + $0x1e4] ss:$16 sps:$4 sm:$0xff]  }
 0x293   : > { %4371 = vmatprep.mubr.bf16.mxu0 %v24815_v10  ;;  %4412 = vmatprep.mubr.bf16.mxu1 %v24819_v11 }
 0x295   : > { %4342 = vmatpush1.bf16.msra.mxu0 %v21187_v13  ;;  %4383 = vmatpush1.bf16.msra.mxu1 %v21190_v14  ;;  %v21276_v13 = vld [vmem:[#allocation7 + $0x3e4] ss:$16 sps:$4 sm:$0xff]   ;;  %v21271_v14 = vld [vmem:[#allocation7 + $0x1e0] ss:$16 sps:$4 sm:$0xff]  }
 0x296   : > { %4343 = vmatprep.subr.bf16.mxu0 %v21195_v43  ;;  %4384 = vmatprep.subr.bf16.mxu1 %v21198_v44  ;;  %v21274_v43 = vld [vmem:[#allocation7 + $0x3e0] ss:$16 sps:$4 sm:$0xff]   ;;  %v21283_v44 = vld [vmem:[#allocation7 + $0x404] ss:$16 sps:$4 sm:$0xff]  }
 0x299   : > { %4344 = vmatpush1.bf16.msra.mxu0 %v21193_v12  ;;  %4385 = vmatpush1.bf16.msra.mxu1 %v21196_v15  ;;  %v21286_v12 = vld [vmem:[#allocation7 + $0x604] ss:$16 sps:$4 sm:$0xff]  }
 0x29a   : > { %4345 = vmatprep.subr.bf16.mxu0 %v21201_v16  ;;  %4386 = vmatprep.subr.bf16.mxu1 %v21204_v17  ;;  %v24825_v15 = vld [vmem:[%s24696_s9 + $0x30] sm:$0xff]  ;;  %v24828_v16 = vld [vmem:[%s24696_s9 + $0x38] sm:$0xff] }
 0x29b   : > { %v21281_v17 = vld [vmem:[#allocation7 + $0x400] ss:$16 sps:$4 sm:$0xff]  }
 0x29d   : > { %4346 = vmatpush1.bf16.msra.mxu0 %v21199_v18  ;;  %4387 = vmatpush1.bf16.msra.mxu1 %v21202_v60  ;;  %v21284_v18 = vld [vmem:[#allocation7 + $0x600] ss:$16 sps:$4 sm:$0xff]   ;;  %v24832_v60 = vcombine.low %v24808_v5, %v24808_v5 }
 0x29e   : > { %4347 = vmatprep.subr.bf16.mxu0 %v21207_v0  ;;  %4388 = vmatprep.subr.bf16.mxu1 %v21210_v23  ;;  %v24836_v0 = vcombine.low %v24811_v6, %v24811_v6  ;;  %v21289_v23 = vld [vmem:[#allocation7 + $0x424] ss:$16 sps:$4 sm:$0xff]   ;;  %v21287_v5 = vld [vmem:[#allocation7 + $0x420] ss:$16 sps:$4 sm:$0xff]  }
 0x29f   : > { %v21290_v6 = vld [vmem:[#allocation7 + $0x620] ss:$16 sps:$4 sm:$0xff]  }
 0x2a1   : > { %4348 = vmatpush1.bf16.msra.mxu0 %v21205_v27  ;;  %4389 = vmatpush1.bf16.msra.mxu1 %v21208_v19  ;;  %v21292_v27 = vld [vmem:[#allocation7 + $0x624] ss:$16 sps:$4 sm:$0xff]   ;;  %v24840_v19 = vcombine.high %v24825_v15, %v24825_v15 }
 0x2a2   : > { %4349 = vmatprep.subr.bf16.mxu0 %v21213_v20  ;;  %4390 = vmatprep.subr.bf16.mxu1 %v21216_v21  ;;  %v24844_v20 = vcombine.high %v24828_v16, %v24828_v16  ;;  %v21295_v21 = vld [vmem:[#allocation7 + $0x444] ss:$16 sps:$4 sm:$0xff]  }
 0x2a5   : > { %4350 = vmatpush1.bf16.msra.mxu0 %v21211_v24  ;;  %4391 = vmatpush1.bf16.msra.mxu1 %v21214_v29  ;;  %v21298_v24 = vld [vmem:[#allocation7 + $0x644] ss:$16 sps:$4 sm:$0xff]   ;;  %v21293_v29 = vld [vmem:[#allocation7 + $0x440] ss:$16 sps:$4 sm:$0xff]  }
 0x2a6   : > { %4351 = vmatprep.subr.bf16.mxu0 %v21219_v30  ;;  %4392 = vmatprep.subr.bf16.mxu1 %v21222_v31  ;;  %v21296_v30 = vld [vmem:[#allocation7 + $0x640] ss:$16 sps:$4 sm:$0xff]   ;;  %v21301_v31 = vld [vmem:[#allocation7 + $0x464] ss:$16 sps:$4 sm:$0xff]  }
 0x2a9   : > { %4352 = vmatpush1.bf16.msra.mxu0 %v21217_v26  ;;  %4393 = vmatpush1.bf16.msra.mxu1 %v21220_v32  ;;  %v21304_v26 = vld [vmem:[#allocation7 + $0x664] ss:$16 sps:$4 sm:$0xff]   ;;  %v21299_v32 = vld [vmem:[#allocation7 + $0x460] ss:$16 sps:$4 sm:$0xff]  }
 0x2aa   : > { %4353 = vmatprep.subr.bf16.mxu0 %v21225_v34  ;;  %4394 = vmatprep.subr.bf16.mxu1 %v21228_v35  ;;  %v21302_v34 = vld [vmem:[#allocation7 + $0x660] ss:$16 sps:$4 sm:$0xff]   ;;  %v21307_v35 = vld [vmem:[#allocation7 + $0x484] ss:$16 sps:$4 sm:$0xff]  }
 0x2ad   : > { %4354 = vmatpush1.bf16.msra.mxu0 %v21223_v33  ;;  %4395 = vmatpush1.bf16.msra.mxu1 %v21226_v36  ;;  %v21310_v33 = vld [vmem:[#allocation7 + $0x684] ss:$16 sps:$4 sm:$0xff]   ;;  %v21305_v36 = vld [vmem:[#allocation7 + $0x480] ss:$16 sps:$4 sm:$0xff]  }
 0x2ae   : > { %4355 = vmatprep.subr.bf16.mxu0 %v21231_v22  ;;  %4396 = vmatprep.subr.bf16.mxu1 %v21234_v37  ;;  %v21308_v22 = vld [vmem:[#allocation7 + $0x680] ss:$16 sps:$4 sm:$0xff]   ;;  %v21313_v37 = vld [vmem:[#allocation7 + $0x4a4] ss:$16 sps:$4 sm:$0xff]  }
 0x2b1   : > { %4356 = vmatpush1.bf16.msra.mxu0 %v21229_v38  ;;  %4397 = vmatpush1.bf16.msra.mxu1 %v21232_v39  ;;  %v21316_v38 = vld [vmem:[#allocation7 + $0x6a4] ss:$16 sps:$4 sm:$0xff]   ;;  %v21311_v39 = vld [vmem:[#allocation7 + $0x4a0] ss:$16 sps:$4 sm:$0xff]  }
 0x2b2   : > { %4357 = vmatprep.subr.bf16.mxu0 %v21237_v40  ;;  %4398 = vmatprep.subr.bf16.mxu1 %v21240_v41  ;;  %v21314_v40 = vld [vmem:[#allocation7 + $0x6a0] ss:$16 sps:$4 sm:$0xff]   ;;  %v21319_v41 = vld [vmem:[#allocation7 + $0x4c4] ss:$16 sps:$4 sm:$0xff]  }
 0x2b5   : > { %4358 = vmatpush1.bf16.msra.mxu0 %v21235_v42  ;;  %4399 = vmatpush1.bf16.msra.mxu1 %v21238_v45  ;;  %v21322_v42 = vld [vmem:[#allocation7 + $0x6c4] ss:$16 sps:$4 sm:$0xff]   ;;  %v21317_v45 = vld [vmem:[#allocation7 + $0x4c0] ss:$16 sps:$4 sm:$0xff]  }
 0x2b6   : > { %4359 = vmatprep.subr.bf16.mxu0 %v21243_v46  ;;  %4400 = vmatprep.subr.bf16.mxu1 %v21246_v47  ;;  %v21320_v46 = vld [vmem:[#allocation7 + $0x6c0] ss:$16 sps:$4 sm:$0xff]   ;;  %v21325_v47 = vld [vmem:[#allocation7 + $0x4e4] ss:$16 sps:$4 sm:$0xff]  }
 0x2b9   : > { %4360 = vmatpush1.bf16.msra.mxu0 %v21241_v48  ;;  %4401 = vmatpush1.bf16.msra.mxu1 %v21244_v49  ;;  %v21328_v48 = vld [vmem:[#allocation7 + $0x6e4] ss:$16 sps:$4 sm:$0xff]   ;;  %v21323_v49 = vld [vmem:[#allocation7 + $0x4e0] ss:$16 sps:$4 sm:$0xff]  }
 0x2ba   : > { %4361 = vmatprep.subr.bf16.mxu0 %v21249_v50  ;;  %4402 = vmatprep.subr.bf16.mxu1 %v21252_v51  ;;  %v21326_v50 = vld [vmem:[#allocation7 + $0x6e0] ss:$16 sps:$4 sm:$0xff]   ;;  %v21331_v51 = vld [vmem:[#allocation7 + $0x504] ss:$16 sps:$4 sm:$0xff]  }
 0x2bd   : > { %4362 = vmatpush1.bf16.msra.mxu0 %v21247_v52  ;;  %4403 = vmatpush1.bf16.msra.mxu1 %v21250_v53  ;;  %v21334_v52 = vld [vmem:[#allocation7 + $0x704] ss:$16 sps:$4 sm:$0xff]   ;;  %v21329_v53 = vld [vmem:[#allocation7 + $0x500] ss:$16 sps:$4 sm:$0xff]  }
 0x2be   : > { %4363 = vmatprep.subr.bf16.mxu0 %v21255_v56  ;;  %4404 = vmatprep.subr.bf16.mxu1 %v21258_v57  ;;  %v21332_v56 = vld [vmem:[#allocation7 + $0x700] ss:$16 sps:$4 sm:$0xff]   ;;  %v21337_v57 = vld [vmem:[#allocation7 + $0x524] ss:$16 sps:$4 sm:$0xff]  }
 0x2c1   : > { %4364 = vmatpush1.bf16.msra.mxu0 %v21253_v58  ;;  %4405 = vmatpush1.bf16.msra.mxu1 %v21256_v62  ;;  %v21340_v58 = vld [vmem:[#allocation7 + $0x724] ss:$16 sps:$4 sm:$0xff]   ;;  %v21335_v62 = vld [vmem:[#allocation7 + $0x520] ss:$16 sps:$4 sm:$0xff]  }
 0x2c2   : > { %4365 = vmatprep.subr.bf16.mxu0 %v21261_v63  ;;  %4406 = vmatprep.subr.bf16.mxu1 %v21264_v59  ;;  %v21338_v63 = vld [vmem:[#allocation7 + $0x720] ss:$16 sps:$4 sm:$0xff]   ;;  %v21343_v59 = vld [vmem:[#allocation7 + $0x544] ss:$16 sps:$4 sm:$0xff]  }
 0x2c5   : > { %4366 = vmatpush1.bf16.msra.mxu0 %v21259_v61  ;;  %4407 = vmatpush1.bf16.msra.mxu1 %v21262_v1  ;;  %v21346_v61 = vld [vmem:[#allocation7 + $0x744] ss:$16 sps:$4 sm:$0xff]   ;;  %v21341_v1 = vld [vmem:[#allocation7 + $0x540] ss:$16 sps:$4 sm:$0xff]  }
 0x2c6   : > { %4367 = vmatprep.subr.bf16.mxu0 %v21267_v2  ;;  %4408 = vmatprep.subr.bf16.mxu1 %v21270_v4  ;;  %v21344_v2 = vld [vmem:[#allocation7 + $0x740] ss:$16 sps:$4 sm:$0xff]   ;;  %v21349_v4 = vld [vmem:[#allocation7 + $0x564] ss:$16 sps:$4 sm:$0xff]  }
 0x2c9   : > { %4368 = vmatpush1.bf16.msra.mxu0 %v21265_v7  ;;  %4409 = vmatpush1.bf16.msra.mxu1 %v21268_v8  ;;  %v21352_v7 = vld [vmem:[#allocation7 + $0x764] ss:$16 sps:$4 sm:$0xff]   ;;  %v21347_v8 = vld [vmem:[#allocation7 + $0x560] ss:$16 sps:$4 sm:$0xff]  }
 0x2ca   : > { %4369 = vmatprep.subr.bf16.mxu0 %v21273_v9  ;;  %4410 = vmatprep.subr.bf16.mxu1 %v21276_v13  ;;  %v21350_v9 = vld [vmem:[#allocation7 + $0x760] ss:$16 sps:$4 sm:$0xff]   ;;  %v21355_v13 = vld [vmem:[#allocation7 + $0x584] ss:$16 sps:$4 sm:$0xff]  }
 0x2cd   : > { %4370 = vmatpush1.bf16.msra.mxu0 %v21271_v14  ;;  %4411 = vmatpush1.bf16.msra.mxu1 %v21274_v43  ;;  %v21358_v14 = vld [vmem:[#allocation7 + $0x784] ss:$16 sps:$4 sm:$0xff]   ;;  %v21353_v43 = vld [vmem:[#allocation7 + $0x580] ss:$16 sps:$4 sm:$0xff]  }
 0x2ce   : > { %4421 = vmatprep.subr.bf16.mxu0 %v21283_v44  ;;  %4462 = vmatprep.subr.bf16.mxu1 %v21286_v12  ;;  %v21356_v44 = vld [vmem:[#allocation7 + $0x780] ss:$16 sps:$4 sm:$0xff]   ;;  %v21361_v12 = vld [vmem:[#allocation7 + $0x5a4] ss:$16 sps:$4 sm:$0xff]  }
 0x2d0   : > { %4372 = vmatmul.mubr.bf16.vlgmr.msra.gmra.mrb[24].mxu0 %v24832_v60  ;;  %4413 = vmatmul.mubr.bf16.vlgmr.msra.gmra.mrb[24].mxu1 %v24836_v0 }
 0x2d1   : > { %4422 = vmatpush1.bf16.msra.mxu0 %v21281_v17  ;;  %4463 = vmatpush1.bf16.msra.mxu1 %v21284_v18  ;;  %v21364_v17 = vld [vmem:[#allocation7 + $0x7a4] ss:$16 sps:$4 sm:$0xff]   ;;  %v21359_v18 = vld [vmem:[#allocation7 + $0x5a0] ss:$16 sps:$4 sm:$0xff]  }
 0x2d2   : > { %4423 = vmatprep.subr.bf16.mxu0 %v21289_v23  ;;  %4464 = vmatprep.subr.bf16.mxu1 %v21292_v27  ;;  %v21362_v23 = vld [vmem:[#allocation7 + $0x7a0] ss:$16 sps:$4 sm:$0xff]   ;;  %v21367_v27 = vld [vmem:[#allocation7 + $0x5c4] ss:$16 sps:$4 sm:$0xff]  }
 0x2d3   : > { %4453 = vmatprep.mubr.bf16.mxu0 %v24840_v19  ;;  %4494 = vmatprep.mubr.bf16.mxu1 %v24844_v20 }
 0x2d5   : > { %4424 = vmatpush1.bf16.msra.mxu0 %v21287_v5  ;;  %4465 = vmatpush1.bf16.msra.mxu1 %v21290_v6  ;;  %v21370_v5 = vld [vmem:[#allocation7 + $0x7c4] ss:$16 sps:$4 sm:$0xff]   ;;  %v21365_v6 = vld [vmem:[#allocation7 + $0x5c0] ss:$16 sps:$4 sm:$0xff]  }
 0x2d6   : > { %4425 = vmatprep.subr.bf16.mxu0 %v21295_v21  ;;  %4466 = vmatprep.subr.bf16.mxu1 %v21298_v24  ;;  %v21368_v21 = vld [vmem:[#allocation7 + $0x7c0] ss:$16 sps:$4 sm:$0xff]   ;;  %v21373_v24 = vld [vmem:[#allocation7 + $0x5e4] ss:$16 sps:$4 sm:$0xff]  }
 0x2d9   : > { %4426 = vmatpush1.bf16.msra.mxu0 %v21293_v29  ;;  %4467 = vmatpush1.bf16.msra.mxu1 %v21296_v30  ;;  %v21376_v29 = vld [vmem:[#allocation7 + $0x7e4] ss:$16 sps:$4 sm:$0xff]   ;;  %v21371_v30 = vld [vmem:[#allocation7 + $0x5e0] ss:$16 sps:$4 sm:$0xff]  }
 0x2da   : > { %4427 = vmatprep.subr.bf16.mxu0 %v21301_v31  ;;  %4468 = vmatprep.subr.bf16.mxu1 %v21304_v26  ;;  %v21374_v31 = vld [vmem:[#allocation7 + $0x7e0] ss:$16 sps:$4 sm:$0xff]   ;;  %v21383_v26 = vld [vmem:[#allocation7 + $0xc] ss:$16 sps:$4 sm:$0xff]  }
 0x2dd   : > { %4428 = vmatpush1.bf16.msra.mxu0 %v21299_v32  ;;  %4469 = vmatpush1.bf16.msra.mxu1 %v21302_v34  ;;  %v21386_v32 = vld [vmem:[#allocation7 + $0x20c] ss:$16 sps:$4 sm:$0xff]   ;;  %v21381_v34 = vld [vmem:[#allocation7 + $0x8] ss:$16 sps:$4 sm:$0xff]  }
 0x2de   : > { %4429 = vmatprep.subr.bf16.mxu0 %v21307_v35  ;;  %4470 = vmatprep.subr.bf16.mxu1 %v21310_v33  ;;  %v21384_v35 = vld [vmem:[#allocation7 + $0x208] ss:$16 sps:$4 sm:$0xff]   ;;  %v24852_v33 = vcombine.low %v24825_v15, %v24825_v15 }
 0x2df   : > { %v21393_v15 = vld [vmem:[#allocation7 + $0x48] ss:$16 sps:$4 sm:$0xff]  }
 0x2e1   : > { %4430 = vmatpush1.bf16.msra.mxu0 %v21305_v36  ;;  %4471 = vmatpush1.bf16.msra.mxu1 %v21308_v22  ;;  %v24856_v36 = vcombine.low %v24828_v16, %v24828_v16  ;;  %v21389_v22 = vld [vmem:[#allocation7 + $0x2c] ss:$16 sps:$4 sm:$0xff]   ;;  %v21396_v16 = vld [vmem:[#allocation7 + $0x248] ss:$16 sps:$4 sm:$0xff]  }
 0x2e2   : > { %4431 = vmatprep.subr.bf16.mxu0 %v21313_v37  ;;  %4472 = vmatprep.subr.bf16.mxu1 %v21316_v38  ;;  %v21392_v37 = vld [vmem:[#allocation7 + $0x22c] ss:$16 sps:$4 sm:$0xff]   ;;  %v21387_v38 = vld [vmem:[#allocation7 + $0x28] ss:$16 sps:$4 sm:$0xff]  }
 0x2e5   : > { %4432 = vmatpush1.bf16.msra.mxu0 %v21311_v39  ;;  %4473 = vmatpush1.bf16.msra.mxu1 %v21314_v40  ;;  %v21390_v39 = vld [vmem:[#allocation7 + $0x228] ss:$16 sps:$4 sm:$0xff]   ;;  %v21395_v40 = vld [vmem:[#allocation7 + $0x4c] ss:$16 sps:$4 sm:$0xff]  }
 0x2e6   : > { %4433 = vmatprep.subr.bf16.mxu0 %v21319_v41  ;;  %4474 = vmatprep.subr.bf16.mxu1 %v21322_v42  ;;  %v21398_v41 = vld [vmem:[#allocation7 + $0x24c] ss:$16 sps:$4 sm:$0xff]  }
 0x2e7   : > { %v21401_v42 = vld [vmem:[#allocation7 + $0x6c] ss:$16 sps:$4 sm:$0xff]  }
 0x2e9   : > { %4434 = vmatpush1.bf16.msra.mxu0 %v21317_v45  ;;  %4475 = vmatpush1.bf16.msra.mxu1 %v21320_v46  ;;  %v21404_v45 = vld [vmem:[#allocation7 + $0x26c] ss:$16 sps:$4 sm:$0xff]   ;;  %v21399_v46 = vld [vmem:[#allocation7 + $0x68] ss:$16 sps:$4 sm:$0xff]  }
 0x2ea   : > { %4435 = vmatprep.subr.bf16.mxu0 %v21325_v47  ;;  %4476 = vmatprep.subr.bf16.mxu1 %v21328_v48  ;;  %v21402_v47 = vld [vmem:[#allocation7 + $0x268] ss:$16 sps:$4 sm:$0xff]   ;;  %v21407_v48 = vld [vmem:[#allocation7 + $0x8c] ss:$16 sps:$4 sm:$0xff]  }
 0x2ed   : > { %4436 = vmatpush1.bf16.msra.mxu0 %v21323_v49  ;;  %4477 = vmatpush1.bf16.msra.mxu1 %v21326_v50  ;;  %v21410_v49 = vld [vmem:[#allocation7 + $0x28c] ss:$16 sps:$4 sm:$0xff]   ;;  %v21405_v50 = vld [vmem:[#allocation7 + $0x88] ss:$16 sps:$4 sm:$0xff]  }
 0x2ee   : > { %4437 = vmatprep.subr.bf16.mxu0 %v21331_v51  ;;  %4478 = vmatprep.subr.bf16.mxu1 %v21334_v52  ;;  %v21408_v51 = vld [vmem:[#allocation7 + $0x288] ss:$16 sps:$4 sm:$0xff]   ;;  %v21413_v52 = vld [vmem:[#allocation7 + $0xac] ss:$16 sps:$4 sm:$0xff]  }
 0x2f1   : > { %4438 = vmatpush1.bf16.msra.mxu0 %v21329_v53  ;;  %4479 = vmatpush1.bf16.msra.mxu1 %v21332_v56  ;;  %v21414_v53 = vld [vmem:[#allocation7 + $0x2a8] ss:$16 sps:$4 sm:$0xff]   ;;  %v21419_v56 = vld [vmem:[#allocation7 + $0xcc] ss:$16 sps:$4 sm:$0xff]  }
 0x2f2   : > { %4439 = vmatprep.subr.bf16.mxu0 %v21337_v57  ;;  %4480 = vmatprep.subr.bf16.mxu1 %v21340_v58  ;;  %v21422_v57 = vld [vmem:[#allocation7 + $0x2cc] ss:$16 sps:$4 sm:$0xff]   ;;  %v21417_v58 = vld [vmem:[#allocation7 + $0xc8] ss:$16 sps:$4 sm:$0xff]  }
 0x2f5   : > { %4440 = vmatpush1.bf16.msra.mxu0 %v21335_v62  ;;  %4481 = vmatpush1.bf16.msra.mxu1 %v21338_v63  ;;  %v21420_v62 = vld [vmem:[#allocation7 + $0x2c8] ss:$16 sps:$4 sm:$0xff]   ;;  %v21425_v63 = vld [vmem:[#allocation7 + $0xec] ss:$16 sps:$4 sm:$0xff]  }
 0x2f6   : > { %4441 = vmatprep.subr.bf16.mxu0 %v21343_v59  ;;  %4482 = vmatprep.subr.bf16.mxu1 %v21346_v61  ;;  %v21428_v59 = vld [vmem:[#allocation7 + $0x2ec] ss:$16 sps:$4 sm:$0xff]   ;;  %v21423_v61 = vld [vmem:[#allocation7 + $0xe8] ss:$16 sps:$4 sm:$0xff]  }
 0x2f9   : > { %4442 = vmatpush1.bf16.msra.mxu0 %v21341_v1  ;;  %4483 = vmatpush1.bf16.msra.mxu1 %v21344_v2  ;;  %v21426_v1 = vld [vmem:[#allocation7 + $0x2e8] ss:$16 sps:$4 sm:$0xff]   ;;  %v21431_v2 = vld [vmem:[#allocation7 + $0x10c] ss:$16 sps:$4 sm:$0xff]  }
 0x2fa   : > { %4443 = vmatprep.subr.bf16.mxu0 %v21349_v4  ;;  %4484 = vmatprep.subr.bf16.mxu1 %v21352_v7  ;;  %v21434_v4 = vld [vmem:[#allocation7 + $0x30c] ss:$16 sps:$4 sm:$0xff]   ;;  %v21429_v7 = vld [vmem:[#allocation7 + $0x108] ss:$16 sps:$4 sm:$0xff]  }
 0x2fd   : > { %4444 = vmatpush1.bf16.msra.mxu0 %v21347_v8  ;;  %4485 = vmatpush1.bf16.msra.mxu1 %v21350_v9  ;;  %v21432_v8 = vld [vmem:[#allocation7 + $0x308] ss:$16 sps:$4 sm:$0xff]   ;;  %v21437_v9 = vld [vmem:[#allocation7 + $0x12c] ss:$16 sps:$4 sm:$0xff]  }
 0x2fe   : > { %4445 = vmatprep.subr.bf16.mxu0 %v21355_v13  ;;  %4486 = vmatprep.subr.bf16.mxu1 %v21358_v14  ;;  %v21440_v13 = vld [vmem:[#allocation7 + $0x32c] ss:$16 sps:$4 sm:$0xff]   ;;  %v21435_v14 = vld [vmem:[#allocation7 + $0x128] ss:$16 sps:$4 sm:$0xff]  }
 0x301   : > { %4446 = vmatpush1.bf16.msra.mxu0 %v21353_v43  ;;  %4487 = vmatpush1.bf16.msra.mxu1 %v21356_v44  ;;  %v21438_v43 = vld [vmem:[#allocation7 + $0x328] ss:$16 sps:$4 sm:$0xff]   ;;  %v21443_v44 = vld [vmem:[#allocation7 + $0x14c] ss:$16 sps:$4 sm:$0xff]  }
 0x302   : > { %4447 = vmatprep.subr.bf16.mxu0 %v21361_v12  ;;  %4488 = vmatprep.subr.bf16.mxu1 %v21364_v17  ;;  %v21446_v12 = vld [vmem:[#allocation7 + $0x34c] ss:$16 sps:$4 sm:$0xff]   ;;  %v21441_v17 = vld [vmem:[#allocation7 + $0x148] ss:$16 sps:$4 sm:$0xff]  }
 0x305   : > { %4448 = vmatpush1.bf16.msra.mxu0 %v21359_v18  ;;  %4489 = vmatpush1.bf16.msra.mxu1 %v21362_v23  ;;  %v21444_v18 = vld [vmem:[#allocation7 + $0x348] ss:$16 sps:$4 sm:$0xff]   ;;  %v21449_v23 = vld [vmem:[#allocation7 + $0x16c] ss:$16 sps:$4 sm:$0xff]  }
 0x306   : > { %4449 = vmatprep.subr.bf16.mxu0 %v21367_v27  ;;  %4490 = vmatprep.subr.bf16.mxu1 %v21370_v5  ;;  %v21452_v27 = vld [vmem:[#allocation7 + $0x36c] ss:$16 sps:$4 sm:$0xff]   ;;  %v21447_v5 = vld [vmem:[#allocation7 + $0x168] ss:$16 sps:$4 sm:$0xff]  }
 0x309   : > { %4450 = vmatpush1.bf16.msra.mxu0 %v21365_v6  ;;  %4491 = vmatpush1.bf16.msra.mxu1 %v21368_v21  ;;  %v21450_v6 = vld [vmem:[#allocation7 + $0x368] ss:$16 sps:$4 sm:$0xff]   ;;  %v21455_v21 = vld [vmem:[#allocation7 + $0x18c] ss:$16 sps:$4 sm:$0xff]  }
 0x30a   : > { %4451 = vmatprep.subr.bf16.mxu0 %v21373_v24  ;;  %4492 = vmatprep.subr.bf16.mxu1 %v21376_v29  ;;  %v21458_v24 = vld [vmem:[#allocation7 + $0x38c] ss:$16 sps:$4 sm:$0xff]   ;;  %v21453_v29 = vld [vmem:[#allocation7 + $0x188] ss:$16 sps:$4 sm:$0xff]  }
 0x30d   : > { %4452 = vmatpush1.bf16.msra.mxu0 %v21371_v30  ;;  %4493 = vmatpush1.bf16.msra.mxu1 %v21374_v31  ;;  %v21456_v30 = vld [vmem:[#allocation7 + $0x388] ss:$16 sps:$4 sm:$0xff]   ;;  %v21461_v31 = vld [vmem:[#allocation7 + $0x1ac] ss:$16 sps:$4 sm:$0xff]  }
 0x30e   : > { %4503 = vmatprep.subr.bf16.mxu0 %v21383_v26  ;;  %4544 = vmatprep.subr.bf16.mxu1 %v21386_v32  ;;  %v21464_v26 = vld [vmem:[#allocation7 + $0x3ac] ss:$16 sps:$4 sm:$0xff]   ;;  %v21459_v32 = vld [vmem:[#allocation7 + $0x1a8] ss:$16 sps:$4 sm:$0xff]  }
 0x310   : > { %4454 = vmatmul.mubr.bf16.vlgmr.msra.gmra.mrb[28].mxu0 %v24852_v33  ;;  %4495 = vmatmul.mubr.bf16.vlgmr.msra.gmra.mrb[28].mxu1 %v24856_v36 }
 0x311   : > { %4504 = vmatpush1.bf16.msra.mxu0 %v21381_v34  ;;  %4545 = vmatpush1.bf16.msra.mxu1 %v21384_v35  ;;  %v21462_v34 = vld [vmem:[#allocation7 + $0x3a8] ss:$16 sps:$4 sm:$0xff]   ;;  %v21467_v35 = vld [vmem:[#allocation7 + $0x1cc] ss:$16 sps:$4 sm:$0xff]  }
 0x312   : > { %4505 = vmatprep.subr.bf16.mxu0 %v21389_v22  ;;  %4546 = vmatprep.subr.bf16.mxu1 %v21392_v37  ;;  %v21470_v22 = vld [vmem:[#allocation7 + $0x3cc] ss:$16 sps:$4 sm:$0xff]   ;;  %v21465_v37 = vld [vmem:[#allocation7 + $0x1c8] ss:$16 sps:$4 sm:$0xff]  }
 0x313   : > { %4535 = vmatprep.mubr.bf16.mxu0 %v24815_v10  ;;  %4576 = vmatprep.mubr.bf16.mxu1 %v24819_v11  ;;  %v21416_v10 = vld [vmem:[#allocation7 + $0x2ac] ss:$16 sps:$4 sm:$0xff]   ;;  %v21411_v11 = vld [vmem:[#allocation7 + $0xa8] ss:$16 sps:$4 sm:$0xff]  }
 0x315   : > { %4506 = vmatpush1.bf16.msra.mxu0 %v21387_v38  ;;  %4547 = vmatpush1.bf16.msra.mxu1 %v21390_v39  ;;  %v21468_v38 = vld [vmem:[#allocation7 + $0x3c8] ss:$16 sps:$4 sm:$0xff]   ;;  %v21473_v39 = vld [vmem:[#allocation7 + $0x1ec] ss:$16 sps:$4 sm:$0xff]  }
 0x316   : > { %4507 = vmatprep.subr.bf16.mxu0 %v21395_v40  ;;  %4548 = vmatprep.subr.bf16.mxu1 %v21398_v41  ;;  %v21476_v40 = vld [vmem:[#allocation7 + $0x3ec] ss:$16 sps:$4 sm:$0xff]   ;;  %v21471_v41 = vld [vmem:[#allocation7 + $0x1e8] ss:$16 sps:$4 sm:$0xff]  }
 0x319   : > { %4508 = vmatpush1.bf16.msra.mxu0 %v21393_v15  ;;  %4549 = vmatpush1.bf16.msra.mxu1 %v21396_v16  ;;  %v21474_v15 = vld [vmem:[#allocation7 + $0x3e8] ss:$16 sps:$4 sm:$0xff]   ;;  %v21479_v16 = vld [vmem:[#allocation7 + $0x40c] ss:$16 sps:$4 sm:$0xff]  }
 0x31a   : > { %4509 = vmatprep.subr.bf16.mxu0 %v21401_v42  ;;  %4550 = vmatprep.subr.bf16.mxu1 %v21404_v45  ;;  %v21482_v42 = vld [vmem:[#allocation7 + $0x60c] ss:$16 sps:$4 sm:$0xff]   ;;  %v21477_v45 = vld [vmem:[#allocation7 + $0x408] ss:$16 sps:$4 sm:$0xff]  }
 0x31d   : > { %4510 = vmatpush1.bf16.msra.mxu0 %v21399_v46  ;;  %4551 = vmatpush1.bf16.msra.mxu1 %v21402_v47  ;;  %v21480_v46 = vld [vmem:[#allocation7 + $0x608] ss:$16 sps:$4 sm:$0xff]   ;;  %v21485_v47 = vld [vmem:[#allocation7 + $0x42c] ss:$16 sps:$4 sm:$0xff]  }
 0x31e   : > { %4511 = vmatprep.subr.bf16.mxu0 %v21407_v48  ;;  %4552 = vmatprep.subr.bf16.mxu1 %v21410_v49  ;;  %v21488_v48 = vld [vmem:[#allocation7 + $0x62c] ss:$16 sps:$4 sm:$0xff]   ;;  %v21483_v49 = vld [vmem:[#allocation7 + $0x428] ss:$16 sps:$4 sm:$0xff]  }
 0x321   : > { %4512 = vmatpush1.bf16.msra.mxu0 %v21405_v50  ;;  %4553 = vmatpush1.bf16.msra.mxu1 %v21408_v51  ;;  %v21486_v50 = vld [vmem:[#allocation7 + $0x628] ss:$16 sps:$4 sm:$0xff]   ;;  %v21491_v51 = vld [vmem:[#allocation7 + $0x44c] ss:$16 sps:$4 sm:$0xff]  }
 0x322   : > { %4513 = vmatprep.subr.bf16.mxu0 %v21413_v52  ;;  %4554 = vmatprep.subr.bf16.mxu1 %v21416_v10  ;;  %v21494_v52 = vld [vmem:[#allocation7 + $0x64c] ss:$16 sps:$4 sm:$0xff]   ;;  %v21489_v10 = vld [vmem:[#allocation7 + $0x448] ss:$16 sps:$4 sm:$0xff]  }
 0x325   : > { %4514 = vmatpush1.bf16.msra.mxu0 %v21411_v11  ;;  %4555 = vmatpush1.bf16.msra.mxu1 %v21414_v53  ;;  %v21492_v11 = vld [vmem:[#allocation7 + $0x648] ss:$16 sps:$4 sm:$0xff]   ;;  %v21497_v53 = vld [vmem:[#allocation7 + $0x46c] ss:$16 sps:$4 sm:$0xff]  }
 0x326   : > { %4515 = vmatprep.subr.bf16.mxu0 %v21419_v56  ;;  %4556 = vmatprep.subr.bf16.mxu1 %v21422_v57  ;;  %v21500_v56 = vld [vmem:[#allocation7 + $0x66c] ss:$16 sps:$4 sm:$0xff]  }
 0x327   : > { %v21503_v57 = vld [vmem:[#allocation7 + $0x48c] ss:$16 sps:$4 sm:$0xff]  }
 0x329   : > { %4516 = vmatpush1.bf16.msra.mxu0 %v21417_v58  ;;  %4557 = vmatpush1.bf16.msra.mxu1 %v21420_v62  ;;  %v21506_v58 = vld [vmem:[#allocation7 + $0x68c] ss:$16 sps:$4 sm:$0xff]   ;;  %v21501_v62 = vld [vmem:[#allocation7 + $0x488] ss:$16 sps:$4 sm:$0xff]  }
 0x32a   : > { %4517 = vmatprep.subr.bf16.mxu0 %v21425_v63  ;;  %4558 = vmatprep.subr.bf16.mxu1 %v21428_v59  ;;  %v21504_v63 = vld [vmem:[#allocation7 + $0x688] ss:$16 sps:$4 sm:$0xff]   ;;  %v21509_v59 = vld [vmem:[#allocation7 + $0x4ac] ss:$16 sps:$4 sm:$0xff]  }
 0x32d   : > { %4518 = vmatpush1.bf16.msra.mxu0 %v21423_v61  ;;  %4559 = vmatpush1.bf16.msra.mxu1 %v21426_v1  ;;  %v21510_v61 = vld [vmem:[#allocation7 + $0x6a8] ss:$16 sps:$4 sm:$0xff]   ;;  %v21515_v1 = vld [vmem:[#allocation7 + $0x4cc] ss:$16 sps:$4 sm:$0xff]  }
 0x32e   : > { %4519 = vmatprep.subr.bf16.mxu0 %v21431_v2  ;;  %4560 = vmatprep.subr.bf16.mxu1 %v21434_v4  ;;  %v21518_v2 = vld [vmem:[#allocation7 + $0x6cc] ss:$16 sps:$4 sm:$0xff]  }
 0x331   : > { %4520 = vmatpush1.bf16.msra.mxu0 %v21429_v7  ;;  %4561 = vmatpush1.bf16.msra.mxu1 %v21432_v8  ;;  %v21513_v8 = vld [vmem:[#allocation7 + $0x4c8] ss:$16 sps:$4 sm:$0xff]  }
 0x332   : > { %4521 = vmatprep.subr.bf16.mxu0 %v21437_v9  ;;  %4562 = vmatprep.subr.bf16.mxu1 %v21440_v13  ;;  %v21516_v9 = vld [vmem:[#allocation7 + $0x6c8] ss:$16 sps:$4 sm:$0xff]  }
 0x335   : > { %4522 = vmatpush1.bf16.msra.mxu0 %v21435_v14  ;;  %4563 = vmatpush1.bf16.msra.mxu1 %v21438_v43  ;;  %v21521_v43 = vld [vmem:[#allocation7 + $0x4ec] ss:$16 sps:$4 sm:$0xff]  }
 0x336   : > { %4523 = vmatprep.subr.bf16.mxu0 %v21443_v44  ;;  %4564 = vmatprep.subr.bf16.mxu1 %v21446_v12 }
 0x339   : > { %4524 = vmatpush1.bf16.msra.mxu0 %v21441_v17  ;;  %4565 = vmatpush1.bf16.msra.mxu1 %v21444_v18  ;;  %v21524_v17 = vld [vmem:[#allocation7 + $0x6ec] ss:$16 sps:$4 sm:$0xff]  }
 0x33a   : > { %4525 = vmatprep.subr.bf16.mxu0 %v21449_v23  ;;  %4566 = vmatprep.subr.bf16.mxu1 %v21452_v27  ;;  %v21519_v27 = vld [vmem:[#allocation7 + $0x4e8] ss:$16 sps:$4 sm:$0xff]  }
 0x33d   : > { %4526 = vmatpush1.bf16.msra.mxu0 %v21447_v5  ;;  %4567 = vmatpush1.bf16.msra.mxu1 %v21450_v6  ;;  %v21522_v5 = vld [vmem:[#allocation7 + $0x6e8] ss:$16 sps:$4 sm:$0xff]   ;;  %v21527_v6 = vld [vmem:[#allocation7 + $0x50c] ss:$16 sps:$4 sm:$0xff]  }
 0x33e   : > { %4527 = vmatprep.subr.bf16.mxu0 %v21455_v21  ;;  %4568 = vmatprep.subr.bf16.mxu1 %v21458_v24  ;;  %v21530_v21 = vld [vmem:[#allocation7 + $0x70c] ss:$16 sps:$4 sm:$0xff]   ;;  %v21525_v24 = vld [vmem:[#allocation7 + $0x508] ss:$16 sps:$4 sm:$0xff]  }
 0x341   : > { %4528 = vmatpush1.bf16.msra.mxu0 %v21453_v29  ;;  %4569 = vmatpush1.bf16.msra.mxu1 %v21456_v30  ;;  %v21528_v29 = vld [vmem:[#allocation7 + $0x708] ss:$16 sps:$4 sm:$0xff]   ;;  %v21533_v30 = vld [vmem:[#allocation7 + $0x52c] ss:$16 sps:$4 sm:$0xff]  }
 0x342   : > { %4529 = vmatprep.subr.bf16.mxu0 %v21461_v31  ;;  %4570 = vmatprep.subr.bf16.mxu1 %v21464_v26  ;;  %v21536_v31 = vld [vmem:[#allocation7 + $0x72c] ss:$16 sps:$4 sm:$0xff]   ;;  %v21531_v26 = vld [vmem:[#allocation7 + $0x528] ss:$16 sps:$4 sm:$0xff]  }
 0x345   : > { %4530 = vmatpush1.bf16.msra.mxu0 %v21459_v32  ;;  %4571 = vmatpush1.bf16.msra.mxu1 %v21462_v34  ;;  %v21534_v32 = vld [vmem:[#allocation7 + $0x728] ss:$16 sps:$4 sm:$0xff]   ;;  %v21539_v34 = vld [vmem:[#allocation7 + $0x54c] ss:$16 sps:$4 sm:$0xff]  }
 0x346   : > { %4531 = vmatprep.subr.bf16.mxu0 %v21467_v35  ;;  %4572 = vmatprep.subr.bf16.mxu1 %v21470_v22  ;;  %v21542_v35 = vld [vmem:[#allocation7 + $0x74c] ss:$16 sps:$4 sm:$0xff]   ;;  %v21537_v22 = vld [vmem:[#allocation7 + $0x548] ss:$16 sps:$4 sm:$0xff]  }
 0x349   : > { %4532 = vmatpush1.bf16.msra.mxu0 %v21465_v37  ;;  %4573 = vmatpush1.bf16.msra.mxu1 %v21468_v38  ;;  %v21540_v37 = vld [vmem:[#allocation7 + $0x748] ss:$16 sps:$4 sm:$0xff]   ;;  %v21545_v38 = vld [vmem:[#allocation7 + $0x56c] ss:$16 sps:$4 sm:$0xff]  }
 0x34a   : > { %4533 = vmatprep.subr.bf16.mxu0 %v21473_v39  ;;  %4574 = vmatprep.subr.bf16.mxu1 %v21476_v40  ;;  %v21548_v39 = vld [vmem:[#allocation7 + $0x76c] ss:$16 sps:$4 sm:$0xff]   ;;  %v21543_v40 = vld [vmem:[#allocation7 + $0x568] ss:$16 sps:$4 sm:$0xff]  }
 0x34d   : > { %4534 = vmatpush1.bf16.msra.mxu0 %v21471_v41  ;;  %4575 = vmatpush1.bf16.msra.mxu1 %v21474_v15  ;;  %v21546_v41 = vld [vmem:[#allocation7 + $0x768] ss:$16 sps:$4 sm:$0xff]   ;;  %v21551_v15 = vld [vmem:[#allocation7 + $0x58c] ss:$16 sps:$4 sm:$0xff]  }
 0x34e   : > { %4585 = vmatprep.subr.bf16.mxu0 %v21479_v16  ;;  %4626 = vmatprep.subr.bf16.mxu1 %v21482_v42  ;;  %v21554_v16 = vld [vmem:[#allocation7 + $0x78c] ss:$16 sps:$4 sm:$0xff]   ;;  %v21549_v42 = vld [vmem:[#allocation7 + $0x588] ss:$16 sps:$4 sm:$0xff]  }
 0x350   : > { %4536 = vmatmul.mubr.bf16.vlgmr.msra.gmra.mrb[32].mxu0 %v24832_v60  ;;  %4577 = vmatmul.mubr.bf16.vlgmr.msra.gmra.mrb[32].mxu1 %v24836_v0  ;;  %v21495_v60 = vld [vmem:[#allocation7 + $0x468] ss:$16 sps:$4 sm:$0xff]  }
 0x351   : > { %4586 = vmatpush1.bf16.msra.mxu0 %v21477_v45  ;;  %4627 = vmatpush1.bf16.msra.mxu1 %v21480_v46  ;;  %v21498_v0 = vld [vmem:[#allocation7 + $0x668] ss:$16 sps:$4 sm:$0xff]   ;;  %v21557_v46 = vld [vmem:[#allocation7 + $0x5ac] ss:$16 sps:$4 sm:$0xff]  }
 0x352   : > { %4587 = vmatprep.subr.bf16.mxu0 %v21485_v47  ;;  %4628 = vmatprep.subr.bf16.mxu1 %v21488_v48  ;;  %v21552_v45 = vld [vmem:[#allocation7 + $0x788] ss:$16 sps:$4 sm:$0xff]   ;;  %v21560_v47 = vld [vmem:[#allocation7 + $0x7ac] ss:$16 sps:$4 sm:$0xff]  }
 0x353   : > { %4617 = vmatprep.mubr.bf16.mxu0 %v24840_v19  ;;  %4658 = vmatprep.mubr.bf16.mxu1 %v24844_v20  ;;  %v21512_v19 = vld [vmem:[#allocation7 + $0x6ac] ss:$16 sps:$4 sm:$0xff]   ;;  %v21507_v20 = vld [vmem:[#allocation7 + $0x4a8] ss:$16 sps:$4 sm:$0xff]  }
 0x354   : > { %v21555_v48 = vld [vmem:[#allocation7 + $0x5a8] ss:$16 sps:$4 sm:$0xff]  }
 0x355   : > { %4588 = vmatpush1.bf16.msra.mxu0 %v21483_v49  ;;  %4629 = vmatpush1.bf16.msra.mxu1 %v21486_v50  ;;  %v21558_v49 = vld [vmem:[#allocation7 + $0x7a8] ss:$16 sps:$4 sm:$0xff]   ;;  %v21563_v50 = vld [vmem:[#allocation7 + $0x5cc] ss:$16 sps:$4 sm:$0xff]  }
 0x356   : > { %4589 = vmatprep.subr.bf16.mxu0 %v21491_v51  ;;  %4630 = vmatprep.subr.bf16.mxu1 %v21494_v52  ;;  %v21566_v51 = vld [vmem:[#allocation7 + $0x7cc] ss:$16 sps:$4 sm:$0xff]   ;;  %v21561_v52 = vld [vmem:[#allocation7 + $0x5c8] ss:$16 sps:$4 sm:$0xff]  }
 0x359   : > { %4590 = vmatpush1.bf16.msra.mxu0 %v21489_v10  ;;  %4631 = vmatpush1.bf16.msra.mxu1 %v21492_v11  ;;  %v21564_v10 = vld [vmem:[#allocation7 + $0x7c8] ss:$16 sps:$4 sm:$0xff]   ;;  %v21569_v11 = vld [vmem:[#allocation7 + $0x5ec] ss:$16 sps:$4 sm:$0xff]  }
 0x35a   : > { %4591 = vmatprep.subr.bf16.mxu0 %v21497_v53  ;;  %4632 = vmatprep.subr.bf16.mxu1 %v21500_v56  ;;  %v21572_v53 = vld [vmem:[#allocation7 + $0x7ec] ss:$16 sps:$4 sm:$0xff]   ;;  %v21567_v56 = vld [vmem:[#allocation7 + $0x5e8] ss:$16 sps:$4 sm:$0xff]  }
 0x35d   : > { %4592 = vmatpush1.bf16.msra.mxu0 %v21495_v60  ;;  %4633 = vmatpush1.bf16.msra.mxu1 %v21498_v0  ;;  %v21570_v60 = vld [vmem:[#allocation7 + $0x7e8] ss:$16 sps:$4 sm:$0xff]  }
 0x35e   : > { %4593 = vmatprep.subr.bf16.mxu0 %v21503_v57  ;;  %4634 = vmatprep.subr.bf16.mxu1 %v21506_v58 }
 0x361   : > { %4594 = vmatpush1.bf16.msra.mxu0 %v21501_v62  ;;  %4635 = vmatpush1.bf16.msra.mxu1 %v21504_v63 }
 0x362   : > { %4595 = vmatprep.subr.bf16.mxu0 %v21509_v59  ;;  %4636 = vmatprep.subr.bf16.mxu1 %v21512_v19 }
 0x363   : > { %v24866_v4 = vpop.f32.mrb[20].mxu0  ;;  %v24868_v7 = vpop.f32.mrb[20].mxu1 }
 0x364   : > { %v24870_v13 = vpop.f32.mrb[21].mxu0  ;;  %v24872_v14 = vpop.f32.mrb[21].mxu1 }
 0x365   : > { %4596 = vmatpush1.bf16.msra.mxu0 %v21507_v20  ;;  %4637 = vmatpush1.bf16.msra.mxu1 %v21510_v61  ;;  %v2987_v44 = vpop.f32.mrb[22].mxu0  ;;  %v3028_v12 = vpop.f32.mrb[22].mxu1 }
 0x366   : > { %v2988_v18 = vpop.f32.mrb[23].mxu0  ;;  %v3029_v23 = vpop.f32.mrb[23].mxu1  ;;  %4597 = vmatprep.subr.bf16.mxu0 %v21515_v1  ;;  %4638 = vmatprep.subr.bf16.mxu1 %v21518_v2 }
 0x367   : > { %v21575_v23 = vld [vmem:[#allocation9 + $0x4] ss:$16 sps:$4 sm:$0xff]  }
 0x369   : > { %4598 = vmatpush1.bf16.msra.mxu0 %v21513_v8  ;;  %4639 = vmatpush1.bf16.msra.mxu1 %v21516_v9 }
 0x36a   : > { %4599 = vmatprep.subr.bf16.mxu0 %v21521_v43  ;;  %4640 = vmatprep.subr.bf16.mxu1 %v21524_v17 }
 0x36d   : > { %4600 = vmatpush1.bf16.msra.mxu0 %v21519_v27  ;;  %4641 = vmatpush1.bf16.msra.mxu1 %v21522_v5 }
 0x36e   : > { %4601 = vmatprep.subr.bf16.mxu0 %v21527_v6  ;;  %4642 = vmatprep.subr.bf16.mxu1 %v21530_v21  ;;  %v21573_v6 = vld [vmem:[#allocation9] ss:$16 sps:$4 sm:$0xff]   ;;  %v21576_v21 = vld [vmem:[#allocation9 + $0x8] ss:$16 sps:$4 sm:$0xff]  }
 0x371   : > { %4602 = vmatpush1.bf16.msra.mxu0 %v21525_v24  ;;  %4643 = vmatpush1.bf16.msra.mxu1 %v21528_v29  ;;  %v21581_v29 = vld [vmem:[#allocation9 + $0x24] ss:$16 sps:$4 sm:$0xff]  }
 0x372   : > { %4603 = vmatprep.subr.bf16.mxu0 %v21533_v30  ;;  %4644 = vmatprep.subr.bf16.mxu1 %v21536_v31  ;;  %v21584_v30 = vld [vmem:[#allocation9 + $0x2c] ss:$16 sps:$4 sm:$0xff]   ;;  %v21579_v31 = vld [vmem:[#allocation9 + $0x20] ss:$16 sps:$4 sm:$0xff]  }
 0x375   : > { %4604 = vmatpush1.bf16.msra.mxu0 %v21531_v26  ;;  %4645 = vmatpush1.bf16.msra.mxu1 %v21534_v32  ;;  %v21582_v26 = vld [vmem:[#allocation9 + $0x28] ss:$16 sps:$4 sm:$0xff]   ;;  %v21587_v32 = vld [vmem:[#allocation9 + $0x44] ss:$16 sps:$4 sm:$0xff]  }
 0x376   : > { %4605 = vmatprep.subr.bf16.mxu0 %v21539_v34  ;;  %4646 = vmatprep.subr.bf16.mxu1 %v21542_v35  ;;  %v21590_v34 = vld [vmem:[#allocation9 + $0x4c] ss:$16 sps:$4 sm:$0xff]   ;;  %v21585_v35 = vld [vmem:[#allocation9 + $0x40] ss:$16 sps:$4 sm:$0xff]  }
 0x379   : > { %4606 = vmatpush1.bf16.msra.mxu0 %v21537_v22  ;;  %4647 = vmatpush1.bf16.msra.mxu1 %v21540_v37  ;;  %v21588_v22 = vld [vmem:[#allocation9 + $0x48] ss:$16 sps:$4 sm:$0xff]   ;;  %v21593_v37 = vld [vmem:[#allocation9 + $0x64] ss:$16 sps:$4 sm:$0xff]  }
 0x37a   : > { %4607 = vmatprep.subr.bf16.mxu0 %v21545_v38  ;;  %4648 = vmatprep.subr.bf16.mxu1 %v21548_v39  ;;  %v21596_v38 = vld [vmem:[#allocation9 + $0x6c] ss:$16 sps:$4 sm:$0xff]   ;;  %v21591_v39 = vld [vmem:[#allocation9 + $0x60] ss:$16 sps:$4 sm:$0xff]  }
 0x37d   : > { %4608 = vmatpush1.bf16.msra.mxu0 %v21543_v40  ;;  %4649 = vmatpush1.bf16.msra.mxu1 %v21546_v41  ;;  %v21594_v40 = vld [vmem:[#allocation9 + $0x68] ss:$16 sps:$4 sm:$0xff]   ;;  %v21599_v41 = vld [vmem:[#allocation9 + $0x84] ss:$16 sps:$4 sm:$0xff]  }
 0x37e   : > { %4609 = vmatprep.subr.bf16.mxu0 %v21551_v15  ;;  %4650 = vmatprep.subr.bf16.mxu1 %v21554_v16  ;;  %v21602_v15 = vld [vmem:[#allocation9 + $0x8c] ss:$16 sps:$4 sm:$0xff]   ;;  %v21597_v16 = vld [vmem:[#allocation9 + $0x80] ss:$16 sps:$4 sm:$0xff]  }
 0x381   : > { %4610 = vmatpush1.bf16.msra.mxu0 %v21549_v42  ;;  %4651 = vmatpush1.bf16.msra.mxu1 %v21552_v45  ;;  %v21600_v42 = vld [vmem:[#allocation9 + $0x88] ss:$16 sps:$4 sm:$0xff]   ;;  %v21605_v45 = vld [vmem:[#allocation9 + $0xa4] ss:$16 sps:$4 sm:$0xff]  }
 0x382   : > { %4611 = vmatprep.subr.bf16.mxu0 %v21557_v46  ;;  %4652 = vmatprep.subr.bf16.mxu1 %v21560_v47  ;;  %v21608_v46 = vld [vmem:[#allocation9 + $0xac] ss:$16 sps:$4 sm:$0xff]   ;;  %v21603_v47 = vld [vmem:[#allocation9 + $0xa0] ss:$16 sps:$4 sm:$0xff]  }
 0x385   : > { %4612 = vmatpush1.bf16.msra.mxu0 %v21555_v48  ;;  %4653 = vmatpush1.bf16.msra.mxu1 %v21558_v49  ;;  %v21606_v48 = vld [vmem:[#allocation9 + $0xa8] ss:$16 sps:$4 sm:$0xff]   ;;  %v21611_v49 = vld [vmem:[#allocation9 + $0xc4] ss:$16 sps:$4 sm:$0xff]  }
 0x386   : > { %4613 = vmatprep.subr.bf16.mxu0 %v21563_v50  ;;  %4654 = vmatprep.subr.bf16.mxu1 %v21566_v51  ;;  %v21614_v50 = vld [vmem:[#allocation9 + $0xcc] ss:$16 sps:$4 sm:$0xff]   ;;  %v21609_v51 = vld [vmem:[#allocation9 + $0xc0] ss:$16 sps:$4 sm:$0xff]  }
 0x389   : > { %4614 = vmatpush1.bf16.msra.mxu0 %v21561_v52  ;;  %4655 = vmatpush1.bf16.msra.mxu1 %v21564_v10  ;;  %v21612_v52 = vld [vmem:[#allocation9 + $0xc8] ss:$16 sps:$4 sm:$0xff]   ;;  %v21617_v10 = vld [vmem:[#allocation9 + $0xe4] ss:$16 sps:$4 sm:$0xff]  }
 0x38a   : > { %4615 = vmatprep.subr.bf16.mxu0 %v21569_v11  ;;  %4656 = vmatprep.subr.bf16.mxu1 %v21572_v53  ;;  %v21620_v11 = vld [vmem:[#allocation9 + $0xec] ss:$16 sps:$4 sm:$0xff]   ;;  %v21615_v53 = vld [vmem:[#allocation9 + $0xe0] ss:$16 sps:$4 sm:$0xff]  }
 0x38d   : > { %4616 = vmatpush1.bf16.msra.mxu0 %v21567_v56  ;;  %4657 = vmatpush1.bf16.msra.mxu1 %v21570_v60  ;;  %v21618_v56 = vld [vmem:[#allocation9 + $0xe8] ss:$16 sps:$4 sm:$0xff]   ;;  %v21623_v60 = vld [vmem:[#allocation7 + $0x4] ss:$16 sps:$4 sm:$0xff]  }
 0x38e   : > { %5172 = vmatprep.subr.bf16.mxu0 %v21575_v23 }
 0x390   : > { %4618 = vmatmul.mubr.bf16.vlgmr.msra.gmra.mrb[36].mxu0 %v24852_v33  ;;  %4659 = vmatmul.mubr.bf16.vlgmr.msra.gmra.mrb[36].mxu1 %v24856_v36 }
 0x391   : > { %5204 = vmatprep.mubr.bf16.mxu0 %v24475_v3  ;;  %5245 = vmatprep.mubr.bf16.mxu1 %v24475_v3 }
 0x392   : > { %5173 = vmatpush1.bf16.msra.mxu0 %v21573_v6 }
 0x393   : > { %5174 = vmatprep.subr.bf16.mxu0 %v21581_v29 }
 0x396   : > { %5175 = vmatpush1.bf16.msra.mxu0 %v21579_v31 }
 0x397   : > { %5176 = vmatprep.subr.bf16.mxu0 %v21587_v32 }
 0x39a   : > { %5177 = vmatpush1.bf16.msra.mxu0 %v21585_v35 }
 0x39b   : > { %5178 = vmatprep.subr.bf16.mxu0 %v21593_v37 }
 0x39e   : > { %5179 = vmatpush1.bf16.msra.mxu0 %v21591_v39 }
 0x39f   : > { %5180 = vmatprep.subr.bf16.mxu0 %v21599_v41 }
 0x3a2   : > { %5181 = vmatpush1.bf16.msra.mxu0 %v21597_v16  ;;  %v4706_v16 = vld [vmem:[#allocation3] sm:$0xff] }
 0x3a3   : > { %v4373_v0 = vpop.f32.mrb[24].mxu0  ;;  %v4414_v57 = vpop.f32.mrb[24].mxu1  ;;  %5182 = vmatprep.subr.bf16.mxu0 %v21605_v45 }
 0x3a4   : > { %v4374_v58 = vadd.f32 %v4373_v0, %v24866_v4  ;;  %v4375_v62 = vpop.f32.mrb[25].mxu0  ;;  %v4416_v63 = vpop.f32.mrb[25].mxu1  ;;  %v21578_v4 = vld [vmem:[#allocation9 + $0xc] ss:$16 sps:$4 sm:$0xff]   ;;  %v21626_v0 = vld [vmem:[#allocation7 + $0x204] ss:$16 sps:$4 sm:$0xff]  }
 0x3a5   : > { %v4376_v59 = vadd.f32 %v4375_v62, %v24870_v13  ;;  %v4377_v19 = vpop.f32.mrb[26].mxu0  ;;  %v4418_v20 = vpop.f32.mrb[26].mxu1  ;;  %5213 = vmatprep.subr.bf16.mxu1 %v21578_v4 }
 0x3a6   : > { %v4415_v61 = vadd.f32 %v4414_v57, %v4374_v58  ;;  %v4378_v1 = vpop.f32.mrb[27].mxu0  ;;  %v4419_v2 = vpop.f32.mrb[27].mxu1  ;;  %5214 = vmatpush1.bf16.msra.mxu1 %v21576_v21  ;;  %5183 = vmatpush1.bf16.msra.mxu0 %v21603_v47 }
 0x3a7   : > { %v4417_v33 = vadd.f32 %v4416_v63, %v4376_v59  ;;  %5215 = vmatprep.subr.bf16.mxu1 %v21584_v30  ;;  %5184 = vmatprep.subr.bf16.mxu0 %v21611_v49 }
 0x3aa   : > { %5216 = vmatpush1.bf16.msra.mxu1 %v21582_v26  ;;  %5185 = vmatpush1.bf16.msra.mxu0 %v21609_v51 }
 0x3ab   : > { %5217 = vmatprep.subr.bf16.mxu1 %v21590_v34  ;;  %5186 = vmatprep.subr.bf16.mxu0 %v21617_v10  ;;  %v24899_v10 = vld [vmem:[%s24696_s9 + $0x48] sm:$0xff] }
 0x3ae   : > { %5218 = vmatpush1.bf16.msra.mxu1 %v21588_v22  ;;  %5187 = vmatpush1.bf16.msra.mxu0 %v21615_v53  ;;  %v21624_v53 = vld [vmem:[#allocation7 + $0x200] ss:$16 sps:$4 sm:$0xff]  }
 0x3af   : > { %5219 = vmatprep.subr.bf16.mxu1 %v21596_v38  ;;  %6562 = vmatprep.subr.bf16.mxu0 %v21623_v60  ;;  %v21629_v60 = vld [vmem:[#allocation7 + $0x24] ss:$16 sps:$4 sm:$0xff]  }
 0x3b2   : > { %5220 = vmatpush1.bf16.msra.mxu1 %v21594_v40 }
 0x3b3   : > { %5221 = vmatprep.subr.bf16.mxu1 %v21602_v15 }
 0x3b6   : > { %5222 = vmatpush1.bf16.msra.mxu1 %v21600_v42 }
 0x3b7   : > { %5223 = vmatprep.subr.bf16.mxu1 %v21608_v46 }
 0x3ba   : > { %5224 = vmatpush1.bf16.msra.mxu1 %v21606_v48 }
 0x3bb   : > { %5225 = vmatprep.subr.bf16.mxu1 %v21614_v50 }
 0x3be   : > { %5226 = vmatpush1.bf16.msra.mxu1 %v21612_v52  ;;  %v24896_v52 = vld [vmem:[%s24696_s9 + $0x40] sm:$0xff] }
 0x3bf   : > { %5227 = vmatprep.subr.bf16.mxu1 %v21620_v11  ;;  %v21621_v11 = vld [vmem:[#allocation7] ss:$16 sps:$4 sm:$0xff]  }
 0x3c2   : > { %5228 = vmatpush1.bf16.msra.mxu1 %v21618_v56 }
 0x3c3   : > { %6603 = vmatprep.subr.bf16.mxu1 %v21626_v0  ;;  %v21632_v0 = vld [vmem:[#allocation7 + $0x224] ss:$16 sps:$4 sm:$0xff]  }
 0x3e3   : > { %v4455_v8 = vpop.f32.mrb[28].mxu0  ;;  %v4496_v36 = vpop.f32.mrb[28].mxu1 }
 0x3e4   : > { %v4456_v9 = vadd.f32 %v4455_v8, %v4415_v61  ;;  %v4457_v43 = vpop.f32.mrb[29].mxu0  ;;  %v4498_v44 = vpop.f32.mrb[29].mxu1 }
 0x3e5   : > { %v4458_v12 = vadd.f32 %v4457_v43, %v4417_v33  ;;  %v4459_v17 = vpop.f32.mrb[30].mxu0  ;;  %v4500_v18 = vpop.f32.mrb[30].mxu1 }
 0x3e6   : > { %v24880_v27 = vadd.f32 %v4496_v36, %v4456_v9  ;;  %v4460_v5 = vpop.f32.mrb[31].mxu0  ;;  %v4501_v13 = vpop.f32.mrb[31].mxu1  ;;  %v4667_v36 = vld [vmem:[%s25475_s3] sm:$0xf] }
 0x3e7   : > { %v24882_v24 = vadd.f32 %v4498_v44, %v4458_v12  ;;  %v4676_v9 = vrot.slane %v4667_v36, %v24790_v54  ;;  %v4672_v43 = vrot.slane %v4667_v36, %v24795_v55  ;;  %v4680_v4 = vrot.slane %v4667_v36, %v24801_v25 }
 0x3e8   : > { %v4684_v21 = vrot.slane %v4667_v36, %v24803_v28  ;;  %v21647_v36 = vld [vmem:[#allocation7 + $0x84] ss:$16 sps:$4 sm:$0xff]  }
 0x3e9   : > { %v4689_v44 = vadd.f32 %v4672_v43, %v24880_v27  ;;  %v21645_v43 = vld [vmem:[#allocation7 + $0x80] ss:$16 sps:$4 sm:$0xff]  }
 0x423   : > { %v4537_v57 = vpop.f32.mrb[32].mxu0  ;;  %v4578_v58 = vpop.f32.mrb[32].mxu1 }
 0x424   : > { %v4538_v62 = vadd.f32 %v4537_v57, %v24868_v7  ;;  %v4539_v63 = vpop.f32.mrb[33].mxu0  ;;  %v4580_v59 = vpop.f32.mrb[33].mxu1  ;;  %v4690_v7 = vadd.f32 %v4676_v9, %v24882_v24  ;;  %v24903_v57 = vcombine.high %v24896_v52, %v24896_v52  ;;  %v21650_v9 = vld [vmem:[#allocation7 + $0x284] ss:$16 sps:$4 sm:$0xff]  }
 0x425   : > { %v4540_v19 = vadd.f32 %v4539_v63, %v24872_v14  ;;  %v4541_v20 = vpop.f32.mrb[34].mxu0  ;;  %v4582_v61 = vpop.f32.mrb[34].mxu1  ;;  %v4693_v14 = vmul.f32 0.5, %v4689_v44  ;;  %v21630_v63 = vld [vmem:[#allocation7 + $0x220] ss:$16 sps:$4 sm:$0xff]  }
 0x426   : > { %v4579_v1 = vadd.f32 %v4578_v58, %v4538_v62  ;;  %v4542_v2 = vpop.f32.mrb[35].mxu0  ;;  %v4583_v33 = vpop.f32.mrb[35].mxu1  ;;  %v4697_v12 = vmul.f32 0.5, %v4690_v7  ;;  %v24907_v58 = vcombine.high %v24899_v10, %v24899_v10  ;;  %v21627_v62 = vld [vmem:[#allocation7 + $0x20] ss:$16 sps:$4 sm:$0xff]  }
 0x427   : > { %v4581_v8 = vadd.f32 %v4580_v59, %v4540_v19  ;;  %v21635_v59 = vld [vmem:[#allocation7 + $0x44] ss:$16 sps:$4 sm:$0xff]   ;;  %v21633_v20 = vld [vmem:[#allocation7 + $0x40] ss:$16 sps:$4 sm:$0xff]  }
 0x428   : > { %24223 = vtanh.f32 %v4697_v12  ;;  %v21638_v19 = vld [vmem:[#allocation7 + $0x244] ss:$16 sps:$4 sm:$0xff]   ;;  %v21636_v61 = vld [vmem:[#allocation7 + $0x240] ss:$16 sps:$4 sm:$0xff]  }
 0x429   : > { %24225 = vtanh.f32 %v4693_v14  ;;  %v21644_v2 = vld [vmem:[#allocation7 + $0x264] ss:$16 sps:$4 sm:$0xff]   ;;  %v21639_v33 = vld [vmem:[#allocation7 + $0x60] ss:$16 sps:$4 sm:$0xff]  }
 0x42a   : > { %v21648_v7 = vld [vmem:[#allocation7 + $0x280] ss:$16 sps:$4 sm:$0xff]   ;;  %v21653_v44 = vld [vmem:[#allocation7 + $0xa4] ss:$16 sps:$4 sm:$0xff]  }
 0x42b   : > { %v21656_v12 = vld [vmem:[#allocation7 + $0x2a4] ss:$16 sps:$4 sm:$0xff]   ;;  %v21651_v14 = vld [vmem:[#allocation7 + $0xa0] ss:$16 sps:$4 sm:$0xff]  }
 0x432   : > { %v24224_v35 = vpop.eup %24223 }
 0x433   : > { %v24226_v22 = vpop.eup %24225  ;;  %v4699_v37 = vadd.f32 1.0, %v24224_v35  ;;  %v21678_v35 = vld [vmem:[#allocation7 + $0x320] ss:$16 sps:$4 sm:$0xff]  }
 0x434   : > { %v4695_v39 = vadd.f32 1.0, %v24226_v22  ;;  %v21683_v22 = vld [vmem:[#allocation7 + $0x144] ss:$16 sps:$4 sm:$0xff]  }
 0x435   : > { %v4700_v40 = vmul.f32 0.5, %v4699_v37  ;;  %v21686_v37 = vld [vmem:[#allocation7 + $0x344] ss:$16 sps:$4 sm:$0xff]  }
 0x436   : > { %v4696_v41 = vmul.f32 0.5, %v4695_v39  ;;  %v21684_v39 = vld [vmem:[#allocation7 + $0x340] ss:$16 sps:$4 sm:$0xff]  }
 0x437   : > { %v4707_v42 = vmul.f32 %v4706_v16, %v4700_v40  ;;  %v21689_v40 = vld [vmem:[#allocation7 + $0x164] ss:$16 sps:$4 sm:$0xff]   ;;  %v21690_v16 = vld [vmem:[#allocation7 + $0x360] ss:$16 sps:$4 sm:$0xff]  }
 0x463   : > { %v4619_v17 = vpop.f32.mrb[36].mxu0  ;;  %v4660_v18 = vpop.f32.mrb[36].mxu1 }
 0x464   : > { %v4620_v23 = vadd.f32 %v4619_v17, %v4579_v1  ;;  %v4621_v5 = vpop.f32.mrb[37].mxu0  ;;  %v4662_v13 = vpop.f32.mrb[37].mxu1  ;;  %v21641_v1 = vld [vmem:[#allocation7 + $0x64] ss:$16 sps:$4 sm:$0xff]   ;;  %v21654_v17 = vld [vmem:[#allocation7 + $0x2a0] ss:$16 sps:$4 sm:$0xff]  }
 0x465   : > { %v4622_v6 = vadd.f32 %v4621_v5, %v4581_v8  ;;  %v4623_v29 = vpop.f32.mrb[38].mxu0  ;;  %v4664_v30 = vpop.f32.mrb[38].mxu1  ;;  %v21642_v8 = vld [vmem:[#allocation7 + $0x260] ss:$16 sps:$4 sm:$0xff]  }
 0x466   : > { %v4661_v31 = vadd.f32 %v4660_v18, %v4620_v23  ;;  %v4624_v24 = vpop.f32.mrb[39].mxu0  ;;  %v4665_v26 = vpop.f32.mrb[39].mxu1  ;;  %v21659_v18 = vld [vmem:[#allocation7 + $0xc4] ss:$16 sps:$4 sm:$0xff]   ;;  %v21660_v5 = vld [vmem:[#allocation7 + $0x2c0] ss:$16 sps:$4 sm:$0xff]  }
 0x467   : > { %v4663_v27 = vadd.f32 %v4662_v13, %v4622_v6  ;;  %v21662_v23 = vld [vmem:[#allocation7 + $0x2c4] ss:$16 sps:$4 sm:$0xff]   ;;  %v21666_v29 = vld [vmem:[#allocation7 + $0x2e0] ss:$16 sps:$4 sm:$0xff]  }
 0x468   : > { %v4691_v32 = vadd.f32 %v4680_v4, %v4661_v31  ;;  %v21657_v4 = vld [vmem:[#allocation7 + $0xc0] ss:$16 sps:$4 sm:$0xff]   ;;  %v21665_v13 = vld [vmem:[#allocation7 + $0xe4] ss:$16 sps:$4 sm:$0xff]  }
 0x469   : > { %v4692_v34 = vadd.f32 %v4684_v21, %v4663_v27  ;;  %v21668_v6 = vld [vmem:[#allocation7 + $0x2e4] ss:$16 sps:$4 sm:$0xff]   ;;  %v21663_v21 = vld [vmem:[#allocation7 + $0xe0] ss:$16 sps:$4 sm:$0xff]  }
 0x46a   : > { %24227 = vtanh.f32 %v4691_v32  ;;  %v21671_v30 = vld [vmem:[#allocation7 + $0x104] ss:$16 sps:$4 sm:$0xff]   ;;  %v21669_v24 = vld [vmem:[#allocation7 + $0x100] ss:$16 sps:$4 sm:$0xff]  }
 0x46b   : > { %v4702_v38 = vmul.f32 0.5, %v4692_v34  ;;  %v21674_v31 = vld [vmem:[#allocation7 + $0x304] ss:$16 sps:$4 sm:$0xff]   ;;  %v21672_v26 = vld [vmem:[#allocation7 + $0x300] ss:$16 sps:$4 sm:$0xff]  }
 0x46c   : > { %v21677_v27 = vld [vmem:[#allocation7 + $0x124] ss:$16 sps:$4 sm:$0xff]   ;;  %v21675_v34 = vld [vmem:[#allocation7 + $0x120] ss:$16 sps:$4 sm:$0xff]  }
 0x46d   : > { %24229 = vtanh.f32 %v4702_v38  ;;  %v21680_v32 = vld [vmem:[#allocation7 + $0x324] ss:$16 sps:$4 sm:$0xff]   ;;  %v21681_v38 = vld [vmem:[#allocation7 + $0x140] ss:$16 sps:$4 sm:$0xff]  }
 0x474   : > { %v24228_v15 = vpop.eup %24227 }
 0x475   : > { %v4708_v45 = vmul.f32 %v24228_v15, %v4696_v41  ;;  %v21692_v41 = vld [vmem:[#allocation7 + $0x364] ss:$16 sps:$4 sm:$0xff]   ;;  %v21687_v15 = vld [vmem:[#allocation7 + $0x160] ss:$16 sps:$4 sm:$0xff]  }
 0x477   : > { %v4709_v46 = vadd.f32 %v4708_v45, %v4707_v42  ;;  %v24230_v47 = vpop.eup %24229  ;;  %v21695_v42 = vld [vmem:[#allocation7 + $0x184] ss:$16 sps:$4 sm:$0xff]  }
 0x478   : > { %v4704_v48 = vadd.f32 1.0, %v24230_v47  ;;  %v21698_v45 = vld [vmem:[#allocation7 + $0x384] ss:$16 sps:$4 sm:$0xff]   ;;  %v21696_v47 = vld [vmem:[#allocation7 + $0x380] ss:$16 sps:$4 sm:$0xff]  }
 0x479   : > { %24231 = vtanh.f32 %v4709_v46  ;;  %4712 = vst [vmem:[#allocation3] sm:$0xff] %v4709_v46  ;;  %v21693_v46 = vld [vmem:[#allocation7 + $0x180] ss:$16 sps:$4 sm:$0xff]  }
 0x47a   : > { %v4705_v49 = vmul.f32 0.5, %v4704_v48  ;;  %v21701_v48 = vld [vmem:[#allocation7 + $0x1a4] ss:$16 sps:$4 sm:$0xff]  }
 0x483   : > { %v24232_v50 = vpop.eup %24231 }
 0x484   : > { %v4711_v51 = vmul.f32 %v24232_v50, %v4705_v49  ;;  %v21704_v49 = vld [vmem:[#allocation7 + $0x3a4] ss:$16 sps:$4 sm:$0xff]   ;;  %v21699_v50 = vld [vmem:[#allocation7 + $0x1a0] ss:$16 sps:$4 sm:$0xff]  }
 0x486   : > { %v4714_v56 = vpack.c.bf16 %v4711_v51, %v4711_v51  ;;  %v21702_v51 = vld [vmem:[#allocation7 + $0x3a0] ss:$16 sps:$4 sm:$0xff]  }
 0x488   : > { %18787 = vst [vmem:[%s24707_s12 + $0x4] sm:$0xf] %v4714_v56  ;;  %5205 = vmatmul.mubr.bf16.vlgmr.msra.gmra.mrb[40].mxu0 %v4714_v56  ;;  %5246 = vmatmul.mubr.bf16.vlgmr.msra.gmra.mrb[40].mxu1 %v4714_v56  ;;  %v21705_v56 = vld [vmem:[#allocation7 + $0x1c0] ss:$16 sps:$4 sm:$0xff]  }
 0x489   : > { %6563 = vmatpush1.bf16.msra.mxu0 %v21621_v11  ;;  %6604 = vmatpush1.bf16.msra.mxu1 %v21624_v53  ;;  %v21707_v11 = vld [vmem:[#allocation7 + $0x1c4] ss:$16 sps:$4 sm:$0xff]  }
 0x48a   : > { %6564 = vmatprep.subr.bf16.mxu0 %v21629_v60  ;;  %6605 = vmatprep.subr.bf16.mxu1 %v21632_v0  ;;  %v21710_v53 = vld [vmem:[#allocation7 + $0x3c4] ss:$16 sps:$4 sm:$0xff]   ;;  %v21708_v60 = vld [vmem:[#allocation7 + $0x3c0] ss:$16 sps:$4 sm:$0xff]  }
 0x48b   : > { %6594 = vmatprep.mubr.bf16.mxu0 %v24903_v57  ;;  %6635 = vmatprep.mubr.bf16.mxu1 %v24907_v58  ;;  %v21713_v0 = vld [vmem:[#allocation7 + $0x1e4] ss:$16 sps:$4 sm:$0xff]  }
 0x48d   : > { %6565 = vmatpush1.bf16.msra.mxu0 %v21627_v62  ;;  %6606 = vmatpush1.bf16.msra.mxu1 %v21630_v63  ;;  %v21716_v62 = vld [vmem:[#allocation7 + $0x3e4] ss:$16 sps:$4 sm:$0xff]   ;;  %v21711_v63 = vld [vmem:[#allocation7 + $0x1e0] ss:$16 sps:$4 sm:$0xff]  }
 0x48e   : > { %6566 = vmatprep.subr.bf16.mxu0 %v21635_v59  ;;  %6607 = vmatprep.subr.bf16.mxu1 %v21638_v19  ;;  %v21714_v59 = vld [vmem:[#allocation7 + $0x3e0] ss:$16 sps:$4 sm:$0xff]   ;;  %v21723_v19 = vld [vmem:[#allocation7 + $0x404] ss:$16 sps:$4 sm:$0xff]  }
 0x491   : > { %6567 = vmatpush1.bf16.msra.mxu0 %v21633_v20  ;;  %6608 = vmatpush1.bf16.msra.mxu1 %v21636_v61  ;;  %v21726_v20 = vld [vmem:[#allocation7 + $0x604] ss:$16 sps:$4 sm:$0xff]   ;;  %v24914_v61 = vcombine.low %v24896_v52, %v24896_v52 }
 0x492   : > { %6568 = vmatprep.subr.bf16.mxu0 %v21641_v1  ;;  %6609 = vmatprep.subr.bf16.mxu1 %v21644_v2  ;;  %v24918_v1 = vcombine.low %v24899_v10, %v24899_v10  ;;  %v24921_v2 = vld [vmem:[%s24696_s9 + $0x50] sm:$0xff] }
 0x493   : > { %v24928_v52 = vcombine.high %v24921_v2, %v24921_v2 }
 0x495   : > { %6569 = vmatpush1.bf16.msra.mxu0 %v21639_v33  ;;  %6610 = vmatpush1.bf16.msra.mxu1 %v21642_v8  ;;  %v24924_v33 = vld [vmem:[%s24696_s9 + $0x58] sm:$0xff]  ;;  %v21721_v8 = vld [vmem:[#allocation7 + $0x400] ss:$16 sps:$4 sm:$0xff]  }
 0x496   : > { %6570 = vmatprep.subr.bf16.mxu0 %v21647_v36  ;;  %6611 = vmatprep.subr.bf16.mxu1 %v21650_v9  ;;  %v21724_v36 = vld [vmem:[#allocation7 + $0x600] ss:$16 sps:$4 sm:$0xff]   ;;  %v21729_v9 = vld [vmem:[#allocation7 + $0x424] ss:$16 sps:$4 sm:$0xff]   ;;  %v24932_v10 = vcombine.high %v24924_v33, %v24924_v33 }
 0x499   : > { %6571 = vmatpush1.bf16.msra.mxu0 %v21645_v43  ;;  %6612 = vmatpush1.bf16.msra.mxu1 %v21648_v7  ;;  %v21732_v43 = vld [vmem:[#allocation7 + $0x624] ss:$16 sps:$4 sm:$0xff]   ;;  %v21727_v7 = vld [vmem:[#allocation7 + $0x420] ss:$16 sps:$4 sm:$0xff]  }
 0x49a   : > { %6572 = vmatprep.subr.bf16.mxu0 %v21653_v44  ;;  %6613 = vmatprep.subr.bf16.mxu1 %v21656_v12  ;;  %v21730_v44 = vld [vmem:[#allocation7 + $0x620] ss:$16 sps:$4 sm:$0xff]   ;;  %v21735_v12 = vld [vmem:[#allocation7 + $0x444] ss:$16 sps:$4 sm:$0xff]  }
 0x49d   : > { %6573 = vmatpush1.bf16.msra.mxu0 %v21651_v14  ;;  %6614 = vmatpush1.bf16.msra.mxu1 %v21654_v17  ;;  %v21738_v14 = vld [vmem:[#allocation7 + $0x644] ss:$16 sps:$4 sm:$0xff]   ;;  %v21733_v17 = vld [vmem:[#allocation7 + $0x440] ss:$16 sps:$4 sm:$0xff]  }
 0x49e   : > { %6574 = vmatprep.subr.bf16.mxu0 %v21659_v18  ;;  %6615 = vmatprep.subr.bf16.mxu1 %v21662_v23  ;;  %v21736_v18 = vld [vmem:[#allocation7 + $0x640] ss:$16 sps:$4 sm:$0xff]   ;;  %v21741_v23 = vld [vmem:[#allocation7 + $0x464] ss:$16 sps:$4 sm:$0xff]  }
 0x4a1   : > { %6575 = vmatpush1.bf16.msra.mxu0 %v21657_v4  ;;  %6616 = vmatpush1.bf16.msra.mxu1 %v21660_v5  ;;  %v21744_v4 = vld [vmem:[#allocation7 + $0x664] ss:$16 sps:$4 sm:$0xff]   ;;  %v21739_v5 = vld [vmem:[#allocation7 + $0x460] ss:$16 sps:$4 sm:$0xff]  }
 0x4a2   : > { %6576 = vmatprep.subr.bf16.mxu0 %v21665_v13  ;;  %6617 = vmatprep.subr.bf16.mxu1 %v21668_v6  ;;  %v21742_v13 = vld [vmem:[#allocation7 + $0x660] ss:$16 sps:$4 sm:$0xff]   ;;  %v21747_v6 = vld [vmem:[#allocation7 + $0x484] ss:$16 sps:$4 sm:$0xff]  }
 0x4a5   : > { %6577 = vmatpush1.bf16.msra.mxu0 %v21663_v21  ;;  %6618 = vmatpush1.bf16.msra.mxu1 %v21666_v29  ;;  %v21750_v21 = vld [vmem:[#allocation7 + $0x684] ss:$16 sps:$4 sm:$0xff]   ;;  %v21745_v29 = vld [vmem:[#allocation7 + $0x480] ss:$16 sps:$4 sm:$0xff]  }
 0x4a6   : > { %6578 = vmatprep.subr.bf16.mxu0 %v21671_v30  ;;  %6619 = vmatprep.subr.bf16.mxu1 %v21674_v31  ;;  %v21748_v30 = vld [vmem:[#allocation7 + $0x680] ss:$16 sps:$4 sm:$0xff]   ;;  %v21753_v31 = vld [vmem:[#allocation7 + $0x4a4] ss:$16 sps:$4 sm:$0xff]  }
 0x4a9   : > { %6579 = vmatpush1.bf16.msra.mxu0 %v21669_v24  ;;  %6620 = vmatpush1.bf16.msra.mxu1 %v21672_v26  ;;  %v21756_v24 = vld [vmem:[#allocation7 + $0x6a4] ss:$16 sps:$4 sm:$0xff]   ;;  %v21751_v26 = vld [vmem:[#allocation7 + $0x4a0] ss:$16 sps:$4 sm:$0xff]  }
 0x4aa   : > { %6580 = vmatprep.subr.bf16.mxu0 %v21677_v27  ;;  %6621 = vmatprep.subr.bf16.mxu1 %v21680_v32  ;;  %v21754_v27 = vld [vmem:[#allocation7 + $0x6a0] ss:$16 sps:$4 sm:$0xff]   ;;  %v21759_v32 = vld [vmem:[#allocation7 + $0x4c4] ss:$16 sps:$4 sm:$0xff]  }
 0x4ad   : > { %6581 = vmatpush1.bf16.msra.mxu0 %v21675_v34  ;;  %6622 = vmatpush1.bf16.msra.mxu1 %v21678_v35  ;;  %v21762_v34 = vld [vmem:[#allocation7 + $0x6c4] ss:$16 sps:$4 sm:$0xff]   ;;  %v21757_v35 = vld [vmem:[#allocation7 + $0x4c0] ss:$16 sps:$4 sm:$0xff]  }
 0x4ae   : > { %6582 = vmatprep.subr.bf16.mxu0 %v21683_v22  ;;  %6623 = vmatprep.subr.bf16.mxu1 %v21686_v37  ;;  %v21760_v22 = vld [vmem:[#allocation7 + $0x6c0] ss:$16 sps:$4 sm:$0xff]   ;;  %v21765_v37 = vld [vmem:[#allocation7 + $0x4e4] ss:$16 sps:$4 sm:$0xff]  }
 0x4b1   : > { %6583 = vmatpush1.bf16.msra.mxu0 %v21681_v38  ;;  %6624 = vmatpush1.bf16.msra.mxu1 %v21684_v39  ;;  %v21768_v38 = vld [vmem:[#allocation7 + $0x6e4] ss:$16 sps:$4 sm:$0xff]   ;;  %v21763_v39 = vld [vmem:[#allocation7 + $0x4e0] ss:$16 sps:$4 sm:$0xff]  }
 0x4b2   : > { %6584 = vmatprep.subr.bf16.mxu0 %v21689_v40  ;;  %6625 = vmatprep.subr.bf16.mxu1 %v21692_v41  ;;  %v21766_v40 = vld [vmem:[#allocation7 + $0x6e0] ss:$16 sps:$4 sm:$0xff]   ;;  %v21771_v41 = vld [vmem:[#allocation7 + $0x504] ss:$16 sps:$4 sm:$0xff]  }
 0x4b5   : > { %6585 = vmatpush1.bf16.msra.mxu0 %v21687_v15  ;;  %6626 = vmatpush1.bf16.msra.mxu1 %v21690_v16  ;;  %v21774_v15 = vld [vmem:[#allocation7 + $0x704] ss:$16 sps:$4 sm:$0xff]   ;;  %v21769_v16 = vld [vmem:[#allocation7 + $0x500] ss:$16 sps:$4 sm:$0xff]  }
 0x4b6   : > { %6586 = vmatprep.subr.bf16.mxu0 %v21695_v42  ;;  %6627 = vmatprep.subr.bf16.mxu1 %v21698_v45  ;;  %v21772_v42 = vld [vmem:[#allocation7 + $0x700] ss:$16 sps:$4 sm:$0xff]   ;;  %v21777_v45 = vld [vmem:[#allocation7 + $0x524] ss:$16 sps:$4 sm:$0xff]  }
 0x4b9   : > { %6587 = vmatpush1.bf16.msra.mxu0 %v21693_v46  ;;  %6628 = vmatpush1.bf16.msra.mxu1 %v21696_v47  ;;  %v21780_v46 = vld [vmem:[#allocation7 + $0x724] ss:$16 sps:$4 sm:$0xff]   ;;  %v21775_v47 = vld [vmem:[#allocation7 + $0x520] ss:$16 sps:$4 sm:$0xff]  }
 0x4ba   : > { %6588 = vmatprep.subr.bf16.mxu0 %v21701_v48  ;;  %6629 = vmatprep.subr.bf16.mxu1 %v21704_v49  ;;  %v21778_v48 = vld [vmem:[#allocation7 + $0x720] ss:$16 sps:$4 sm:$0xff]   ;;  %v21783_v49 = vld [vmem:[#allocation7 + $0x544] ss:$16 sps:$4 sm:$0xff]  }
 0x4bd   : > { %6589 = vmatpush1.bf16.msra.mxu0 %v21699_v50  ;;  %6630 = vmatpush1.bf16.msra.mxu1 %v21702_v51  ;;  %v21786_v50 = vld [vmem:[#allocation7 + $0x744] ss:$16 sps:$4 sm:$0xff]   ;;  %v21781_v51 = vld [vmem:[#allocation7 + $0x540] ss:$16 sps:$4 sm:$0xff]  }
 0x4be   : > { %6590 = vmatprep.subr.bf16.mxu0 %v21707_v11  ;;  %6631 = vmatprep.subr.bf16.mxu1 %v21710_v53  ;;  %v21784_v11 = vld [vmem:[#allocation7 + $0x740] ss:$16 sps:$4 sm:$0xff]   ;;  %v21789_v53 = vld [vmem:[#allocation7 + $0x564] ss:$16 sps:$4 sm:$0xff]  }
 0x4c1   : > { %6591 = vmatpush1.bf16.msra.mxu0 %v21705_v56  ;;  %6632 = vmatpush1.bf16.msra.mxu1 %v21708_v60  ;;  %v21792_v56 = vld [vmem:[#allocation7 + $0x764] ss:$16 sps:$4 sm:$0xff]   ;;  %v21787_v60 = vld [vmem:[#allocation7 + $0x560] ss:$16 sps:$4 sm:$0xff]  }
 0x4c2   : > { %6592 = vmatprep.subr.bf16.mxu0 %v21713_v0  ;;  %6633 = vmatprep.subr.bf16.mxu1 %v21716_v62  ;;  %v21790_v0 = vld [vmem:[#allocation7 + $0x760] ss:$16 sps:$4 sm:$0xff]   ;;  %v21795_v62 = vld [vmem:[#allocation7 + $0x584] ss:$16 sps:$4 sm:$0xff]  }
 0x4c5   : > { %6593 = vmatpush1.bf16.msra.mxu0 %v21711_v63  ;;  %6634 = vmatpush1.bf16.msra.mxu1 %v21714_v59  ;;  %v21798_v63 = vld [vmem:[#allocation7 + $0x784] ss:$16 sps:$4 sm:$0xff]   ;;  %v21793_v59 = vld [vmem:[#allocation7 + $0x580] ss:$16 sps:$4 sm:$0xff]  }
 0x4c6   : > { %6644 = vmatprep.subr.bf16.mxu0 %v21723_v19  ;;  %6685 = vmatprep.subr.bf16.mxu1 %v21726_v20  ;;  %v21796_v19 = vld [vmem:[#allocation7 + $0x780] ss:$16 sps:$4 sm:$0xff]   ;;  %v21801_v20 = vld [vmem:[#allocation7 + $0x5a4] ss:$16 sps:$4 sm:$0xff]  }
 0x4c8   : > { %6595 = vmatmul.mubr.bf16.vlgmr.msra.gmra.mrb[44].mxu0 %v24914_v61  ;;  %6636 = vmatmul.mubr.bf16.vlgmr.msra.gmra.mrb[44].mxu1 %v24918_v1 }
 0x4c9   : > { %6645 = vmatpush1.bf16.msra.mxu0 %v21721_v8  ;;  %6686 = vmatpush1.bf16.msra.mxu1 %v21724_v36  ;;  %v21804_v8 = vld [vmem:[#allocation7 + $0x7a4] ss:$16 sps:$4 sm:$0xff]   ;;  %v21799_v36 = vld [vmem:[#allocation7 + $0x5a0] ss:$16 sps:$4 sm:$0xff]  }
 0x4ca   : > { %6646 = vmatprep.subr.bf16.mxu0 %v21729_v9  ;;  %6687 = vmatprep.subr.bf16.mxu1 %v21732_v43  ;;  %v21802_v9 = vld [vmem:[#allocation7 + $0x7a0] ss:$16 sps:$4 sm:$0xff]   ;;  %v21807_v43 = vld [vmem:[#allocation7 + $0x5c4] ss:$16 sps:$4 sm:$0xff]  }
 0x4cb   : > { %6676 = vmatprep.mubr.bf16.mxu0 %v24928_v52  ;;  %6717 = vmatprep.mubr.bf16.mxu1 %v24932_v10 }
 0x4cd   : > { %6647 = vmatpush1.bf16.msra.mxu0 %v21727_v7  ;;  %6688 = vmatpush1.bf16.msra.mxu1 %v21730_v44  ;;  %v21810_v7 = vld [vmem:[#allocation7 + $0x7c4] ss:$16 sps:$4 sm:$0xff]   ;;  %v21805_v44 = vld [vmem:[#allocation7 + $0x5c0] ss:$16 sps:$4 sm:$0xff]  }
 0x4ce   : > { %6648 = vmatprep.subr.bf16.mxu0 %v21735_v12  ;;  %6689 = vmatprep.subr.bf16.mxu1 %v21738_v14  ;;  %v21808_v12 = vld [vmem:[#allocation7 + $0x7c0] ss:$16 sps:$4 sm:$0xff]   ;;  %v21813_v14 = vld [vmem:[#allocation7 + $0x5e4] ss:$16 sps:$4 sm:$0xff]  }
 0x4d1   : > { %6649 = vmatpush1.bf16.msra.mxu0 %v21733_v17  ;;  %6690 = vmatpush1.bf16.msra.mxu1 %v21736_v18  ;;  %v21816_v17 = vld [vmem:[#allocation7 + $0x7e4] ss:$16 sps:$4 sm:$0xff]   ;;  %v21811_v18 = vld [vmem:[#allocation7 + $0x5e0] ss:$16 sps:$4 sm:$0xff]  }
 0x4d2   : > { %6650 = vmatprep.subr.bf16.mxu0 %v21741_v23  ;;  %6691 = vmatprep.subr.bf16.mxu1 %v21744_v4  ;;  %v21814_v23 = vld [vmem:[#allocation7 + $0x7e0] ss:$16 sps:$4 sm:$0xff]   ;;  %v21823_v4 = vld [vmem:[#allocation7 + $0xc] ss:$16 sps:$4 sm:$0xff]  }
 0x4d5   : > { %6651 = vmatpush1.bf16.msra.mxu0 %v21739_v5  ;;  %6692 = vmatpush1.bf16.msra.mxu1 %v21742_v13  ;;  %v21826_v5 = vld [vmem:[#allocation7 + $0x20c] ss:$16 sps:$4 sm:$0xff]   ;;  %v24940_v13 = vcombine.low %v24921_v2, %v24921_v2  ;;  %v21827_v2 = vld [vmem:[#allocation7 + $0x28] ss:$16 sps:$4 sm:$0xff]  }
 0x4d6   : > { %6652 = vmatprep.subr.bf16.mxu0 %v21747_v6  ;;  %6693 = vmatprep.subr.bf16.mxu1 %v21750_v21  ;;  %v24944_v6 = vcombine.low %v24924_v33, %v24924_v33  ;;  %v21821_v21 = vld [vmem:[#allocation7 + $0x8] ss:$16 sps:$4 sm:$0xff]   ;;  %v21835_v33 = vld [vmem:[#allocation7 + $0x4c] ss:$16 sps:$4 sm:$0xff]  }
 0x4d9   : > { %6653 = vmatpush1.bf16.msra.mxu0 %v21745_v29  ;;  %6694 = vmatpush1.bf16.msra.mxu1 %v21748_v30  ;;  %v21824_v29 = vld [vmem:[#allocation7 + $0x208] ss:$16 sps:$4 sm:$0xff]   ;;  %v21829_v30 = vld [vmem:[#allocation7 + $0x2c] ss:$16 sps:$4 sm:$0xff]  }
 0x4da   : > { %6654 = vmatprep.subr.bf16.mxu0 %v21753_v31  ;;  %6695 = vmatprep.subr.bf16.mxu1 %v21756_v24  ;;  %v21832_v31 = vld [vmem:[#allocation7 + $0x22c] ss:$16 sps:$4 sm:$0xff]   ;;  %v21830_v24 = vld [vmem:[#allocation7 + $0x228] ss:$16 sps:$4 sm:$0xff]  }
 0x4dd   : > { %6655 = vmatpush1.bf16.msra.mxu0 %v21751_v26  ;;  %6696 = vmatpush1.bf16.msra.mxu1 %v21754_v27  ;;  %v21838_v26 = vld [vmem:[#allocation7 + $0x24c] ss:$16 sps:$4 sm:$0xff]   ;;  %v21833_v27 = vld [vmem:[#allocation7 + $0x48] ss:$16 sps:$4 sm:$0xff]  }
 0x4de   : > { %6656 = vmatprep.subr.bf16.mxu0 %v21759_v32  ;;  %6697 = vmatprep.subr.bf16.mxu1 %v21762_v34  ;;  %v21836_v32 = vld [vmem:[#allocation7 + $0x248] ss:$16 sps:$4 sm:$0xff]   ;;  %v21841_v34 = vld [vmem:[#allocation7 + $0x6c] ss:$16 sps:$4 sm:$0xff]  }
 0x4e1   : > { %6657 = vmatpush1.bf16.msra.mxu0 %v21757_v35  ;;  %6698 = vmatpush1.bf16.msra.mxu1 %v21760_v22  ;;  %v21844_v35 = vld [vmem:[#allocation7 + $0x26c] ss:$16 sps:$4 sm:$0xff]   ;;  %v21839_v22 = vld [vmem:[#allocation7 + $0x68] ss:$16 sps:$4 sm:$0xff]  }
 0x4e2   : > { %6658 = vmatprep.subr.bf16.mxu0 %v21765_v37  ;;  %6699 = vmatprep.subr.bf16.mxu1 %v21768_v38  ;;  %v21842_v37 = vld [vmem:[#allocation7 + $0x268] ss:$16 sps:$4 sm:$0xff]   ;;  %v21847_v38 = vld [vmem:[#allocation7 + $0x8c] ss:$16 sps:$4 sm:$0xff]  }
 0x4e5   : > { %6659 = vmatpush1.bf16.msra.mxu0 %v21763_v39  ;;  %6700 = vmatpush1.bf16.msra.mxu1 %v21766_v40  ;;  %v21850_v39 = vld [vmem:[#allocation7 + $0x28c] ss:$16 sps:$4 sm:$0xff]  }
 0x4e6   : > { %6660 = vmatprep.subr.bf16.mxu0 %v21771_v41  ;;  %6701 = vmatprep.subr.bf16.mxu1 %v21774_v15  ;;  %v21853_v40 = vld [vmem:[#allocation7 + $0xac] ss:$16 sps:$4 sm:$0xff]   ;;  %v21851_v15 = vld [vmem:[#allocation7 + $0xa8] ss:$16 sps:$4 sm:$0xff]  }
 0x4e7   : > { %v21856_v41 = vld [vmem:[#allocation7 + $0x2ac] ss:$16 sps:$4 sm:$0xff]  }
 0x4e9   : > { %6661 = vmatpush1.bf16.msra.mxu0 %v21769_v16  ;;  %6702 = vmatpush1.bf16.msra.mxu1 %v21772_v42  ;;  %v21854_v16 = vld [vmem:[#allocation7 + $0x2a8] ss:$16 sps:$4 sm:$0xff]   ;;  %v21859_v42 = vld [vmem:[#allocation7 + $0xcc] ss:$16 sps:$4 sm:$0xff]  }
 0x4ea   : > { %6662 = vmatprep.subr.bf16.mxu0 %v21777_v45  ;;  %6703 = vmatprep.subr.bf16.mxu1 %v21780_v46  ;;  %v21862_v45 = vld [vmem:[#allocation7 + $0x2cc] ss:$16 sps:$4 sm:$0xff]   ;;  %v21857_v46 = vld [vmem:[#allocation7 + $0xc8] ss:$16 sps:$4 sm:$0xff]  }
 0x4ed   : > { %6663 = vmatpush1.bf16.msra.mxu0 %v21775_v47  ;;  %6704 = vmatpush1.bf16.msra.mxu1 %v21778_v48  ;;  %v21860_v47 = vld [vmem:[#allocation7 + $0x2c8] ss:$16 sps:$4 sm:$0xff]   ;;  %v21865_v48 = vld [vmem:[#allocation7 + $0xec] ss:$16 sps:$4 sm:$0xff]  }
 0x4ee   : > { %6664 = vmatprep.subr.bf16.mxu0 %v21783_v49  ;;  %6705 = vmatprep.subr.bf16.mxu1 %v21786_v50  ;;  %v21868_v49 = vld [vmem:[#allocation7 + $0x2ec] ss:$16 sps:$4 sm:$0xff]   ;;  %v21863_v50 = vld [vmem:[#allocation7 + $0xe8] ss:$16 sps:$4 sm:$0xff]  }
 0x4f1   : > { %6665 = vmatpush1.bf16.msra.mxu0 %v21781_v51  ;;  %6706 = vmatpush1.bf16.msra.mxu1 %v21784_v11  ;;  %v21866_v51 = vld [vmem:[#allocation7 + $0x2e8] ss:$16 sps:$4 sm:$0xff]   ;;  %v21871_v11 = vld [vmem:[#allocation7 + $0x10c] ss:$16 sps:$4 sm:$0xff]  }
 0x4f2   : > { %6666 = vmatprep.subr.bf16.mxu0 %v21789_v53  ;;  %6707 = vmatprep.subr.bf16.mxu1 %v21792_v56  ;;  %v21874_v53 = vld [vmem:[#allocation7 + $0x30c] ss:$16 sps:$4 sm:$0xff]   ;;  %v21869_v56 = vld [vmem:[#allocation7 + $0x108] ss:$16 sps:$4 sm:$0xff]  }
 0x4f5   : > { %6667 = vmatpush1.bf16.msra.mxu0 %v21787_v60  ;;  %6708 = vmatpush1.bf16.msra.mxu1 %v21790_v0  ;;  %v21872_v60 = vld [vmem:[#allocation7 + $0x308] ss:$16 sps:$4 sm:$0xff]   ;;  %v21877_v0 = vld [vmem:[#allocation7 + $0x12c] ss:$16 sps:$4 sm:$0xff]  }
 0x4f6   : > { %6668 = vmatprep.subr.bf16.mxu0 %v21795_v62  ;;  %6709 = vmatprep.subr.bf16.mxu1 %v21798_v63  ;;  %v21880_v62 = vld [vmem:[#allocation7 + $0x32c] ss:$16 sps:$4 sm:$0xff]   ;;  %v21875_v63 = vld [vmem:[#allocation7 + $0x128] ss:$16 sps:$4 sm:$0xff]  }
 0x4f9   : > { %6669 = vmatpush1.bf16.msra.mxu0 %v21793_v59  ;;  %6710 = vmatpush1.bf16.msra.mxu1 %v21796_v19  ;;  %v21878_v59 = vld [vmem:[#allocation7 + $0x328] ss:$16 sps:$4 sm:$0xff]   ;;  %v21883_v19 = vld [vmem:[#allocation7 + $0x14c] ss:$16 sps:$4 sm:$0xff]  }
 0x4fa   : > { %6670 = vmatprep.subr.bf16.mxu0 %v21801_v20  ;;  %6711 = vmatprep.subr.bf16.mxu1 %v21804_v8  ;;  %v21886_v20 = vld [vmem:[#allocation7 + $0x34c] ss:$16 sps:$4 sm:$0xff]   ;;  %v21881_v8 = vld [vmem:[#allocation7 + $0x148] ss:$16 sps:$4 sm:$0xff]  }
 0x4fd   : > { %6671 = vmatpush1.bf16.msra.mxu0 %v21799_v36  ;;  %6712 = vmatpush1.bf16.msra.mxu1 %v21802_v9  ;;  %v21884_v36 = vld [vmem:[#allocation7 + $0x348] ss:$16 sps:$4 sm:$0xff]   ;;  %v21889_v9 = vld [vmem:[#allocation7 + $0x16c] ss:$16 sps:$4 sm:$0xff]  }
 0x4fe   : > { %6672 = vmatprep.subr.bf16.mxu0 %v21807_v43  ;;  %6713 = vmatprep.subr.bf16.mxu1 %v21810_v7  ;;  %v21892_v43 = vld [vmem:[#allocation7 + $0x36c] ss:$16 sps:$4 sm:$0xff]   ;;  %v21887_v7 = vld [vmem:[#allocation7 + $0x168] ss:$16 sps:$4 sm:$0xff]  }
 0x501   : > { %6673 = vmatpush1.bf16.msra.mxu0 %v21805_v44  ;;  %6714 = vmatpush1.bf16.msra.mxu1 %v21808_v12  ;;  %v21890_v44 = vld [vmem:[#allocation7 + $0x368] ss:$16 sps:$4 sm:$0xff]   ;;  %v21895_v12 = vld [vmem:[#allocation7 + $0x18c] ss:$16 sps:$4 sm:$0xff]  }
 0x502   : > { %6674 = vmatprep.subr.bf16.mxu0 %v21813_v14  ;;  %6715 = vmatprep.subr.bf16.mxu1 %v21816_v17  ;;  %v21898_v14 = vld [vmem:[#allocation7 + $0x38c] ss:$16 sps:$4 sm:$0xff]   ;;  %v21893_v17 = vld [vmem:[#allocation7 + $0x188] ss:$16 sps:$4 sm:$0xff]  }
 0x505   : > { %6675 = vmatpush1.bf16.msra.mxu0 %v21811_v18  ;;  %6716 = vmatpush1.bf16.msra.mxu1 %v21814_v23  ;;  %v21896_v18 = vld [vmem:[#allocation7 + $0x388] ss:$16 sps:$4 sm:$0xff]   ;;  %v21901_v23 = vld [vmem:[#allocation7 + $0x1ac] ss:$16 sps:$4 sm:$0xff]  }
 0x506   : > { %6726 = vmatprep.subr.bf16.mxu0 %v21823_v4  ;;  %6767 = vmatprep.subr.bf16.mxu1 %v21826_v5  ;;  %v21904_v4 = vld [vmem:[#allocation7 + $0x3ac] ss:$16 sps:$4 sm:$0xff]   ;;  %v21899_v5 = vld [vmem:[#allocation7 + $0x1a8] ss:$16 sps:$4 sm:$0xff]  }
 0x508   : > { %6677 = vmatmul.mubr.bf16.vlgmr.msra.gmra.mrb[48].mxu0 %v24940_v13  ;;  %6718 = vmatmul.mubr.bf16.vlgmr.msra.gmra.mrb[48].mxu1 %v24944_v6 }
 0x509   : > { %6727 = vmatpush1.bf16.msra.mxu0 %v21821_v21  ;;  %6768 = vmatpush1.bf16.msra.mxu1 %v21824_v29  ;;  %v21902_v21 = vld [vmem:[#allocation7 + $0x3a8] ss:$16 sps:$4 sm:$0xff]   ;;  %v21907_v29 = vld [vmem:[#allocation7 + $0x1cc] ss:$16 sps:$4 sm:$0xff]  }
 0x50a   : > { %6728 = vmatprep.subr.bf16.mxu0 %v21829_v30  ;;  %6769 = vmatprep.subr.bf16.mxu1 %v21832_v31  ;;  %v21910_v30 = vld [vmem:[#allocation7 + $0x3cc] ss:$16 sps:$4 sm:$0xff]   ;;  %v21905_v31 = vld [vmem:[#allocation7 + $0x1c8] ss:$16 sps:$4 sm:$0xff]  }
 0x50b   : > { %6758 = vmatprep.mubr.bf16.mxu0 %v24903_v57  ;;  %6799 = vmatprep.mubr.bf16.mxu1 %v24907_v58  ;;  %v21845_v57 = vld [vmem:[#allocation7 + $0x88] ss:$16 sps:$4 sm:$0xff]  }
 0x50c   : > { %v21848_v58 = vld [vmem:[#allocation7 + $0x288] ss:$16 sps:$4 sm:$0xff]  }
 0x50d   : > { %6729 = vmatpush1.bf16.msra.mxu0 %v21827_v2  ;;  %6770 = vmatpush1.bf16.msra.mxu1 %v21830_v24  ;;  %v21908_v2 = vld [vmem:[#allocation7 + $0x3c8] ss:$16 sps:$4 sm:$0xff]   ;;  %v21913_v24 = vld [vmem:[#allocation7 + $0x1ec] ss:$16 sps:$4 sm:$0xff]  }
 0x50e   : > { %6730 = vmatprep.subr.bf16.mxu0 %v21835_v33  ;;  %6771 = vmatprep.subr.bf16.mxu1 %v21838_v26  ;;  %v21916_v33 = vld [vmem:[#allocation7 + $0x3ec] ss:$16 sps:$4 sm:$0xff]   ;;  %v21911_v26 = vld [vmem:[#allocation7 + $0x1e8] ss:$16 sps:$4 sm:$0xff]  }
 0x511   : > { %6731 = vmatpush1.bf16.msra.mxu0 %v21833_v27  ;;  %6772 = vmatpush1.bf16.msra.mxu1 %v21836_v32  ;;  %v21914_v27 = vld [vmem:[#allocation7 + $0x3e8] ss:$16 sps:$4 sm:$0xff]   ;;  %v21919_v32 = vld [vmem:[#allocation7 + $0x40c] ss:$16 sps:$4 sm:$0xff]  }
 0x512   : > { %6732 = vmatprep.subr.bf16.mxu0 %v21841_v34  ;;  %6773 = vmatprep.subr.bf16.mxu1 %v21844_v35  ;;  %v21922_v34 = vld [vmem:[#allocation7 + $0x60c] ss:$16 sps:$4 sm:$0xff]   ;;  %v21917_v35 = vld [vmem:[#allocation7 + $0x408] ss:$16 sps:$4 sm:$0xff]  }
 0x515   : > { %6733 = vmatpush1.bf16.msra.mxu0 %v21839_v22  ;;  %6774 = vmatpush1.bf16.msra.mxu1 %v21842_v37  ;;  %v21920_v22 = vld [vmem:[#allocation7 + $0x608] ss:$16 sps:$4 sm:$0xff]   ;;  %v21925_v37 = vld [vmem:[#allocation7 + $0x42c] ss:$16 sps:$4 sm:$0xff]  }
 0x516   : > { %6734 = vmatprep.subr.bf16.mxu0 %v21847_v38  ;;  %6775 = vmatprep.subr.bf16.mxu1 %v21850_v39  ;;  %v21928_v38 = vld [vmem:[#allocation7 + $0x62c] ss:$16 sps:$4 sm:$0xff]   ;;  %v21923_v39 = vld [vmem:[#allocation7 + $0x428] ss:$16 sps:$4 sm:$0xff]  }
 0x519   : > { %6735 = vmatpush1.bf16.msra.mxu0 %v21845_v57  ;;  %6776 = vmatpush1.bf16.msra.mxu1 %v21848_v58  ;;  %v21926_v57 = vld [vmem:[#allocation7 + $0x628] ss:$16 sps:$4 sm:$0xff]   ;;  %v21931_v58 = vld [vmem:[#allocation7 + $0x44c] ss:$16 sps:$4 sm:$0xff]  }
 0x51a   : > { %6736 = vmatprep.subr.bf16.mxu0 %v21853_v40  ;;  %6777 = vmatprep.subr.bf16.mxu1 %v21856_v41  ;;  %v21934_v40 = vld [vmem:[#allocation7 + $0x64c] ss:$16 sps:$4 sm:$0xff]   ;;  %v21929_v41 = vld [vmem:[#allocation7 + $0x448] ss:$16 sps:$4 sm:$0xff]  }
 0x51d   : > { %6737 = vmatpush1.bf16.msra.mxu0 %v21851_v15  ;;  %6778 = vmatpush1.bf16.msra.mxu1 %v21854_v16  ;;  %v21932_v15 = vld [vmem:[#allocation7 + $0x648] ss:$16 sps:$4 sm:$0xff]  }
 0x51e   : > { %6738 = vmatprep.subr.bf16.mxu0 %v21859_v42  ;;  %6779 = vmatprep.subr.bf16.mxu1 %v21862_v45  ;;  %v21935_v16 = vld [vmem:[#allocation7 + $0x468] ss:$16 sps:$4 sm:$0xff]   ;;  %v21943_v45 = vld [vmem:[#allocation7 + $0x48c] ss:$16 sps:$4 sm:$0xff]  }
 0x51f   : > { %v21938_v42 = vld [vmem:[#allocation7 + $0x668] ss:$16 sps:$4 sm:$0xff]  }
 0x521   : > { %6739 = vmatpush1.bf16.msra.mxu0 %v21857_v46  ;;  %6780 = vmatpush1.bf16.msra.mxu1 %v21860_v47  ;;  %v21946_v46 = vld [vmem:[#allocation7 + $0x68c] ss:$16 sps:$4 sm:$0xff]  }
 0x522   : > { %6740 = vmatprep.subr.bf16.mxu0 %v21865_v48  ;;  %6781 = vmatprep.subr.bf16.mxu1 %v21868_v49  ;;  %v21949_v47 = vld [vmem:[#allocation7 + $0x4ac] ss:$16 sps:$4 sm:$0xff]   ;;  %v21947_v49 = vld [vmem:[#allocation7 + $0x4a8] ss:$16 sps:$4 sm:$0xff]  }
 0x523   : > { %v21952_v48 = vld [vmem:[#allocation7 + $0x6ac] ss:$16 sps:$4 sm:$0xff]  }
 0x525   : > { %6741 = vmatpush1.bf16.msra.mxu0 %v21863_v50  ;;  %6782 = vmatpush1.bf16.msra.mxu1 %v21866_v51  ;;  %v21950_v50 = vld [vmem:[#allocation7 + $0x6a8] ss:$16 sps:$4 sm:$0xff]   ;;  %v21955_v51 = vld [vmem:[#allocation7 + $0x4cc] ss:$16 sps:$4 sm:$0xff]  }
 0x526   : > { %6742 = vmatprep.subr.bf16.mxu0 %v21871_v11  ;;  %6783 = vmatprep.subr.bf16.mxu1 %v21874_v53  ;;  %v21958_v11 = vld [vmem:[#allocation7 + $0x6cc] ss:$16 sps:$4 sm:$0xff]  }
 0x529   : > { %6743 = vmatpush1.bf16.msra.mxu0 %v21869_v56  ;;  %6784 = vmatpush1.bf16.msra.mxu1 %v21872_v60 }
 0x52a   : > { %6744 = vmatprep.subr.bf16.mxu0 %v21877_v0  ;;  %6785 = vmatprep.subr.bf16.mxu1 %v21880_v62 }
 0x52d   : > { %6745 = vmatpush1.bf16.msra.mxu0 %v21875_v63  ;;  %6786 = vmatpush1.bf16.msra.mxu1 %v21878_v59  ;;  %v21953_v59 = vld [vmem:[#allocation7 + $0x4c8] ss:$16 sps:$4 sm:$0xff]  }
 0x52e   : > { %6746 = vmatprep.subr.bf16.mxu0 %v21883_v19  ;;  %6787 = vmatprep.subr.bf16.mxu1 %v21886_v20  ;;  %v21956_v19 = vld [vmem:[#allocation7 + $0x6c8] ss:$16 sps:$4 sm:$0xff]  }
 0x531   : > { %6747 = vmatpush1.bf16.msra.mxu0 %v21881_v8  ;;  %6788 = vmatpush1.bf16.msra.mxu1 %v21884_v36  ;;  %v21961_v36 = vld [vmem:[#allocation7 + $0x4ec] ss:$16 sps:$4 sm:$0xff]  }
 0x532   : > { %6748 = vmatprep.subr.bf16.mxu0 %v21889_v9  ;;  %6789 = vmatprep.subr.bf16.mxu1 %v21892_v43  ;;  %v21964_v9 = vld [vmem:[#allocation7 + $0x6ec] ss:$16 sps:$4 sm:$0xff]   ;;  %v21959_v43 = vld [vmem:[#allocation7 + $0x4e8] ss:$16 sps:$4 sm:$0xff]  }
 0x535   : > { %6749 = vmatpush1.bf16.msra.mxu0 %v21887_v7  ;;  %6790 = vmatpush1.bf16.msra.mxu1 %v21890_v44  ;;  %v21962_v7 = vld [vmem:[#allocation7 + $0x6e8] ss:$16 sps:$4 sm:$0xff]   ;;  %v21967_v44 = vld [vmem:[#allocation7 + $0x50c] ss:$16 sps:$4 sm:$0xff]  }
 0x536   : > { %6750 = vmatprep.subr.bf16.mxu0 %v21895_v12  ;;  %6791 = vmatprep.subr.bf16.mxu1 %v21898_v14  ;;  %v21970_v12 = vld [vmem:[#allocation7 + $0x70c] ss:$16 sps:$4 sm:$0xff]   ;;  %v21965_v14 = vld [vmem:[#allocation7 + $0x508] ss:$16 sps:$4 sm:$0xff]  }
 0x539   : > { %6751 = vmatpush1.bf16.msra.mxu0 %v21893_v17  ;;  %6792 = vmatpush1.bf16.msra.mxu1 %v21896_v18  ;;  %v21968_v17 = vld [vmem:[#allocation7 + $0x708] ss:$16 sps:$4 sm:$0xff]   ;;  %v21973_v18 = vld [vmem:[#allocation7 + $0x52c] ss:$16 sps:$4 sm:$0xff]  }
 0x53a   : > { %6752 = vmatprep.subr.bf16.mxu0 %v21901_v23  ;;  %6793 = vmatprep.subr.bf16.mxu1 %v21904_v4  ;;  %v21976_v23 = vld [vmem:[#allocation7 + $0x72c] ss:$16 sps:$4 sm:$0xff]   ;;  %v21971_v4 = vld [vmem:[#allocation7 + $0x528] ss:$16 sps:$4 sm:$0xff]  }
 0x53d   : > { %6753 = vmatpush1.bf16.msra.mxu0 %v21899_v5  ;;  %6794 = vmatpush1.bf16.msra.mxu1 %v21902_v21  ;;  %v21974_v5 = vld [vmem:[#allocation7 + $0x728] ss:$16 sps:$4 sm:$0xff]   ;;  %v21979_v21 = vld [vmem:[#allocation7 + $0x54c] ss:$16 sps:$4 sm:$0xff]  }
 0x53e   : > { %6754 = vmatprep.subr.bf16.mxu0 %v21907_v29  ;;  %6795 = vmatprep.subr.bf16.mxu1 %v21910_v30  ;;  %v21982_v29 = vld [vmem:[#allocation7 + $0x74c] ss:$16 sps:$4 sm:$0xff]   ;;  %v21977_v30 = vld [vmem:[#allocation7 + $0x548] ss:$16 sps:$4 sm:$0xff]  }
 0x541   : > { %6755 = vmatpush1.bf16.msra.mxu0 %v21905_v31  ;;  %6796 = vmatpush1.bf16.msra.mxu1 %v21908_v2  ;;  %v21980_v31 = vld [vmem:[#allocation7 + $0x748] ss:$16 sps:$4 sm:$0xff]   ;;  %v21985_v2 = vld [vmem:[#allocation7 + $0x56c] ss:$16 sps:$4 sm:$0xff]  }
 0x542   : > { %6756 = vmatprep.subr.bf16.mxu0 %v21913_v24  ;;  %6797 = vmatprep.subr.bf16.mxu1 %v21916_v33  ;;  %v21988_v24 = vld [vmem:[#allocation7 + $0x76c] ss:$16 sps:$4 sm:$0xff]   ;;  %v21983_v33 = vld [vmem:[#allocation7 + $0x568] ss:$16 sps:$4 sm:$0xff]  }
 0x545   : > { %6757 = vmatpush1.bf16.msra.mxu0 %v21911_v26  ;;  %6798 = vmatpush1.bf16.msra.mxu1 %v21914_v27  ;;  %v21986_v26 = vld [vmem:[#allocation7 + $0x768] ss:$16 sps:$4 sm:$0xff]   ;;  %v21991_v27 = vld [vmem:[#allocation7 + $0x58c] ss:$16 sps:$4 sm:$0xff]  }
 0x546   : > { %6808 = vmatprep.subr.bf16.mxu0 %v21919_v32  ;;  %6849 = vmatprep.subr.bf16.mxu1 %v21922_v34  ;;  %v21994_v32 = vld [vmem:[#allocation7 + $0x78c] ss:$16 sps:$4 sm:$0xff]   ;;  %v21989_v34 = vld [vmem:[#allocation7 + $0x588] ss:$16 sps:$4 sm:$0xff]  }
 0x548   : > { %6759 = vmatmul.mubr.bf16.vlgmr.msra.gmra.mrb[52].mxu0 %v24914_v61  ;;  %6800 = vmatmul.mubr.bf16.vlgmr.msra.gmra.mrb[52].mxu1 %v24918_v1  ;;  %v21937_v61 = vld [vmem:[#allocation7 + $0x46c] ss:$16 sps:$4 sm:$0xff]  }
 0x549   : > { %6809 = vmatpush1.bf16.msra.mxu0 %v21917_v35  ;;  %6850 = vmatpush1.bf16.msra.mxu1 %v21920_v22  ;;  %v21940_v1 = vld [vmem:[#allocation7 + $0x66c] ss:$16 sps:$4 sm:$0xff]   ;;  %v21992_v35 = vld [vmem:[#allocation7 + $0x788] ss:$16 sps:$4 sm:$0xff]  }
 0x54a   : > { %6810 = vmatprep.subr.bf16.mxu0 %v21925_v37  ;;  %6851 = vmatprep.subr.bf16.mxu1 %v21928_v38  ;;  %v21997_v22 = vld [vmem:[#allocation7 + $0x5ac] ss:$16 sps:$4 sm:$0xff]   ;;  %v21995_v38 = vld [vmem:[#allocation7 + $0x5a8] ss:$16 sps:$4 sm:$0xff]  }
 0x54b   : > { %6840 = vmatprep.mubr.bf16.mxu0 %v24928_v52  ;;  %6881 = vmatprep.mubr.bf16.mxu1 %v24932_v10  ;;  %v21941_v52 = vld [vmem:[#allocation7 + $0x488] ss:$16 sps:$4 sm:$0xff]   ;;  %v22000_v37 = vld [vmem:[#allocation7 + $0x7ac] ss:$16 sps:$4 sm:$0xff]  }
 0x54c   : > { %v21944_v10 = vld [vmem:[#allocation7 + $0x688] ss:$16 sps:$4 sm:$0xff]  }
 0x54d   : > { %6811 = vmatpush1.bf16.msra.mxu0 %v21923_v39  ;;  %6852 = vmatpush1.bf16.msra.mxu1 %v21926_v57  ;;  %v21998_v39 = vld [vmem:[#allocation7 + $0x7a8] ss:$16 sps:$4 sm:$0xff]   ;;  %v22003_v57 = vld [vmem:[#allocation7 + $0x5cc] ss:$16 sps:$4 sm:$0xff]  }
 0x54e   : > { %6812 = vmatprep.subr.bf16.mxu0 %v21931_v58  ;;  %6853 = vmatprep.subr.bf16.mxu1 %v21934_v40  ;;  %v22006_v58 = vld [vmem:[#allocation7 + $0x7cc] ss:$16 sps:$4 sm:$0xff]   ;;  %v22001_v40 = vld [vmem:[#allocation7 + $0x5c8] ss:$16 sps:$4 sm:$0xff]  }
 0x551   : > { %6813 = vmatpush1.bf16.msra.mxu0 %v21929_v41  ;;  %6854 = vmatpush1.bf16.msra.mxu1 %v21932_v15  ;;  %v22004_v41 = vld [vmem:[#allocation7 + $0x7c8] ss:$16 sps:$4 sm:$0xff]   ;;  %v22009_v15 = vld [vmem:[#allocation7 + $0x5ec] ss:$16 sps:$4 sm:$0xff]  }
 0x552   : > { %6814 = vmatprep.subr.bf16.mxu0 %v21937_v61  ;;  %6855 = vmatprep.subr.bf16.mxu1 %v21940_v1  ;;  %v22012_v61 = vld [vmem:[#allocation7 + $0x7ec] ss:$16 sps:$4 sm:$0xff]   ;;  %v22007_v1 = vld [vmem:[#allocation7 + $0x5e8] ss:$16 sps:$4 sm:$0xff]  }
 0x555   : > { %6815 = vmatpush1.bf16.msra.mxu0 %v21935_v16  ;;  %6856 = vmatpush1.bf16.msra.mxu1 %v21938_v42  ;;  %v22010_v16 = vld [vmem:[#allocation7 + $0x7e8] ss:$16 sps:$4 sm:$0xff]  }
 0x556   : > { %6816 = vmatprep.subr.bf16.mxu0 %v21943_v45  ;;  %6857 = vmatprep.subr.bf16.mxu1 %v21946_v46 }
 0x559   : > { %6817 = vmatpush1.bf16.msra.mxu0 %v21941_v52  ;;  %6858 = vmatpush1.bf16.msra.mxu1 %v21944_v10 }
 0x55a   : > { %6818 = vmatprep.subr.bf16.mxu0 %v21949_v47  ;;  %6859 = vmatprep.subr.bf16.mxu1 %v21952_v48 }
 0x55b   : > { %v24954_v53 = vpop.f32.mrb[40].mxu0  ;;  %v24956_v56 = vpop.f32.mrb[40].mxu1 }
 0x55c   : > { %v24958_v60 = vpop.f32.mrb[41].mxu0  ;;  %v24960_v0 = vpop.f32.mrb[41].mxu1 }
 0x55d   : > { %6819 = vmatpush1.bf16.msra.mxu0 %v21947_v49  ;;  %6860 = vmatpush1.bf16.msra.mxu1 %v21950_v50  ;;  %v5210_v62 = vpop.f32.mrb[42].mxu0  ;;  %v5251_v63 = vpop.f32.mrb[42].mxu1 }
 0x55e   : > { %v5211_v20 = vpop.f32.mrb[43].mxu0  ;;  %v5252_v8 = vpop.f32.mrb[43].mxu1  ;;  %6820 = vmatprep.subr.bf16.mxu0 %v21955_v51  ;;  %6861 = vmatprep.subr.bf16.mxu1 %v21958_v11 }
 0x561   : > { %6821 = vmatpush1.bf16.msra.mxu0 %v21953_v59  ;;  %6862 = vmatpush1.bf16.msra.mxu1 %v21956_v19 }
 0x562   : > { %6822 = vmatprep.subr.bf16.mxu0 %v21961_v36  ;;  %6863 = vmatprep.subr.bf16.mxu1 %v21964_v9  ;;  %v22015_v9 = vld [vmem:[#allocation9 + $0x4] ss:$16 sps:$4 sm:$0xff]  }
 0x565   : > { %6823 = vmatpush1.bf16.msra.mxu0 %v21959_v43  ;;  %6864 = vmatpush1.bf16.msra.mxu1 %v21962_v7 }
 0x566   : > { %6824 = vmatprep.subr.bf16.mxu0 %v21967_v44  ;;  %6865 = vmatprep.subr.bf16.mxu1 %v21970_v12  ;;  %v22013_v44 = vld [vmem:[#allocation9] ss:$16 sps:$4 sm:$0xff]   ;;  %v22016_v12 = vld [vmem:[#allocation9 + $0x8] ss:$16 sps:$4 sm:$0xff]  }
 0x569   : > { %6825 = vmatpush1.bf16.msra.mxu0 %v21965_v14  ;;  %6866 = vmatpush1.bf16.msra.mxu1 %v21968_v17  ;;  %v22021_v17 = vld [vmem:[#allocation9 + $0x24] ss:$16 sps:$4 sm:$0xff]  }
 0x56a   : > { %6826 = vmatprep.subr.bf16.mxu0 %v21973_v18  ;;  %6867 = vmatprep.subr.bf16.mxu1 %v21976_v23  ;;  %v22024_v18 = vld [vmem:[#allocation9 + $0x2c] ss:$16 sps:$4 sm:$0xff]   ;;  %v22019_v23 = vld [vmem:[#allocation9 + $0x20] ss:$16 sps:$4 sm:$0xff]  }
 0x56d   : > { %6827 = vmatpush1.bf16.msra.mxu0 %v21971_v4  ;;  %6868 = vmatpush1.bf16.msra.mxu1 %v21974_v5  ;;  %v22022_v4 = vld [vmem:[#allocation9 + $0x28] ss:$16 sps:$4 sm:$0xff]   ;;  %v22027_v5 = vld [vmem:[#allocation9 + $0x44] ss:$16 sps:$4 sm:$0xff]  }
 0x56e   : > { %6828 = vmatprep.subr.bf16.mxu0 %v21979_v21  ;;  %6869 = vmatprep.subr.bf16.mxu1 %v21982_v29  ;;  %v22030_v21 = vld [vmem:[#allocation9 + $0x4c] ss:$16 sps:$4 sm:$0xff]   ;;  %v22025_v29 = vld [vmem:[#allocation9 + $0x40] ss:$16 sps:$4 sm:$0xff]  }
 0x571   : > { %6829 = vmatpush1.bf16.msra.mxu0 %v21977_v30  ;;  %6870 = vmatpush1.bf16.msra.mxu1 %v21980_v31  ;;  %v22028_v30 = vld [vmem:[#allocation9 + $0x48] ss:$16 sps:$4 sm:$0xff]   ;;  %v22033_v31 = vld [vmem:[#allocation9 + $0x64] ss:$16 sps:$4 sm:$0xff]  }
 0x572   : > { %6830 = vmatprep.subr.bf16.mxu0 %v21985_v2  ;;  %6871 = vmatprep.subr.bf16.mxu1 %v21988_v24  ;;  %v22036_v2 = vld [vmem:[#allocation9 + $0x6c] ss:$16 sps:$4 sm:$0xff]   ;;  %v22031_v24 = vld [vmem:[#allocation9 + $0x60] ss:$16 sps:$4 sm:$0xff]  }
 0x575   : > { %6831 = vmatpush1.bf16.msra.mxu0 %v21983_v33  ;;  %6872 = vmatpush1.bf16.msra.mxu1 %v21986_v26  ;;  %v22034_v33 = vld [vmem:[#allocation9 + $0x68] ss:$16 sps:$4 sm:$0xff]   ;;  %v22039_v26 = vld [vmem:[#allocation9 + $0x84] ss:$16 sps:$4 sm:$0xff]  }
 0x576   : > { %6832 = vmatprep.subr.bf16.mxu0 %v21991_v27  ;;  %6873 = vmatprep.subr.bf16.mxu1 %v21994_v32  ;;  %v22042_v27 = vld [vmem:[#allocation9 + $0x8c] ss:$16 sps:$4 sm:$0xff]   ;;  %v22037_v32 = vld [vmem:[#allocation9 + $0x80] ss:$16 sps:$4 sm:$0xff]  }
 0x579   : > { %6833 = vmatpush1.bf16.msra.mxu0 %v21989_v34  ;;  %6874 = vmatpush1.bf16.msra.mxu1 %v21992_v35  ;;  %v22040_v34 = vld [vmem:[#allocation9 + $0x88] ss:$16 sps:$4 sm:$0xff]   ;;  %v22045_v35 = vld [vmem:[#allocation9 + $0xa4] ss:$16 sps:$4 sm:$0xff]  }
 0x57a   : > { %6834 = vmatprep.subr.bf16.mxu0 %v21997_v22  ;;  %6875 = vmatprep.subr.bf16.mxu1 %v22000_v37  ;;  %v22048_v22 = vld [vmem:[#allocation9 + $0xac] ss:$16 sps:$4 sm:$0xff]   ;;  %v22043_v37 = vld [vmem:[#allocation9 + $0xa0] ss:$16 sps:$4 sm:$0xff]  }
 0x57d   : > { %6835 = vmatpush1.bf16.msra.mxu0 %v21995_v38  ;;  %6876 = vmatpush1.bf16.msra.mxu1 %v21998_v39  ;;  %v22046_v38 = vld [vmem:[#allocation9 + $0xa8] ss:$16 sps:$4 sm:$0xff]   ;;  %v22051_v39 = vld [vmem:[#allocation9 + $0xc4] ss:$16 sps:$4 sm:$0xff]  }
 0x57e   : > { %6836 = vmatprep.subr.bf16.mxu0 %v22003_v57  ;;  %6877 = vmatprep.subr.bf16.mxu1 %v22006_v58  ;;  %v22054_v57 = vld [vmem:[#allocation9 + $0xcc] ss:$16 sps:$4 sm:$0xff]   ;;  %v22049_v58 = vld [vmem:[#allocation9 + $0xc0] ss:$16 sps:$4 sm:$0xff]  }
 0x581   : > { %6837 = vmatpush1.bf16.msra.mxu0 %v22001_v40  ;;  %6878 = vmatpush1.bf16.msra.mxu1 %v22004_v41  ;;  %v22052_v40 = vld [vmem:[#allocation9 + $0xc8] ss:$16 sps:$4 sm:$0xff]   ;;  %v22057_v41 = vld [vmem:[#allocation9 + $0xe4] ss:$16 sps:$4 sm:$0xff]  }
 0x582   : > { %6838 = vmatprep.subr.bf16.mxu0 %v22009_v15  ;;  %6879 = vmatprep.subr.bf16.mxu1 %v22012_v61  ;;  %v22060_v15 = vld [vmem:[#allocation9 + $0xec] ss:$16 sps:$4 sm:$0xff]   ;;  %v22055_v61 = vld [vmem:[#allocation9 + $0xe0] ss:$16 sps:$4 sm:$0xff]  }
 0x585   : > { %6839 = vmatpush1.bf16.msra.mxu0 %v22007_v1  ;;  %6880 = vmatpush1.bf16.msra.mxu1 %v22010_v16  ;;  %v22058_v1 = vld [vmem:[#allocation9 + $0xe8] ss:$16 sps:$4 sm:$0xff]   ;;  %v22063_v16 = vld [vmem:[#allocation7 + $0x4] ss:$16 sps:$4 sm:$0xff]  }
 0x586   : > { %7395 = vmatprep.subr.bf16.mxu0 %v22015_v9 }
 0x588   : > { %6841 = vmatmul.mubr.bf16.vlgmr.msra.gmra.mrb[56].mxu0 %v24940_v13  ;;  %6882 = vmatmul.mubr.bf16.vlgmr.msra.gmra.mrb[56].mxu1 %v24944_v6 }
 0x589   : > { %7427 = vmatprep.mubr.bf16.mxu0 %v24475_v3  ;;  %7468 = vmatprep.mubr.bf16.mxu1 %v24475_v3 }
 0x58a   : > { %7396 = vmatpush1.bf16.msra.mxu0 %v22013_v44 }
 0x58b   : > { %7397 = vmatprep.subr.bf16.mxu0 %v22021_v17 }
 0x58e   : > { %7398 = vmatpush1.bf16.msra.mxu0 %v22019_v23 }
 0x58f   : > { %7399 = vmatprep.subr.bf16.mxu0 %v22027_v5 }
 0x592   : > { %7400 = vmatpush1.bf16.msra.mxu0 %v22025_v29 }
 0x593   : > { %7401 = vmatprep.subr.bf16.mxu0 %v22033_v31 }
 0x596   : > { %7402 = vmatpush1.bf16.msra.mxu0 %v22031_v24 }
 0x597   : > { %7403 = vmatprep.subr.bf16.mxu0 %v22039_v26 }
 0x59a   : > { %7404 = vmatpush1.bf16.msra.mxu0 %v22037_v32  ;;  %v6929_v32 = vld [vmem:[#allocation3] sm:$0xff] }
 0x59b   : > { %v6596_v42 = vpop.f32.mrb[44].mxu0  ;;  %v6637_v45 = vpop.f32.mrb[44].mxu1  ;;  %7405 = vmatprep.subr.bf16.mxu0 %v22045_v35 }
 0x59c   : > { %v6597_v46 = vadd.f32 %v6596_v42, %v24954_v53  ;;  %v6598_v52 = vpop.f32.mrb[45].mxu0  ;;  %v6639_v10 = vpop.f32.mrb[45].mxu1  ;;  %v22018_v53 = vld [vmem:[#allocation9 + $0xc] ss:$16 sps:$4 sm:$0xff]   ;;  %v22066_v42 = vld [vmem:[#allocation7 + $0x204] ss:$16 sps:$4 sm:$0xff]  }
 0x59d   : > { %v6599_v47 = vadd.f32 %v6598_v52, %v24958_v60  ;;  %v6600_v48 = vpop.f32.mrb[46].mxu0  ;;  %v6641_v49 = vpop.f32.mrb[46].mxu1  ;;  %7436 = vmatprep.subr.bf16.mxu1 %v22018_v53 }
 0x59e   : > { %v6638_v50 = vadd.f32 %v6637_v45, %v6597_v46  ;;  %v6601_v51 = vpop.f32.mrb[47].mxu0  ;;  %v6642_v11 = vpop.f32.mrb[47].mxu1  ;;  %7437 = vmatpush1.bf16.msra.mxu1 %v22016_v12  ;;  %7406 = vmatpush1.bf16.msra.mxu0 %v22043_v37 }
 0x59f   : > { %v6640_v13 = vadd.f32 %v6639_v10, %v6599_v47  ;;  %7438 = vmatprep.subr.bf16.mxu1 %v22024_v18  ;;  %7407 = vmatprep.subr.bf16.mxu0 %v22051_v39 }
 0x5a2   : > { %7439 = vmatpush1.bf16.msra.mxu1 %v22022_v4  ;;  %7408 = vmatpush1.bf16.msra.mxu0 %v22049_v58 }
 0x5a3   : > { %7440 = vmatprep.subr.bf16.mxu1 %v22030_v21  ;;  %7409 = vmatprep.subr.bf16.mxu0 %v22057_v41  ;;  %v24987_v41 = vld [vmem:[%s24696_s9 + $0x68] sm:$0xff] }
 0x5a6   : > { %7441 = vmatpush1.bf16.msra.mxu1 %v22028_v30  ;;  %7410 = vmatpush1.bf16.msra.mxu0 %v22055_v61  ;;  %v22064_v61 = vld [vmem:[#allocation7 + $0x200] ss:$16 sps:$4 sm:$0xff]  }
 0x5a7   : > { %7442 = vmatprep.subr.bf16.mxu1 %v22036_v2  ;;  %8785 = vmatprep.subr.bf16.mxu0 %v22063_v16  ;;  %v22069_v16 = vld [vmem:[#allocation7 + $0x24] ss:$16 sps:$4 sm:$0xff]  }
 0x5aa   : > { %7443 = vmatpush1.bf16.msra.mxu1 %v22034_v33 }
 0x5ab   : > { %7444 = vmatprep.subr.bf16.mxu1 %v22042_v27 }
 0x5ae   : > { %7445 = vmatpush1.bf16.msra.mxu1 %v22040_v34 }
 0x5af   : > { %7446 = vmatprep.subr.bf16.mxu1 %v22048_v22 }
 0x5b2   : > { %7447 = vmatpush1.bf16.msra.mxu1 %v22046_v38 }
 0x5b3   : > { %7448 = vmatprep.subr.bf16.mxu1 %v22054_v57 }
 0x5b6   : > { %7449 = vmatpush1.bf16.msra.mxu1 %v22052_v40  ;;  %v24984_v40 = vld [vmem:[%s24696_s9 + $0x60] sm:$0xff] }
 0x5b7   : > { %7450 = vmatprep.subr.bf16.mxu1 %v22060_v15  ;;  %v22061_v15 = vld [vmem:[#allocation7] ss:$16 sps:$4 sm:$0xff]  }
 0x5ba   : > { %7451 = vmatpush1.bf16.msra.mxu1 %v22058_v1 }
 0x5bb   : > { %8826 = vmatprep.subr.bf16.mxu1 %v22066_v42  ;;  %v22072_v42 = vld [vmem:[#allocation7 + $0x224] ss:$16 sps:$4 sm:$0xff]  }
 0x5db   : > { %v6678_v62 = vpop.f32.mrb[48].mxu0  ;;  %v6719_v6 = vpop.f32.mrb[48].mxu1 }
 0x5dc   : > { %v6679_v63 = vadd.f32 %v6678_v62, %v6638_v50  ;;  %v6680_v59 = vpop.f32.mrb[49].mxu0  ;;  %v6721_v19 = vpop.f32.mrb[49].mxu1 }
 0x5dd   : > { %v6681_v20 = vadd.f32 %v6680_v59, %v6640_v13  ;;  %v6682_v8 = vpop.f32.mrb[50].mxu0  ;;  %v6723_v36 = vpop.f32.mrb[50].mxu1 }
 0x5de   : > { %v24968_v43 = vadd.f32 %v6719_v6, %v6679_v63  ;;  %v6683_v7 = vpop.f32.mrb[51].mxu0  ;;  %v6724_v60 = vpop.f32.mrb[51].mxu1  ;;  %v6890_v6 = vld [vmem:[%s25475_s3] sm:$0xf] }
 0x5df   : > { %v24970_v14 = vadd.f32 %v6721_v19, %v6681_v20  ;;  %v6899_v63 = vrot.slane %v6890_v6, %v24790_v54  ;;  %v6895_v59 = vrot.slane %v6890_v6, %v24795_v55  ;;  %v6903_v53 = vrot.slane %v6890_v6, %v24801_v25 }
 0x5e0   : > { %v6907_v12 = vrot.slane %v6890_v6, %v24803_v28  ;;  %v22087_v6 = vld [vmem:[#allocation7 + $0x84] ss:$16 sps:$4 sm:$0xff]  }
 0x5e1   : > { %v6912_v19 = vadd.f32 %v6895_v59, %v24968_v43  ;;  %v22085_v59 = vld [vmem:[#allocation7 + $0x80] ss:$16 sps:$4 sm:$0xff]  }
 0x61b   : > { %v6760_v45 = vpop.f32.mrb[52].mxu0  ;;  %v6801_v46 = vpop.f32.mrb[52].mxu1 }
 0x61c   : > { %v6761_v52 = vadd.f32 %v6760_v45, %v24956_v56  ;;  %v6762_v10 = vpop.f32.mrb[53].mxu0  ;;  %v6803_v47 = vpop.f32.mrb[53].mxu1  ;;  %v6913_v56 = vadd.f32 %v6899_v63, %v24970_v14  ;;  %v24991_v45 = vcombine.high %v24984_v40, %v24984_v40  ;;  %v22090_v63 = vld [vmem:[#allocation7 + $0x284] ss:$16 sps:$4 sm:$0xff]  }
 0x61d   : > { %v6763_v48 = vadd.f32 %v6762_v10, %v24960_v0  ;;  %v6764_v49 = vpop.f32.mrb[54].mxu0  ;;  %v6805_v50 = vpop.f32.mrb[54].mxu1  ;;  %v6916_v0 = vmul.f32 0.5, %v6912_v19  ;;  %v22070_v10 = vld [vmem:[#allocation7 + $0x220] ss:$16 sps:$4 sm:$0xff]  }
 0x61e   : > { %v6802_v51 = vadd.f32 %v6801_v46, %v6761_v52  ;;  %v6765_v11 = vpop.f32.mrb[55].mxu0  ;;  %v6806_v13 = vpop.f32.mrb[55].mxu1  ;;  %v6920_v20 = vmul.f32 0.5, %v6913_v56  ;;  %v24995_v46 = vcombine.high %v24987_v41, %v24987_v41  ;;  %v22067_v52 = vld [vmem:[#allocation7 + $0x20] ss:$16 sps:$4 sm:$0xff]  }
 0x61f   : > { %v6804_v62 = vadd.f32 %v6803_v47, %v6763_v48  ;;  %v22075_v47 = vld [vmem:[#allocation7 + $0x44] ss:$16 sps:$4 sm:$0xff]   ;;  %v22073_v49 = vld [vmem:[#allocation7 + $0x40] ss:$16 sps:$4 sm:$0xff]  }
 0x620   : > { %24233 = vtanh.f32 %v6920_v20  ;;  %v22078_v48 = vld [vmem:[#allocation7 + $0x244] ss:$16 sps:$4 sm:$0xff]   ;;  %v22076_v50 = vld [vmem:[#allocation7 + $0x240] ss:$16 sps:$4 sm:$0xff]  }
 0x621   : > { %24235 = vtanh.f32 %v6916_v0  ;;  %v22084_v11 = vld [vmem:[#allocation7 + $0x264] ss:$16 sps:$4 sm:$0xff]   ;;  %v22079_v13 = vld [vmem:[#allocation7 + $0x60] ss:$16 sps:$4 sm:$0xff]  }
 0x622   : > { %v22088_v56 = vld [vmem:[#allocation7 + $0x280] ss:$16 sps:$4 sm:$0xff]   ;;  %v22093_v19 = vld [vmem:[#allocation7 + $0xa4] ss:$16 sps:$4 sm:$0xff]  }
 0x623   : > { %v22096_v20 = vld [vmem:[#allocation7 + $0x2a4] ss:$16 sps:$4 sm:$0xff]   ;;  %v22091_v0 = vld [vmem:[#allocation7 + $0xa0] ss:$16 sps:$4 sm:$0xff]  }
 0x62a   : > { %v24234_v29 = vpop.eup %24233 }
 0x62b   : > { %v24236_v30 = vpop.eup %24235  ;;  %v6922_v31 = vadd.f32 1.0, %v24234_v29  ;;  %v22118_v29 = vld [vmem:[#allocation7 + $0x320] ss:$16 sps:$4 sm:$0xff]  }
 0x62c   : > { %v6918_v24 = vadd.f32 1.0, %v24236_v30  ;;  %v22123_v30 = vld [vmem:[#allocation7 + $0x144] ss:$16 sps:$4 sm:$0xff]  }
 0x62d   : > { %v6923_v33 = vmul.f32 0.5, %v6922_v31  ;;  %v22126_v31 = vld [vmem:[#allocation7 + $0x344] ss:$16 sps:$4 sm:$0xff]  }
 0x62e   : > { %v6919_v26 = vmul.f32 0.5, %v6918_v24  ;;  %v22124_v24 = vld [vmem:[#allocation7 + $0x340] ss:$16 sps:$4 sm:$0xff]  }
 0x62f   : > { %v6930_v34 = vmul.f32 %v6929_v32, %v6923_v33  ;;  %v22129_v33 = vld [vmem:[#allocation7 + $0x164] ss:$16 sps:$4 sm:$0xff]   ;;  %v22130_v32 = vld [vmem:[#allocation7 + $0x360] ss:$16 sps:$4 sm:$0xff]  }
 0x65b   : > { %v6842_v8 = vpop.f32.mrb[56].mxu0  ;;  %v6883_v36 = vpop.f32.mrb[56].mxu1 }
 0x65c   : > { %v6843_v9 = vadd.f32 %v6842_v8, %v6802_v51  ;;  %v6844_v7 = vpop.f32.mrb[57].mxu0  ;;  %v6885_v60 = vpop.f32.mrb[57].mxu1  ;;  %v22081_v51 = vld [vmem:[#allocation7 + $0x64] ss:$16 sps:$4 sm:$0xff]   ;;  %v22094_v8 = vld [vmem:[#allocation7 + $0x2a0] ss:$16 sps:$4 sm:$0xff]  }
 0x65d   : > { %v6845_v44 = vadd.f32 %v6844_v7, %v6804_v62  ;;  %v6846_v17 = vpop.f32.mrb[58].mxu0  ;;  %v6887_v18 = vpop.f32.mrb[58].mxu1  ;;  %v22082_v62 = vld [vmem:[#allocation7 + $0x260] ss:$16 sps:$4 sm:$0xff]  }
 0x65e   : > { %v6884_v23 = vadd.f32 %v6883_v36, %v6843_v9  ;;  %v6847_v14 = vpop.f32.mrb[59].mxu0  ;;  %v6888_v4 = vpop.f32.mrb[59].mxu1  ;;  %v22099_v36 = vld [vmem:[#allocation7 + $0xc4] ss:$16 sps:$4 sm:$0xff]   ;;  %v22100_v7 = vld [vmem:[#allocation7 + $0x2c0] ss:$16 sps:$4 sm:$0xff]  }
 0x65f   : > { %v6886_v43 = vadd.f32 %v6885_v60, %v6845_v44  ;;  %v22102_v9 = vld [vmem:[#allocation7 + $0x2c4] ss:$16 sps:$4 sm:$0xff]   ;;  %v22106_v17 = vld [vmem:[#allocation7 + $0x2e0] ss:$16 sps:$4 sm:$0xff]  }
 0x660   : > { %v6914_v5 = vadd.f32 %v6903_v53, %v6884_v23  ;;  %v22097_v53 = vld [vmem:[#allocation7 + $0xc0] ss:$16 sps:$4 sm:$0xff]   ;;  %v22105_v60 = vld [vmem:[#allocation7 + $0xe4] ss:$16 sps:$4 sm:$0xff]  }
 0x661   : > { %v6915_v21 = vadd.f32 %v6907_v12, %v6886_v43  ;;  %v22108_v44 = vld [vmem:[#allocation7 + $0x2e4] ss:$16 sps:$4 sm:$0xff]   ;;  %v22103_v12 = vld [vmem:[#allocation7 + $0xe0] ss:$16 sps:$4 sm:$0xff]  }
 0x662   : > { %24237 = vtanh.f32 %v6914_v5  ;;  %v22111_v18 = vld [vmem:[#allocation7 + $0x104] ss:$16 sps:$4 sm:$0xff]   ;;  %v22109_v14 = vld [vmem:[#allocation7 + $0x100] ss:$16 sps:$4 sm:$0xff]  }
 0x663   : > { %v6925_v2 = vmul.f32 0.5, %v6915_v21  ;;  %v22114_v23 = vld [vmem:[#allocation7 + $0x304] ss:$16 sps:$4 sm:$0xff]   ;;  %v22112_v4 = vld [vmem:[#allocation7 + $0x300] ss:$16 sps:$4 sm:$0xff]  }
 0x664   : > { %v22117_v43 = vld [vmem:[#allocation7 + $0x124] ss:$16 sps:$4 sm:$0xff]   ;;  %v22115_v21 = vld [vmem:[#allocation7 + $0x120] ss:$16 sps:$4 sm:$0xff]  }
 0x665   : > { %24239 = vtanh.f32 %v6925_v2  ;;  %v22120_v5 = vld [vmem:[#allocation7 + $0x324] ss:$16 sps:$4 sm:$0xff]   ;;  %v22121_v2 = vld [vmem:[#allocation7 + $0x140] ss:$16 sps:$4 sm:$0xff]  }
 0x66c   : > { %v24238_v27 = vpop.eup %24237 }
 0x66d   : > { %v6931_v35 = vmul.f32 %v24238_v27, %v6919_v26  ;;  %v22132_v26 = vld [vmem:[#allocation7 + $0x364] ss:$16 sps:$4 sm:$0xff]   ;;  %v22127_v27 = vld [vmem:[#allocation7 + $0x160] ss:$16 sps:$4 sm:$0xff]  }
 0x66f   : > { %v6932_v22 = vadd.f32 %v6931_v35, %v6930_v34  ;;  %v24240_v37 = vpop.eup %24239  ;;  %v22135_v34 = vld [vmem:[#allocation7 + $0x184] ss:$16 sps:$4 sm:$0xff]  }
 0x670   : > { %v6927_v38 = vadd.f32 1.0, %v24240_v37  ;;  %v22138_v35 = vld [vmem:[#allocation7 + $0x384] ss:$16 sps:$4 sm:$0xff]   ;;  %v22136_v37 = vld [vmem:[#allocation7 + $0x380] ss:$16 sps:$4 sm:$0xff]  }
 0x671   : > { %24241 = vtanh.f32 %v6932_v22  ;;  %6935 = vst [vmem:[#allocation3] sm:$0xff] %v6932_v22  ;;  %v22133_v22 = vld [vmem:[#allocation7 + $0x180] ss:$16 sps:$4 sm:$0xff]  }
 0x672   : > { %v6928_v39 = vmul.f32 0.5, %v6927_v38  ;;  %v22141_v38 = vld [vmem:[#allocation7 + $0x1a4] ss:$16 sps:$4 sm:$0xff]  }
 0x67b   : > { %v24242_v57 = vpop.eup %24241 }
 0x67c   : > { %v6934_v58 = vmul.f32 %v24242_v57, %v6928_v39  ;;  %v22144_v39 = vld [vmem:[#allocation7 + $0x3a4] ss:$16 sps:$4 sm:$0xff]   ;;  %v22139_v57 = vld [vmem:[#allocation7 + $0x1a0] ss:$16 sps:$4 sm:$0xff]  }
 0x67e   : > { %v6937_v1 = vpack.c.bf16 %v6934_v58, %v6934_v58  ;;  %v22142_v58 = vld [vmem:[#allocation7 + $0x3a0] ss:$16 sps:$4 sm:$0xff]  }
 0x680   : > { %19088 = vst [vmem:[%s24707_s12 + $0x8] sm:$0xf] %v6937_v1  ;;  %7428 = vmatmul.mubr.bf16.vlgmr.msra.gmra.mrb[60].mxu0 %v6937_v1  ;;  %7469 = vmatmul.mubr.bf16.vlgmr.msra.gmra.mrb[60].mxu1 %v6937_v1  ;;  %v22145_v1 = vld [vmem:[#allocation7 + $0x1c0] ss:$16 sps:$4 sm:$0xff]  }
 0x681   : > { %8786 = vmatpush1.bf16.msra.mxu0 %v22061_v15  ;;  %8827 = vmatpush1.bf16.msra.mxu1 %v22064_v61  ;;  %v22147_v15 = vld [vmem:[#allocation7 + $0x1c4] ss:$16 sps:$4 sm:$0xff]  }
 0x682   : > { %8787 = vmatprep.subr.bf16.mxu0 %v22069_v16  ;;  %8828 = vmatprep.subr.bf16.mxu1 %v22072_v42  ;;  %v22150_v61 = vld [vmem:[#allocation7 + $0x3c4] ss:$16 sps:$4 sm:$0xff]   ;;  %v22148_v16 = vld [vmem:[#allocation7 + $0x3c0] ss:$16 sps:$4 sm:$0xff]  }
 0x683   : > { %8817 = vmatprep.mubr.bf16.mxu0 %v24991_v45  ;;  %8858 = vmatprep.mubr.bf16.mxu1 %v24995_v46  ;;  %v22153_v42 = vld [vmem:[#allocation7 + $0x1e4] ss:$16 sps:$4 sm:$0xff]  }
 0x685   : > { %8788 = vmatpush1.bf16.msra.mxu0 %v22067_v52  ;;  %8829 = vmatpush1.bf16.msra.mxu1 %v22070_v10  ;;  %v22156_v52 = vld [vmem:[#allocation7 + $0x3e4] ss:$16 sps:$4 sm:$0xff]   ;;  %v22151_v10 = vld [vmem:[#allocation7 + $0x1e0] ss:$16 sps:$4 sm:$0xff]  }
 0x686   : > { %8789 = vmatprep.subr.bf16.mxu0 %v22075_v47  ;;  %8830 = vmatprep.subr.bf16.mxu1 %v22078_v48  ;;  %v22154_v47 = vld [vmem:[#allocation7 + $0x3e0] ss:$16 sps:$4 sm:$0xff]   ;;  %v22163_v48 = vld [vmem:[#allocation7 + $0x404] ss:$16 sps:$4 sm:$0xff]  }
 0x689   : > { %8790 = vmatpush1.bf16.msra.mxu0 %v22073_v49  ;;  %8831 = vmatpush1.bf16.msra.mxu1 %v22076_v50  ;;  %v22166_v49 = vld [vmem:[#allocation7 + $0x604] ss:$16 sps:$4 sm:$0xff]   ;;  %v25002_v50 = vcombine.low %v24984_v40, %v24984_v40 }
 0x68a   : > { %8791 = vmatprep.subr.bf16.mxu0 %v22081_v51  ;;  %8832 = vmatprep.subr.bf16.mxu1 %v22084_v11  ;;  %v25006_v51 = vcombine.low %v24987_v41, %v24987_v41  ;;  %v25009_v11 = vld [vmem:[%s24696_s9 + $0x70] sm:$0xff] }
 0x68b   : > { %v25016_v40 = vcombine.high %v25009_v11, %v25009_v11 }
 0x68d   : > { %8792 = vmatpush1.bf16.msra.mxu0 %v22079_v13  ;;  %8833 = vmatpush1.bf16.msra.mxu1 %v22082_v62  ;;  %v25012_v13 = vld [vmem:[%s24696_s9 + $0x78] sm:$0xff]  ;;  %v22161_v62 = vld [vmem:[#allocation7 + $0x400] ss:$16 sps:$4 sm:$0xff]  }
 0x68e   : > { %8793 = vmatprep.subr.bf16.mxu0 %v22087_v6  ;;  %8834 = vmatprep.subr.bf16.mxu1 %v22090_v63  ;;  %v22164_v6 = vld [vmem:[#allocation7 + $0x600] ss:$16 sps:$4 sm:$0xff]   ;;  %v22169_v63 = vld [vmem:[#allocation7 + $0x424] ss:$16 sps:$4 sm:$0xff]   ;;  %v25020_v41 = vcombine.high %v25012_v13, %v25012_v13 }
 0x691   : > { %8794 = vmatpush1.bf16.msra.mxu0 %v22085_v59  ;;  %8835 = vmatpush1.bf16.msra.mxu1 %v22088_v56  ;;  %v22172_v59 = vld [vmem:[#allocation7 + $0x624] ss:$16 sps:$4 sm:$0xff]   ;;  %v22167_v56 = vld [vmem:[#allocation7 + $0x420] ss:$16 sps:$4 sm:$0xff]  }
 0x692   : > { %8795 = vmatprep.subr.bf16.mxu0 %v22093_v19  ;;  %8836 = vmatprep.subr.bf16.mxu1 %v22096_v20  ;;  %v22170_v19 = vld [vmem:[#allocation7 + $0x620] ss:$16 sps:$4 sm:$0xff]   ;;  %v22175_v20 = vld [vmem:[#allocation7 + $0x444] ss:$16 sps:$4 sm:$0xff]  }
 0x695   : > { %8796 = vmatpush1.bf16.msra.mxu0 %v22091_v0  ;;  %8837 = vmatpush1.bf16.msra.mxu1 %v22094_v8  ;;  %v22178_v0 = vld [vmem:[#allocation7 + $0x644] ss:$16 sps:$4 sm:$0xff]   ;;  %v22173_v8 = vld [vmem:[#allocation7 + $0x440] ss:$16 sps:$4 sm:$0xff]  }
 0x696   : > { %8797 = vmatprep.subr.bf16.mxu0 %v22099_v36  ;;  %8838 = vmatprep.subr.bf16.mxu1 %v22102_v9  ;;  %v22176_v36 = vld [vmem:[#allocation7 + $0x640] ss:$16 sps:$4 sm:$0xff]   ;;  %v22181_v9 = vld [vmem:[#allocation7 + $0x464] ss:$16 sps:$4 sm:$0xff]  }
 0x699   : > { %8798 = vmatpush1.bf16.msra.mxu0 %v22097_v53  ;;  %8839 = vmatpush1.bf16.msra.mxu1 %v22100_v7  ;;  %v22184_v53 = vld [vmem:[#allocation7 + $0x664] ss:$16 sps:$4 sm:$0xff]   ;;  %v22179_v7 = vld [vmem:[#allocation7 + $0x460] ss:$16 sps:$4 sm:$0xff]  }
 0x69a   : > { %8799 = vmatprep.subr.bf16.mxu0 %v22105_v60  ;;  %8840 = vmatprep.subr.bf16.mxu1 %v22108_v44  ;;  %v22182_v60 = vld [vmem:[#allocation7 + $0x660] ss:$16 sps:$4 sm:$0xff]   ;;  %v22187_v44 = vld [vmem:[#allocation7 + $0x484] ss:$16 sps:$4 sm:$0xff]  }
 0x69d   : > { %8800 = vmatpush1.bf16.msra.mxu0 %v22103_v12  ;;  %8841 = vmatpush1.bf16.msra.mxu1 %v22106_v17  ;;  %v22190_v12 = vld [vmem:[#allocation7 + $0x684] ss:$16 sps:$4 sm:$0xff]   ;;  %v22185_v17 = vld [vmem:[#allocation7 + $0x480] ss:$16 sps:$4 sm:$0xff]  }
 0x69e   : > { %8801 = vmatprep.subr.bf16.mxu0 %v22111_v18  ;;  %8842 = vmatprep.subr.bf16.mxu1 %v22114_v23  ;;  %v22188_v18 = vld [vmem:[#allocation7 + $0x680] ss:$16 sps:$4 sm:$0xff]   ;;  %v22193_v23 = vld [vmem:[#allocation7 + $0x4a4] ss:$16 sps:$4 sm:$0xff]  }
 0x6a1   : > { %8802 = vmatpush1.bf16.msra.mxu0 %v22109_v14  ;;  %8843 = vmatpush1.bf16.msra.mxu1 %v22112_v4  ;;  %v22196_v14 = vld [vmem:[#allocation7 + $0x6a4] ss:$16 sps:$4 sm:$0xff]   ;;  %v22191_v4 = vld [vmem:[#allocation7 + $0x4a0] ss:$16 sps:$4 sm:$0xff]  }
 0x6a2   : > { %8803 = vmatprep.subr.bf16.mxu0 %v22117_v43  ;;  %8844 = vmatprep.subr.bf16.mxu1 %v22120_v5  ;;  %v22194_v43 = vld [vmem:[#allocation7 + $0x6a0] ss:$16 sps:$4 sm:$0xff]   ;;  %v22199_v5 = vld [vmem:[#allocation7 + $0x4c4] ss:$16 sps:$4 sm:$0xff]  }
 0x6a5   : > { %8804 = vmatpush1.bf16.msra.mxu0 %v22115_v21  ;;  %8845 = vmatpush1.bf16.msra.mxu1 %v22118_v29  ;;  %v22202_v21 = vld [vmem:[#allocation7 + $0x6c4] ss:$16 sps:$4 sm:$0xff]   ;;  %v22197_v29 = vld [vmem:[#allocation7 + $0x4c0] ss:$16 sps:$4 sm:$0xff]  }
 0x6a6   : > { %8805 = vmatprep.subr.bf16.mxu0 %v22123_v30  ;;  %8846 = vmatprep.subr.bf16.mxu1 %v22126_v31  ;;  %v22200_v30 = vld [vmem:[#allocation7 + $0x6c0] ss:$16 sps:$4 sm:$0xff]   ;;  %v22205_v31 = vld [vmem:[#allocation7 + $0x4e4] ss:$16 sps:$4 sm:$0xff]  }
 0x6a9   : > { %8806 = vmatpush1.bf16.msra.mxu0 %v22121_v2  ;;  %8847 = vmatpush1.bf16.msra.mxu1 %v22124_v24  ;;  %v22208_v2 = vld [vmem:[#allocation7 + $0x6e4] ss:$16 sps:$4 sm:$0xff]   ;;  %v22203_v24 = vld [vmem:[#allocation7 + $0x4e0] ss:$16 sps:$4 sm:$0xff]  }
 0x6aa   : > { %8807 = vmatprep.subr.bf16.mxu0 %v22129_v33  ;;  %8848 = vmatprep.subr.bf16.mxu1 %v22132_v26  ;;  %v22206_v33 = vld [vmem:[#allocation7 + $0x6e0] ss:$16 sps:$4 sm:$0xff]   ;;  %v22211_v26 = vld [vmem:[#allocation7 + $0x504] ss:$16 sps:$4 sm:$0xff]  }
 0x6ad   : > { %8808 = vmatpush1.bf16.msra.mxu0 %v22127_v27  ;;  %8849 = vmatpush1.bf16.msra.mxu1 %v22130_v32  ;;  %v22214_v27 = vld [vmem:[#allocation7 + $0x704] ss:$16 sps:$4 sm:$0xff]   ;;  %v22209_v32 = vld [vmem:[#allocation7 + $0x500] ss:$16 sps:$4 sm:$0xff]  }
 0x6ae   : > { %8809 = vmatprep.subr.bf16.mxu0 %v22135_v34  ;;  %8850 = vmatprep.subr.bf16.mxu1 %v22138_v35  ;;  %v22212_v34 = vld [vmem:[#allocation7 + $0x700] ss:$16 sps:$4 sm:$0xff]   ;;  %v22217_v35 = vld [vmem:[#allocation7 + $0x524] ss:$16 sps:$4 sm:$0xff]  }
 0x6b1   : > { %8810 = vmatpush1.bf16.msra.mxu0 %v22133_v22  ;;  %8851 = vmatpush1.bf16.msra.mxu1 %v22136_v37  ;;  %v22220_v22 = vld [vmem:[#allocation7 + $0x724] ss:$16 sps:$4 sm:$0xff]   ;;  %v22215_v37 = vld [vmem:[#allocation7 + $0x520] ss:$16 sps:$4 sm:$0xff]  }
 0x6b2   : > { %8811 = vmatprep.subr.bf16.mxu0 %v22141_v38  ;;  %8852 = vmatprep.subr.bf16.mxu1 %v22144_v39  ;;  %v22218_v38 = vld [vmem:[#allocation7 + $0x720] ss:$16 sps:$4 sm:$0xff]   ;;  %v22223_v39 = vld [vmem:[#allocation7 + $0x544] ss:$16 sps:$4 sm:$0xff]  }
 0x6b5   : > { %8812 = vmatpush1.bf16.msra.mxu0 %v22139_v57  ;;  %8853 = vmatpush1.bf16.msra.mxu1 %v22142_v58  ;;  %v22226_v57 = vld [vmem:[#allocation7 + $0x744] ss:$16 sps:$4 sm:$0xff]   ;;  %v22221_v58 = vld [vmem:[#allocation7 + $0x540] ss:$16 sps:$4 sm:$0xff]  }
 0x6b6   : > { %8813 = vmatprep.subr.bf16.mxu0 %v22147_v15  ;;  %8854 = vmatprep.subr.bf16.mxu1 %v22150_v61  ;;  %v22224_v15 = vld [vmem:[#allocation7 + $0x740] ss:$16 sps:$4 sm:$0xff]   ;;  %v22229_v61 = vld [vmem:[#allocation7 + $0x564] ss:$16 sps:$4 sm:$0xff]  }
 0x6b9   : > { %8814 = vmatpush1.bf16.msra.mxu0 %v22145_v1  ;;  %8855 = vmatpush1.bf16.msra.mxu1 %v22148_v16  ;;  %v22232_v1 = vld [vmem:[#allocation7 + $0x764] ss:$16 sps:$4 sm:$0xff]   ;;  %v22227_v16 = vld [vmem:[#allocation7 + $0x560] ss:$16 sps:$4 sm:$0xff]  }
 0x6ba   : > { %8815 = vmatprep.subr.bf16.mxu0 %v22153_v42  ;;  %8856 = vmatprep.subr.bf16.mxu1 %v22156_v52  ;;  %v22230_v42 = vld [vmem:[#allocation7 + $0x760] ss:$16 sps:$4 sm:$0xff]   ;;  %v22235_v52 = vld [vmem:[#allocation7 + $0x584] ss:$16 sps:$4 sm:$0xff]  }
 0x6bd   : > { %8816 = vmatpush1.bf16.msra.mxu0 %v22151_v10  ;;  %8857 = vmatpush1.bf16.msra.mxu1 %v22154_v47  ;;  %v22238_v10 = vld [vmem:[#allocation7 + $0x784] ss:$16 sps:$4 sm:$0xff]   ;;  %v22233_v47 = vld [vmem:[#allocation7 + $0x580] ss:$16 sps:$4 sm:$0xff]  }
 0x6be   : > { %8867 = vmatprep.subr.bf16.mxu0 %v22163_v48  ;;  %8908 = vmatprep.subr.bf16.mxu1 %v22166_v49  ;;  %v22236_v48 = vld [vmem:[#allocation7 + $0x780] ss:$16 sps:$4 sm:$0xff]   ;;  %v22241_v49 = vld [vmem:[#allocation7 + $0x5a4] ss:$16 sps:$4 sm:$0xff]  }
 0x6c0   : > { %8818 = vmatmul.mubr.bf16.vlgmr.msra.gmra.mrb[64].mxu0 %v25002_v50  ;;  %8859 = vmatmul.mubr.bf16.vlgmr.msra.gmra.mrb[64].mxu1 %v25006_v51 }
 0x6c1   : > { %8868 = vmatpush1.bf16.msra.mxu0 %v22161_v62  ;;  %8909 = vmatpush1.bf16.msra.mxu1 %v22164_v6  ;;  %v22244_v62 = vld [vmem:[#allocation7 + $0x7a4] ss:$16 sps:$4 sm:$0xff]   ;;  %v22239_v6 = vld [vmem:[#allocation7 + $0x5a0] ss:$16 sps:$4 sm:$0xff]  }
 0x6c2   : > { %8869 = vmatprep.subr.bf16.mxu0 %v22169_v63  ;;  %8910 = vmatprep.subr.bf16.mxu1 %v22172_v59  ;;  %v22242_v63 = vld [vmem:[#allocation7 + $0x7a0] ss:$16 sps:$4 sm:$0xff]   ;;  %v22247_v59 = vld [vmem:[#allocation7 + $0x5c4] ss:$16 sps:$4 sm:$0xff]  }
 0x6c3   : > { %8899 = vmatprep.mubr.bf16.mxu0 %v25016_v40  ;;  %8940 = vmatprep.mubr.bf16.mxu1 %v25020_v41 }
 0x6c5   : > { %8870 = vmatpush1.bf16.msra.mxu0 %v22167_v56  ;;  %8911 = vmatpush1.bf16.msra.mxu1 %v22170_v19  ;;  %v22250_v56 = vld [vmem:[#allocation7 + $0x7c4] ss:$16 sps:$4 sm:$0xff]   ;;  %v22245_v19 = vld [vmem:[#allocation7 + $0x5c0] ss:$16 sps:$4 sm:$0xff]  }
 0x6c6   : > { %8871 = vmatprep.subr.bf16.mxu0 %v22175_v20  ;;  %8912 = vmatprep.subr.bf16.mxu1 %v22178_v0  ;;  %v22248_v20 = vld [vmem:[#allocation7 + $0x7c0] ss:$16 sps:$4 sm:$0xff]   ;;  %v22253_v0 = vld [vmem:[#allocation7 + $0x5e4] ss:$16 sps:$4 sm:$0xff]  }
 0x6c9   : > { %8872 = vmatpush1.bf16.msra.mxu0 %v22173_v8  ;;  %8913 = vmatpush1.bf16.msra.mxu1 %v22176_v36  ;;  %v22256_v8 = vld [vmem:[#allocation7 + $0x7e4] ss:$16 sps:$4 sm:$0xff]   ;;  %v22251_v36 = vld [vmem:[#allocation7 + $0x5e0] ss:$16 sps:$4 sm:$0xff]  }
 0x6ca   : > { %8873 = vmatprep.subr.bf16.mxu0 %v22181_v9  ;;  %8914 = vmatprep.subr.bf16.mxu1 %v22184_v53  ;;  %v22254_v9 = vld [vmem:[#allocation7 + $0x7e0] ss:$16 sps:$4 sm:$0xff]   ;;  %v22263_v53 = vld [vmem:[#allocation7 + $0xc] ss:$16 sps:$4 sm:$0xff]  }
 0x6cd   : > { %8874 = vmatpush1.bf16.msra.mxu0 %v22179_v7  ;;  %8915 = vmatpush1.bf16.msra.mxu1 %v22182_v60  ;;  %v22266_v7 = vld [vmem:[#allocation7 + $0x20c] ss:$16 sps:$4 sm:$0xff]   ;;  %v25028_v60 = vcombine.low %v25009_v11, %v25009_v11  ;;  %v22267_v11 = vld [vmem:[#allocation7 + $0x28] ss:$16 sps:$4 sm:$0xff]  }
 0x6ce   : > { %8875 = vmatprep.subr.bf16.mxu0 %v22187_v44  ;;  %8916 = vmatprep.subr.bf16.mxu1 %v22190_v12  ;;  %v25032_v44 = vcombine.low %v25012_v13, %v25012_v13  ;;  %v22261_v12 = vld [vmem:[#allocation7 + $0x8] ss:$16 sps:$4 sm:$0xff]   ;;  %v22275_v13 = vld [vmem:[#allocation7 + $0x4c] ss:$16 sps:$4 sm:$0xff]  }
 0x6d1   : > { %8876 = vmatpush1.bf16.msra.mxu0 %v22185_v17  ;;  %8917 = vmatpush1.bf16.msra.mxu1 %v22188_v18  ;;  %v22264_v17 = vld [vmem:[#allocation7 + $0x208] ss:$16 sps:$4 sm:$0xff]   ;;  %v22269_v18 = vld [vmem:[#allocation7 + $0x2c] ss:$16 sps:$4 sm:$0xff]  }
 0x6d2   : > { %8877 = vmatprep.subr.bf16.mxu0 %v22193_v23  ;;  %8918 = vmatprep.subr.bf16.mxu1 %v22196_v14  ;;  %v22272_v23 = vld [vmem:[#allocation7 + $0x22c] ss:$16 sps:$4 sm:$0xff]   ;;  %v22270_v14 = vld [vmem:[#allocation7 + $0x228] ss:$16 sps:$4 sm:$0xff]  }
 0x6d5   : > { %8878 = vmatpush1.bf16.msra.mxu0 %v22191_v4  ;;  %8919 = vmatpush1.bf16.msra.mxu1 %v22194_v43  ;;  %v22278_v4 = vld [vmem:[#allocation7 + $0x24c] ss:$16 sps:$4 sm:$0xff]   ;;  %v22273_v43 = vld [vmem:[#allocation7 + $0x48] ss:$16 sps:$4 sm:$0xff]  }
 0x6d6   : > { %8879 = vmatprep.subr.bf16.mxu0 %v22199_v5  ;;  %8920 = vmatprep.subr.bf16.mxu1 %v22202_v21  ;;  %v22276_v5 = vld [vmem:[#allocation7 + $0x248] ss:$16 sps:$4 sm:$0xff]   ;;  %v22281_v21 = vld [vmem:[#allocation7 + $0x6c] ss:$16 sps:$4 sm:$0xff]  }
 0x6d9   : > { %8880 = vmatpush1.bf16.msra.mxu0 %v22197_v29  ;;  %8921 = vmatpush1.bf16.msra.mxu1 %v22200_v30  ;;  %v22284_v29 = vld [vmem:[#allocation7 + $0x26c] ss:$16 sps:$4 sm:$0xff]   ;;  %v22279_v30 = vld [vmem:[#allocation7 + $0x68] ss:$16 sps:$4 sm:$0xff]  }
 0x6da   : > { %8881 = vmatprep.subr.bf16.mxu0 %v22205_v31  ;;  %8922 = vmatprep.subr.bf16.mxu1 %v22208_v2  ;;  %v22282_v31 = vld [vmem:[#allocation7 + $0x268] ss:$16 sps:$4 sm:$0xff]   ;;  %v22287_v2 = vld [vmem:[#allocation7 + $0x8c] ss:$16 sps:$4 sm:$0xff]  }
 0x6dd   : > { %8882 = vmatpush1.bf16.msra.mxu0 %v22203_v24  ;;  %8923 = vmatpush1.bf16.msra.mxu1 %v22206_v33  ;;  %v22290_v24 = vld [vmem:[#allocation7 + $0x28c] ss:$16 sps:$4 sm:$0xff]  }
 0x6de   : > { %8883 = vmatprep.subr.bf16.mxu0 %v22211_v26  ;;  %8924 = vmatprep.subr.bf16.mxu1 %v22214_v27  ;;  %v22293_v33 = vld [vmem:[#allocation7 + $0xac] ss:$16 sps:$4 sm:$0xff]   ;;  %v22291_v27 = vld [vmem:[#allocation7 + $0xa8] ss:$16 sps:$4 sm:$0xff]  }
 0x6df   : > { %v22296_v26 = vld [vmem:[#allocation7 + $0x2ac] ss:$16 sps:$4 sm:$0xff]  }
 0x6e1   : > { %8884 = vmatpush1.bf16.msra.mxu0 %v22209_v32  ;;  %8925 = vmatpush1.bf16.msra.mxu1 %v22212_v34  ;;  %v22294_v32 = vld [vmem:[#allocation7 + $0x2a8] ss:$16 sps:$4 sm:$0xff]   ;;  %v22299_v34 = vld [vmem:[#allocation7 + $0xcc] ss:$16 sps:$4 sm:$0xff]  }
 0x6e2   : > { %8885 = vmatprep.subr.bf16.mxu0 %v22217_v35  ;;  %8926 = vmatprep.subr.bf16.mxu1 %v22220_v22  ;;  %v22302_v35 = vld [vmem:[#allocation7 + $0x2cc] ss:$16 sps:$4 sm:$0xff]   ;;  %v22297_v22 = vld [vmem:[#allocation7 + $0xc8] ss:$16 sps:$4 sm:$0xff]  }
 0x6e5   : > { %8886 = vmatpush1.bf16.msra.mxu0 %v22215_v37  ;;  %8927 = vmatpush1.bf16.msra.mxu1 %v22218_v38  ;;  %v22300_v37 = vld [vmem:[#allocation7 + $0x2c8] ss:$16 sps:$4 sm:$0xff]   ;;  %v22305_v38 = vld [vmem:[#allocation7 + $0xec] ss:$16 sps:$4 sm:$0xff]  }
 0x6e6   : > { %8887 = vmatprep.subr.bf16.mxu0 %v22223_v39  ;;  %8928 = vmatprep.subr.bf16.mxu1 %v22226_v57  ;;  %v22308_v39 = vld [vmem:[#allocation7 + $0x2ec] ss:$16 sps:$4 sm:$0xff]   ;;  %v22303_v57 = vld [vmem:[#allocation7 + $0xe8] ss:$16 sps:$4 sm:$0xff]  }
 0x6e9   : > { %8888 = vmatpush1.bf16.msra.mxu0 %v22221_v58  ;;  %8929 = vmatpush1.bf16.msra.mxu1 %v22224_v15  ;;  %v22306_v58 = vld [vmem:[#allocation7 + $0x2e8] ss:$16 sps:$4 sm:$0xff]   ;;  %v22311_v15 = vld [vmem:[#allocation7 + $0x10c] ss:$16 sps:$4 sm:$0xff]  }
 0x6ea   : > { %8889 = vmatprep.subr.bf16.mxu0 %v22229_v61  ;;  %8930 = vmatprep.subr.bf16.mxu1 %v22232_v1  ;;  %v22314_v61 = vld [vmem:[#allocation7 + $0x30c] ss:$16 sps:$4 sm:$0xff]   ;;  %v22309_v1 = vld [vmem:[#allocation7 + $0x108] ss:$16 sps:$4 sm:$0xff]  }
 0x6ed   : > { %8890 = vmatpush1.bf16.msra.mxu0 %v22227_v16  ;;  %8931 = vmatpush1.bf16.msra.mxu1 %v22230_v42  ;;  %v22312_v16 = vld [vmem:[#allocation7 + $0x308] ss:$16 sps:$4 sm:$0xff]   ;;  %v22317_v42 = vld [vmem:[#allocation7 + $0x12c] ss:$16 sps:$4 sm:$0xff]  }
 0x6ee   : > { %8891 = vmatprep.subr.bf16.mxu0 %v22235_v52  ;;  %8932 = vmatprep.subr.bf16.mxu1 %v22238_v10  ;;  %v22320_v52 = vld [vmem:[#allocation7 + $0x32c] ss:$16 sps:$4 sm:$0xff]   ;;  %v22315_v10 = vld [vmem:[#allocation7 + $0x128] ss:$16 sps:$4 sm:$0xff]  }
 0x6f1   : > { %8892 = vmatpush1.bf16.msra.mxu0 %v22233_v47  ;;  %8933 = vmatpush1.bf16.msra.mxu1 %v22236_v48  ;;  %v22318_v47 = vld [vmem:[#allocation7 + $0x328] ss:$16 sps:$4 sm:$0xff]   ;;  %v22323_v48 = vld [vmem:[#allocation7 + $0x14c] ss:$16 sps:$4 sm:$0xff]  }
 0x6f2   : > { %8893 = vmatprep.subr.bf16.mxu0 %v22241_v49  ;;  %8934 = vmatprep.subr.bf16.mxu1 %v22244_v62  ;;  %v22326_v49 = vld [vmem:[#allocation7 + $0x34c] ss:$16 sps:$4 sm:$0xff]   ;;  %v22321_v62 = vld [vmem:[#allocation7 + $0x148] ss:$16 sps:$4 sm:$0xff]  }
 0x6f5   : > { %8894 = vmatpush1.bf16.msra.mxu0 %v22239_v6  ;;  %8935 = vmatpush1.bf16.msra.mxu1 %v22242_v63  ;;  %v22324_v6 = vld [vmem:[#allocation7 + $0x348] ss:$16 sps:$4 sm:$0xff]   ;;  %v22329_v63 = vld [vmem:[#allocation7 + $0x16c] ss:$16 sps:$4 sm:$0xff]  }
 0x6f6   : > { %8895 = vmatprep.subr.bf16.mxu0 %v22247_v59  ;;  %8936 = vmatprep.subr.bf16.mxu1 %v22250_v56  ;;  %v22332_v59 = vld [vmem:[#allocation7 + $0x36c] ss:$16 sps:$4 sm:$0xff]   ;;  %v22327_v56 = vld [vmem:[#allocation7 + $0x168] ss:$16 sps:$4 sm:$0xff]  }
 0x6f9   : > { %8896 = vmatpush1.bf16.msra.mxu0 %v22245_v19  ;;  %8937 = vmatpush1.bf16.msra.mxu1 %v22248_v20  ;;  %v22330_v19 = vld [vmem:[#allocation7 + $0x368] ss:$16 sps:$4 sm:$0xff]   ;;  %v22335_v20 = vld [vmem:[#allocation7 + $0x18c] ss:$16 sps:$4 sm:$0xff]  }
 0x6fa   : > { %8897 = vmatprep.subr.bf16.mxu0 %v22253_v0  ;;  %8938 = vmatprep.subr.bf16.mxu1 %v22256_v8  ;;  %v22338_v0 = vld [vmem:[#allocation7 + $0x38c] ss:$16 sps:$4 sm:$0xff]   ;;  %v22333_v8 = vld [vmem:[#allocation7 + $0x188] ss:$16 sps:$4 sm:$0xff]  }
 0x6fd   : > { %8898 = vmatpush1.bf16.msra.mxu0 %v22251_v36  ;;  %8939 = vmatpush1.bf16.msra.mxu1 %v22254_v9  ;;  %v22336_v36 = vld [vmem:[#allocation7 + $0x388] ss:$16 sps:$4 sm:$0xff]   ;;  %v22341_v9 = vld [vmem:[#allocation7 + $0x1ac] ss:$16 sps:$4 sm:$0xff]  }
 0x6fe   : > { %8949 = vmatprep.subr.bf16.mxu0 %v22263_v53  ;;  %8990 = vmatprep.subr.bf16.mxu1 %v22266_v7  ;;  %v22344_v53 = vld [vmem:[#allocation7 + $0x3ac] ss:$16 sps:$4 sm:$0xff]   ;;  %v22339_v7 = vld [vmem:[#allocation7 + $0x1a8] ss:$16 sps:$4 sm:$0xff]  }
 0x700   : > { %8900 = vmatmul.mubr.bf16.vlgmr.msra.gmra.mrb[68].mxu0 %v25028_v60  ;;  %8941 = vmatmul.mubr.bf16.vlgmr.msra.gmra.mrb[68].mxu1 %v25032_v44 }
 0x701   : > { %8950 = vmatpush1.bf16.msra.mxu0 %v22261_v12  ;;  %8991 = vmatpush1.bf16.msra.mxu1 %v22264_v17  ;;  %v22342_v12 = vld [vmem:[#allocation7 + $0x3a8] ss:$16 sps:$4 sm:$0xff]   ;;  %v22347_v17 = vld [vmem:[#allocation7 + $0x1cc] ss:$16 sps:$4 sm:$0xff]  }
 0x702   : > { %8951 = vmatprep.subr.bf16.mxu0 %v22269_v18  ;;  %8992 = vmatprep.subr.bf16.mxu1 %v22272_v23  ;;  %v22350_v18 = vld [vmem:[#allocation7 + $0x3cc] ss:$16 sps:$4 sm:$0xff]   ;;  %v22345_v23 = vld [vmem:[#allocation7 + $0x1c8] ss:$16 sps:$4 sm:$0xff]  }
 0x703   : > { %8981 = vmatprep.mubr.bf16.mxu0 %v24991_v45  ;;  %9022 = vmatprep.mubr.bf16.mxu1 %v24995_v46  ;;  %v22285_v45 = vld [vmem:[#allocation7 + $0x88] ss:$16 sps:$4 sm:$0xff]  }
 0x704   : > { %v22288_v46 = vld [vmem:[#allocation7 + $0x288] ss:$16 sps:$4 sm:$0xff]  }
 0x705   : > { %8952 = vmatpush1.bf16.msra.mxu0 %v22267_v11  ;;  %8993 = vmatpush1.bf16.msra.mxu1 %v22270_v14  ;;  %v22348_v11 = vld [vmem:[#allocation7 + $0x3c8] ss:$16 sps:$4 sm:$0xff]   ;;  %v22353_v14 = vld [vmem:[#allocation7 + $0x1ec] ss:$16 sps:$4 sm:$0xff]  }
 0x706   : > { %8953 = vmatprep.subr.bf16.mxu0 %v22275_v13  ;;  %8994 = vmatprep.subr.bf16.mxu1 %v22278_v4  ;;  %v22356_v13 = vld [vmem:[#allocation7 + $0x3ec] ss:$16 sps:$4 sm:$0xff]   ;;  %v22351_v4 = vld [vmem:[#allocation7 + $0x1e8] ss:$16 sps:$4 sm:$0xff]  }
 0x709   : > { %8954 = vmatpush1.bf16.msra.mxu0 %v22273_v43  ;;  %8995 = vmatpush1.bf16.msra.mxu1 %v22276_v5  ;;  %v22354_v43 = vld [vmem:[#allocation7 + $0x3e8] ss:$16 sps:$4 sm:$0xff]   ;;  %v22359_v5 = vld [vmem:[#allocation7 + $0x40c] ss:$16 sps:$4 sm:$0xff]  }
 0x70a   : > { %8955 = vmatprep.subr.bf16.mxu0 %v22281_v21  ;;  %8996 = vmatprep.subr.bf16.mxu1 %v22284_v29  ;;  %v22362_v21 = vld [vmem:[#allocation7 + $0x60c] ss:$16 sps:$4 sm:$0xff]   ;;  %v22357_v29 = vld [vmem:[#allocation7 + $0x408] ss:$16 sps:$4 sm:$0xff]  }
 0x70d   : > { %8956 = vmatpush1.bf16.msra.mxu0 %v22279_v30  ;;  %8997 = vmatpush1.bf16.msra.mxu1 %v22282_v31  ;;  %v22360_v30 = vld [vmem:[#allocation7 + $0x608] ss:$16 sps:$4 sm:$0xff]   ;;  %v22365_v31 = vld [vmem:[#allocation7 + $0x42c] ss:$16 sps:$4 sm:$0xff]  }
 0x70e   : > { %8957 = vmatprep.subr.bf16.mxu0 %v22287_v2  ;;  %8998 = vmatprep.subr.bf16.mxu1 %v22290_v24  ;;  %v22368_v2 = vld [vmem:[#allocation7 + $0x62c] ss:$16 sps:$4 sm:$0xff]   ;;  %v22363_v24 = vld [vmem:[#allocation7 + $0x428] ss:$16 sps:$4 sm:$0xff]  }
 0x711   : > { %8958 = vmatpush1.bf16.msra.mxu0 %v22285_v45  ;;  %8999 = vmatpush1.bf16.msra.mxu1 %v22288_v46  ;;  %v22366_v45 = vld [vmem:[#allocation7 + $0x628] ss:$16 sps:$4 sm:$0xff]   ;;  %v22371_v46 = vld [vmem:[#allocation7 + $0x44c] ss:$16 sps:$4 sm:$0xff]  }
 0x712   : > { %8959 = vmatprep.subr.bf16.mxu0 %v22293_v33  ;;  %9000 = vmatprep.subr.bf16.mxu1 %v22296_v26  ;;  %v22374_v33 = vld [vmem:[#allocation7 + $0x64c] ss:$16 sps:$4 sm:$0xff]   ;;  %v22369_v26 = vld [vmem:[#allocation7 + $0x448] ss:$16 sps:$4 sm:$0xff]  }
 0x715   : > { %8960 = vmatpush1.bf16.msra.mxu0 %v22291_v27  ;;  %9001 = vmatpush1.bf16.msra.mxu1 %v22294_v32  ;;  %v22372_v27 = vld [vmem:[#allocation7 + $0x648] ss:$16 sps:$4 sm:$0xff]  }
 0x716   : > { %8961 = vmatprep.subr.bf16.mxu0 %v22299_v34  ;;  %9002 = vmatprep.subr.bf16.mxu1 %v22302_v35  ;;  %v22375_v32 = vld [vmem:[#allocation7 + $0x468] ss:$16 sps:$4 sm:$0xff]   ;;  %v22383_v35 = vld [vmem:[#allocation7 + $0x48c] ss:$16 sps:$4 sm:$0xff]  }
 0x717   : > { %v22378_v34 = vld [vmem:[#allocation7 + $0x668] ss:$16 sps:$4 sm:$0xff]  }
 0x719   : > { %8962 = vmatpush1.bf16.msra.mxu0 %v22297_v22  ;;  %9003 = vmatpush1.bf16.msra.mxu1 %v22300_v37  ;;  %v22386_v22 = vld [vmem:[#allocation7 + $0x68c] ss:$16 sps:$4 sm:$0xff]  }
 0x71a   : > { %8963 = vmatprep.subr.bf16.mxu0 %v22305_v38  ;;  %9004 = vmatprep.subr.bf16.mxu1 %v22308_v39  ;;  %v22389_v37 = vld [vmem:[#allocation7 + $0x4ac] ss:$16 sps:$4 sm:$0xff]   ;;  %v22387_v39 = vld [vmem:[#allocation7 + $0x4a8] ss:$16 sps:$4 sm:$0xff]  }
 0x71b   : > { %v22392_v38 = vld [vmem:[#allocation7 + $0x6ac] ss:$16 sps:$4 sm:$0xff]  }
 0x71d   : > { %8964 = vmatpush1.bf16.msra.mxu0 %v22303_v57  ;;  %9005 = vmatpush1.bf16.msra.mxu1 %v22306_v58  ;;  %v22390_v57 = vld [vmem:[#allocation7 + $0x6a8] ss:$16 sps:$4 sm:$0xff]   ;;  %v22395_v58 = vld [vmem:[#allocation7 + $0x4cc] ss:$16 sps:$4 sm:$0xff]  }
 0x71e   : > { %8965 = vmatprep.subr.bf16.mxu0 %v22311_v15  ;;  %9006 = vmatprep.subr.bf16.mxu1 %v22314_v61  ;;  %v22398_v15 = vld [vmem:[#allocation7 + $0x6cc] ss:$16 sps:$4 sm:$0xff]  }
 0x721   : > { %8966 = vmatpush1.bf16.msra.mxu0 %v22309_v1  ;;  %9007 = vmatpush1.bf16.msra.mxu1 %v22312_v16 }
 0x722   : > { %8967 = vmatprep.subr.bf16.mxu0 %v22317_v42  ;;  %9008 = vmatprep.subr.bf16.mxu1 %v22320_v52 }
 0x725   : > { %8968 = vmatpush1.bf16.msra.mxu0 %v22315_v10  ;;  %9009 = vmatpush1.bf16.msra.mxu1 %v22318_v47  ;;  %v22393_v47 = vld [vmem:[#allocation7 + $0x4c8] ss:$16 sps:$4 sm:$0xff]  }
 0x726   : > { %8969 = vmatprep.subr.bf16.mxu0 %v22323_v48  ;;  %9010 = vmatprep.subr.bf16.mxu1 %v22326_v49  ;;  %v22396_v48 = vld [vmem:[#allocation7 + $0x6c8] ss:$16 sps:$4 sm:$0xff]  }
 0x729   : > { %8970 = vmatpush1.bf16.msra.mxu0 %v22321_v62  ;;  %9011 = vmatpush1.bf16.msra.mxu1 %v22324_v6  ;;  %v22401_v6 = vld [vmem:[#allocation7 + $0x4ec] ss:$16 sps:$4 sm:$0xff]  }
 0x72a   : > { %8971 = vmatprep.subr.bf16.mxu0 %v22329_v63  ;;  %9012 = vmatprep.subr.bf16.mxu1 %v22332_v59  ;;  %v22404_v63 = vld [vmem:[#allocation7 + $0x6ec] ss:$16 sps:$4 sm:$0xff]   ;;  %v22399_v59 = vld [vmem:[#allocation7 + $0x4e8] ss:$16 sps:$4 sm:$0xff]  }
 0x72d   : > { %8972 = vmatpush1.bf16.msra.mxu0 %v22327_v56  ;;  %9013 = vmatpush1.bf16.msra.mxu1 %v22330_v19  ;;  %v22402_v56 = vld [vmem:[#allocation7 + $0x6e8] ss:$16 sps:$4 sm:$0xff]   ;;  %v22407_v19 = vld [vmem:[#allocation7 + $0x50c] ss:$16 sps:$4 sm:$0xff]  }
 0x72e   : > { %8973 = vmatprep.subr.bf16.mxu0 %v22335_v20  ;;  %9014 = vmatprep.subr.bf16.mxu1 %v22338_v0  ;;  %v22410_v20 = vld [vmem:[#allocation7 + $0x70c] ss:$16 sps:$4 sm:$0xff]   ;;  %v22405_v0 = vld [vmem:[#allocation7 + $0x508] ss:$16 sps:$4 sm:$0xff]  }
 0x731   : > { %8974 = vmatpush1.bf16.msra.mxu0 %v22333_v8  ;;  %9015 = vmatpush1.bf16.msra.mxu1 %v22336_v36  ;;  %v22408_v8 = vld [vmem:[#allocation7 + $0x708] ss:$16 sps:$4 sm:$0xff]   ;;  %v22413_v36 = vld [vmem:[#allocation7 + $0x52c] ss:$16 sps:$4 sm:$0xff]  }
 0x732   : > { %8975 = vmatprep.subr.bf16.mxu0 %v22341_v9  ;;  %9016 = vmatprep.subr.bf16.mxu1 %v22344_v53  ;;  %v22416_v9 = vld [vmem:[#allocation7 + $0x72c] ss:$16 sps:$4 sm:$0xff]   ;;  %v22411_v53 = vld [vmem:[#allocation7 + $0x528] ss:$16 sps:$4 sm:$0xff]  }
 0x735   : > { %8976 = vmatpush1.bf16.msra.mxu0 %v22339_v7  ;;  %9017 = vmatpush1.bf16.msra.mxu1 %v22342_v12  ;;  %v22414_v7 = vld [vmem:[#allocation7 + $0x728] ss:$16 sps:$4 sm:$0xff]   ;;  %v22419_v12 = vld [vmem:[#allocation7 + $0x54c] ss:$16 sps:$4 sm:$0xff]  }
 0x736   : > { %8977 = vmatprep.subr.bf16.mxu0 %v22347_v17  ;;  %9018 = vmatprep.subr.bf16.mxu1 %v22350_v18  ;;  %v22422_v17 = vld [vmem:[#allocation7 + $0x74c] ss:$16 sps:$4 sm:$0xff]   ;;  %v22417_v18 = vld [vmem:[#allocation7 + $0x548] ss:$16 sps:$4 sm:$0xff]  }
 0x739   : > { %8978 = vmatpush1.bf16.msra.mxu0 %v22345_v23  ;;  %9019 = vmatpush1.bf16.msra.mxu1 %v22348_v11  ;;  %v22420_v23 = vld [vmem:[#allocation7 + $0x748] ss:$16 sps:$4 sm:$0xff]   ;;  %v22425_v11 = vld [vmem:[#allocation7 + $0x56c] ss:$16 sps:$4 sm:$0xff]  }
 0x73a   : > { %8979 = vmatprep.subr.bf16.mxu0 %v22353_v14  ;;  %9020 = vmatprep.subr.bf16.mxu1 %v22356_v13  ;;  %v22428_v14 = vld [vmem:[#allocation7 + $0x76c] ss:$16 sps:$4 sm:$0xff]   ;;  %v22423_v13 = vld [vmem:[#allocation7 + $0x568] ss:$16 sps:$4 sm:$0xff]  }
 0x73d   : > { %8980 = vmatpush1.bf16.msra.mxu0 %v22351_v4  ;;  %9021 = vmatpush1.bf16.msra.mxu1 %v22354_v43  ;;  %v22426_v4 = vld [vmem:[#allocation7 + $0x768] ss:$16 sps:$4 sm:$0xff]   ;;  %v22431_v43 = vld [vmem:[#allocation7 + $0x58c] ss:$16 sps:$4 sm:$0xff]  }
 0x73e   : > { %9031 = vmatprep.subr.bf16.mxu0 %v22359_v5  ;;  %9072 = vmatprep.subr.bf16.mxu1 %v22362_v21  ;;  %v22434_v5 = vld [vmem:[#allocation7 + $0x78c] ss:$16 sps:$4 sm:$0xff]   ;;  %v22429_v21 = vld [vmem:[#allocation7 + $0x588] ss:$16 sps:$4 sm:$0xff]  }
 0x740   : > { %8982 = vmatmul.mubr.bf16.vlgmr.msra.gmra.mrb[72].mxu0 %v25002_v50  ;;  %9023 = vmatmul.mubr.bf16.vlgmr.msra.gmra.mrb[72].mxu1 %v25006_v51  ;;  %v22377_v50 = vld [vmem:[#allocation7 + $0x46c] ss:$16 sps:$4 sm:$0xff]  }
 0x741   : > { %9032 = vmatpush1.bf16.msra.mxu0 %v22357_v29  ;;  %9073 = vmatpush1.bf16.msra.mxu1 %v22360_v30  ;;  %v22380_v51 = vld [vmem:[#allocation7 + $0x66c] ss:$16 sps:$4 sm:$0xff]   ;;  %v22432_v29 = vld [vmem:[#allocation7 + $0x788] ss:$16 sps:$4 sm:$0xff]  }
 0x742   : > { %9033 = vmatprep.subr.bf16.mxu0 %v22365_v31  ;;  %9074 = vmatprep.subr.bf16.mxu1 %v22368_v2  ;;  %v22437_v30 = vld [vmem:[#allocation7 + $0x5ac] ss:$16 sps:$4 sm:$0xff]   ;;  %v22435_v2 = vld [vmem:[#allocation7 + $0x5a8] ss:$16 sps:$4 sm:$0xff]  }
 0x743   : > { %9063 = vmatprep.mubr.bf16.mxu0 %v25016_v40  ;;  %9104 = vmatprep.mubr.bf16.mxu1 %v25020_v41  ;;  %v22381_v40 = vld [vmem:[#allocation7 + $0x488] ss:$16 sps:$4 sm:$0xff]   ;;  %v22440_v31 = vld [vmem:[#allocation7 + $0x7ac] ss:$16 sps:$4 sm:$0xff]  }
 0x744   : > { %v22384_v41 = vld [vmem:[#allocation7 + $0x688] ss:$16 sps:$4 sm:$0xff]  }
 0x745   : > { %9034 = vmatpush1.bf16.msra.mxu0 %v22363_v24  ;;  %9075 = vmatpush1.bf16.msra.mxu1 %v22366_v45  ;;  %v22438_v24 = vld [vmem:[#allocation7 + $0x7a8] ss:$16 sps:$4 sm:$0xff]   ;;  %v22443_v45 = vld [vmem:[#allocation7 + $0x5cc] ss:$16 sps:$4 sm:$0xff]  }
 0x746   : > { %9035 = vmatprep.subr.bf16.mxu0 %v22371_v46  ;;  %9076 = vmatprep.subr.bf16.mxu1 %v22374_v33  ;;  %v22446_v46 = vld [vmem:[#allocation7 + $0x7cc] ss:$16 sps:$4 sm:$0xff]   ;;  %v22441_v33 = vld [vmem:[#allocation7 + $0x5c8] ss:$16 sps:$4 sm:$0xff]  }
 0x749   : > { %9036 = vmatpush1.bf16.msra.mxu0 %v22369_v26  ;;  %9077 = vmatpush1.bf16.msra.mxu1 %v22372_v27  ;;  %v22444_v26 = vld [vmem:[#allocation7 + $0x7c8] ss:$16 sps:$4 sm:$0xff]   ;;  %v22449_v27 = vld [vmem:[#allocation7 + $0x5ec] ss:$16 sps:$4 sm:$0xff]  }
 0x74a   : > { %9037 = vmatprep.subr.bf16.mxu0 %v22377_v50  ;;  %9078 = vmatprep.subr.bf16.mxu1 %v22380_v51  ;;  %v22452_v50 = vld [vmem:[#allocation7 + $0x7ec] ss:$16 sps:$4 sm:$0xff]   ;;  %v22447_v51 = vld [vmem:[#allocation7 + $0x5e8] ss:$16 sps:$4 sm:$0xff]  }
 0x74d   : > { %9038 = vmatpush1.bf16.msra.mxu0 %v22375_v32  ;;  %9079 = vmatpush1.bf16.msra.mxu1 %v22378_v34  ;;  %v22450_v32 = vld [vmem:[#allocation7 + $0x7e8] ss:$16 sps:$4 sm:$0xff]  }
 0x74e   : > { %9039 = vmatprep.subr.bf16.mxu0 %v22383_v35  ;;  %9080 = vmatprep.subr.bf16.mxu1 %v22386_v22 }
 0x751   : > { %9040 = vmatpush1.bf16.msra.mxu0 %v22381_v40  ;;  %9081 = vmatpush1.bf16.msra.mxu1 %v22384_v41 }
 0x752   : > { %9041 = vmatprep.subr.bf16.mxu0 %v22389_v37  ;;  %9082 = vmatprep.subr.bf16.mxu1 %v22392_v38 }
 0x753   : > { %v25042_v61 = vpop.f32.mrb[60].mxu0  ;;  %v25044_v1 = vpop.f32.mrb[60].mxu1 }
 0x754   : > { %v25046_v16 = vpop.f32.mrb[61].mxu0  ;;  %v25048_v42 = vpop.f32.mrb[61].mxu1 }
 0x755   : > { %9042 = vmatpush1.bf16.msra.mxu0 %v22387_v39  ;;  %9083 = vmatpush1.bf16.msra.mxu1 %v22390_v57  ;;  %v7433_v52 = vpop.f32.mrb[62].mxu0  ;;  %v7474_v10 = vpop.f32.mrb[62].mxu1 }
 0x756   : > { %v7434_v49 = vpop.f32.mrb[63].mxu0  ;;  %v7475_v62 = vpop.f32.mrb[63].mxu1  ;;  %9043 = vmatprep.subr.bf16.mxu0 %v22395_v58  ;;  %9084 = vmatprep.subr.bf16.mxu1 %v22398_v15 }
 0x759   : > { %9044 = vmatpush1.bf16.msra.mxu0 %v22393_v47  ;;  %9085 = vmatpush1.bf16.msra.mxu1 %v22396_v48 }
 0x75a   : > { %9045 = vmatprep.subr.bf16.mxu0 %v22401_v6  ;;  %9086 = vmatprep.subr.bf16.mxu1 %v22404_v63  ;;  %v22455_v63 = vld [vmem:[#allocation9 + $0x4] ss:$16 sps:$4 sm:$0xff]  }
 0x75d   : > { %9046 = vmatpush1.bf16.msra.mxu0 %v22399_v59  ;;  %9087 = vmatpush1.bf16.msra.mxu1 %v22402_v56 }
 0x75e   : > { %9047 = vmatprep.subr.bf16.mxu0 %v22407_v19  ;;  %9088 = vmatprep.subr.bf16.mxu1 %v22410_v20  ;;  %v22453_v19 = vld [vmem:[#allocation9] ss:$16 sps:$4 sm:$0xff]   ;;  %v22456_v20 = vld [vmem:[#allocation9 + $0x8] ss:$16 sps:$4 sm:$0xff]  }
 0x761   : > { %9048 = vmatpush1.bf16.msra.mxu0 %v22405_v0  ;;  %9089 = vmatpush1.bf16.msra.mxu1 %v22408_v8  ;;  %v22461_v8 = vld [vmem:[#allocation9 + $0x24] ss:$16 sps:$4 sm:$0xff]  }
 0x762   : > { %9049 = vmatprep.subr.bf16.mxu0 %v22413_v36  ;;  %9090 = vmatprep.subr.bf16.mxu1 %v22416_v9  ;;  %v22464_v36 = vld [vmem:[#allocation9 + $0x2c] ss:$16 sps:$4 sm:$0xff]   ;;  %v22459_v9 = vld [vmem:[#allocation9 + $0x20] ss:$16 sps:$4 sm:$0xff]  }
 0x765   : > { %9050 = vmatpush1.bf16.msra.mxu0 %v22411_v53  ;;  %9091 = vmatpush1.bf16.msra.mxu1 %v22414_v7  ;;  %v22462_v53 = vld [vmem:[#allocation9 + $0x28] ss:$16 sps:$4 sm:$0xff]   ;;  %v22467_v7 = vld [vmem:[#allocation9 + $0x44] ss:$16 sps:$4 sm:$0xff]  }
 0x766   : > { %9051 = vmatprep.subr.bf16.mxu0 %v22419_v12  ;;  %9092 = vmatprep.subr.bf16.mxu1 %v22422_v17  ;;  %v22470_v12 = vld [vmem:[#allocation9 + $0x4c] ss:$16 sps:$4 sm:$0xff]   ;;  %v22465_v17 = vld [vmem:[#allocation9 + $0x40] ss:$16 sps:$4 sm:$0xff]  }
 0x769   : > { %9052 = vmatpush1.bf16.msra.mxu0 %v22417_v18  ;;  %9093 = vmatpush1.bf16.msra.mxu1 %v22420_v23  ;;  %v22468_v18 = vld [vmem:[#allocation9 + $0x48] ss:$16 sps:$4 sm:$0xff]   ;;  %v22473_v23 = vld [vmem:[#allocation9 + $0x64] ss:$16 sps:$4 sm:$0xff]  }
 0x76a   : > { %9053 = vmatprep.subr.bf16.mxu0 %v22425_v11  ;;  %9094 = vmatprep.subr.bf16.mxu1 %v22428_v14  ;;  %v22476_v11 = vld [vmem:[#allocation9 + $0x6c] ss:$16 sps:$4 sm:$0xff]   ;;  %v22471_v14 = vld [vmem:[#allocation9 + $0x60] ss:$16 sps:$4 sm:$0xff]  }
 0x76d   : > { %9054 = vmatpush1.bf16.msra.mxu0 %v22423_v13  ;;  %9095 = vmatpush1.bf16.msra.mxu1 %v22426_v4  ;;  %v22474_v13 = vld [vmem:[#allocation9 + $0x68] ss:$16 sps:$4 sm:$0xff]   ;;  %v22479_v4 = vld [vmem:[#allocation9 + $0x84] ss:$16 sps:$4 sm:$0xff]  }
 0x76e   : > { %9055 = vmatprep.subr.bf16.mxu0 %v22431_v43  ;;  %9096 = vmatprep.subr.bf16.mxu1 %v22434_v5  ;;  %v22482_v43 = vld [vmem:[#allocation9 + $0x8c] ss:$16 sps:$4 sm:$0xff]   ;;  %v22477_v5 = vld [vmem:[#allocation9 + $0x80] ss:$16 sps:$4 sm:$0xff]  }
 0x771   : > { %9056 = vmatpush1.bf16.msra.mxu0 %v22429_v21  ;;  %9097 = vmatpush1.bf16.msra.mxu1 %v22432_v29  ;;  %v22480_v21 = vld [vmem:[#allocation9 + $0x88] ss:$16 sps:$4 sm:$0xff]   ;;  %v22485_v29 = vld [vmem:[#allocation9 + $0xa4] ss:$16 sps:$4 sm:$0xff]  }
 0x772   : > { %9057 = vmatprep.subr.bf16.mxu0 %v22437_v30  ;;  %9098 = vmatprep.subr.bf16.mxu1 %v22440_v31  ;;  %v22488_v30 = vld [vmem:[#allocation9 + $0xac] ss:$16 sps:$4 sm:$0xff]   ;;  %v22483_v31 = vld [vmem:[#allocation9 + $0xa0] ss:$16 sps:$4 sm:$0xff]  }
 0x775   : > { %9058 = vmatpush1.bf16.msra.mxu0 %v22435_v2  ;;  %9099 = vmatpush1.bf16.msra.mxu1 %v22438_v24  ;;  %v22486_v2 = vld [vmem:[#allocation9 + $0xa8] ss:$16 sps:$4 sm:$0xff]   ;;  %v22491_v24 = vld [vmem:[#allocation9 + $0xc4] ss:$16 sps:$4 sm:$0xff]  }
 0x776   : > { %9059 = vmatprep.subr.bf16.mxu0 %v22443_v45  ;;  %9100 = vmatprep.subr.bf16.mxu1 %v22446_v46  ;;  %v22494_v45 = vld [vmem:[#allocation9 + $0xcc] ss:$16 sps:$4 sm:$0xff]   ;;  %v22489_v46 = vld [vmem:[#allocation9 + $0xc0] ss:$16 sps:$4 sm:$0xff]  }
 0x779   : > { %9060 = vmatpush1.bf16.msra.mxu0 %v22441_v33  ;;  %9101 = vmatpush1.bf16.msra.mxu1 %v22444_v26  ;;  %v22492_v33 = vld [vmem:[#allocation9 + $0xc8] ss:$16 sps:$4 sm:$0xff]   ;;  %v22497_v26 = vld [vmem:[#allocation9 + $0xe4] ss:$16 sps:$4 sm:$0xff]  }
 0x77a   : > { %9061 = vmatprep.subr.bf16.mxu0 %v22449_v27  ;;  %9102 = vmatprep.subr.bf16.mxu1 %v22452_v50  ;;  %v22500_v27 = vld [vmem:[#allocation9 + $0xec] ss:$16 sps:$4 sm:$0xff]   ;;  %v22495_v50 = vld [vmem:[#allocation9 + $0xe0] ss:$16 sps:$4 sm:$0xff]  }
 0x77d   : > { %9062 = vmatpush1.bf16.msra.mxu0 %v22447_v51  ;;  %9103 = vmatpush1.bf16.msra.mxu1 %v22450_v32  ;;  %v22498_v51 = vld [vmem:[#allocation9 + $0xe8] ss:$16 sps:$4 sm:$0xff]   ;;  %v22503_v32 = vld [vmem:[#allocation7 + $0x4] ss:$16 sps:$4 sm:$0xff]  }
 0x77e   : > { %9618 = vmatprep.subr.bf16.mxu0 %v22455_v63 }
 0x780   : > { %9064 = vmatmul.mubr.bf16.vlgmr.msra.gmra.mrb[76].mxu0 %v25028_v60  ;;  %9105 = vmatmul.mubr.bf16.vlgmr.msra.gmra.mrb[76].mxu1 %v25032_v44 }
 0x781   : > { %9650 = vmatprep.mubr.bf16.mxu0 %v24475_v3  ;;  %9691 = vmatprep.mubr.bf16.mxu1 %v24475_v3 }
 0x782   : > { %9619 = vmatpush1.bf16.msra.mxu0 %v22453_v19 }
 0x783   : > { %9620 = vmatprep.subr.bf16.mxu0 %v22461_v8 }
 0x786   : > { %9621 = vmatpush1.bf16.msra.mxu0 %v22459_v9 }
 0x787   : > { %9622 = vmatprep.subr.bf16.mxu0 %v22467_v7 }
 0x78a   : > { %9623 = vmatpush1.bf16.msra.mxu0 %v22465_v17 }
 0x78b   : > { %9624 = vmatprep.subr.bf16.mxu0 %v22473_v23 }
 0x78e   : > { %9625 = vmatpush1.bf16.msra.mxu0 %v22471_v14 }
 0x78f   : > { %9626 = vmatprep.subr.bf16.mxu0 %v22479_v4 }
 0x792   : > { %9627 = vmatpush1.bf16.msra.mxu0 %v22477_v5  ;;  %v9152_v5 = vld [vmem:[#allocation3] sm:$0xff] }
 0x793   : > { %v8819_v34 = vpop.f32.mrb[64].mxu0  ;;  %v8860_v35 = vpop.f32.mrb[64].mxu1  ;;  %9628 = vmatprep.subr.bf16.mxu0 %v22485_v29 }
 0x794   : > { %v8820_v22 = vadd.f32 %v8819_v34, %v25042_v61  ;;  %v8821_v40 = vpop.f32.mrb[65].mxu0  ;;  %v8862_v41 = vpop.f32.mrb[65].mxu1  ;;  %v22458_v61 = vld [vmem:[#allocation9 + $0xc] ss:$16 sps:$4 sm:$0xff]   ;;  %v22506_v34 = vld [vmem:[#allocation7 + $0x204] ss:$16 sps:$4 sm:$0xff]  }
 0x795   : > { %v8822_v37 = vadd.f32 %v8821_v40, %v25046_v16  ;;  %v8823_v38 = vpop.f32.mrb[66].mxu0  ;;  %v8864_v39 = vpop.f32.mrb[66].mxu1  ;;  %9659 = vmatprep.subr.bf16.mxu1 %v22458_v61 }
 0x796   : > { %v8861_v57 = vadd.f32 %v8860_v35, %v8820_v22  ;;  %v8824_v58 = vpop.f32.mrb[67].mxu0  ;;  %v8865_v15 = vpop.f32.mrb[67].mxu1  ;;  %9660 = vmatpush1.bf16.msra.mxu1 %v22456_v20  ;;  %9629 = vmatpush1.bf16.msra.mxu0 %v22483_v31 }
 0x797   : > { %v8863_v60 = vadd.f32 %v8862_v41, %v8822_v37  ;;  %9661 = vmatprep.subr.bf16.mxu1 %v22464_v36  ;;  %9630 = vmatprep.subr.bf16.mxu0 %v22491_v24 }
 0x79a   : > { %9662 = vmatpush1.bf16.msra.mxu1 %v22462_v53  ;;  %9631 = vmatpush1.bf16.msra.mxu0 %v22489_v46 }
 0x79b   : > { %9663 = vmatprep.subr.bf16.mxu1 %v22470_v12  ;;  %9632 = vmatprep.subr.bf16.mxu0 %v22497_v26  ;;  %v25075_v26 = vld [vmem:[%s24696_s9 + $0x88] sm:$0xff] }
 0x79e   : > { %9664 = vmatpush1.bf16.msra.mxu1 %v22468_v18  ;;  %9633 = vmatpush1.bf16.msra.mxu0 %v22495_v50  ;;  %v22504_v50 = vld [vmem:[#allocation7 + $0x200] ss:$16 sps:$4 sm:$0xff]  }
 0x79f   : > { %9665 = vmatprep.subr.bf16.mxu1 %v22476_v11  ;;  %11008 = vmatprep.subr.bf16.mxu0 %v22503_v32  ;;  %v22509_v32 = vld [vmem:[#allocation7 + $0x24] ss:$16 sps:$4 sm:$0xff]  }
 0x7a2   : > { %9666 = vmatpush1.bf16.msra.mxu1 %v22474_v13 }
 0x7a3   : > { %9667 = vmatprep.subr.bf16.mxu1 %v22482_v43 }
 0x7a6   : > { %9668 = vmatpush1.bf16.msra.mxu1 %v22480_v21 }
 0x7a7   : > { %9669 = vmatprep.subr.bf16.mxu1 %v22488_v30 }
 0x7aa   : > { %9670 = vmatpush1.bf16.msra.mxu1 %v22486_v2 }
 0x7ab   : > { %9671 = vmatprep.subr.bf16.mxu1 %v22494_v45 }
 0x7ae   : > { %9672 = vmatpush1.bf16.msra.mxu1 %v22492_v33  ;;  %v25072_v33 = vld [vmem:[%s24696_s9 + $0x80] sm:$0xff] }
 0x7af   : > { %9673 = vmatprep.subr.bf16.mxu1 %v22500_v27  ;;  %v22501_v27 = vld [vmem:[#allocation7] ss:$16 sps:$4 sm:$0xff]  }
 0x7b2   : > { %9674 = vmatpush1.bf16.msra.mxu1 %v22498_v51 }
 0x7b3   : > { %11049 = vmatprep.subr.bf16.mxu1 %v22506_v34  ;;  %v22512_v34 = vld [vmem:[#allocation7 + $0x224] ss:$16 sps:$4 sm:$0xff]  }
 0x7d3   : > { %v8901_v52 = vpop.f32.mrb[68].mxu0  ;;  %v8942_v44 = vpop.f32.mrb[68].mxu1 }
 0x7d4   : > { %v8902_v10 = vadd.f32 %v8901_v52, %v8861_v57  ;;  %v8903_v47 = vpop.f32.mrb[69].mxu0  ;;  %v8944_v48 = vpop.f32.mrb[69].mxu1 }
 0x7d5   : > { %v8904_v49 = vadd.f32 %v8903_v47, %v8863_v60  ;;  %v8905_v62 = vpop.f32.mrb[70].mxu0  ;;  %v8946_v6 = vpop.f32.mrb[70].mxu1 }
 0x7d6   : > { %v25056_v59 = vadd.f32 %v8942_v44, %v8902_v10  ;;  %v8906_v56 = vpop.f32.mrb[71].mxu0  ;;  %v8947_v16 = vpop.f32.mrb[71].mxu1  ;;  %v9113_v44 = vld [vmem:[%s25475_s3] sm:$0xf] }
 0x7d7   : > { %v25058_v0 = vadd.f32 %v8944_v48, %v8904_v49  ;;  %v9122_v10 = vrot.slane %v9113_v44, %v24790_v54  ;;  %v9118_v47 = vrot.slane %v9113_v44, %v24795_v55  ;;  %v9126_v61 = vrot.slane %v9113_v44, %v24801_v25 }
 0x7d8   : > { %v9130_v20 = vrot.slane %v9113_v44, %v24803_v28  ;;  %v22527_v44 = vld [vmem:[#allocation7 + $0x84] ss:$16 sps:$4 sm:$0xff]  }
 0x7d9   : > { %v9135_v48 = vadd.f32 %v9118_v47, %v25056_v59  ;;  %v22525_v47 = vld [vmem:[#allocation7 + $0x80] ss:$16 sps:$4 sm:$0xff]  }
 0x813   : > { %v8983_v35 = vpop.f32.mrb[72].mxu0  ;;  %v9024_v22 = vpop.f32.mrb[72].mxu1 }
 0x814   : > { %v8984_v40 = vadd.f32 %v8983_v35, %v25044_v1  ;;  %v8985_v41 = vpop.f32.mrb[73].mxu0  ;;  %v9026_v37 = vpop.f32.mrb[73].mxu1  ;;  %v9136_v1 = vadd.f32 %v9122_v10, %v25058_v0  ;;  %v25079_v35 = vcombine.high %v25072_v33, %v25072_v33  ;;  %v22530_v10 = vld [vmem:[#allocation7 + $0x284] ss:$16 sps:$4 sm:$0xff]  }
 0x815   : > { %v8986_v38 = vadd.f32 %v8985_v41, %v25048_v42  ;;  %v8987_v39 = vpop.f32.mrb[74].mxu0  ;;  %v9028_v57 = vpop.f32.mrb[74].mxu1  ;;  %v9139_v42 = vmul.f32 0.5, %v9135_v48  ;;  %v22510_v41 = vld [vmem:[#allocation7 + $0x220] ss:$16 sps:$4 sm:$0xff]  }
 0x816   : > { %v9025_v58 = vadd.f32 %v9024_v22, %v8984_v40  ;;  %v8988_v15 = vpop.f32.mrb[75].mxu0  ;;  %v9029_v60 = vpop.f32.mrb[75].mxu1  ;;  %v9143_v49 = vmul.f32 0.5, %v9136_v1  ;;  %v25083_v22 = vcombine.high %v25075_v26, %v25075_v26  ;;  %v22507_v40 = vld [vmem:[#allocation7 + $0x20] ss:$16 sps:$4 sm:$0xff]  }
 0x817   : > { %v9027_v52 = vadd.f32 %v9026_v37, %v8986_v38  ;;  %v22515_v37 = vld [vmem:[#allocation7 + $0x44] ss:$16 sps:$4 sm:$0xff]   ;;  %v22513_v39 = vld [vmem:[#allocation7 + $0x40] ss:$16 sps:$4 sm:$0xff]  }
 0x818   : > { %24243 = vtanh.f32 %v9143_v49  ;;  %v22518_v38 = vld [vmem:[#allocation7 + $0x244] ss:$16 sps:$4 sm:$0xff]   ;;  %v22516_v57 = vld [vmem:[#allocation7 + $0x240] ss:$16 sps:$4 sm:$0xff]  }
 0x819   : > { %24245 = vtanh.f32 %v9139_v42  ;;  %v22524_v15 = vld [vmem:[#allocation7 + $0x264] ss:$16 sps:$4 sm:$0xff]   ;;  %v22519_v60 = vld [vmem:[#allocation7 + $0x60] ss:$16 sps:$4 sm:$0xff]  }
 0x81a   : > { %v22528_v1 = vld [vmem:[#allocation7 + $0x280] ss:$16 sps:$4 sm:$0xff]   ;;  %v22533_v48 = vld [vmem:[#allocation7 + $0xa4] ss:$16 sps:$4 sm:$0xff]  }
 0x81b   : > { %v22536_v49 = vld [vmem:[#allocation7 + $0x2a4] ss:$16 sps:$4 sm:$0xff]   ;;  %v22531_v42 = vld [vmem:[#allocation7 + $0xa0] ss:$16 sps:$4 sm:$0xff]  }
 0x822   : > { %v24244_v17 = vpop.eup %24243 }
 0x823   : > { %v24246_v18 = vpop.eup %24245  ;;  %v9145_v23 = vadd.f32 1.0, %v24244_v17  ;;  %v22558_v17 = vld [vmem:[#allocation7 + $0x320] ss:$16 sps:$4 sm:$0xff]  }
 0x824   : > { %v9141_v14 = vadd.f32 1.0, %v24246_v18  ;;  %v22563_v18 = vld [vmem:[#allocation7 + $0x144] ss:$16 sps:$4 sm:$0xff]  }
 0x825   : > { %v9146_v13 = vmul.f32 0.5, %v9145_v23  ;;  %v22566_v23 = vld [vmem:[#allocation7 + $0x344] ss:$16 sps:$4 sm:$0xff]  }
 0x826   : > { %v9142_v4 = vmul.f32 0.5, %v9141_v14  ;;  %v22564_v14 = vld [vmem:[#allocation7 + $0x340] ss:$16 sps:$4 sm:$0xff]  }
 0x827   : > { %v9153_v21 = vmul.f32 %v9152_v5, %v9146_v13  ;;  %v22569_v13 = vld [vmem:[#allocation7 + $0x164] ss:$16 sps:$4 sm:$0xff]   ;;  %v22570_v5 = vld [vmem:[#allocation7 + $0x360] ss:$16 sps:$4 sm:$0xff]  }
 0x853   : > { %v9065_v62 = vpop.f32.mrb[76].mxu0  ;;  %v9106_v6 = vpop.f32.mrb[76].mxu1 }
 0x854   : > { %v9066_v63 = vadd.f32 %v9065_v62, %v9025_v58  ;;  %v9067_v56 = vpop.f32.mrb[77].mxu0  ;;  %v9108_v16 = vpop.f32.mrb[77].mxu1  ;;  %v22521_v58 = vld [vmem:[#allocation7 + $0x64] ss:$16 sps:$4 sm:$0xff]   ;;  %v22534_v62 = vld [vmem:[#allocation7 + $0x2a0] ss:$16 sps:$4 sm:$0xff]  }
 0x855   : > { %v9068_v19 = vadd.f32 %v9067_v56, %v9027_v52  ;;  %v9069_v8 = vpop.f32.mrb[78].mxu0  ;;  %v9110_v36 = vpop.f32.mrb[78].mxu1  ;;  %v22522_v52 = vld [vmem:[#allocation7 + $0x260] ss:$16 sps:$4 sm:$0xff]  }
 0x856   : > { %v9107_v9 = vadd.f32 %v9106_v6, %v9066_v63  ;;  %v9070_v0 = vpop.f32.mrb[79].mxu0  ;;  %v9111_v53 = vpop.f32.mrb[79].mxu1  ;;  %v22539_v6 = vld [vmem:[#allocation7 + $0xc4] ss:$16 sps:$4 sm:$0xff]   ;;  %v22540_v56 = vld [vmem:[#allocation7 + $0x2c0] ss:$16 sps:$4 sm:$0xff]  }
 0x857   : > { %v9109_v59 = vadd.f32 %v9108_v16, %v9068_v19  ;;  %v22542_v63 = vld [vmem:[#allocation7 + $0x2c4] ss:$16 sps:$4 sm:$0xff]   ;;  %v22546_v8 = vld [vmem:[#allocation7 + $0x2e0] ss:$16 sps:$4 sm:$0xff]  }
 0x858   : > { %v9137_v7 = vadd.f32 %v9126_v61, %v9107_v9  ;;  %v22537_v61 = vld [vmem:[#allocation7 + $0xc0] ss:$16 sps:$4 sm:$0xff]   ;;  %v22545_v16 = vld [vmem:[#allocation7 + $0xe4] ss:$16 sps:$4 sm:$0xff]  }
 0x859   : > { %v9138_v12 = vadd.f32 %v9130_v20, %v9109_v59  ;;  %v22548_v19 = vld [vmem:[#allocation7 + $0x2e4] ss:$16 sps:$4 sm:$0xff]   ;;  %v22543_v20 = vld [vmem:[#allocation7 + $0xe0] ss:$16 sps:$4 sm:$0xff]  }
 0x85a   : > { %24247 = vtanh.f32 %v9137_v7  ;;  %v22551_v36 = vld [vmem:[#allocation7 + $0x104] ss:$16 sps:$4 sm:$0xff]   ;;  %v22549_v0 = vld [vmem:[#allocation7 + $0x100] ss:$16 sps:$4 sm:$0xff]  }
 0x85b   : > { %v9148_v11 = vmul.f32 0.5, %v9138_v12  ;;  %v22554_v9 = vld [vmem:[#allocation7 + $0x304] ss:$16 sps:$4 sm:$0xff]   ;;  %v22552_v53 = vld [vmem:[#allocation7 + $0x300] ss:$16 sps:$4 sm:$0xff]  }
 0x85c   : > { %v22557_v59 = vld [vmem:[#allocation7 + $0x124] ss:$16 sps:$4 sm:$0xff]   ;;  %v22555_v12 = vld [vmem:[#allocation7 + $0x120] ss:$16 sps:$4 sm:$0xff]  }
 0x85d   : > { %24249 = vtanh.f32 %v9148_v11  ;;  %v22560_v7 = vld [vmem:[#allocation7 + $0x324] ss:$16 sps:$4 sm:$0xff]   ;;  %v22561_v11 = vld [vmem:[#allocation7 + $0x140] ss:$16 sps:$4 sm:$0xff]  }
 0x864   : > { %v24248_v43 = vpop.eup %24247 }
 0x865   : > { %v9154_v29 = vmul.f32 %v24248_v43, %v9142_v4  ;;  %v22572_v4 = vld [vmem:[#allocation7 + $0x364] ss:$16 sps:$4 sm:$0xff]   ;;  %v22567_v43 = vld [vmem:[#allocation7 + $0x160] ss:$16 sps:$4 sm:$0xff]  }
 0x867   : > { %v9155_v30 = vadd.f32 %v9154_v29, %v9153_v21  ;;  %v24250_v31 = vpop.eup %24249  ;;  %v22575_v21 = vld [vmem:[#allocation7 + $0x184] ss:$16 sps:$4 sm:$0xff]  }
 0x868   : > { %v9150_v2 = vadd.f32 1.0, %v24250_v31  ;;  %v22578_v29 = vld [vmem:[#allocation7 + $0x384] ss:$16 sps:$4 sm:$0xff]   ;;  %v22576_v31 = vld [vmem:[#allocation7 + $0x380] ss:$16 sps:$4 sm:$0xff]  }
 0x869   : > { %24251 = vtanh.f32 %v9155_v30  ;;  %9158 = vst [vmem:[#allocation3] sm:$0xff] %v9155_v30  ;;  %v22573_v30 = vld [vmem:[#allocation7 + $0x180] ss:$16 sps:$4 sm:$0xff]  }
 0x86a   : > { %v9151_v24 = vmul.f32 0.5, %v9150_v2  ;;  %v22581_v2 = vld [vmem:[#allocation7 + $0x1a4] ss:$16 sps:$4 sm:$0xff]  }
 0x873   : > { %v24252_v45 = vpop.eup %24251 }
 0x874   : > { %v9157_v46 = vmul.f32 %v24252_v45, %v9151_v24  ;;  %v22584_v24 = vld [vmem:[#allocation7 + $0x3a4] ss:$16 sps:$4 sm:$0xff]   ;;  %v22579_v45 = vld [vmem:[#allocation7 + $0x1a0] ss:$16 sps:$4 sm:$0xff]  }
 0x876   : > { %v9160_v51 = vpack.c.bf16 %v9157_v46, %v9157_v46  ;;  %v22582_v46 = vld [vmem:[#allocation7 + $0x3a0] ss:$16 sps:$4 sm:$0xff]  }
 0x878   : > { %19389 = vst [vmem:[%s24707_s12 + $0xc] sm:$0xf] %v9160_v51  ;;  %9651 = vmatmul.mubr.bf16.vlgmr.msra.gmra.mrb[80].mxu0 %v9160_v51  ;;  %9692 = vmatmul.mubr.bf16.vlgmr.msra.gmra.mrb[80].mxu1 %v9160_v51  ;;  %v22585_v51 = vld [vmem:[#allocation7 + $0x1c0] ss:$16 sps:$4 sm:$0xff]  }
 0x879   : > { %11009 = vmatpush1.bf16.msra.mxu0 %v22501_v27  ;;  %11050 = vmatpush1.bf16.msra.mxu1 %v22504_v50  ;;  %v22587_v27 = vld [vmem:[#allocation7 + $0x1c4] ss:$16 sps:$4 sm:$0xff]  }
 0x87a   : > { %11010 = vmatprep.subr.bf16.mxu0 %v22509_v32  ;;  %11051 = vmatprep.subr.bf16.mxu1 %v22512_v34  ;;  %v22590_v50 = vld [vmem:[#allocation7 + $0x3c4] ss:$16 sps:$4 sm:$0xff]   ;;  %v22588_v32 = vld [vmem:[#allocation7 + $0x3c0] ss:$16 sps:$4 sm:$0xff]  }
 0x87b   : > { %11040 = vmatprep.mubr.bf16.mxu0 %v25079_v35  ;;  %11081 = vmatprep.mubr.bf16.mxu1 %v25083_v22  ;;  %v22593_v34 = vld [vmem:[#allocation7 + $0x1e4] ss:$16 sps:$4 sm:$0xff]  }
 0x87d   : > { %11011 = vmatpush1.bf16.msra.mxu0 %v22507_v40  ;;  %11052 = vmatpush1.bf16.msra.mxu1 %v22510_v41  ;;  %v22596_v40 = vld [vmem:[#allocation7 + $0x3e4] ss:$16 sps:$4 sm:$0xff]   ;;  %v22591_v41 = vld [vmem:[#allocation7 + $0x1e0] ss:$16 sps:$4 sm:$0xff]  }
 0x87e   : > { %11012 = vmatprep.subr.bf16.mxu0 %v22515_v37  ;;  %11053 = vmatprep.subr.bf16.mxu1 %v22518_v38  ;;  %v22594_v37 = vld [vmem:[#allocation7 + $0x3e0] ss:$16 sps:$4 sm:$0xff]   ;;  %v22603_v38 = vld [vmem:[#allocation7 + $0x404] ss:$16 sps:$4 sm:$0xff]  }
 0x881   : > { %11013 = vmatpush1.bf16.msra.mxu0 %v22513_v39  ;;  %11054 = vmatpush1.bf16.msra.mxu1 %v22516_v57  ;;  %v22606_v39 = vld [vmem:[#allocation7 + $0x604] ss:$16 sps:$4 sm:$0xff]   ;;  %v25090_v57 = vcombine.low %v25072_v33, %v25072_v33 }
 0x882   : > { %11014 = vmatprep.subr.bf16.mxu0 %v22521_v58  ;;  %11055 = vmatprep.subr.bf16.mxu1 %v22524_v15  ;;  %v25094_v58 = vcombine.low %v25075_v26, %v25075_v26  ;;  %v25097_v15 = vld [vmem:[%s24696_s9 + $0x90] sm:$0xff] }
 0x883   : > { %v25104_v33 = vcombine.high %v25097_v15, %v25097_v15 }
 0x885   : > { %11015 = vmatpush1.bf16.msra.mxu0 %v22519_v60  ;;  %11056 = vmatpush1.bf16.msra.mxu1 %v22522_v52  ;;  %v25100_v60 = vld [vmem:[%s24696_s9 + $0x98] sm:$0xff]  ;;  %v22601_v52 = vld [vmem:[#allocation7 + $0x400] ss:$16 sps:$4 sm:$0xff]  }
 0x886   : > { %11016 = vmatprep.subr.bf16.mxu0 %v22527_v44  ;;  %11057 = vmatprep.subr.bf16.mxu1 %v22530_v10  ;;  %v22604_v44 = vld [vmem:[#allocation7 + $0x600] ss:$16 sps:$4 sm:$0xff]   ;;  %v22609_v10 = vld [vmem:[#allocation7 + $0x424] ss:$16 sps:$4 sm:$0xff]   ;;  %v25108_v26 = vcombine.high %v25100_v60, %v25100_v60 }
 0x889   : > { %11017 = vmatpush1.bf16.msra.mxu0 %v22525_v47  ;;  %11058 = vmatpush1.bf16.msra.mxu1 %v22528_v1  ;;  %v22612_v47 = vld [vmem:[#allocation7 + $0x624] ss:$16 sps:$4 sm:$0xff]   ;;  %v22607_v1 = vld [vmem:[#allocation7 + $0x420] ss:$16 sps:$4 sm:$0xff]  }
 0x88a   : > { %11018 = vmatprep.subr.bf16.mxu0 %v22533_v48  ;;  %11059 = vmatprep.subr.bf16.mxu1 %v22536_v49  ;;  %v22610_v48 = vld [vmem:[#allocation7 + $0x620] ss:$16 sps:$4 sm:$0xff]   ;;  %v22615_v49 = vld [vmem:[#allocation7 + $0x444] ss:$16 sps:$4 sm:$0xff]  }
 0x88d   : > { %11019 = vmatpush1.bf16.msra.mxu0 %v22531_v42  ;;  %11060 = vmatpush1.bf16.msra.mxu1 %v22534_v62  ;;  %v22618_v42 = vld [vmem:[#allocation7 + $0x644] ss:$16 sps:$4 sm:$0xff]   ;;  %v22613_v62 = vld [vmem:[#allocation7 + $0x440] ss:$16 sps:$4 sm:$0xff]  }
 0x88e   : > { %11020 = vmatprep.subr.bf16.mxu0 %v22539_v6  ;;  %11061 = vmatprep.subr.bf16.mxu1 %v22542_v63  ;;  %v22616_v6 = vld [vmem:[#allocation7 + $0x640] ss:$16 sps:$4 sm:$0xff]   ;;  %v22621_v63 = vld [vmem:[#allocation7 + $0x464] ss:$16 sps:$4 sm:$0xff]  }
 0x891   : > { %11021 = vmatpush1.bf16.msra.mxu0 %v22537_v61  ;;  %11062 = vmatpush1.bf16.msra.mxu1 %v22540_v56  ;;  %v22624_v61 = vld [vmem:[#allocation7 + $0x664] ss:$16 sps:$4 sm:$0xff]   ;;  %v22619_v56 = vld [vmem:[#allocation7 + $0x460] ss:$16 sps:$4 sm:$0xff]  }
 0x892   : > { %11022 = vmatprep.subr.bf16.mxu0 %v22545_v16  ;;  %11063 = vmatprep.subr.bf16.mxu1 %v22548_v19  ;;  %v22622_v16 = vld [vmem:[#allocation7 + $0x660] ss:$16 sps:$4 sm:$0xff]   ;;  %v22627_v19 = vld [vmem:[#allocation7 + $0x484] ss:$16 sps:$4 sm:$0xff]  }
 0x895   : > { %11023 = vmatpush1.bf16.msra.mxu0 %v22543_v20  ;;  %11064 = vmatpush1.bf16.msra.mxu1 %v22546_v8  ;;  %v22630_v20 = vld [vmem:[#allocation7 + $0x684] ss:$16 sps:$4 sm:$0xff]   ;;  %v22625_v8 = vld [vmem:[#allocation7 + $0x480] ss:$16 sps:$4 sm:$0xff]  }
 0x896   : > { %11024 = vmatprep.subr.bf16.mxu0 %v22551_v36  ;;  %11065 = vmatprep.subr.bf16.mxu1 %v22554_v9  ;;  %v22628_v36 = vld [vmem:[#allocation7 + $0x680] ss:$16 sps:$4 sm:$0xff]   ;;  %v22633_v9 = vld [vmem:[#allocation7 + $0x4a4] ss:$16 sps:$4 sm:$0xff]  }
 0x899   : > { %11025 = vmatpush1.bf16.msra.mxu0 %v22549_v0  ;;  %11066 = vmatpush1.bf16.msra.mxu1 %v22552_v53  ;;  %v22636_v0 = vld [vmem:[#allocation7 + $0x6a4] ss:$16 sps:$4 sm:$0xff]   ;;  %v22631_v53 = vld [vmem:[#allocation7 + $0x4a0] ss:$16 sps:$4 sm:$0xff]  }
 0x89a   : > { %11026 = vmatprep.subr.bf16.mxu0 %v22557_v59  ;;  %11067 = vmatprep.subr.bf16.mxu1 %v22560_v7  ;;  %v22634_v59 = vld [vmem:[#allocation7 + $0x6a0] ss:$16 sps:$4 sm:$0xff]   ;;  %v22639_v7 = vld [vmem:[#allocation7 + $0x4c4] ss:$16 sps:$4 sm:$0xff]  }
 0x89d   : > { %11027 = vmatpush1.bf16.msra.mxu0 %v22555_v12  ;;  %11068 = vmatpush1.bf16.msra.mxu1 %v22558_v17  ;;  %v22642_v12 = vld [vmem:[#allocation7 + $0x6c4] ss:$16 sps:$4 sm:$0xff]   ;;  %v22637_v17 = vld [vmem:[#allocation7 + $0x4c0] ss:$16 sps:$4 sm:$0xff]  }
 0x89e   : > { %11028 = vmatprep.subr.bf16.mxu0 %v22563_v18  ;;  %11069 = vmatprep.subr.bf16.mxu1 %v22566_v23  ;;  %v22640_v18 = vld [vmem:[#allocation7 + $0x6c0] ss:$16 sps:$4 sm:$0xff]   ;;  %v22645_v23 = vld [vmem:[#allocation7 + $0x4e4] ss:$16 sps:$4 sm:$0xff]  }
 0x8a1   : > { %11029 = vmatpush1.bf16.msra.mxu0 %v22561_v11  ;;  %11070 = vmatpush1.bf16.msra.mxu1 %v22564_v14  ;;  %v22648_v11 = vld [vmem:[#allocation7 + $0x6e4] ss:$16 sps:$4 sm:$0xff]   ;;  %v22643_v14 = vld [vmem:[#allocation7 + $0x4e0] ss:$16 sps:$4 sm:$0xff]  }
 0x8a2   : > { %11030 = vmatprep.subr.bf16.mxu0 %v22569_v13  ;;  %11071 = vmatprep.subr.bf16.mxu1 %v22572_v4  ;;  %v22646_v13 = vld [vmem:[#allocation7 + $0x6e0] ss:$16 sps:$4 sm:$0xff]   ;;  %v22651_v4 = vld [vmem:[#allocation7 + $0x504] ss:$16 sps:$4 sm:$0xff]  }
 0x8a5   : > { %11031 = vmatpush1.bf16.msra.mxu0 %v22567_v43  ;;  %11072 = vmatpush1.bf16.msra.mxu1 %v22570_v5  ;;  %v22654_v43 = vld [vmem:[#allocation7 + $0x704] ss:$16 sps:$4 sm:$0xff]   ;;  %v22649_v5 = vld [vmem:[#allocation7 + $0x500] ss:$16 sps:$4 sm:$0xff]  }
 0x8a6   : > { %11032 = vmatprep.subr.bf16.mxu0 %v22575_v21  ;;  %11073 = vmatprep.subr.bf16.mxu1 %v22578_v29  ;;  %v22652_v21 = vld [vmem:[#allocation7 + $0x700] ss:$16 sps:$4 sm:$0xff]   ;;  %v22657_v29 = vld [vmem:[#allocation7 + $0x524] ss:$16 sps:$4 sm:$0xff]  }
 0x8a9   : > { %11033 = vmatpush1.bf16.msra.mxu0 %v22573_v30  ;;  %11074 = vmatpush1.bf16.msra.mxu1 %v22576_v31  ;;  %v22660_v30 = vld [vmem:[#allocation7 + $0x724] ss:$16 sps:$4 sm:$0xff]   ;;  %v22655_v31 = vld [vmem:[#allocation7 + $0x520] ss:$16 sps:$4 sm:$0xff]  }
 0x8aa   : > { %11034 = vmatprep.subr.bf16.mxu0 %v22581_v2  ;;  %11075 = vmatprep.subr.bf16.mxu1 %v22584_v24  ;;  %v22658_v2 = vld [vmem:[#allocation7 + $0x720] ss:$16 sps:$4 sm:$0xff]   ;;  %v22663_v24 = vld [vmem:[#allocation7 + $0x544] ss:$16 sps:$4 sm:$0xff]  }
 0x8ad   : > { %11035 = vmatpush1.bf16.msra.mxu0 %v22579_v45  ;;  %11076 = vmatpush1.bf16.msra.mxu1 %v22582_v46  ;;  %v22666_v45 = vld [vmem:[#allocation7 + $0x744] ss:$16 sps:$4 sm:$0xff]   ;;  %v22661_v46 = vld [vmem:[#allocation7 + $0x540] ss:$16 sps:$4 sm:$0xff]  }
 0x8ae   : > { %11036 = vmatprep.subr.bf16.mxu0 %v22587_v27  ;;  %11077 = vmatprep.subr.bf16.mxu1 %v22590_v50  ;;  %v22664_v27 = vld [vmem:[#allocation7 + $0x740] ss:$16 sps:$4 sm:$0xff]   ;;  %v22669_v50 = vld [vmem:[#allocation7 + $0x564] ss:$16 sps:$4 sm:$0xff]  }
 0x8b1   : > { %11037 = vmatpush1.bf16.msra.mxu0 %v22585_v51  ;;  %11078 = vmatpush1.bf16.msra.mxu1 %v22588_v32  ;;  %v22672_v51 = vld [vmem:[#allocation7 + $0x764] ss:$16 sps:$4 sm:$0xff]   ;;  %v22667_v32 = vld [vmem:[#allocation7 + $0x560] ss:$16 sps:$4 sm:$0xff]  }
 0x8b2   : > { %11038 = vmatprep.subr.bf16.mxu0 %v22593_v34  ;;  %11079 = vmatprep.subr.bf16.mxu1 %v22596_v40  ;;  %v22670_v34 = vld [vmem:[#allocation7 + $0x760] ss:$16 sps:$4 sm:$0xff]   ;;  %v22675_v40 = vld [vmem:[#allocation7 + $0x584] ss:$16 sps:$4 sm:$0xff]  }
 0x8b5   : > { %11039 = vmatpush1.bf16.msra.mxu0 %v22591_v41  ;;  %11080 = vmatpush1.bf16.msra.mxu1 %v22594_v37  ;;  %v22678_v41 = vld [vmem:[#allocation7 + $0x784] ss:$16 sps:$4 sm:$0xff]   ;;  %v22673_v37 = vld [vmem:[#allocation7 + $0x580] ss:$16 sps:$4 sm:$0xff]  }
 0x8b6   : > { %11090 = vmatprep.subr.bf16.mxu0 %v22603_v38  ;;  %11131 = vmatprep.subr.bf16.mxu1 %v22606_v39  ;;  %v22676_v38 = vld [vmem:[#allocation7 + $0x780] ss:$16 sps:$4 sm:$0xff]   ;;  %v22681_v39 = vld [vmem:[#allocation7 + $0x5a4] ss:$16 sps:$4 sm:$0xff]  }
 0x8b8   : > { %11041 = vmatmul.mubr.bf16.vlgmr.msra.gmra.mrb[84].mxu0 %v25090_v57  ;;  %11082 = vmatmul.mubr.bf16.vlgmr.msra.gmra.mrb[84].mxu1 %v25094_v58 }
 0x8b9   : > { %11091 = vmatpush1.bf16.msra.mxu0 %v22601_v52  ;;  %11132 = vmatpush1.bf16.msra.mxu1 %v22604_v44  ;;  %v22684_v52 = vld [vmem:[#allocation7 + $0x7a4] ss:$16 sps:$4 sm:$0xff]   ;;  %v22679_v44 = vld [vmem:[#allocation7 + $0x5a0] ss:$16 sps:$4 sm:$0xff]  }
 0x8ba   : > { %11092 = vmatprep.subr.bf16.mxu0 %v22609_v10  ;;  %11133 = vmatprep.subr.bf16.mxu1 %v22612_v47  ;;  %v22682_v10 = vld [vmem:[#allocation7 + $0x7a0] ss:$16 sps:$4 sm:$0xff]   ;;  %v22687_v47 = vld [vmem:[#allocation7 + $0x5c4] ss:$16 sps:$4 sm:$0xff]  }
 0x8bb   : > { %11122 = vmatprep.mubr.bf16.mxu0 %v25104_v33  ;;  %11163 = vmatprep.mubr.bf16.mxu1 %v25108_v26 }
 0x8bd   : > { %11093 = vmatpush1.bf16.msra.mxu0 %v22607_v1  ;;  %11134 = vmatpush1.bf16.msra.mxu1 %v22610_v48  ;;  %v22690_v1 = vld [vmem:[#allocation7 + $0x7c4] ss:$16 sps:$4 sm:$0xff]   ;;  %v22685_v48 = vld [vmem:[#allocation7 + $0x5c0] ss:$16 sps:$4 sm:$0xff]  }
 0x8be   : > { %11094 = vmatprep.subr.bf16.mxu0 %v22615_v49  ;;  %11135 = vmatprep.subr.bf16.mxu1 %v22618_v42  ;;  %v22688_v49 = vld [vmem:[#allocation7 + $0x7c0] ss:$16 sps:$4 sm:$0xff]   ;;  %v22693_v42 = vld [vmem:[#allocation7 + $0x5e4] ss:$16 sps:$4 sm:$0xff]  }
 0x8c1   : > { %11095 = vmatpush1.bf16.msra.mxu0 %v22613_v62  ;;  %11136 = vmatpush1.bf16.msra.mxu1 %v22616_v6  ;;  %v22696_v62 = vld [vmem:[#allocation7 + $0x7e4] ss:$16 sps:$4 sm:$0xff]   ;;  %v22691_v6 = vld [vmem:[#allocation7 + $0x5e0] ss:$16 sps:$4 sm:$0xff]  }
 0x8c2   : > { %11096 = vmatprep.subr.bf16.mxu0 %v22621_v63  ;;  %11137 = vmatprep.subr.bf16.mxu1 %v22624_v61  ;;  %v22694_v63 = vld [vmem:[#allocation7 + $0x7e0] ss:$16 sps:$4 sm:$0xff]   ;;  %v22703_v61 = vld [vmem:[#allocation7 + $0xc] ss:$16 sps:$4 sm:$0xff]  }
 0x8c5   : > { %11097 = vmatpush1.bf16.msra.mxu0 %v22619_v56  ;;  %11138 = vmatpush1.bf16.msra.mxu1 %v22622_v16  ;;  %v22706_v56 = vld [vmem:[#allocation7 + $0x20c] ss:$16 sps:$4 sm:$0xff]   ;;  %v25116_v16 = vcombine.low %v25097_v15, %v25097_v15  ;;  %v22707_v15 = vld [vmem:[#allocation7 + $0x28] ss:$16 sps:$4 sm:$0xff]  }
 0x8c6   : > { %11098 = vmatprep.subr.bf16.mxu0 %v22627_v19  ;;  %11139 = vmatprep.subr.bf16.mxu1 %v22630_v20  ;;  %v25120_v19 = vcombine.low %v25100_v60, %v25100_v60  ;;  %v22701_v20 = vld [vmem:[#allocation7 + $0x8] ss:$16 sps:$4 sm:$0xff]   ;;  %v22715_v60 = vld [vmem:[#allocation7 + $0x4c] ss:$16 sps:$4 sm:$0xff]  }
 0x8c9   : > { %11099 = vmatpush1.bf16.msra.mxu0 %v22625_v8  ;;  %11140 = vmatpush1.bf16.msra.mxu1 %v22628_v36  ;;  %v22704_v8 = vld [vmem:[#allocation7 + $0x208] ss:$16 sps:$4 sm:$0xff]   ;;  %v22709_v36 = vld [vmem:[#allocation7 + $0x2c] ss:$16 sps:$4 sm:$0xff]  }
 0x8ca   : > { %11100 = vmatprep.subr.bf16.mxu0 %v22633_v9  ;;  %11141 = vmatprep.subr.bf16.mxu1 %v22636_v0  ;;  %v22712_v9 = vld [vmem:[#allocation7 + $0x22c] ss:$16 sps:$4 sm:$0xff]   ;;  %v22710_v0 = vld [vmem:[#allocation7 + $0x228] ss:$16 sps:$4 sm:$0xff]  }
 0x8cd   : > { %11101 = vmatpush1.bf16.msra.mxu0 %v22631_v53  ;;  %11142 = vmatpush1.bf16.msra.mxu1 %v22634_v59  ;;  %v22718_v53 = vld [vmem:[#allocation7 + $0x24c] ss:$16 sps:$4 sm:$0xff]   ;;  %v22713_v59 = vld [vmem:[#allocation7 + $0x48] ss:$16 sps:$4 sm:$0xff]  }
 0x8ce   : > { %11102 = vmatprep.subr.bf16.mxu0 %v22639_v7  ;;  %11143 = vmatprep.subr.bf16.mxu1 %v22642_v12  ;;  %v22716_v7 = vld [vmem:[#allocation7 + $0x248] ss:$16 sps:$4 sm:$0xff]   ;;  %v22721_v12 = vld [vmem:[#allocation7 + $0x6c] ss:$16 sps:$4 sm:$0xff]  }
 0x8d1   : > { %11103 = vmatpush1.bf16.msra.mxu0 %v22637_v17  ;;  %11144 = vmatpush1.bf16.msra.mxu1 %v22640_v18  ;;  %v22724_v17 = vld [vmem:[#allocation7 + $0x26c] ss:$16 sps:$4 sm:$0xff]   ;;  %v22719_v18 = vld [vmem:[#allocation7 + $0x68] ss:$16 sps:$4 sm:$0xff]  }
 0x8d2   : > { %11104 = vmatprep.subr.bf16.mxu0 %v22645_v23  ;;  %11145 = vmatprep.subr.bf16.mxu1 %v22648_v11  ;;  %v22722_v23 = vld [vmem:[#allocation7 + $0x268] ss:$16 sps:$4 sm:$0xff]   ;;  %v22727_v11 = vld [vmem:[#allocation7 + $0x8c] ss:$16 sps:$4 sm:$0xff]  }
 0x8d5   : > { %11105 = vmatpush1.bf16.msra.mxu0 %v22643_v14  ;;  %11146 = vmatpush1.bf16.msra.mxu1 %v22646_v13  ;;  %v22730_v14 = vld [vmem:[#allocation7 + $0x28c] ss:$16 sps:$4 sm:$0xff]  }
 0x8d6   : > { %11106 = vmatprep.subr.bf16.mxu0 %v22651_v4  ;;  %11147 = vmatprep.subr.bf16.mxu1 %v22654_v43  ;;  %v22733_v13 = vld [vmem:[#allocation7 + $0xac] ss:$16 sps:$4 sm:$0xff]   ;;  %v22731_v43 = vld [vmem:[#allocation7 + $0xa8] ss:$16 sps:$4 sm:$0xff]  }
 0x8d7   : > { %v22736_v4 = vld [vmem:[#allocation7 + $0x2ac] ss:$16 sps:$4 sm:$0xff]  }
 0x8d9   : > { %11107 = vmatpush1.bf16.msra.mxu0 %v22649_v5  ;;  %11148 = vmatpush1.bf16.msra.mxu1 %v22652_v21  ;;  %v22734_v5 = vld [vmem:[#allocation7 + $0x2a8] ss:$16 sps:$4 sm:$0xff]   ;;  %v22739_v21 = vld [vmem:[#allocation7 + $0xcc] ss:$16 sps:$4 sm:$0xff]  }
 0x8da   : > { %11108 = vmatprep.subr.bf16.mxu0 %v22657_v29  ;;  %11149 = vmatprep.subr.bf16.mxu1 %v22660_v30  ;;  %v22742_v29 = vld [vmem:[#allocation7 + $0x2cc] ss:$16 sps:$4 sm:$0xff]   ;;  %v22737_v30 = vld [vmem:[#allocation7 + $0xc8] ss:$16 sps:$4 sm:$0xff]  }
 0x8dd   : > { %11109 = vmatpush1.bf16.msra.mxu0 %v22655_v31  ;;  %11150 = vmatpush1.bf16.msra.mxu1 %v22658_v2  ;;  %v22740_v31 = vld [vmem:[#allocation7 + $0x2c8] ss:$16 sps:$4 sm:$0xff]   ;;  %v22745_v2 = vld [vmem:[#allocation7 + $0xec] ss:$16 sps:$4 sm:$0xff]  }
 0x8de   : > { %11110 = vmatprep.subr.bf16.mxu0 %v22663_v24  ;;  %11151 = vmatprep.subr.bf16.mxu1 %v22666_v45  ;;  %v22748_v24 = vld [vmem:[#allocation7 + $0x2ec] ss:$16 sps:$4 sm:$0xff]   ;;  %v22743_v45 = vld [vmem:[#allocation7 + $0xe8] ss:$16 sps:$4 sm:$0xff]  }
 0x8e1   : > { %11111 = vmatpush1.bf16.msra.mxu0 %v22661_v46  ;;  %11152 = vmatpush1.bf16.msra.mxu1 %v22664_v27  ;;  %v22746_v46 = vld [vmem:[#allocation7 + $0x2e8] ss:$16 sps:$4 sm:$0xff]   ;;  %v22751_v27 = vld [vmem:[#allocation7 + $0x10c] ss:$16 sps:$4 sm:$0xff]  }
 0x8e2   : > { %11112 = vmatprep.subr.bf16.mxu0 %v22669_v50  ;;  %11153 = vmatprep.subr.bf16.mxu1 %v22672_v51  ;;  %v22754_v50 = vld [vmem:[#allocation7 + $0x30c] ss:$16 sps:$4 sm:$0xff]   ;;  %v22749_v51 = vld [vmem:[#allocation7 + $0x108] ss:$16 sps:$4 sm:$0xff]  }
 0x8e5   : > { %11113 = vmatpush1.bf16.msra.mxu0 %v22667_v32  ;;  %11154 = vmatpush1.bf16.msra.mxu1 %v22670_v34  ;;  %v22752_v32 = vld [vmem:[#allocation7 + $0x308] ss:$16 sps:$4 sm:$0xff]   ;;  %v22757_v34 = vld [vmem:[#allocation7 + $0x12c] ss:$16 sps:$4 sm:$0xff]  }
 0x8e6   : > { %11114 = vmatprep.subr.bf16.mxu0 %v22675_v40  ;;  %11155 = vmatprep.subr.bf16.mxu1 %v22678_v41  ;;  %v22760_v40 = vld [vmem:[#allocation7 + $0x32c] ss:$16 sps:$4 sm:$0xff]   ;;  %v22755_v41 = vld [vmem:[#allocation7 + $0x128] ss:$16 sps:$4 sm:$0xff]  }
 0x8e9   : > { %11115 = vmatpush1.bf16.msra.mxu0 %v22673_v37  ;;  %11156 = vmatpush1.bf16.msra.mxu1 %v22676_v38  ;;  %v22758_v37 = vld [vmem:[#allocation7 + $0x328] ss:$16 sps:$4 sm:$0xff]   ;;  %v22763_v38 = vld [vmem:[#allocation7 + $0x14c] ss:$16 sps:$4 sm:$0xff]  }
 0x8ea   : > { %11116 = vmatprep.subr.bf16.mxu0 %v22681_v39  ;;  %11157 = vmatprep.subr.bf16.mxu1 %v22684_v52  ;;  %v22766_v39 = vld [vmem:[#allocation7 + $0x34c] ss:$16 sps:$4 sm:$0xff]   ;;  %v22761_v52 = vld [vmem:[#allocation7 + $0x148] ss:$16 sps:$4 sm:$0xff]  }
 0x8ed   : > { %11117 = vmatpush1.bf16.msra.mxu0 %v22679_v44  ;;  %11158 = vmatpush1.bf16.msra.mxu1 %v22682_v10  ;;  %v22764_v44 = vld [vmem:[#allocation7 + $0x348] ss:$16 sps:$4 sm:$0xff]   ;;  %v22769_v10 = vld [vmem:[#allocation7 + $0x16c] ss:$16 sps:$4 sm:$0xff]  }
 0x8ee   : > { %11118 = vmatprep.subr.bf16.mxu0 %v22687_v47  ;;  %11159 = vmatprep.subr.bf16.mxu1 %v22690_v1  ;;  %v22772_v47 = vld [vmem:[#allocation7 + $0x36c] ss:$16 sps:$4 sm:$0xff]   ;;  %v22767_v1 = vld [vmem:[#allocation7 + $0x168] ss:$16 sps:$4 sm:$0xff]  }
 0x8f1   : > { %11119 = vmatpush1.bf16.msra.mxu0 %v22685_v48  ;;  %11160 = vmatpush1.bf16.msra.mxu1 %v22688_v49  ;;  %v22770_v48 = vld [vmem:[#allocation7 + $0x368] ss:$16 sps:$4 sm:$0xff]   ;;  %v22775_v49 = vld [vmem:[#allocation7 + $0x18c] ss:$16 sps:$4 sm:$0xff]  }
 0x8f2   : > { %11120 = vmatprep.subr.bf16.mxu0 %v22693_v42  ;;  %11161 = vmatprep.subr.bf16.mxu1 %v22696_v62  ;;  %v22778_v42 = vld [vmem:[#allocation7 + $0x38c] ss:$16 sps:$4 sm:$0xff]   ;;  %v22773_v62 = vld [vmem:[#allocation7 + $0x188] ss:$16 sps:$4 sm:$0xff]  }
 0x8f5   : > { %11121 = vmatpush1.bf16.msra.mxu0 %v22691_v6  ;;  %11162 = vmatpush1.bf16.msra.mxu1 %v22694_v63  ;;  %v22776_v6 = vld [vmem:[#allocation7 + $0x388] ss:$16 sps:$4 sm:$0xff]   ;;  %v22781_v63 = vld [vmem:[#allocation7 + $0x1ac] ss:$16 sps:$4 sm:$0xff]  }
 0x8f6   : > { %11172 = vmatprep.subr.bf16.mxu0 %v22703_v61  ;;  %11213 = vmatprep.subr.bf16.mxu1 %v22706_v56  ;;  %v22784_v61 = vld [vmem:[#allocation7 + $0x3ac] ss:$16 sps:$4 sm:$0xff]   ;;  %v22779_v56 = vld [vmem:[#allocation7 + $0x1a8] ss:$16 sps:$4 sm:$0xff]  }
 0x8f8   : > { %11123 = vmatmul.mubr.bf16.vlgmr.msra.gmra.mrb[88].mxu0 %v25116_v16  ;;  %11164 = vmatmul.mubr.bf16.vlgmr.msra.gmra.mrb[88].mxu1 %v25120_v19 }
 0x8f9   : > { %11173 = vmatpush1.bf16.msra.mxu0 %v22701_v20  ;;  %11214 = vmatpush1.bf16.msra.mxu1 %v22704_v8  ;;  %v22782_v20 = vld [vmem:[#allocation7 + $0x3a8] ss:$16 sps:$4 sm:$0xff]   ;;  %v22787_v8 = vld [vmem:[#allocation7 + $0x1cc] ss:$16 sps:$4 sm:$0xff]  }
 0x8fa   : > { %11174 = vmatprep.subr.bf16.mxu0 %v22709_v36  ;;  %11215 = vmatprep.subr.bf16.mxu1 %v22712_v9  ;;  %v22790_v36 = vld [vmem:[#allocation7 + $0x3cc] ss:$16 sps:$4 sm:$0xff]   ;;  %v22785_v9 = vld [vmem:[#allocation7 + $0x1c8] ss:$16 sps:$4 sm:$0xff]  }
 0x8fb   : > { %11204 = vmatprep.mubr.bf16.mxu0 %v25079_v35  ;;  %11245 = vmatprep.mubr.bf16.mxu1 %v25083_v22  ;;  %v22725_v35 = vld [vmem:[#allocation7 + $0x88] ss:$16 sps:$4 sm:$0xff]  }
 0x8fc   : > { %v22728_v22 = vld [vmem:[#allocation7 + $0x288] ss:$16 sps:$4 sm:$0xff]  }
 0x8fd   : > { %11175 = vmatpush1.bf16.msra.mxu0 %v22707_v15  ;;  %11216 = vmatpush1.bf16.msra.mxu1 %v22710_v0  ;;  %v22788_v15 = vld [vmem:[#allocation7 + $0x3c8] ss:$16 sps:$4 sm:$0xff]   ;;  %v22793_v0 = vld [vmem:[#allocation7 + $0x1ec] ss:$16 sps:$4 sm:$0xff]  }
 0x8fe   : > { %11176 = vmatprep.subr.bf16.mxu0 %v22715_v60  ;;  %11217 = vmatprep.subr.bf16.mxu1 %v22718_v53  ;;  %v22796_v60 = vld [vmem:[#allocation7 + $0x3ec] ss:$16 sps:$4 sm:$0xff]   ;;  %v22791_v53 = vld [vmem:[#allocation7 + $0x1e8] ss:$16 sps:$4 sm:$0xff]  }
 0x901   : > { %11177 = vmatpush1.bf16.msra.mxu0 %v22713_v59  ;;  %11218 = vmatpush1.bf16.msra.mxu1 %v22716_v7  ;;  %v22794_v59 = vld [vmem:[#allocation7 + $0x3e8] ss:$16 sps:$4 sm:$0xff]   ;;  %v22799_v7 = vld [vmem:[#allocation7 + $0x40c] ss:$16 sps:$4 sm:$0xff]  }
 0x902   : > { %11178 = vmatprep.subr.bf16.mxu0 %v22721_v12  ;;  %11219 = vmatprep.subr.bf16.mxu1 %v22724_v17  ;;  %v22802_v12 = vld [vmem:[#allocation7 + $0x60c] ss:$16 sps:$4 sm:$0xff]   ;;  %v22797_v17 = vld [vmem:[#allocation7 + $0x408] ss:$16 sps:$4 sm:$0xff]  }
 0x905   : > { %11179 = vmatpush1.bf16.msra.mxu0 %v22719_v18  ;;  %11220 = vmatpush1.bf16.msra.mxu1 %v22722_v23  ;;  %v22800_v18 = vld [vmem:[#allocation7 + $0x608] ss:$16 sps:$4 sm:$0xff]   ;;  %v22805_v23 = vld [vmem:[#allocation7 + $0x42c] ss:$16 sps:$4 sm:$0xff]  }
 0x906   : > { %11180 = vmatprep.subr.bf16.mxu0 %v22727_v11  ;;  %11221 = vmatprep.subr.bf16.mxu1 %v22730_v14  ;;  %v22808_v11 = vld [vmem:[#allocation7 + $0x62c] ss:$16 sps:$4 sm:$0xff]   ;;  %v22803_v14 = vld [vmem:[#allocation7 + $0x428] ss:$16 sps:$4 sm:$0xff]  }
 0x909   : > { %11181 = vmatpush1.bf16.msra.mxu0 %v22725_v35  ;;  %11222 = vmatpush1.bf16.msra.mxu1 %v22728_v22  ;;  %v22806_v35 = vld [vmem:[#allocation7 + $0x628] ss:$16 sps:$4 sm:$0xff]   ;;  %v22811_v22 = vld [vmem:[#allocation7 + $0x44c] ss:$16 sps:$4 sm:$0xff]  }
 0x90a   : > { %11182 = vmatprep.subr.bf16.mxu0 %v22733_v13  ;;  %11223 = vmatprep.subr.bf16.mxu1 %v22736_v4  ;;  %v22814_v13 = vld [vmem:[#allocation7 + $0x64c] ss:$16 sps:$4 sm:$0xff]   ;;  %v22809_v4 = vld [vmem:[#allocation7 + $0x448] ss:$16 sps:$4 sm:$0xff]  }
 0x90d   : > { %11183 = vmatpush1.bf16.msra.mxu0 %v22731_v43  ;;  %11224 = vmatpush1.bf16.msra.mxu1 %v22734_v5  ;;  %v22812_v43 = vld [vmem:[#allocation7 + $0x648] ss:$16 sps:$4 sm:$0xff]  }
 0x90e   : > { %11184 = vmatprep.subr.bf16.mxu0 %v22739_v21  ;;  %11225 = vmatprep.subr.bf16.mxu1 %v22742_v29  ;;  %v22815_v5 = vld [vmem:[#allocation7 + $0x468] ss:$16 sps:$4 sm:$0xff]   ;;  %v22823_v29 = vld [vmem:[#allocation7 + $0x48c] ss:$16 sps:$4 sm:$0xff]  }
 0x90f   : > { %v22818_v21 = vld [vmem:[#allocation7 + $0x668] ss:$16 sps:$4 sm:$0xff]  }
 0x911   : > { %11185 = vmatpush1.bf16.msra.mxu0 %v22737_v30  ;;  %11226 = vmatpush1.bf16.msra.mxu1 %v22740_v31  ;;  %v22826_v30 = vld [vmem:[#allocation7 + $0x68c] ss:$16 sps:$4 sm:$0xff]  }
 0x912   : > { %11186 = vmatprep.subr.bf16.mxu0 %v22745_v2  ;;  %11227 = vmatprep.subr.bf16.mxu1 %v22748_v24  ;;  %v22829_v31 = vld [vmem:[#allocation7 + $0x4ac] ss:$16 sps:$4 sm:$0xff]   ;;  %v22827_v24 = vld [vmem:[#allocation7 + $0x4a8] ss:$16 sps:$4 sm:$0xff]  }
 0x913   : > { %v22832_v2 = vld [vmem:[#allocation7 + $0x6ac] ss:$16 sps:$4 sm:$0xff]  }
 0x915   : > { %11187 = vmatpush1.bf16.msra.mxu0 %v22743_v45  ;;  %11228 = vmatpush1.bf16.msra.mxu1 %v22746_v46  ;;  %v22830_v45 = vld [vmem:[#allocation7 + $0x6a8] ss:$16 sps:$4 sm:$0xff]   ;;  %v22835_v46 = vld [vmem:[#allocation7 + $0x4cc] ss:$16 sps:$4 sm:$0xff]  }
 0x916   : > { %11188 = vmatprep.subr.bf16.mxu0 %v22751_v27  ;;  %11229 = vmatprep.subr.bf16.mxu1 %v22754_v50  ;;  %v22838_v27 = vld [vmem:[#allocation7 + $0x6cc] ss:$16 sps:$4 sm:$0xff]  }
 0x919   : > { %11189 = vmatpush1.bf16.msra.mxu0 %v22749_v51  ;;  %11230 = vmatpush1.bf16.msra.mxu1 %v22752_v32 }
 0x91a   : > { %11190 = vmatprep.subr.bf16.mxu0 %v22757_v34  ;;  %11231 = vmatprep.subr.bf16.mxu1 %v22760_v40 }
 0x91d   : > { %11191 = vmatpush1.bf16.msra.mxu0 %v22755_v41  ;;  %11232 = vmatpush1.bf16.msra.mxu1 %v22758_v37  ;;  %v22833_v37 = vld [vmem:[#allocation7 + $0x4c8] ss:$16 sps:$4 sm:$0xff]  }
 0x91e   : > { %11192 = vmatprep.subr.bf16.mxu0 %v22763_v38  ;;  %11233 = vmatprep.subr.bf16.mxu1 %v22766_v39  ;;  %v22836_v38 = vld [vmem:[#allocation7 + $0x6c8] ss:$16 sps:$4 sm:$0xff]  }
 0x921   : > { %11193 = vmatpush1.bf16.msra.mxu0 %v22761_v52  ;;  %11234 = vmatpush1.bf16.msra.mxu1 %v22764_v44  ;;  %v22841_v44 = vld [vmem:[#allocation7 + $0x4ec] ss:$16 sps:$4 sm:$0xff]  }
 0x922   : > { %11194 = vmatprep.subr.bf16.mxu0 %v22769_v10  ;;  %11235 = vmatprep.subr.bf16.mxu1 %v22772_v47  ;;  %v22844_v10 = vld [vmem:[#allocation7 + $0x6ec] ss:$16 sps:$4 sm:$0xff]   ;;  %v22839_v47 = vld [vmem:[#allocation7 + $0x4e8] ss:$16 sps:$4 sm:$0xff]  }
 0x925   : > { %11195 = vmatpush1.bf16.msra.mxu0 %v22767_v1  ;;  %11236 = vmatpush1.bf16.msra.mxu1 %v22770_v48  ;;  %v22842_v1 = vld [vmem:[#allocation7 + $0x6e8] ss:$16 sps:$4 sm:$0xff]   ;;  %v22847_v48 = vld [vmem:[#allocation7 + $0x50c] ss:$16 sps:$4 sm:$0xff]  }
 0x926   : > { %11196 = vmatprep.subr.bf16.mxu0 %v22775_v49  ;;  %11237 = vmatprep.subr.bf16.mxu1 %v22778_v42  ;;  %v22850_v49 = vld [vmem:[#allocation7 + $0x70c] ss:$16 sps:$4 sm:$0xff]   ;;  %v22845_v42 = vld [vmem:[#allocation7 + $0x508] ss:$16 sps:$4 sm:$0xff]  }
 0x929   : > { %11197 = vmatpush1.bf16.msra.mxu0 %v22773_v62  ;;  %11238 = vmatpush1.bf16.msra.mxu1 %v22776_v6  ;;  %v22848_v62 = vld [vmem:[#allocation7 + $0x708] ss:$16 sps:$4 sm:$0xff]   ;;  %v22853_v6 = vld [vmem:[#allocation7 + $0x52c] ss:$16 sps:$4 sm:$0xff]  }
 0x92a   : > { %11198 = vmatprep.subr.bf16.mxu0 %v22781_v63  ;;  %11239 = vmatprep.subr.bf16.mxu1 %v22784_v61  ;;  %v22856_v63 = vld [vmem:[#allocation7 + $0x72c] ss:$16 sps:$4 sm:$0xff]   ;;  %v22851_v61 = vld [vmem:[#allocation7 + $0x528] ss:$16 sps:$4 sm:$0xff]  }
 0x92d   : > { %11199 = vmatpush1.bf16.msra.mxu0 %v22779_v56  ;;  %11240 = vmatpush1.bf16.msra.mxu1 %v22782_v20  ;;  %v22854_v56 = vld [vmem:[#allocation7 + $0x728] ss:$16 sps:$4 sm:$0xff]   ;;  %v22859_v20 = vld [vmem:[#allocation7 + $0x54c] ss:$16 sps:$4 sm:$0xff]  }
 0x92e   : > { %11200 = vmatprep.subr.bf16.mxu0 %v22787_v8  ;;  %11241 = vmatprep.subr.bf16.mxu1 %v22790_v36  ;;  %v22862_v8 = vld [vmem:[#allocation7 + $0x74c] ss:$16 sps:$4 sm:$0xff]   ;;  %v22857_v36 = vld [vmem:[#allocation7 + $0x548] ss:$16 sps:$4 sm:$0xff]  }
 0x931   : > { %11201 = vmatpush1.bf16.msra.mxu0 %v22785_v9  ;;  %11242 = vmatpush1.bf16.msra.mxu1 %v22788_v15  ;;  %v22860_v9 = vld [vmem:[#allocation7 + $0x748] ss:$16 sps:$4 sm:$0xff]   ;;  %v22865_v15 = vld [vmem:[#allocation7 + $0x56c] ss:$16 sps:$4 sm:$0xff]  }
 0x932   : > { %11202 = vmatprep.subr.bf16.mxu0 %v22793_v0  ;;  %11243 = vmatprep.subr.bf16.mxu1 %v22796_v60  ;;  %v22868_v0 = vld [vmem:[#allocation7 + $0x76c] ss:$16 sps:$4 sm:$0xff]   ;;  %v22863_v60 = vld [vmem:[#allocation7 + $0x568] ss:$16 sps:$4 sm:$0xff]  }
 0x935   : > { %11203 = vmatpush1.bf16.msra.mxu0 %v22791_v53  ;;  %11244 = vmatpush1.bf16.msra.mxu1 %v22794_v59  ;;  %v22866_v53 = vld [vmem:[#allocation7 + $0x768] ss:$16 sps:$4 sm:$0xff]   ;;  %v22871_v59 = vld [vmem:[#allocation7 + $0x58c] ss:$16 sps:$4 sm:$0xff]  }
 0x936   : > { %11254 = vmatprep.subr.bf16.mxu0 %v22799_v7  ;;  %11295 = vmatprep.subr.bf16.mxu1 %v22802_v12  ;;  %v22874_v7 = vld [vmem:[#allocation7 + $0x78c] ss:$16 sps:$4 sm:$0xff]   ;;  %v22869_v12 = vld [vmem:[#allocation7 + $0x588] ss:$16 sps:$4 sm:$0xff]  }
 0x938   : > { %11205 = vmatmul.mubr.bf16.vlgmr.msra.gmra.mrb[92].mxu0 %v25090_v57  ;;  %11246 = vmatmul.mubr.bf16.vlgmr.msra.gmra.mrb[92].mxu1 %v25094_v58  ;;  %v22817_v57 = vld [vmem:[#allocation7 + $0x46c] ss:$16 sps:$4 sm:$0xff]  }
 0x939   : > { %11255 = vmatpush1.bf16.msra.mxu0 %v22797_v17  ;;  %11296 = vmatpush1.bf16.msra.mxu1 %v22800_v18  ;;  %v22820_v58 = vld [vmem:[#allocation7 + $0x66c] ss:$16 sps:$4 sm:$0xff]   ;;  %v22872_v17 = vld [vmem:[#allocation7 + $0x788] ss:$16 sps:$4 sm:$0xff]  }
 0x93a   : > { %11256 = vmatprep.subr.bf16.mxu0 %v22805_v23  ;;  %11297 = vmatprep.subr.bf16.mxu1 %v22808_v11  ;;  %v22877_v18 = vld [vmem:[#allocation7 + $0x5ac] ss:$16 sps:$4 sm:$0xff]   ;;  %v22875_v11 = vld [vmem:[#allocation7 + $0x5a8] ss:$16 sps:$4 sm:$0xff]  }
 0x93b   : > { %11286 = vmatprep.mubr.bf16.mxu0 %v25104_v33  ;;  %11327 = vmatprep.mubr.bf16.mxu1 %v25108_v26  ;;  %v22821_v33 = vld [vmem:[#allocation7 + $0x488] ss:$16 sps:$4 sm:$0xff]   ;;  %v22880_v23 = vld [vmem:[#allocation7 + $0x7ac] ss:$16 sps:$4 sm:$0xff]  }
 0x93c   : > { %v22824_v26 = vld [vmem:[#allocation7 + $0x688] ss:$16 sps:$4 sm:$0xff]  }
 0x93d   : > { %11257 = vmatpush1.bf16.msra.mxu0 %v22803_v14  ;;  %11298 = vmatpush1.bf16.msra.mxu1 %v22806_v35  ;;  %v22878_v14 = vld [vmem:[#allocation7 + $0x7a8] ss:$16 sps:$4 sm:$0xff]   ;;  %v22883_v35 = vld [vmem:[#allocation7 + $0x5cc] ss:$16 sps:$4 sm:$0xff]  }
 0x93e   : > { %11258 = vmatprep.subr.bf16.mxu0 %v22811_v22  ;;  %11299 = vmatprep.subr.bf16.mxu1 %v22814_v13  ;;  %v22886_v22 = vld [vmem:[#allocation7 + $0x7cc] ss:$16 sps:$4 sm:$0xff]   ;;  %v22881_v13 = vld [vmem:[#allocation7 + $0x5c8] ss:$16 sps:$4 sm:$0xff]  }
 0x941   : > { %11259 = vmatpush1.bf16.msra.mxu0 %v22809_v4  ;;  %11300 = vmatpush1.bf16.msra.mxu1 %v22812_v43  ;;  %v22884_v4 = vld [vmem:[#allocation7 + $0x7c8] ss:$16 sps:$4 sm:$0xff]   ;;  %v22889_v43 = vld [vmem:[#allocation7 + $0x5ec] ss:$16 sps:$4 sm:$0xff]  }
 0x942   : > { %11260 = vmatprep.subr.bf16.mxu0 %v22817_v57  ;;  %11301 = vmatprep.subr.bf16.mxu1 %v22820_v58  ;;  %v22892_v57 = vld [vmem:[#allocation7 + $0x7ec] ss:$16 sps:$4 sm:$0xff]   ;;  %v22887_v58 = vld [vmem:[#allocation7 + $0x5e8] ss:$16 sps:$4 sm:$0xff]  }
 0x945   : > { %11261 = vmatpush1.bf16.msra.mxu0 %v22815_v5  ;;  %11302 = vmatpush1.bf16.msra.mxu1 %v22818_v21  ;;  %v22890_v5 = vld [vmem:[#allocation7 + $0x7e8] ss:$16 sps:$4 sm:$0xff]  }
 0x946   : > { %11262 = vmatprep.subr.bf16.mxu0 %v22823_v29  ;;  %11303 = vmatprep.subr.bf16.mxu1 %v22826_v30 }
 0x949   : > { %11263 = vmatpush1.bf16.msra.mxu0 %v22821_v33  ;;  %11304 = vmatpush1.bf16.msra.mxu1 %v22824_v26 }
 0x94a   : > { %11264 = vmatprep.subr.bf16.mxu0 %v22829_v31  ;;  %11305 = vmatprep.subr.bf16.mxu1 %v22832_v2 }
 0x94b   : > { %v25130_v50 = vpop.f32.mrb[80].mxu0  ;;  %v25132_v51 = vpop.f32.mrb[80].mxu1 }
 0x94c   : > { %v25134_v32 = vpop.f32.mrb[81].mxu0  ;;  %v25136_v34 = vpop.f32.mrb[81].mxu1 }
 0x94d   : > { %11265 = vmatpush1.bf16.msra.mxu0 %v22827_v24  ;;  %11306 = vmatpush1.bf16.msra.mxu1 %v22830_v45  ;;  %v9656_v40 = vpop.f32.mrb[82].mxu0  ;;  %v9697_v41 = vpop.f32.mrb[82].mxu1 }
 0x94e   : > { %v9657_v39 = vpop.f32.mrb[83].mxu0  ;;  %v9698_v52 = vpop.f32.mrb[83].mxu1  ;;  %11266 = vmatprep.subr.bf16.mxu0 %v22835_v46  ;;  %11307 = vmatprep.subr.bf16.mxu1 %v22838_v27 }
 0x951   : > { %11267 = vmatpush1.bf16.msra.mxu0 %v22833_v37  ;;  %11308 = vmatpush1.bf16.msra.mxu1 %v22836_v38 }
 0x952   : > { %11268 = vmatprep.subr.bf16.mxu0 %v22841_v44  ;;  %11309 = vmatprep.subr.bf16.mxu1 %v22844_v10  ;;  %v22895_v10 = vld [vmem:[#allocation9 + $0x4] ss:$16 sps:$4 sm:$0xff]  }
 0x955   : > { %11269 = vmatpush1.bf16.msra.mxu0 %v22839_v47  ;;  %11310 = vmatpush1.bf16.msra.mxu1 %v22842_v1 }
 0x956   : > { %11270 = vmatprep.subr.bf16.mxu0 %v22847_v48  ;;  %11311 = vmatprep.subr.bf16.mxu1 %v22850_v49  ;;  %v22893_v48 = vld [vmem:[#allocation9] ss:$16 sps:$4 sm:$0xff]   ;;  %v22896_v49 = vld [vmem:[#allocation9 + $0x8] ss:$16 sps:$4 sm:$0xff]  }
 0x959   : > { %11271 = vmatpush1.bf16.msra.mxu0 %v22845_v42  ;;  %11312 = vmatpush1.bf16.msra.mxu1 %v22848_v62  ;;  %v22901_v62 = vld [vmem:[#allocation9 + $0x24] ss:$16 sps:$4 sm:$0xff]  }
 0x95a   : > { %11272 = vmatprep.subr.bf16.mxu0 %v22853_v6  ;;  %11313 = vmatprep.subr.bf16.mxu1 %v22856_v63  ;;  %v22904_v6 = vld [vmem:[#allocation9 + $0x2c] ss:$16 sps:$4 sm:$0xff]   ;;  %v22899_v63 = vld [vmem:[#allocation9 + $0x20] ss:$16 sps:$4 sm:$0xff]  }
 0x95d   : > { %11273 = vmatpush1.bf16.msra.mxu0 %v22851_v61  ;;  %11314 = vmatpush1.bf16.msra.mxu1 %v22854_v56  ;;  %v22902_v61 = vld [vmem:[#allocation9 + $0x28] ss:$16 sps:$4 sm:$0xff]   ;;  %v22907_v56 = vld [vmem:[#allocation9 + $0x44] ss:$16 sps:$4 sm:$0xff]  }
 0x95e   : > { %11274 = vmatprep.subr.bf16.mxu0 %v22859_v20  ;;  %11315 = vmatprep.subr.bf16.mxu1 %v22862_v8  ;;  %v22910_v20 = vld [vmem:[#allocation9 + $0x4c] ss:$16 sps:$4 sm:$0xff]   ;;  %v22905_v8 = vld [vmem:[#allocation9 + $0x40] ss:$16 sps:$4 sm:$0xff]  }
 0x961   : > { %11275 = vmatpush1.bf16.msra.mxu0 %v22857_v36  ;;  %11316 = vmatpush1.bf16.msra.mxu1 %v22860_v9  ;;  %v22908_v36 = vld [vmem:[#allocation9 + $0x48] ss:$16 sps:$4 sm:$0xff]   ;;  %v22913_v9 = vld [vmem:[#allocation9 + $0x64] ss:$16 sps:$4 sm:$0xff]  }
 0x962   : > { %11276 = vmatprep.subr.bf16.mxu0 %v22865_v15  ;;  %11317 = vmatprep.subr.bf16.mxu1 %v22868_v0  ;;  %v22916_v15 = vld [vmem:[#allocation9 + $0x6c] ss:$16 sps:$4 sm:$0xff]   ;;  %v22911_v0 = vld [vmem:[#allocation9 + $0x60] ss:$16 sps:$4 sm:$0xff]  }
 0x965   : > { %11277 = vmatpush1.bf16.msra.mxu0 %v22863_v60  ;;  %11318 = vmatpush1.bf16.msra.mxu1 %v22866_v53  ;;  %v22914_v60 = vld [vmem:[#allocation9 + $0x68] ss:$16 sps:$4 sm:$0xff]   ;;  %v22919_v53 = vld [vmem:[#allocation9 + $0x84] ss:$16 sps:$4 sm:$0xff]  }
 0x966   : > { %11278 = vmatprep.subr.bf16.mxu0 %v22871_v59  ;;  %11319 = vmatprep.subr.bf16.mxu1 %v22874_v7  ;;  %v22922_v59 = vld [vmem:[#allocation9 + $0x8c] ss:$16 sps:$4 sm:$0xff]   ;;  %v22917_v7 = vld [vmem:[#allocation9 + $0x80] ss:$16 sps:$4 sm:$0xff]  }
 0x969   : > { %11279 = vmatpush1.bf16.msra.mxu0 %v22869_v12  ;;  %11320 = vmatpush1.bf16.msra.mxu1 %v22872_v17  ;;  %v22920_v12 = vld [vmem:[#allocation9 + $0x88] ss:$16 sps:$4 sm:$0xff]   ;;  %v22925_v17 = vld [vmem:[#allocation9 + $0xa4] ss:$16 sps:$4 sm:$0xff]  }
 0x96a   : > { %11280 = vmatprep.subr.bf16.mxu0 %v22877_v18  ;;  %11321 = vmatprep.subr.bf16.mxu1 %v22880_v23  ;;  %v22928_v18 = vld [vmem:[#allocation9 + $0xac] ss:$16 sps:$4 sm:$0xff]   ;;  %v22923_v23 = vld [vmem:[#allocation9 + $0xa0] ss:$16 sps:$4 sm:$0xff]  }
 0x96d   : > { %11281 = vmatpush1.bf16.msra.mxu0 %v22875_v11  ;;  %11322 = vmatpush1.bf16.msra.mxu1 %v22878_v14  ;;  %v22926_v11 = vld [vmem:[#allocation9 + $0xa8] ss:$16 sps:$4 sm:$0xff]   ;;  %v22931_v14 = vld [vmem:[#allocation9 + $0xc4] ss:$16 sps:$4 sm:$0xff]  }
 0x96e   : > { %11282 = vmatprep.subr.bf16.mxu0 %v22883_v35  ;;  %11323 = vmatprep.subr.bf16.mxu1 %v22886_v22  ;;  %v22934_v35 = vld [vmem:[#allocation9 + $0xcc] ss:$16 sps:$4 sm:$0xff]   ;;  %v22929_v22 = vld [vmem:[#allocation9 + $0xc0] ss:$16 sps:$4 sm:$0xff]  }
 0x971   : > { %11283 = vmatpush1.bf16.msra.mxu0 %v22881_v13  ;;  %11324 = vmatpush1.bf16.msra.mxu1 %v22884_v4  ;;  %v22932_v13 = vld [vmem:[#allocation9 + $0xc8] ss:$16 sps:$4 sm:$0xff]   ;;  %v22937_v4 = vld [vmem:[#allocation9 + $0xe4] ss:$16 sps:$4 sm:$0xff]  }
 0x972   : > { %11284 = vmatprep.subr.bf16.mxu0 %v22889_v43  ;;  %11325 = vmatprep.subr.bf16.mxu1 %v22892_v57  ;;  %v22940_v43 = vld [vmem:[#allocation9 + $0xec] ss:$16 sps:$4 sm:$0xff]   ;;  %v22935_v57 = vld [vmem:[#allocation9 + $0xe0] ss:$16 sps:$4 sm:$0xff]  }
 0x975   : > { %11285 = vmatpush1.bf16.msra.mxu0 %v22887_v58  ;;  %11326 = vmatpush1.bf16.msra.mxu1 %v22890_v5  ;;  %v22938_v58 = vld [vmem:[#allocation9 + $0xe8] ss:$16 sps:$4 sm:$0xff]   ;;  %v22943_v5 = vld [vmem:[#allocation7 + $0x4] ss:$16 sps:$4 sm:$0xff]  }
 0x976   : > { %11841 = vmatprep.subr.bf16.mxu0 %v22895_v10 }
 0x978   : > { %11287 = vmatmul.mubr.bf16.vlgmr.msra.gmra.mrb[96].mxu0 %v25116_v16  ;;  %11328 = vmatmul.mubr.bf16.vlgmr.msra.gmra.mrb[96].mxu1 %v25120_v19 }
 0x979   : > { %11873 = vmatprep.mubr.bf16.mxu0 %v24475_v3  ;;  %11914 = vmatprep.mubr.bf16.mxu1 %v24475_v3 }
 0x97a   : > { %11842 = vmatpush1.bf16.msra.mxu0 %v22893_v48 }
 0x97b   : > { %11843 = vmatprep.subr.bf16.mxu0 %v22901_v62 }
 0x97e   : > { %11844 = vmatpush1.bf16.msra.mxu0 %v22899_v63 }
 0x97f   : > { %11845 = vmatprep.subr.bf16.mxu0 %v22907_v56 }
 0x982   : > { %11846 = vmatpush1.bf16.msra.mxu0 %v22905_v8 }
 0x983   : > { %11847 = vmatprep.subr.bf16.mxu0 %v22913_v9 }
 0x986   : > { %11848 = vmatpush1.bf16.msra.mxu0 %v22911_v0 }
 0x987   : > { %11849 = vmatprep.subr.bf16.mxu0 %v22919_v53 }
 0x98a   : > { %11850 = vmatpush1.bf16.msra.mxu0 %v22917_v7  ;;  %v11375_v7 = vld [vmem:[#allocation3] sm:$0xff] }
 0x98b   : > { %v11042_v21 = vpop.f32.mrb[84].mxu0  ;;  %v11083_v29 = vpop.f32.mrb[84].mxu1  ;;  %11851 = vmatprep.subr.bf16.mxu0 %v22925_v17 }
 0x98c   : > { %v11043_v30 = vadd.f32 %v11042_v21, %v25130_v50  ;;  %v11044_v33 = vpop.f32.mrb[85].mxu0  ;;  %v11085_v26 = vpop.f32.mrb[85].mxu1  ;;  %v22898_v50 = vld [vmem:[#allocation9 + $0xc] ss:$16 sps:$4 sm:$0xff]   ;;  %v22946_v21 = vld [vmem:[#allocation7 + $0x204] ss:$16 sps:$4 sm:$0xff]  }
 0x98d   : > { %v11045_v31 = vadd.f32 %v11044_v33, %v25134_v32  ;;  %v11046_v2 = vpop.f32.mrb[86].mxu0  ;;  %v11087_v24 = vpop.f32.mrb[86].mxu1  ;;  %11882 = vmatprep.subr.bf16.mxu1 %v22898_v50 }
 0x98e   : > { %v11084_v45 = vadd.f32 %v11083_v29, %v11043_v30  ;;  %v11047_v46 = vpop.f32.mrb[87].mxu0  ;;  %v11088_v27 = vpop.f32.mrb[87].mxu1  ;;  %11883 = vmatpush1.bf16.msra.mxu1 %v22896_v49  ;;  %11852 = vmatpush1.bf16.msra.mxu0 %v22923_v23 }
 0x98f   : > { %v11086_v16 = vadd.f32 %v11085_v26, %v11045_v31  ;;  %11884 = vmatprep.subr.bf16.mxu1 %v22904_v6  ;;  %11853 = vmatprep.subr.bf16.mxu0 %v22931_v14 }
 0x992   : > { %11885 = vmatpush1.bf16.msra.mxu1 %v22902_v61  ;;  %11854 = vmatpush1.bf16.msra.mxu0 %v22929_v22 }
 0x993   : > { %11886 = vmatprep.subr.bf16.mxu1 %v22910_v20  ;;  %11855 = vmatprep.subr.bf16.mxu0 %v22937_v4  ;;  %v25163_v4 = vld [vmem:[%s24696_s9 + $0xa8] sm:$0xff] }
 0x996   : > { %11887 = vmatpush1.bf16.msra.mxu1 %v22908_v36  ;;  %11856 = vmatpush1.bf16.msra.mxu0 %v22935_v57  ;;  %v22944_v57 = vld [vmem:[#allocation7 + $0x200] ss:$16 sps:$4 sm:$0xff]  }
 0x997   : > { %11888 = vmatprep.subr.bf16.mxu1 %v22916_v15  ;;  %13231 = vmatprep.subr.bf16.mxu0 %v22943_v5  ;;  %v22949_v5 = vld [vmem:[#allocation7 + $0x24] ss:$16 sps:$4 sm:$0xff]  }
 0x99a   : > { %11889 = vmatpush1.bf16.msra.mxu1 %v22914_v60 }
 0x99b   : > { %11890 = vmatprep.subr.bf16.mxu1 %v22922_v59 }
 0x99e   : > { %11891 = vmatpush1.bf16.msra.mxu1 %v22920_v12 }
 0x99f   : > { %11892 = vmatprep.subr.bf16.mxu1 %v22928_v18 }
 0x9a2   : > { %11893 = vmatpush1.bf16.msra.mxu1 %v22926_v11 }
 0x9a3   : > { %11894 = vmatprep.subr.bf16.mxu1 %v22934_v35 }
 0x9a6   : > { %11895 = vmatpush1.bf16.msra.mxu1 %v22932_v13  ;;  %v25160_v13 = vld [vmem:[%s24696_s9 + $0xa0] sm:$0xff] }
 0x9a7   : > { %11896 = vmatprep.subr.bf16.mxu1 %v22940_v43  ;;  %v22941_v43 = vld [vmem:[#allocation7] ss:$16 sps:$4 sm:$0xff]  }
 0x9aa   : > { %11897 = vmatpush1.bf16.msra.mxu1 %v22938_v58 }
 0x9ab   : > { %13272 = vmatprep.subr.bf16.mxu1 %v22946_v21  ;;  %v22952_v21 = vld [vmem:[#allocation7 + $0x224] ss:$16 sps:$4 sm:$0xff]  }
 0x9cb   : > { %v11124_v40 = vpop.f32.mrb[88].mxu0  ;;  %v11165_v19 = vpop.f32.mrb[88].mxu1 }
 0x9cc   : > { %v11125_v41 = vadd.f32 %v11124_v40, %v11084_v45  ;;  %v11126_v37 = vpop.f32.mrb[89].mxu0  ;;  %v11167_v38 = vpop.f32.mrb[89].mxu1 }
 0x9cd   : > { %v11127_v39 = vadd.f32 %v11126_v37, %v11086_v16  ;;  %v11128_v52 = vpop.f32.mrb[90].mxu0  ;;  %v11169_v44 = vpop.f32.mrb[90].mxu1 }
 0x9ce   : > { %v25144_v47 = vadd.f32 %v11165_v19, %v11125_v41  ;;  %v11129_v1 = vpop.f32.mrb[91].mxu0  ;;  %v11170_v32 = vpop.f32.mrb[91].mxu1  ;;  %v11336_v19 = vld [vmem:[%s25475_s3] sm:$0xf] }
 0x9cf   : > { %v25146_v42 = vadd.f32 %v11167_v38, %v11127_v39  ;;  %v11345_v41 = vrot.slane %v11336_v19, %v24790_v54  ;;  %v11341_v37 = vrot.slane %v11336_v19, %v24795_v55  ;;  %v11349_v50 = vrot.slane %v11336_v19, %v24801_v25 }
 0x9d0   : > { %v11353_v49 = vrot.slane %v11336_v19, %v24803_v28  ;;  %v22967_v19 = vld [vmem:[#allocation7 + $0x84] ss:$16 sps:$4 sm:$0xff]  }
 0x9d1   : > { %v11358_v38 = vadd.f32 %v11341_v37, %v25144_v47  ;;  %v22965_v37 = vld [vmem:[#allocation7 + $0x80] ss:$16 sps:$4 sm:$0xff]  }
 0xa0b   : > { %v11206_v29 = vpop.f32.mrb[92].mxu0  ;;  %v11247_v30 = vpop.f32.mrb[92].mxu1 }
 0xa0c   : > { %v11207_v33 = vadd.f32 %v11206_v29, %v25132_v51  ;;  %v11208_v26 = vpop.f32.mrb[93].mxu0  ;;  %v11249_v31 = vpop.f32.mrb[93].mxu1  ;;  %v11359_v51 = vadd.f32 %v11345_v41, %v25146_v42  ;;  %v25167_v29 = vcombine.high %v25160_v13, %v25160_v13  ;;  %v22970_v41 = vld [vmem:[#allocation7 + $0x284] ss:$16 sps:$4 sm:$0xff]  }
 0xa0d   : > { %v11209_v2 = vadd.f32 %v11208_v26, %v25136_v34  ;;  %v11210_v24 = vpop.f32.mrb[94].mxu0  ;;  %v11251_v45 = vpop.f32.mrb[94].mxu1  ;;  %v11362_v34 = vmul.f32 0.5, %v11358_v38  ;;  %v22950_v26 = vld [vmem:[#allocation7 + $0x220] ss:$16 sps:$4 sm:$0xff]  }
 0xa0e   : > { %v11248_v46 = vadd.f32 %v11247_v30, %v11207_v33  ;;  %v11211_v27 = vpop.f32.mrb[95].mxu0  ;;  %v11252_v16 = vpop.f32.mrb[95].mxu1  ;;  %v11366_v39 = vmul.f32 0.5, %v11359_v51  ;;  %v25171_v30 = vcombine.high %v25163_v4, %v25163_v4  ;;  %v22947_v33 = vld [vmem:[#allocation7 + $0x20] ss:$16 sps:$4 sm:$0xff]  }
 0xa0f   : > { %v11250_v40 = vadd.f32 %v11249_v31, %v11209_v2  ;;  %v22955_v31 = vld [vmem:[#allocation7 + $0x44] ss:$16 sps:$4 sm:$0xff]   ;;  %v22953_v24 = vld [vmem:[#allocation7 + $0x40] ss:$16 sps:$4 sm:$0xff]  }
 0xa10   : > { %24253 = vtanh.f32 %v11366_v39  ;;  %v22958_v2 = vld [vmem:[#allocation7 + $0x244] ss:$16 sps:$4 sm:$0xff]   ;;  %v22956_v45 = vld [vmem:[#allocation7 + $0x240] ss:$16 sps:$4 sm:$0xff]  }
 0xa11   : > { %24255 = vtanh.f32 %v11362_v34  ;;  %v22964_v27 = vld [vmem:[#allocation7 + $0x264] ss:$16 sps:$4 sm:$0xff]   ;;  %v22959_v16 = vld [vmem:[#allocation7 + $0x60] ss:$16 sps:$4 sm:$0xff]  }
 0xa12   : > { %v22968_v51 = vld [vmem:[#allocation7 + $0x280] ss:$16 sps:$4 sm:$0xff]   ;;  %v22973_v38 = vld [vmem:[#allocation7 + $0xa4] ss:$16 sps:$4 sm:$0xff]  }
 0xa13   : > { %v22976_v39 = vld [vmem:[#allocation7 + $0x2a4] ss:$16 sps:$4 sm:$0xff]   ;;  %v22971_v34 = vld [vmem:[#allocation7 + $0xa0] ss:$16 sps:$4 sm:$0xff]  }
 0xa1a   : > { %v24254_v8 = vpop.eup %24253 }
 0xa1b   : > { %v24256_v36 = vpop.eup %24255  ;;  %v11368_v9 = vadd.f32 1.0, %v24254_v8  ;;  %v22998_v8 = vld [vmem:[#allocation7 + $0x320] ss:$16 sps:$4 sm:$0xff]  }
 0xa1c   : > { %v11364_v0 = vadd.f32 1.0, %v24256_v36  ;;  %v23003_v36 = vld [vmem:[#allocation7 + $0x144] ss:$16 sps:$4 sm:$0xff]  }
 0xa1d   : > { %v11369_v60 = vmul.f32 0.5, %v11368_v9  ;;  %v23006_v9 = vld [vmem:[#allocation7 + $0x344] ss:$16 sps:$4 sm:$0xff]  }
 0xa1e   : > { %v11365_v53 = vmul.f32 0.5, %v11364_v0  ;;  %v23004_v0 = vld [vmem:[#allocation7 + $0x340] ss:$16 sps:$4 sm:$0xff]  }
 0xa1f   : > { %v11376_v12 = vmul.f32 %v11375_v7, %v11369_v60  ;;  %v23009_v60 = vld [vmem:[#allocation7 + $0x164] ss:$16 sps:$4 sm:$0xff]   ;;  %v23010_v7 = vld [vmem:[#allocation7 + $0x360] ss:$16 sps:$4 sm:$0xff]  }
 0xa4b   : > { %v11288_v52 = vpop.f32.mrb[96].mxu0  ;;  %v11329_v44 = vpop.f32.mrb[96].mxu1 }
 0xa4c   : > { %v11289_v10 = vadd.f32 %v11288_v52, %v11248_v46  ;;  %v11290_v1 = vpop.f32.mrb[97].mxu0  ;;  %v11331_v32 = vpop.f32.mrb[97].mxu1  ;;  %v22961_v46 = vld [vmem:[#allocation7 + $0x64] ss:$16 sps:$4 sm:$0xff]   ;;  %v22974_v52 = vld [vmem:[#allocation7 + $0x2a0] ss:$16 sps:$4 sm:$0xff]  }
 0xa4d   : > { %v11291_v48 = vadd.f32 %v11290_v1, %v11250_v40  ;;  %v11292_v62 = vpop.f32.mrb[98].mxu0  ;;  %v11333_v6 = vpop.f32.mrb[98].mxu1  ;;  %v22962_v40 = vld [vmem:[#allocation7 + $0x260] ss:$16 sps:$4 sm:$0xff]  }
 0xa4e   : > { %v11330_v63 = vadd.f32 %v11329_v44, %v11289_v10  ;;  %v11293_v42 = vpop.f32.mrb[99].mxu0  ;;  %v11334_v61 = vpop.f32.mrb[99].mxu1  ;;  %v22979_v44 = vld [vmem:[#allocation7 + $0xc4] ss:$16 sps:$4 sm:$0xff]   ;;  %v22980_v1 = vld [vmem:[#allocation7 + $0x2c0] ss:$16 sps:$4 sm:$0xff]  }
 0xa4f   : > { %v11332_v47 = vadd.f32 %v11331_v32, %v11291_v48  ;;  %v22982_v10 = vld [vmem:[#allocation7 + $0x2c4] ss:$16 sps:$4 sm:$0xff]   ;;  %v22986_v62 = vld [vmem:[#allocation7 + $0x2e0] ss:$16 sps:$4 sm:$0xff]  }
 0xa50   : > { %v11360_v56 = vadd.f32 %v11349_v50, %v11330_v63  ;;  %v22977_v50 = vld [vmem:[#allocation7 + $0xc0] ss:$16 sps:$4 sm:$0xff]   ;;  %v22985_v32 = vld [vmem:[#allocation7 + $0xe4] ss:$16 sps:$4 sm:$0xff]  }
 0xa51   : > { %v11361_v20 = vadd.f32 %v11353_v49, %v11332_v47  ;;  %v22988_v48 = vld [vmem:[#allocation7 + $0x2e4] ss:$16 sps:$4 sm:$0xff]   ;;  %v22983_v49 = vld [vmem:[#allocation7 + $0xe0] ss:$16 sps:$4 sm:$0xff]  }
 0xa52   : > { %24257 = vtanh.f32 %v11360_v56  ;;  %v22991_v6 = vld [vmem:[#allocation7 + $0x104] ss:$16 sps:$4 sm:$0xff]   ;;  %v22989_v42 = vld [vmem:[#allocation7 + $0x100] ss:$16 sps:$4 sm:$0xff]  }
 0xa53   : > { %v11371_v15 = vmul.f32 0.5, %v11361_v20  ;;  %v22994_v63 = vld [vmem:[#allocation7 + $0x304] ss:$16 sps:$4 sm:$0xff]   ;;  %v22992_v61 = vld [vmem:[#allocation7 + $0x300] ss:$16 sps:$4 sm:$0xff]  }
 0xa54   : > { %v22997_v47 = vld [vmem:[#allocation7 + $0x124] ss:$16 sps:$4 sm:$0xff]   ;;  %v22995_v20 = vld [vmem:[#allocation7 + $0x120] ss:$16 sps:$4 sm:$0xff]  }
 0xa55   : > { %24259 = vtanh.f32 %v11371_v15  ;;  %v23000_v56 = vld [vmem:[#allocation7 + $0x324] ss:$16 sps:$4 sm:$0xff]   ;;  %v23001_v15 = vld [vmem:[#allocation7 + $0x140] ss:$16 sps:$4 sm:$0xff]  }
 0xa5c   : > { %v24258_v59 = vpop.eup %24257 }
 0xa5d   : > { %v11377_v17 = vmul.f32 %v24258_v59, %v11365_v53  ;;  %v23012_v53 = vld [vmem:[#allocation7 + $0x364] ss:$16 sps:$4 sm:$0xff]   ;;  %v23007_v59 = vld [vmem:[#allocation7 + $0x160] ss:$16 sps:$4 sm:$0xff]  }
 0xa5f   : > { %v11378_v18 = vadd.f32 %v11377_v17, %v11376_v12  ;;  %v24260_v23 = vpop.eup %24259  ;;  %v23015_v12 = vld [vmem:[#allocation7 + $0x184] ss:$16 sps:$4 sm:$0xff]  }
 0xa60   : > { %v11373_v11 = vadd.f32 1.0, %v24260_v23  ;;  %v23018_v17 = vld [vmem:[#allocation7 + $0x384] ss:$16 sps:$4 sm:$0xff]   ;;  %v23016_v23 = vld [vmem:[#allocation7 + $0x380] ss:$16 sps:$4 sm:$0xff]  }
 0xa61   : > { %24261 = vtanh.f32 %v11378_v18  ;;  %11381 = vst [vmem:[#allocation3] sm:$0xff] %v11378_v18  ;;  %v23013_v18 = vld [vmem:[#allocation7 + $0x180] ss:$16 sps:$4 sm:$0xff]  }
 0xa62   : > { %v11374_v14 = vmul.f32 0.5, %v11373_v11  ;;  %v23021_v11 = vld [vmem:[#allocation7 + $0x1a4] ss:$16 sps:$4 sm:$0xff]  }
 0xa6b   : > { %v24262_v35 = vpop.eup %24261 }
 0xa6c   : > { %v11380_v22 = vmul.f32 %v24262_v35, %v11374_v14  ;;  %v23024_v14 = vld [vmem:[#allocation7 + $0x3a4] ss:$16 sps:$4 sm:$0xff]   ;;  %v23019_v35 = vld [vmem:[#allocation7 + $0x1a0] ss:$16 sps:$4 sm:$0xff]  }
 0xa6e   : > { %v11383_v58 = vpack.c.bf16 %v11380_v22, %v11380_v22  ;;  %v23022_v22 = vld [vmem:[#allocation7 + $0x3a0] ss:$16 sps:$4 sm:$0xff]  }
 0xa70   : > { %19690 = vst [vmem:[%s24707_s12 + $0x10] sm:$0xf] %v11383_v58  ;;  %11874 = vmatmul.mubr.bf16.vlgmr.msra.gmra.mrb[100].mxu0 %v11383_v58  ;;  %11915 = vmatmul.mubr.bf16.vlgmr.msra.gmra.mrb[100].mxu1 %v11383_v58  ;;  %v23025_v58 = vld [vmem:[#allocation7 + $0x1c0] ss:$16 sps:$4 sm:$0xff]  }
 0xa71   : > { %13232 = vmatpush1.bf16.msra.mxu0 %v22941_v43  ;;  %13273 = vmatpush1.bf16.msra.mxu1 %v22944_v57  ;;  %v23027_v43 = vld [vmem:[#allocation7 + $0x1c4] ss:$16 sps:$4 sm:$0xff]  }
 0xa72   : > { %13233 = vmatprep.subr.bf16.mxu0 %v22949_v5  ;;  %13274 = vmatprep.subr.bf16.mxu1 %v22952_v21  ;;  %v23030_v57 = vld [vmem:[#allocation7 + $0x3c4] ss:$16 sps:$4 sm:$0xff]   ;;  %v23028_v5 = vld [vmem:[#allocation7 + $0x3c0] ss:$16 sps:$4 sm:$0xff]  }
 0xa73   : > { %13263 = vmatprep.mubr.bf16.mxu0 %v25167_v29  ;;  %13304 = vmatprep.mubr.bf16.mxu1 %v25171_v30  ;;  %v23033_v21 = vld [vmem:[#allocation7 + $0x1e4] ss:$16 sps:$4 sm:$0xff]  }
 0xa75   : > { %13234 = vmatpush1.bf16.msra.mxu0 %v22947_v33  ;;  %13275 = vmatpush1.bf16.msra.mxu1 %v22950_v26  ;;  %v23036_v33 = vld [vmem:[#allocation7 + $0x3e4] ss:$16 sps:$4 sm:$0xff]   ;;  %v23031_v26 = vld [vmem:[#allocation7 + $0x1e0] ss:$16 sps:$4 sm:$0xff]  }
 0xa76   : > { %13235 = vmatprep.subr.bf16.mxu0 %v22955_v31  ;;  %13276 = vmatprep.subr.bf16.mxu1 %v22958_v2  ;;  %v23034_v31 = vld [vmem:[#allocation7 + $0x3e0] ss:$16 sps:$4 sm:$0xff]   ;;  %v23043_v2 = vld [vmem:[#allocation7 + $0x404] ss:$16 sps:$4 sm:$0xff]  }
 0xa79   : > { %13236 = vmatpush1.bf16.msra.mxu0 %v22953_v24  ;;  %13277 = vmatpush1.bf16.msra.mxu1 %v22956_v45  ;;  %v23046_v24 = vld [vmem:[#allocation7 + $0x604] ss:$16 sps:$4 sm:$0xff]   ;;  %v25178_v45 = vcombine.low %v25160_v13, %v25160_v13 }
 0xa7a   : > { %13237 = vmatprep.subr.bf16.mxu0 %v22961_v46  ;;  %13278 = vmatprep.subr.bf16.mxu1 %v22964_v27  ;;  %v25182_v46 = vcombine.low %v25163_v4, %v25163_v4  ;;  %v25185_v27 = vld [vmem:[%s24696_s9 + $0xb0] sm:$0xff] }
 0xa7b   : > { %v25192_v13 = vcombine.high %v25185_v27, %v25185_v27 }
 0xa7d   : > { %13238 = vmatpush1.bf16.msra.mxu0 %v22959_v16  ;;  %13279 = vmatpush1.bf16.msra.mxu1 %v22962_v40  ;;  %v25188_v16 = vld [vmem:[%s24696_s9 + $0xb8] sm:$0xff]  ;;  %v23041_v40 = vld [vmem:[#allocation7 + $0x400] ss:$16 sps:$4 sm:$0xff]  }
 0xa7e   : > { %13239 = vmatprep.subr.bf16.mxu0 %v22967_v19  ;;  %13280 = vmatprep.subr.bf16.mxu1 %v22970_v41  ;;  %v23044_v19 = vld [vmem:[#allocation7 + $0x600] ss:$16 sps:$4 sm:$0xff]   ;;  %v23049_v41 = vld [vmem:[#allocation7 + $0x424] ss:$16 sps:$4 sm:$0xff]   ;;  %v25196_v4 = vcombine.high %v25188_v16, %v25188_v16 }
 0xa81   : > { %13240 = vmatpush1.bf16.msra.mxu0 %v22965_v37  ;;  %13281 = vmatpush1.bf16.msra.mxu1 %v22968_v51  ;;  %v23052_v37 = vld [vmem:[#allocation7 + $0x624] ss:$16 sps:$4 sm:$0xff]   ;;  %v23047_v51 = vld [vmem:[#allocation7 + $0x420] ss:$16 sps:$4 sm:$0xff]  }
 0xa82   : > { %13241 = vmatprep.subr.bf16.mxu0 %v22973_v38  ;;  %13282 = vmatprep.subr.bf16.mxu1 %v22976_v39  ;;  %v23050_v38 = vld [vmem:[#allocation7 + $0x620] ss:$16 sps:$4 sm:$0xff]   ;;  %v23055_v39 = vld [vmem:[#allocation7 + $0x444] ss:$16 sps:$4 sm:$0xff]  }
 0xa85   : > { %13242 = vmatpush1.bf16.msra.mxu0 %v22971_v34  ;;  %13283 = vmatpush1.bf16.msra.mxu1 %v22974_v52  ;;  %v23058_v34 = vld [vmem:[#allocation7 + $0x644] ss:$16 sps:$4 sm:$0xff]   ;;  %v23053_v52 = vld [vmem:[#allocation7 + $0x440] ss:$16 sps:$4 sm:$0xff]  }
 0xa86   : > { %13243 = vmatprep.subr.bf16.mxu0 %v22979_v44  ;;  %13284 = vmatprep.subr.bf16.mxu1 %v22982_v10  ;;  %v23056_v44 = vld [vmem:[#allocation7 + $0x640] ss:$16 sps:$4 sm:$0xff]   ;;  %v23061_v10 = vld [vmem:[#allocation7 + $0x464] ss:$16 sps:$4 sm:$0xff]  }
 0xa89   : > { %13244 = vmatpush1.bf16.msra.mxu0 %v22977_v50  ;;  %13285 = vmatpush1.bf16.msra.mxu1 %v22980_v1  ;;  %v23064_v50 = vld [vmem:[#allocation7 + $0x664] ss:$16 sps:$4 sm:$0xff]   ;;  %v23059_v1 = vld [vmem:[#allocation7 + $0x460] ss:$16 sps:$4 sm:$0xff]  }
 0xa8a   : > { %13245 = vmatprep.subr.bf16.mxu0 %v22985_v32  ;;  %13286 = vmatprep.subr.bf16.mxu1 %v22988_v48  ;;  %v23062_v32 = vld [vmem:[#allocation7 + $0x660] ss:$16 sps:$4 sm:$0xff]   ;;  %v23067_v48 = vld [vmem:[#allocation7 + $0x484] ss:$16 sps:$4 sm:$0xff]  }
 0xa8d   : > { %13246 = vmatpush1.bf16.msra.mxu0 %v22983_v49  ;;  %13287 = vmatpush1.bf16.msra.mxu1 %v22986_v62  ;;  %v23070_v49 = vld [vmem:[#allocation7 + $0x684] ss:$16 sps:$4 sm:$0xff]   ;;  %v23065_v62 = vld [vmem:[#allocation7 + $0x480] ss:$16 sps:$4 sm:$0xff]  }
 0xa8e   : > { %13247 = vmatprep.subr.bf16.mxu0 %v22991_v6  ;;  %13288 = vmatprep.subr.bf16.mxu1 %v22994_v63  ;;  %v23068_v6 = vld [vmem:[#allocation7 + $0x680] ss:$16 sps:$4 sm:$0xff]   ;;  %v23073_v63 = vld [vmem:[#allocation7 + $0x4a4] ss:$16 sps:$4 sm:$0xff]  }
 0xa91   : > { %13248 = vmatpush1.bf16.msra.mxu0 %v22989_v42  ;;  %13289 = vmatpush1.bf16.msra.mxu1 %v22992_v61  ;;  %v23076_v42 = vld [vmem:[#allocation7 + $0x6a4] ss:$16 sps:$4 sm:$0xff]   ;;  %v23071_v61 = vld [vmem:[#allocation7 + $0x4a0] ss:$16 sps:$4 sm:$0xff]  }
 0xa92   : > { %13249 = vmatprep.subr.bf16.mxu0 %v22997_v47  ;;  %13290 = vmatprep.subr.bf16.mxu1 %v23000_v56  ;;  %v23074_v47 = vld [vmem:[#allocation7 + $0x6a0] ss:$16 sps:$4 sm:$0xff]   ;;  %v23079_v56 = vld [vmem:[#allocation7 + $0x4c4] ss:$16 sps:$4 sm:$0xff]  }
 0xa95   : > { %13250 = vmatpush1.bf16.msra.mxu0 %v22995_v20  ;;  %13291 = vmatpush1.bf16.msra.mxu1 %v22998_v8  ;;  %v23082_v20 = vld [vmem:[#allocation7 + $0x6c4] ss:$16 sps:$4 sm:$0xff]   ;;  %v23077_v8 = vld [vmem:[#allocation7 + $0x4c0] ss:$16 sps:$4 sm:$0xff]  }
 0xa96   : > { %13251 = vmatprep.subr.bf16.mxu0 %v23003_v36  ;;  %13292 = vmatprep.subr.bf16.mxu1 %v23006_v9  ;;  %v23080_v36 = vld [vmem:[#allocation7 + $0x6c0] ss:$16 sps:$4 sm:$0xff]   ;;  %v23085_v9 = vld [vmem:[#allocation7 + $0x4e4] ss:$16 sps:$4 sm:$0xff]  }
 0xa99   : > { %13252 = vmatpush1.bf16.msra.mxu0 %v23001_v15  ;;  %13293 = vmatpush1.bf16.msra.mxu1 %v23004_v0  ;;  %v23088_v15 = vld [vmem:[#allocation7 + $0x6e4] ss:$16 sps:$4 sm:$0xff]   ;;  %v23083_v0 = vld [vmem:[#allocation7 + $0x4e0] ss:$16 sps:$4 sm:$0xff]  }
 0xa9a   : > { %13253 = vmatprep.subr.bf16.mxu0 %v23009_v60  ;;  %13294 = vmatprep.subr.bf16.mxu1 %v23012_v53  ;;  %v23086_v60 = vld [vmem:[#allocation7 + $0x6e0] ss:$16 sps:$4 sm:$0xff]   ;;  %v23091_v53 = vld [vmem:[#allocation7 + $0x504] ss:$16 sps:$4 sm:$0xff]  }
 0xa9d   : > { %13254 = vmatpush1.bf16.msra.mxu0 %v23007_v59  ;;  %13295 = vmatpush1.bf16.msra.mxu1 %v23010_v7  ;;  %v23094_v59 = vld [vmem:[#allocation7 + $0x704] ss:$16 sps:$4 sm:$0xff]   ;;  %v23089_v7 = vld [vmem:[#allocation7 + $0x500] ss:$16 sps:$4 sm:$0xff]  }
 0xa9e   : > { %13255 = vmatprep.subr.bf16.mxu0 %v23015_v12  ;;  %13296 = vmatprep.subr.bf16.mxu1 %v23018_v17  ;;  %v23092_v12 = vld [vmem:[#allocation7 + $0x700] ss:$16 sps:$4 sm:$0xff]   ;;  %v23097_v17 = vld [vmem:[#allocation7 + $0x524] ss:$16 sps:$4 sm:$0xff]  }
 0xaa1   : > { %13256 = vmatpush1.bf16.msra.mxu0 %v23013_v18  ;;  %13297 = vmatpush1.bf16.msra.mxu1 %v23016_v23  ;;  %v23100_v18 = vld [vmem:[#allocation7 + $0x724] ss:$16 sps:$4 sm:$0xff]   ;;  %v23095_v23 = vld [vmem:[#allocation7 + $0x520] ss:$16 sps:$4 sm:$0xff]  }
 0xaa2   : > { %13257 = vmatprep.subr.bf16.mxu0 %v23021_v11  ;;  %13298 = vmatprep.subr.bf16.mxu1 %v23024_v14  ;;  %v23098_v11 = vld [vmem:[#allocation7 + $0x720] ss:$16 sps:$4 sm:$0xff]   ;;  %v23103_v14 = vld [vmem:[#allocation7 + $0x544] ss:$16 sps:$4 sm:$0xff]  }
 0xaa5   : > { %13258 = vmatpush1.bf16.msra.mxu0 %v23019_v35  ;;  %13299 = vmatpush1.bf16.msra.mxu1 %v23022_v22  ;;  %v23106_v35 = vld [vmem:[#allocation7 + $0x744] ss:$16 sps:$4 sm:$0xff]   ;;  %v23101_v22 = vld [vmem:[#allocation7 + $0x540] ss:$16 sps:$4 sm:$0xff]  }
 0xaa6   : > { %13259 = vmatprep.subr.bf16.mxu0 %v23027_v43  ;;  %13300 = vmatprep.subr.bf16.mxu1 %v23030_v57  ;;  %v23104_v43 = vld [vmem:[#allocation7 + $0x740] ss:$16 sps:$4 sm:$0xff]   ;;  %v23109_v57 = vld [vmem:[#allocation7 + $0x564] ss:$16 sps:$4 sm:$0xff]  }
 0xaa9   : > { %13260 = vmatpush1.bf16.msra.mxu0 %v23025_v58  ;;  %13301 = vmatpush1.bf16.msra.mxu1 %v23028_v5  ;;  %v23112_v58 = vld [vmem:[#allocation7 + $0x764] ss:$16 sps:$4 sm:$0xff]   ;;  %v23107_v5 = vld [vmem:[#allocation7 + $0x560] ss:$16 sps:$4 sm:$0xff]  }
 0xaaa   : > { %13261 = vmatprep.subr.bf16.mxu0 %v23033_v21  ;;  %13302 = vmatprep.subr.bf16.mxu1 %v23036_v33  ;;  %v23110_v21 = vld [vmem:[#allocation7 + $0x760] ss:$16 sps:$4 sm:$0xff]   ;;  %v23115_v33 = vld [vmem:[#allocation7 + $0x584] ss:$16 sps:$4 sm:$0xff]  }
 0xaad   : > { %13262 = vmatpush1.bf16.msra.mxu0 %v23031_v26  ;;  %13303 = vmatpush1.bf16.msra.mxu1 %v23034_v31  ;;  %v23118_v26 = vld [vmem:[#allocation7 + $0x784] ss:$16 sps:$4 sm:$0xff]   ;;  %v23113_v31 = vld [vmem:[#allocation7 + $0x580] ss:$16 sps:$4 sm:$0xff]  }
 0xaae   : > { %13313 = vmatprep.subr.bf16.mxu0 %v23043_v2  ;;  %13354 = vmatprep.subr.bf16.mxu1 %v23046_v24  ;;  %v23116_v2 = vld [vmem:[#allocation7 + $0x780] ss:$16 sps:$4 sm:$0xff]   ;;  %v23121_v24 = vld [vmem:[#allocation7 + $0x5a4] ss:$16 sps:$4 sm:$0xff]  }
 0xab0   : > { %13264 = vmatmul.mubr.bf16.vlgmr.msra.gmra.mrb[104].mxu0 %v25178_v45  ;;  %13305 = vmatmul.mubr.bf16.vlgmr.msra.gmra.mrb[104].mxu1 %v25182_v46 }
 0xab1   : > { %13314 = vmatpush1.bf16.msra.mxu0 %v23041_v40  ;;  %13355 = vmatpush1.bf16.msra.mxu1 %v23044_v19  ;;  %v23124_v40 = vld [vmem:[#allocation7 + $0x7a4] ss:$16 sps:$4 sm:$0xff]   ;;  %v23119_v19 = vld [vmem:[#allocation7 + $0x5a0] ss:$16 sps:$4 sm:$0xff]  }
 0xab2   : > { %13315 = vmatprep.subr.bf16.mxu0 %v23049_v41  ;;  %13356 = vmatprep.subr.bf16.mxu1 %v23052_v37  ;;  %v23122_v41 = vld [vmem:[#allocation7 + $0x7a0] ss:$16 sps:$4 sm:$0xff]   ;;  %v23127_v37 = vld [vmem:[#allocation7 + $0x5c4] ss:$16 sps:$4 sm:$0xff]  }
 0xab3   : > { %13345 = vmatprep.mubr.bf16.mxu0 %v25192_v13  ;;  %13386 = vmatprep.mubr.bf16.mxu1 %v25196_v4 }
 0xab5   : > { %13316 = vmatpush1.bf16.msra.mxu0 %v23047_v51  ;;  %13357 = vmatpush1.bf16.msra.mxu1 %v23050_v38  ;;  %v23130_v51 = vld [vmem:[#allocation7 + $0x7c4] ss:$16 sps:$4 sm:$0xff]   ;;  %v23125_v38 = vld [vmem:[#allocation7 + $0x5c0] ss:$16 sps:$4 sm:$0xff]  }
 0xab6   : > { %13317 = vmatprep.subr.bf16.mxu0 %v23055_v39  ;;  %13358 = vmatprep.subr.bf16.mxu1 %v23058_v34  ;;  %v23128_v39 = vld [vmem:[#allocation7 + $0x7c0] ss:$16 sps:$4 sm:$0xff]   ;;  %v23133_v34 = vld [vmem:[#allocation7 + $0x5e4] ss:$16 sps:$4 sm:$0xff]  }
 0xab9   : > { %13318 = vmatpush1.bf16.msra.mxu0 %v23053_v52  ;;  %13359 = vmatpush1.bf16.msra.mxu1 %v23056_v44  ;;  %v23136_v52 = vld [vmem:[#allocation7 + $0x7e4] ss:$16 sps:$4 sm:$0xff]   ;;  %v23131_v44 = vld [vmem:[#allocation7 + $0x5e0] ss:$16 sps:$4 sm:$0xff]  }
 0xaba   : > { %13319 = vmatprep.subr.bf16.mxu0 %v23061_v10  ;;  %13360 = vmatprep.subr.bf16.mxu1 %v23064_v50  ;;  %v23134_v10 = vld [vmem:[#allocation7 + $0x7e0] ss:$16 sps:$4 sm:$0xff]   ;;  %v23143_v50 = vld [vmem:[#allocation7 + $0xc] ss:$16 sps:$4 sm:$0xff]  }
 0xabd   : > { %13320 = vmatpush1.bf16.msra.mxu0 %v23059_v1  ;;  %13361 = vmatpush1.bf16.msra.mxu1 %v23062_v32  ;;  %v23146_v1 = vld [vmem:[#allocation7 + $0x20c] ss:$16 sps:$4 sm:$0xff]   ;;  %v25204_v32 = vcombine.low %v25185_v27, %v25185_v27  ;;  %v23147_v27 = vld [vmem:[#allocation7 + $0x28] ss:$16 sps:$4 sm:$0xff]  }
 0xabe   : > { %13321 = vmatprep.subr.bf16.mxu0 %v23067_v48  ;;  %13362 = vmatprep.subr.bf16.mxu1 %v23070_v49  ;;  %v25208_v48 = vcombine.low %v25188_v16, %v25188_v16  ;;  %v23141_v49 = vld [vmem:[#allocation7 + $0x8] ss:$16 sps:$4 sm:$0xff]   ;;  %v23155_v16 = vld [vmem:[#allocation7 + $0x4c] ss:$16 sps:$4 sm:$0xff]  }
 0xac1   : > { %13322 = vmatpush1.bf16.msra.mxu0 %v23065_v62  ;;  %13363 = vmatpush1.bf16.msra.mxu1 %v23068_v6  ;;  %v23144_v62 = vld [vmem:[#allocation7 + $0x208] ss:$16 sps:$4 sm:$0xff]   ;;  %v23149_v6 = vld [vmem:[#allocation7 + $0x2c] ss:$16 sps:$4 sm:$0xff]  }
 0xac2   : > { %13323 = vmatprep.subr.bf16.mxu0 %v23073_v63  ;;  %13364 = vmatprep.subr.bf16.mxu1 %v23076_v42  ;;  %v23152_v63 = vld [vmem:[#allocation7 + $0x22c] ss:$16 sps:$4 sm:$0xff]   ;;  %v23150_v42 = vld [vmem:[#allocation7 + $0x228] ss:$16 sps:$4 sm:$0xff]  }
 0xac5   : > { %13324 = vmatpush1.bf16.msra.mxu0 %v23071_v61  ;;  %13365 = vmatpush1.bf16.msra.mxu1 %v23074_v47  ;;  %v23158_v61 = vld [vmem:[#allocation7 + $0x24c] ss:$16 sps:$4 sm:$0xff]   ;;  %v23153_v47 = vld [vmem:[#allocation7 + $0x48] ss:$16 sps:$4 sm:$0xff]  }
 0xac6   : > { %13325 = vmatprep.subr.bf16.mxu0 %v23079_v56  ;;  %13366 = vmatprep.subr.bf16.mxu1 %v23082_v20  ;;  %v23156_v56 = vld [vmem:[#allocation7 + $0x248] ss:$16 sps:$4 sm:$0xff]   ;;  %v23161_v20 = vld [vmem:[#allocation7 + $0x6c] ss:$16 sps:$4 sm:$0xff]  }
 0xac9   : > { %13326 = vmatpush1.bf16.msra.mxu0 %v23077_v8  ;;  %13367 = vmatpush1.bf16.msra.mxu1 %v23080_v36  ;;  %v23164_v8 = vld [vmem:[#allocation7 + $0x26c] ss:$16 sps:$4 sm:$0xff]   ;;  %v23159_v36 = vld [vmem:[#allocation7 + $0x68] ss:$16 sps:$4 sm:$0xff]  }
 0xaca   : > { %13327 = vmatprep.subr.bf16.mxu0 %v23085_v9  ;;  %13368 = vmatprep.subr.bf16.mxu1 %v23088_v15  ;;  %v23162_v9 = vld [vmem:[#allocation7 + $0x268] ss:$16 sps:$4 sm:$0xff]   ;;  %v23167_v15 = vld [vmem:[#allocation7 + $0x8c] ss:$16 sps:$4 sm:$0xff]  }
 0xacd   : > { %13328 = vmatpush1.bf16.msra.mxu0 %v23083_v0  ;;  %13369 = vmatpush1.bf16.msra.mxu1 %v23086_v60  ;;  %v23170_v0 = vld [vmem:[#allocation7 + $0x28c] ss:$16 sps:$4 sm:$0xff]  }
 0xace   : > { %13329 = vmatprep.subr.bf16.mxu0 %v23091_v53  ;;  %13370 = vmatprep.subr.bf16.mxu1 %v23094_v59  ;;  %v23173_v60 = vld [vmem:[#allocation7 + $0xac] ss:$16 sps:$4 sm:$0xff]   ;;  %v23171_v59 = vld [vmem:[#allocation7 + $0xa8] ss:$16 sps:$4 sm:$0xff]  }
 0xacf   : > { %v23176_v53 = vld [vmem:[#allocation7 + $0x2ac] ss:$16 sps:$4 sm:$0xff]  }
 0xad1   : > { %13330 = vmatpush1.bf16.msra.mxu0 %v23089_v7  ;;  %13371 = vmatpush1.bf16.msra.mxu1 %v23092_v12  ;;  %v23174_v7 = vld [vmem:[#allocation7 + $0x2a8] ss:$16 sps:$4 sm:$0xff]   ;;  %v23179_v12 = vld [vmem:[#allocation7 + $0xcc] ss:$16 sps:$4 sm:$0xff]  }
 0xad2   : > { %13331 = vmatprep.subr.bf16.mxu0 %v23097_v17  ;;  %13372 = vmatprep.subr.bf16.mxu1 %v23100_v18  ;;  %v23182_v17 = vld [vmem:[#allocation7 + $0x2cc] ss:$16 sps:$4 sm:$0xff]   ;;  %v23177_v18 = vld [vmem:[#allocation7 + $0xc8] ss:$16 sps:$4 sm:$0xff]  }
 0xad5   : > { %13332 = vmatpush1.bf16.msra.mxu0 %v23095_v23  ;;  %13373 = vmatpush1.bf16.msra.mxu1 %v23098_v11  ;;  %v23180_v23 = vld [vmem:[#allocation7 + $0x2c8] ss:$16 sps:$4 sm:$0xff]   ;;  %v23185_v11 = vld [vmem:[#allocation7 + $0xec] ss:$16 sps:$4 sm:$0xff]  }
 0xad6   : > { %13333 = vmatprep.subr.bf16.mxu0 %v23103_v14  ;;  %13374 = vmatprep.subr.bf16.mxu1 %v23106_v35  ;;  %v23188_v14 = vld [vmem:[#allocation7 + $0x2ec] ss:$16 sps:$4 sm:$0xff]   ;;  %v23183_v35 = vld [vmem:[#allocation7 + $0xe8] ss:$16 sps:$4 sm:$0xff]  }
 0xad9   : > { %13334 = vmatpush1.bf16.msra.mxu0 %v23101_v22  ;;  %13375 = vmatpush1.bf16.msra.mxu1 %v23104_v43  ;;  %v23186_v22 = vld [vmem:[#allocation7 + $0x2e8] ss:$16 sps:$4 sm:$0xff]   ;;  %v23191_v43 = vld [vmem:[#allocation7 + $0x10c] ss:$16 sps:$4 sm:$0xff]  }
 0xada   : > { %13335 = vmatprep.subr.bf16.mxu0 %v23109_v57  ;;  %13376 = vmatprep.subr.bf16.mxu1 %v23112_v58  ;;  %v23194_v57 = vld [vmem:[#allocation7 + $0x30c] ss:$16 sps:$4 sm:$0xff]   ;;  %v23189_v58 = vld [vmem:[#allocation7 + $0x108] ss:$16 sps:$4 sm:$0xff]  }
 0xadd   : > { %13336 = vmatpush1.bf16.msra.mxu0 %v23107_v5  ;;  %13377 = vmatpush1.bf16.msra.mxu1 %v23110_v21  ;;  %v23192_v5 = vld [vmem:[#allocation7 + $0x308] ss:$16 sps:$4 sm:$0xff]   ;;  %v23197_v21 = vld [vmem:[#allocation7 + $0x12c] ss:$16 sps:$4 sm:$0xff]  }
 0xade   : > { %13337 = vmatprep.subr.bf16.mxu0 %v23115_v33  ;;  %13378 = vmatprep.subr.bf16.mxu1 %v23118_v26  ;;  %v23200_v33 = vld [vmem:[#allocation7 + $0x32c] ss:$16 sps:$4 sm:$0xff]   ;;  %v23195_v26 = vld [vmem:[#allocation7 + $0x128] ss:$16 sps:$4 sm:$0xff]  }
 0xae1   : > { %13338 = vmatpush1.bf16.msra.mxu0 %v23113_v31  ;;  %13379 = vmatpush1.bf16.msra.mxu1 %v23116_v2  ;;  %v23198_v31 = vld [vmem:[#allocation7 + $0x328] ss:$16 sps:$4 sm:$0xff]   ;;  %v23203_v2 = vld [vmem:[#allocation7 + $0x14c] ss:$16 sps:$4 sm:$0xff]  }
 0xae2   : > { %13339 = vmatprep.subr.bf16.mxu0 %v23121_v24  ;;  %13380 = vmatprep.subr.bf16.mxu1 %v23124_v40  ;;  %v23206_v24 = vld [vmem:[#allocation7 + $0x34c] ss:$16 sps:$4 sm:$0xff]   ;;  %v23201_v40 = vld [vmem:[#allocation7 + $0x148] ss:$16 sps:$4 sm:$0xff]  }
 0xae5   : > { %13340 = vmatpush1.bf16.msra.mxu0 %v23119_v19  ;;  %13381 = vmatpush1.bf16.msra.mxu1 %v23122_v41  ;;  %v23204_v19 = vld [vmem:[#allocation7 + $0x348] ss:$16 sps:$4 sm:$0xff]   ;;  %v23209_v41 = vld [vmem:[#allocation7 + $0x16c] ss:$16 sps:$4 sm:$0xff]  }
 0xae6   : > { %13341 = vmatprep.subr.bf16.mxu0 %v23127_v37  ;;  %13382 = vmatprep.subr.bf16.mxu1 %v23130_v51  ;;  %v23212_v37 = vld [vmem:[#allocation7 + $0x36c] ss:$16 sps:$4 sm:$0xff]   ;;  %v23207_v51 = vld [vmem:[#allocation7 + $0x168] ss:$16 sps:$4 sm:$0xff]  }
 0xae9   : > { %13342 = vmatpush1.bf16.msra.mxu0 %v23125_v38  ;;  %13383 = vmatpush1.bf16.msra.mxu1 %v23128_v39  ;;  %v23210_v38 = vld [vmem:[#allocation7 + $0x368] ss:$16 sps:$4 sm:$0xff]   ;;  %v23215_v39 = vld [vmem:[#allocation7 + $0x18c] ss:$16 sps:$4 sm:$0xff]  }
 0xaea   : > { %13343 = vmatprep.subr.bf16.mxu0 %v23133_v34  ;;  %13384 = vmatprep.subr.bf16.mxu1 %v23136_v52  ;;  %v23218_v34 = vld [vmem:[#allocation7 + $0x38c] ss:$16 sps:$4 sm:$0xff]   ;;  %v23213_v52 = vld [vmem:[#allocation7 + $0x188] ss:$16 sps:$4 sm:$0xff]  }
 0xaed   : > { %13344 = vmatpush1.bf16.msra.mxu0 %v23131_v44  ;;  %13385 = vmatpush1.bf16.msra.mxu1 %v23134_v10  ;;  %v23216_v44 = vld [vmem:[#allocation7 + $0x388] ss:$16 sps:$4 sm:$0xff]   ;;  %v23221_v10 = vld [vmem:[#allocation7 + $0x1ac] ss:$16 sps:$4 sm:$0xff]  }
 0xaee   : > { %13395 = vmatprep.subr.bf16.mxu0 %v23143_v50  ;;  %13436 = vmatprep.subr.bf16.mxu1 %v23146_v1  ;;  %v23224_v50 = vld [vmem:[#allocation7 + $0x3ac] ss:$16 sps:$4 sm:$0xff]   ;;  %v23219_v1 = vld [vmem:[#allocation7 + $0x1a8] ss:$16 sps:$4 sm:$0xff]  }
 0xaf0   : > { %13346 = vmatmul.mubr.bf16.vlgmr.msra.gmra.mrb[108].mxu0 %v25204_v32  ;;  %13387 = vmatmul.mubr.bf16.vlgmr.msra.gmra.mrb[108].mxu1 %v25208_v48 }
 0xaf1   : > { %13396 = vmatpush1.bf16.msra.mxu0 %v23141_v49  ;;  %13437 = vmatpush1.bf16.msra.mxu1 %v23144_v62  ;;  %v23222_v49 = vld [vmem:[#allocation7 + $0x3a8] ss:$16 sps:$4 sm:$0xff]   ;;  %v23227_v62 = vld [vmem:[#allocation7 + $0x1cc] ss:$16 sps:$4 sm:$0xff]  }
 0xaf2   : > { %13397 = vmatprep.subr.bf16.mxu0 %v23149_v6  ;;  %13438 = vmatprep.subr.bf16.mxu1 %v23152_v63  ;;  %v23230_v6 = vld [vmem:[#allocation7 + $0x3cc] ss:$16 sps:$4 sm:$0xff]   ;;  %v23225_v63 = vld [vmem:[#allocation7 + $0x1c8] ss:$16 sps:$4 sm:$0xff]  }
 0xaf3   : > { %13427 = vmatprep.mubr.bf16.mxu0 %v25167_v29  ;;  %13468 = vmatprep.mubr.bf16.mxu1 %v25171_v30  ;;  %v23165_v29 = vld [vmem:[#allocation7 + $0x88] ss:$16 sps:$4 sm:$0xff]  }
 0xaf4   : > { %v23168_v30 = vld [vmem:[#allocation7 + $0x288] ss:$16 sps:$4 sm:$0xff]  }
 0xaf5   : > { %13398 = vmatpush1.bf16.msra.mxu0 %v23147_v27  ;;  %13439 = vmatpush1.bf16.msra.mxu1 %v23150_v42  ;;  %v23228_v27 = vld [vmem:[#allocation7 + $0x3c8] ss:$16 sps:$4 sm:$0xff]   ;;  %v23233_v42 = vld [vmem:[#allocation7 + $0x1ec] ss:$16 sps:$4 sm:$0xff]  }
 0xaf6   : > { %13399 = vmatprep.subr.bf16.mxu0 %v23155_v16  ;;  %13440 = vmatprep.subr.bf16.mxu1 %v23158_v61  ;;  %v23236_v16 = vld [vmem:[#allocation7 + $0x3ec] ss:$16 sps:$4 sm:$0xff]   ;;  %v23231_v61 = vld [vmem:[#allocation7 + $0x1e8] ss:$16 sps:$4 sm:$0xff]  }
 0xaf9   : > { %13400 = vmatpush1.bf16.msra.mxu0 %v23153_v47  ;;  %13441 = vmatpush1.bf16.msra.mxu1 %v23156_v56  ;;  %v23234_v47 = vld [vmem:[#allocation7 + $0x3e8] ss:$16 sps:$4 sm:$0xff]   ;;  %v23239_v56 = vld [vmem:[#allocation7 + $0x40c] ss:$16 sps:$4 sm:$0xff]  }
 0xafa   : > { %13401 = vmatprep.subr.bf16.mxu0 %v23161_v20  ;;  %13442 = vmatprep.subr.bf16.mxu1 %v23164_v8  ;;  %v23242_v20 = vld [vmem:[#allocation7 + $0x60c] ss:$16 sps:$4 sm:$0xff]   ;;  %v23237_v8 = vld [vmem:[#allocation7 + $0x408] ss:$16 sps:$4 sm:$0xff]  }
 0xafd   : > { %13402 = vmatpush1.bf16.msra.mxu0 %v23159_v36  ;;  %13443 = vmatpush1.bf16.msra.mxu1 %v23162_v9  ;;  %v23240_v36 = vld [vmem:[#allocation7 + $0x608] ss:$16 sps:$4 sm:$0xff]   ;;  %v23245_v9 = vld [vmem:[#allocation7 + $0x42c] ss:$16 sps:$4 sm:$0xff]  }
 0xafe   : > { %13403 = vmatprep.subr.bf16.mxu0 %v23167_v15  ;;  %13444 = vmatprep.subr.bf16.mxu1 %v23170_v0  ;;  %v23248_v15 = vld [vmem:[#allocation7 + $0x62c] ss:$16 sps:$4 sm:$0xff]   ;;  %v23243_v0 = vld [vmem:[#allocation7 + $0x428] ss:$16 sps:$4 sm:$0xff]  }
 0xb01   : > { %13404 = vmatpush1.bf16.msra.mxu0 %v23165_v29  ;;  %13445 = vmatpush1.bf16.msra.mxu1 %v23168_v30  ;;  %v23246_v29 = vld [vmem:[#allocation7 + $0x628] ss:$16 sps:$4 sm:$0xff]   ;;  %v23251_v30 = vld [vmem:[#allocation7 + $0x44c] ss:$16 sps:$4 sm:$0xff]  }
 0xb02   : > { %13405 = vmatprep.subr.bf16.mxu0 %v23173_v60  ;;  %13446 = vmatprep.subr.bf16.mxu1 %v23176_v53  ;;  %v23254_v60 = vld [vmem:[#allocation7 + $0x64c] ss:$16 sps:$4 sm:$0xff]   ;;  %v23249_v53 = vld [vmem:[#allocation7 + $0x448] ss:$16 sps:$4 sm:$0xff]  }
 0xb05   : > { %13406 = vmatpush1.bf16.msra.mxu0 %v23171_v59  ;;  %13447 = vmatpush1.bf16.msra.mxu1 %v23174_v7  ;;  %v23252_v59 = vld [vmem:[#allocation7 + $0x648] ss:$16 sps:$4 sm:$0xff]  }
 0xb06   : > { %13407 = vmatprep.subr.bf16.mxu0 %v23179_v12  ;;  %13448 = vmatprep.subr.bf16.mxu1 %v23182_v17  ;;  %v23255_v7 = vld [vmem:[#allocation7 + $0x468] ss:$16 sps:$4 sm:$0xff]   ;;  %v23263_v17 = vld [vmem:[#allocation7 + $0x48c] ss:$16 sps:$4 sm:$0xff]  }
 0xb07   : > { %v23258_v12 = vld [vmem:[#allocation7 + $0x668] ss:$16 sps:$4 sm:$0xff]  }
 0xb09   : > { %13408 = vmatpush1.bf16.msra.mxu0 %v23177_v18  ;;  %13449 = vmatpush1.bf16.msra.mxu1 %v23180_v23  ;;  %v23266_v18 = vld [vmem:[#allocation7 + $0x68c] ss:$16 sps:$4 sm:$0xff]  }
 0xb0a   : > { %13409 = vmatprep.subr.bf16.mxu0 %v23185_v11  ;;  %13450 = vmatprep.subr.bf16.mxu1 %v23188_v14  ;;  %v23269_v23 = vld [vmem:[#allocation7 + $0x4ac] ss:$16 sps:$4 sm:$0xff]   ;;  %v23267_v14 = vld [vmem:[#allocation7 + $0x4a8] ss:$16 sps:$4 sm:$0xff]  }
 0xb0b   : > { %v23272_v11 = vld [vmem:[#allocation7 + $0x6ac] ss:$16 sps:$4 sm:$0xff]  }
 0xb0d   : > { %13410 = vmatpush1.bf16.msra.mxu0 %v23183_v35  ;;  %13451 = vmatpush1.bf16.msra.mxu1 %v23186_v22  ;;  %v23270_v35 = vld [vmem:[#allocation7 + $0x6a8] ss:$16 sps:$4 sm:$0xff]   ;;  %v23275_v22 = vld [vmem:[#allocation7 + $0x4cc] ss:$16 sps:$4 sm:$0xff]  }
 0xb0e   : > { %13411 = vmatprep.subr.bf16.mxu0 %v23191_v43  ;;  %13452 = vmatprep.subr.bf16.mxu1 %v23194_v57  ;;  %v23278_v43 = vld [vmem:[#allocation7 + $0x6cc] ss:$16 sps:$4 sm:$0xff]  }
 0xb11   : > { %13412 = vmatpush1.bf16.msra.mxu0 %v23189_v58  ;;  %13453 = vmatpush1.bf16.msra.mxu1 %v23192_v5 }
 0xb12   : > { %13413 = vmatprep.subr.bf16.mxu0 %v23197_v21  ;;  %13454 = vmatprep.subr.bf16.mxu1 %v23200_v33 }
 0xb15   : > { %13414 = vmatpush1.bf16.msra.mxu0 %v23195_v26  ;;  %13455 = vmatpush1.bf16.msra.mxu1 %v23198_v31  ;;  %v23273_v31 = vld [vmem:[#allocation7 + $0x4c8] ss:$16 sps:$4 sm:$0xff]  }
 0xb16   : > { %13415 = vmatprep.subr.bf16.mxu0 %v23203_v2  ;;  %13456 = vmatprep.subr.bf16.mxu1 %v23206_v24  ;;  %v23276_v2 = vld [vmem:[#allocation7 + $0x6c8] ss:$16 sps:$4 sm:$0xff]  }
 0xb19   : > { %13416 = vmatpush1.bf16.msra.mxu0 %v23201_v40  ;;  %13457 = vmatpush1.bf16.msra.mxu1 %v23204_v19  ;;  %v23281_v19 = vld [vmem:[#allocation7 + $0x4ec] ss:$16 sps:$4 sm:$0xff]  }
 0xb1a   : > { %13417 = vmatprep.subr.bf16.mxu0 %v23209_v41  ;;  %13458 = vmatprep.subr.bf16.mxu1 %v23212_v37  ;;  %v23284_v41 = vld [vmem:[#allocation7 + $0x6ec] ss:$16 sps:$4 sm:$0xff]   ;;  %v23279_v37 = vld [vmem:[#allocation7 + $0x4e8] ss:$16 sps:$4 sm:$0xff]  }
 0xb1d   : > { %13418 = vmatpush1.bf16.msra.mxu0 %v23207_v51  ;;  %13459 = vmatpush1.bf16.msra.mxu1 %v23210_v38  ;;  %v23282_v51 = vld [vmem:[#allocation7 + $0x6e8] ss:$16 sps:$4 sm:$0xff]   ;;  %v23287_v38 = vld [vmem:[#allocation7 + $0x50c] ss:$16 sps:$4 sm:$0xff]  }
 0xb1e   : > { %13419 = vmatprep.subr.bf16.mxu0 %v23215_v39  ;;  %13460 = vmatprep.subr.bf16.mxu1 %v23218_v34  ;;  %v23290_v39 = vld [vmem:[#allocation7 + $0x70c] ss:$16 sps:$4 sm:$0xff]   ;;  %v23285_v34 = vld [vmem:[#allocation7 + $0x508] ss:$16 sps:$4 sm:$0xff]  }
 0xb21   : > { %13420 = vmatpush1.bf16.msra.mxu0 %v23213_v52  ;;  %13461 = vmatpush1.bf16.msra.mxu1 %v23216_v44  ;;  %v23288_v52 = vld [vmem:[#allocation7 + $0x708] ss:$16 sps:$4 sm:$0xff]   ;;  %v23293_v44 = vld [vmem:[#allocation7 + $0x52c] ss:$16 sps:$4 sm:$0xff]  }
 0xb22   : > { %13421 = vmatprep.subr.bf16.mxu0 %v23221_v10  ;;  %13462 = vmatprep.subr.bf16.mxu1 %v23224_v50  ;;  %v23296_v10 = vld [vmem:[#allocation7 + $0x72c] ss:$16 sps:$4 sm:$0xff]   ;;  %v23291_v50 = vld [vmem:[#allocation7 + $0x528] ss:$16 sps:$4 sm:$0xff]  }
 0xb25   : > { %13422 = vmatpush1.bf16.msra.mxu0 %v23219_v1  ;;  %13463 = vmatpush1.bf16.msra.mxu1 %v23222_v49  ;;  %v23294_v1 = vld [vmem:[#allocation7 + $0x728] ss:$16 sps:$4 sm:$0xff]   ;;  %v23299_v49 = vld [vmem:[#allocation7 + $0x54c] ss:$16 sps:$4 sm:$0xff]  }
 0xb26   : > { %13423 = vmatprep.subr.bf16.mxu0 %v23227_v62  ;;  %13464 = vmatprep.subr.bf16.mxu1 %v23230_v6  ;;  %v23302_v62 = vld [vmem:[#allocation7 + $0x74c] ss:$16 sps:$4 sm:$0xff]   ;;  %v23297_v6 = vld [vmem:[#allocation7 + $0x548] ss:$16 sps:$4 sm:$0xff]  }
 0xb29   : > { %13424 = vmatpush1.bf16.msra.mxu0 %v23225_v63  ;;  %13465 = vmatpush1.bf16.msra.mxu1 %v23228_v27  ;;  %v23300_v63 = vld [vmem:[#allocation7 + $0x748] ss:$16 sps:$4 sm:$0xff]   ;;  %v23305_v27 = vld [vmem:[#allocation7 + $0x56c] ss:$16 sps:$4 sm:$0xff]  }
 0xb2a   : > { %13425 = vmatprep.subr.bf16.mxu0 %v23233_v42  ;;  %13466 = vmatprep.subr.bf16.mxu1 %v23236_v16  ;;  %v23308_v42 = vld [vmem:[#allocation7 + $0x76c] ss:$16 sps:$4 sm:$0xff]   ;;  %v23303_v16 = vld [vmem:[#allocation7 + $0x568] ss:$16 sps:$4 sm:$0xff]  }
 0xb2d   : > { %13426 = vmatpush1.bf16.msra.mxu0 %v23231_v61  ;;  %13467 = vmatpush1.bf16.msra.mxu1 %v23234_v47  ;;  %v23306_v61 = vld [vmem:[#allocation7 + $0x768] ss:$16 sps:$4 sm:$0xff]   ;;  %v23311_v47 = vld [vmem:[#allocation7 + $0x58c] ss:$16 sps:$4 sm:$0xff]  }
 0xb2e   : > { %13477 = vmatprep.subr.bf16.mxu0 %v23239_v56  ;;  %13518 = vmatprep.subr.bf16.mxu1 %v23242_v20  ;;  %v23314_v56 = vld [vmem:[#allocation7 + $0x78c] ss:$16 sps:$4 sm:$0xff]   ;;  %v23309_v20 = vld [vmem:[#allocation7 + $0x588] ss:$16 sps:$4 sm:$0xff]  }
 0xb30   : > { %13428 = vmatmul.mubr.bf16.vlgmr.msra.gmra.mrb[112].mxu0 %v25178_v45  ;;  %13469 = vmatmul.mubr.bf16.vlgmr.msra.gmra.mrb[112].mxu1 %v25182_v46  ;;  %v23257_v45 = vld [vmem:[#allocation7 + $0x46c] ss:$16 sps:$4 sm:$0xff]  }
 0xb31   : > { %13478 = vmatpush1.bf16.msra.mxu0 %v23237_v8  ;;  %13519 = vmatpush1.bf16.msra.mxu1 %v23240_v36  ;;  %v23260_v46 = vld [vmem:[#allocation7 + $0x66c] ss:$16 sps:$4 sm:$0xff]   ;;  %v23312_v8 = vld [vmem:[#allocation7 + $0x788] ss:$16 sps:$4 sm:$0xff]  }
 0xb32   : > { %13479 = vmatprep.subr.bf16.mxu0 %v23245_v9  ;;  %13520 = vmatprep.subr.bf16.mxu1 %v23248_v15  ;;  %v23317_v36 = vld [vmem:[#allocation7 + $0x5ac] ss:$16 sps:$4 sm:$0xff]   ;;  %v23315_v15 = vld [vmem:[#allocation7 + $0x5a8] ss:$16 sps:$4 sm:$0xff]  }
 0xb33   : > { %13509 = vmatprep.mubr.bf16.mxu0 %v25192_v13  ;;  %13550 = vmatprep.mubr.bf16.mxu1 %v25196_v4  ;;  %v23261_v13 = vld [vmem:[#allocation7 + $0x488] ss:$16 sps:$4 sm:$0xff]   ;;  %v23320_v9 = vld [vmem:[#allocation7 + $0x7ac] ss:$16 sps:$4 sm:$0xff]  }
 0xb34   : > { %v23264_v4 = vld [vmem:[#allocation7 + $0x688] ss:$16 sps:$4 sm:$0xff]  }
 0xb35   : > { %13480 = vmatpush1.bf16.msra.mxu0 %v23243_v0  ;;  %13521 = vmatpush1.bf16.msra.mxu1 %v23246_v29  ;;  %v23318_v0 = vld [vmem:[#allocation7 + $0x7a8] ss:$16 sps:$4 sm:$0xff]   ;;  %v23323_v29 = vld [vmem:[#allocation7 + $0x5cc] ss:$16 sps:$4 sm:$0xff]  }
 0xb36   : > { %13481 = vmatprep.subr.bf16.mxu0 %v23251_v30  ;;  %13522 = vmatprep.subr.bf16.mxu1 %v23254_v60  ;;  %v23326_v30 = vld [vmem:[#allocation7 + $0x7cc] ss:$16 sps:$4 sm:$0xff]   ;;  %v23321_v60 = vld [vmem:[#allocation7 + $0x5c8] ss:$16 sps:$4 sm:$0xff]  }
 0xb39   : > { %13482 = vmatpush1.bf16.msra.mxu0 %v23249_v53  ;;  %13523 = vmatpush1.bf16.msra.mxu1 %v23252_v59  ;;  %v23324_v53 = vld [vmem:[#allocation7 + $0x7c8] ss:$16 sps:$4 sm:$0xff]   ;;  %v23329_v59 = vld [vmem:[#allocation7 + $0x5ec] ss:$16 sps:$4 sm:$0xff]  }
 0xb3a   : > { %13483 = vmatprep.subr.bf16.mxu0 %v23257_v45  ;;  %13524 = vmatprep.subr.bf16.mxu1 %v23260_v46  ;;  %v23332_v45 = vld [vmem:[#allocation7 + $0x7ec] ss:$16 sps:$4 sm:$0xff]   ;;  %v23327_v46 = vld [vmem:[#allocation7 + $0x5e8] ss:$16 sps:$4 sm:$0xff]  }
 0xb3d   : > { %13484 = vmatpush1.bf16.msra.mxu0 %v23255_v7  ;;  %13525 = vmatpush1.bf16.msra.mxu1 %v23258_v12  ;;  %v23330_v7 = vld [vmem:[#allocation7 + $0x7e8] ss:$16 sps:$4 sm:$0xff]  }
 0xb3e   : > { %13485 = vmatprep.subr.bf16.mxu0 %v23263_v17  ;;  %13526 = vmatprep.subr.bf16.mxu1 %v23266_v18 }
 0xb41   : > { %13486 = vmatpush1.bf16.msra.mxu0 %v23261_v13  ;;  %13527 = vmatpush1.bf16.msra.mxu1 %v23264_v4 }
 0xb42   : > { %13487 = vmatprep.subr.bf16.mxu0 %v23269_v23  ;;  %13528 = vmatprep.subr.bf16.mxu1 %v23272_v11 }
 0xb43   : > { %v25218_v57 = vpop.f32.mrb[100].mxu0  ;;  %v25220_v58 = vpop.f32.mrb[100].mxu1 }
 0xb44   : > { %v25222_v5 = vpop.f32.mrb[101].mxu0  ;;  %v25224_v21 = vpop.f32.mrb[101].mxu1 }
 0xb45   : > { %13488 = vmatpush1.bf16.msra.mxu0 %v23267_v14  ;;  %13529 = vmatpush1.bf16.msra.mxu1 %v23270_v35  ;;  %v11879_v33 = vpop.f32.mrb[102].mxu0  ;;  %v11920_v26 = vpop.f32.mrb[102].mxu1 }
 0xb46   : > { %v11880_v24 = vpop.f32.mrb[103].mxu0  ;;  %v11921_v40 = vpop.f32.mrb[103].mxu1  ;;  %13489 = vmatprep.subr.bf16.mxu0 %v23275_v22  ;;  %13530 = vmatprep.subr.bf16.mxu1 %v23278_v43 }
 0xb49   : > { %13490 = vmatpush1.bf16.msra.mxu0 %v23273_v31  ;;  %13531 = vmatpush1.bf16.msra.mxu1 %v23276_v2 }
 0xb4a   : > { %13491 = vmatprep.subr.bf16.mxu0 %v23281_v19  ;;  %13532 = vmatprep.subr.bf16.mxu1 %v23284_v41  ;;  %v23335_v41 = vld [vmem:[#allocation9 + $0x4] ss:$16 sps:$4 sm:$0xff]  }
 0xb4d   : > { %13492 = vmatpush1.bf16.msra.mxu0 %v23279_v37  ;;  %13533 = vmatpush1.bf16.msra.mxu1 %v23282_v51 }
 0xb4e   : > { %13493 = vmatprep.subr.bf16.mxu0 %v23287_v38  ;;  %13534 = vmatprep.subr.bf16.mxu1 %v23290_v39  ;;  %v23333_v38 = vld [vmem:[#allocation9] ss:$16 sps:$4 sm:$0xff]   ;;  %v23336_v39 = vld [vmem:[#allocation9 + $0x8] ss:$16 sps:$4 sm:$0xff]  }
 0xb51   : > { %13494 = vmatpush1.bf16.msra.mxu0 %v23285_v34  ;;  %13535 = vmatpush1.bf16.msra.mxu1 %v23288_v52  ;;  %v23341_v52 = vld [vmem:[#allocation9 + $0x24] ss:$16 sps:$4 sm:$0xff]  }
 0xb52   : > { %13495 = vmatprep.subr.bf16.mxu0 %v23293_v44  ;;  %13536 = vmatprep.subr.bf16.mxu1 %v23296_v10  ;;  %v23344_v44 = vld [vmem:[#allocation9 + $0x2c] ss:$16 sps:$4 sm:$0xff]   ;;  %v23339_v10 = vld [vmem:[#allocation9 + $0x20] ss:$16 sps:$4 sm:$0xff]  }
 0xb55   : > { %13496 = vmatpush1.bf16.msra.mxu0 %v23291_v50  ;;  %13537 = vmatpush1.bf16.msra.mxu1 %v23294_v1  ;;  %v23342_v50 = vld [vmem:[#allocation9 + $0x28] ss:$16 sps:$4 sm:$0xff]   ;;  %v23347_v1 = vld [vmem:[#allocation9 + $0x44] ss:$16 sps:$4 sm:$0xff]  }
 0xb56   : > { %13497 = vmatprep.subr.bf16.mxu0 %v23299_v49  ;;  %13538 = vmatprep.subr.bf16.mxu1 %v23302_v62  ;;  %v23350_v49 = vld [vmem:[#allocation9 + $0x4c] ss:$16 sps:$4 sm:$0xff]   ;;  %v23345_v62 = vld [vmem:[#allocation9 + $0x40] ss:$16 sps:$4 sm:$0xff]  }
 0xb59   : > { %13498 = vmatpush1.bf16.msra.mxu0 %v23297_v6  ;;  %13539 = vmatpush1.bf16.msra.mxu1 %v23300_v63  ;;  %v23348_v6 = vld [vmem:[#allocation9 + $0x48] ss:$16 sps:$4 sm:$0xff]   ;;  %v23353_v63 = vld [vmem:[#allocation9 + $0x64] ss:$16 sps:$4 sm:$0xff]  }
 0xb5a   : > { %13499 = vmatprep.subr.bf16.mxu0 %v23305_v27  ;;  %13540 = vmatprep.subr.bf16.mxu1 %v23308_v42  ;;  %v23356_v27 = vld [vmem:[#allocation9 + $0x6c] ss:$16 sps:$4 sm:$0xff]   ;;  %v23351_v42 = vld [vmem:[#allocation9 + $0x60] ss:$16 sps:$4 sm:$0xff]  }
 0xb5d   : > { %13500 = vmatpush1.bf16.msra.mxu0 %v23303_v16  ;;  %13541 = vmatpush1.bf16.msra.mxu1 %v23306_v61  ;;  %v23354_v16 = vld [vmem:[#allocation9 + $0x68] ss:$16 sps:$4 sm:$0xff]   ;;  %v23359_v61 = vld [vmem:[#allocation9 + $0x84] ss:$16 sps:$4 sm:$0xff]  }
 0xb5e   : > { %13501 = vmatprep.subr.bf16.mxu0 %v23311_v47  ;;  %13542 = vmatprep.subr.bf16.mxu1 %v23314_v56  ;;  %v23362_v47 = vld [vmem:[#allocation9 + $0x8c] ss:$16 sps:$4 sm:$0xff]   ;;  %v23357_v56 = vld [vmem:[#allocation9 + $0x80] ss:$16 sps:$4 sm:$0xff]  }
 0xb61   : > { %13502 = vmatpush1.bf16.msra.mxu0 %v23309_v20  ;;  %13543 = vmatpush1.bf16.msra.mxu1 %v23312_v8  ;;  %v23360_v20 = vld [vmem:[#allocation9 + $0x88] ss:$16 sps:$4 sm:$0xff]   ;;  %v23365_v8 = vld [vmem:[#allocation9 + $0xa4] ss:$16 sps:$4 sm:$0xff]  }
 0xb62   : > { %13503 = vmatprep.subr.bf16.mxu0 %v23317_v36  ;;  %13544 = vmatprep.subr.bf16.mxu1 %v23320_v9  ;;  %v23368_v36 = vld [vmem:[#allocation9 + $0xac] ss:$16 sps:$4 sm:$0xff]   ;;  %v23363_v9 = vld [vmem:[#allocation9 + $0xa0] ss:$16 sps:$4 sm:$0xff]  }
 0xb65   : > { %13504 = vmatpush1.bf16.msra.mxu0 %v23315_v15  ;;  %13545 = vmatpush1.bf16.msra.mxu1 %v23318_v0  ;;  %v23366_v15 = vld [vmem:[#allocation9 + $0xa8] ss:$16 sps:$4 sm:$0xff]   ;;  %v23371_v0 = vld [vmem:[#allocation9 + $0xc4] ss:$16 sps:$4 sm:$0xff]  }
 0xb66   : > { %13505 = vmatprep.subr.bf16.mxu0 %v23323_v29  ;;  %13546 = vmatprep.subr.bf16.mxu1 %v23326_v30  ;;  %v23374_v29 = vld [vmem:[#allocation9 + $0xcc] ss:$16 sps:$4 sm:$0xff]   ;;  %v23369_v30 = vld [vmem:[#allocation9 + $0xc0] ss:$16 sps:$4 sm:$0xff]  }
 0xb69   : > { %13506 = vmatpush1.bf16.msra.mxu0 %v23321_v60  ;;  %13547 = vmatpush1.bf16.msra.mxu1 %v23324_v53  ;;  %v23372_v60 = vld [vmem:[#allocation9 + $0xc8] ss:$16 sps:$4 sm:$0xff]   ;;  %v23377_v53 = vld [vmem:[#allocation9 + $0xe4] ss:$16 sps:$4 sm:$0xff]  }
 0xb6a   : > { %13507 = vmatprep.subr.bf16.mxu0 %v23329_v59  ;;  %13548 = vmatprep.subr.bf16.mxu1 %v23332_v45  ;;  %v23380_v59 = vld [vmem:[#allocation9 + $0xec] ss:$16 sps:$4 sm:$0xff]   ;;  %v23375_v45 = vld [vmem:[#allocation9 + $0xe0] ss:$16 sps:$4 sm:$0xff]  }
 0xb6d   : > { %13508 = vmatpush1.bf16.msra.mxu0 %v23327_v46  ;;  %13549 = vmatpush1.bf16.msra.mxu1 %v23330_v7  ;;  %v23378_v46 = vld [vmem:[#allocation9 + $0xe8] ss:$16 sps:$4 sm:$0xff]   ;;  %v23383_v7 = vld [vmem:[#allocation7 + $0x4] ss:$16 sps:$4 sm:$0xff]  }
 0xb6e   : > { %14064 = vmatprep.subr.bf16.mxu0 %v23335_v41 }
 0xb70   : > { %13510 = vmatmul.mubr.bf16.vlgmr.msra.gmra.mrb[116].mxu0 %v25204_v32  ;;  %13551 = vmatmul.mubr.bf16.vlgmr.msra.gmra.mrb[116].mxu1 %v25208_v48 }
 0xb71   : > { %14096 = vmatprep.mubr.bf16.mxu0 %v24475_v3  ;;  %14137 = vmatprep.mubr.bf16.mxu1 %v24475_v3 }
 0xb72   : > { %14065 = vmatpush1.bf16.msra.mxu0 %v23333_v38 }
 0xb73   : > { %14066 = vmatprep.subr.bf16.mxu0 %v23341_v52 }
 0xb76   : > { %14067 = vmatpush1.bf16.msra.mxu0 %v23339_v10 }
 0xb77   : > { %14068 = vmatprep.subr.bf16.mxu0 %v23347_v1 }
 0xb7a   : > { %14069 = vmatpush1.bf16.msra.mxu0 %v23345_v62 }
 0xb7b   : > { %14070 = vmatprep.subr.bf16.mxu0 %v23353_v63 }
 0xb7e   : > { %14071 = vmatpush1.bf16.msra.mxu0 %v23351_v42 }
 0xb7f   : > { %14072 = vmatprep.subr.bf16.mxu0 %v23359_v61 }
 0xb82   : > { %14073 = vmatpush1.bf16.msra.mxu0 %v23357_v56  ;;  %v13598_v56 = vld [vmem:[#allocation3] sm:$0xff] }
 0xb83   : > { %v13265_v12 = vpop.f32.mrb[104].mxu0  ;;  %v13306_v17 = vpop.f32.mrb[104].mxu1  ;;  %14074 = vmatprep.subr.bf16.mxu0 %v23365_v8 }
 0xb84   : > { %v13266_v18 = vadd.f32 %v13265_v12, %v25218_v57  ;;  %v13267_v13 = vpop.f32.mrb[105].mxu0  ;;  %v13308_v4 = vpop.f32.mrb[105].mxu1  ;;  %v23338_v57 = vld [vmem:[#allocation9 + $0xc] ss:$16 sps:$4 sm:$0xff]   ;;  %v23386_v12 = vld [vmem:[#allocation7 + $0x204] ss:$16 sps:$4 sm:$0xff]  }
 0xb85   : > { %v13268_v23 = vadd.f32 %v13267_v13, %v25222_v5  ;;  %v13269_v11 = vpop.f32.mrb[106].mxu0  ;;  %v13310_v14 = vpop.f32.mrb[106].mxu1  ;;  %14105 = vmatprep.subr.bf16.mxu1 %v23338_v57 }
 0xb86   : > { %v13307_v35 = vadd.f32 %v13306_v17, %v13266_v18  ;;  %v13270_v22 = vpop.f32.mrb[107].mxu0  ;;  %v13311_v43 = vpop.f32.mrb[107].mxu1  ;;  %14106 = vmatpush1.bf16.msra.mxu1 %v23336_v39  ;;  %14075 = vmatpush1.bf16.msra.mxu0 %v23363_v9 }
 0xb87   : > { %v13309_v32 = vadd.f32 %v13308_v4, %v13268_v23  ;;  %14107 = vmatprep.subr.bf16.mxu1 %v23344_v44  ;;  %14076 = vmatprep.subr.bf16.mxu0 %v23371_v0 }
 0xb8a   : > { %14108 = vmatpush1.bf16.msra.mxu1 %v23342_v50  ;;  %14077 = vmatpush1.bf16.msra.mxu0 %v23369_v30 }
 0xb8b   : > { %14109 = vmatprep.subr.bf16.mxu1 %v23350_v49  ;;  %14078 = vmatprep.subr.bf16.mxu0 %v23377_v53  ;;  %v25251_v53 = vld [vmem:[%s24696_s9 + $0xc8] sm:$0xff] }
 0xb8e   : > { %14110 = vmatpush1.bf16.msra.mxu1 %v23348_v6  ;;  %14079 = vmatpush1.bf16.msra.mxu0 %v23375_v45  ;;  %v23384_v45 = vld [vmem:[#allocation7 + $0x200] ss:$16 sps:$4 sm:$0xff]  }
 0xb8f   : > { %14111 = vmatprep.subr.bf16.mxu1 %v23356_v27  ;;  %15454 = vmatprep.subr.bf16.mxu0 %v23383_v7  ;;  %v23389_v7 = vld [vmem:[#allocation7 + $0x24] ss:$16 sps:$4 sm:$0xff]  }
 0xb92   : > { %14112 = vmatpush1.bf16.msra.mxu1 %v23354_v16 }
 0xb93   : > { %14113 = vmatprep.subr.bf16.mxu1 %v23362_v47 }
 0xb96   : > { %14114 = vmatpush1.bf16.msra.mxu1 %v23360_v20 }
 0xb97   : > { %14115 = vmatprep.subr.bf16.mxu1 %v23368_v36 }
 0xb9a   : > { %14116 = vmatpush1.bf16.msra.mxu1 %v23366_v15 }
 0xb9b   : > { %14117 = vmatprep.subr.bf16.mxu1 %v23374_v29 }
 0xb9e   : > { %14118 = vmatpush1.bf16.msra.mxu1 %v23372_v60  ;;  %v25248_v60 = vld [vmem:[%s24696_s9 + $0xc0] sm:$0xff] }
 0xb9f   : > { %14119 = vmatprep.subr.bf16.mxu1 %v23380_v59  ;;  %v23381_v59 = vld [vmem:[#allocation7] ss:$16 sps:$4 sm:$0xff]  }
 0xba2   : > { %14120 = vmatpush1.bf16.msra.mxu1 %v23378_v46 }
 0xba3   : > { %15495 = vmatprep.subr.bf16.mxu1 %v23386_v12  ;;  %v23392_v12 = vld [vmem:[#allocation7 + $0x224] ss:$16 sps:$4 sm:$0xff]  }
 0xbc3   : > { %v13347_v33 = vpop.f32.mrb[108].mxu0  ;;  %v13388_v48 = vpop.f32.mrb[108].mxu1 }
 0xbc4   : > { %v13348_v26 = vadd.f32 %v13347_v33, %v13307_v35  ;;  %v13349_v31 = vpop.f32.mrb[109].mxu0  ;;  %v13390_v2 = vpop.f32.mrb[109].mxu1 }
 0xbc5   : > { %v13350_v24 = vadd.f32 %v13349_v31, %v13309_v32  ;;  %v13351_v40 = vpop.f32.mrb[110].mxu0  ;;  %v13392_v19 = vpop.f32.mrb[110].mxu1 }
 0xbc6   : > { %v25232_v37 = vadd.f32 %v13388_v48, %v13348_v26  ;;  %v13352_v51 = vpop.f32.mrb[111].mxu0  ;;  %v13393_v5 = vpop.f32.mrb[111].mxu1  ;;  %v13559_v48 = vld [vmem:[%s25475_s3] sm:$0xf] }
 0xbc7   : > { %v25234_v34 = vadd.f32 %v13390_v2, %v13350_v24  ;;  %v13568_v26 = vrot.slane %v13559_v48, %v24790_v54  ;;  %v13564_v31 = vrot.slane %v13559_v48, %v24795_v55  ;;  %v13572_v57 = vrot.slane %v13559_v48, %v24801_v25 }
 0xbc8   : > { %v13576_v39 = vrot.slane %v13559_v48, %v24803_v28  ;;  %v23407_v48 = vld [vmem:[#allocation7 + $0x84] ss:$16 sps:$4 sm:$0xff]  }
 0xbc9   : > { %v13581_v2 = vadd.f32 %v13564_v31, %v25232_v37  ;;  %v23405_v31 = vld [vmem:[#allocation7 + $0x80] ss:$16 sps:$4 sm:$0xff]  }
 0xc03   : > { %v13429_v17 = vpop.f32.mrb[112].mxu0  ;;  %v13470_v18 = vpop.f32.mrb[112].mxu1 }
 0xc04   : > { %v13430_v13 = vadd.f32 %v13429_v17, %v25220_v58  ;;  %v13431_v4 = vpop.f32.mrb[113].mxu0  ;;  %v13472_v23 = vpop.f32.mrb[113].mxu1  ;;  %v13582_v58 = vadd.f32 %v13568_v26, %v25234_v34  ;;  %v25255_v17 = vcombine.high %v25248_v60, %v25248_v60  ;;  %v23410_v26 = vld [vmem:[#allocation7 + $0x284] ss:$16 sps:$4 sm:$0xff]  }
 0xc05   : > { %v13432_v11 = vadd.f32 %v13431_v4, %v25224_v21  ;;  %v13433_v14 = vpop.f32.mrb[114].mxu0  ;;  %v13474_v35 = vpop.f32.mrb[114].mxu1  ;;  %v13585_v21 = vmul.f32 0.5, %v13581_v2  ;;  %v23390_v4 = vld [vmem:[#allocation7 + $0x220] ss:$16 sps:$4 sm:$0xff]  }
 0xc06   : > { %v13471_v22 = vadd.f32 %v13470_v18, %v13430_v13  ;;  %v13434_v43 = vpop.f32.mrb[115].mxu0  ;;  %v13475_v32 = vpop.f32.mrb[115].mxu1  ;;  %v13589_v24 = vmul.f32 0.5, %v13582_v58  ;;  %v25259_v18 = vcombine.high %v25251_v53, %v25251_v53  ;;  %v23387_v13 = vld [vmem:[#allocation7 + $0x20] ss:$16 sps:$4 sm:$0xff]  }
 0xc07   : > { %v13473_v33 = vadd.f32 %v13472_v23, %v13432_v11  ;;  %v23395_v23 = vld [vmem:[#allocation7 + $0x44] ss:$16 sps:$4 sm:$0xff]   ;;  %v23393_v14 = vld [vmem:[#allocation7 + $0x40] ss:$16 sps:$4 sm:$0xff]  }
 0xc08   : > { %24263 = vtanh.f32 %v13589_v24  ;;  %v23398_v11 = vld [vmem:[#allocation7 + $0x244] ss:$16 sps:$4 sm:$0xff]   ;;  %v23396_v35 = vld [vmem:[#allocation7 + $0x240] ss:$16 sps:$4 sm:$0xff]  }
 0xc09   : > { %24265 = vtanh.f32 %v13585_v21  ;;  %v23404_v43 = vld [vmem:[#allocation7 + $0x264] ss:$16 sps:$4 sm:$0xff]   ;;  %v23399_v32 = vld [vmem:[#allocation7 + $0x60] ss:$16 sps:$4 sm:$0xff]  }
 0xc0a   : > { %v23408_v58 = vld [vmem:[#allocation7 + $0x280] ss:$16 sps:$4 sm:$0xff]   ;;  %v23413_v2 = vld [vmem:[#allocation7 + $0xa4] ss:$16 sps:$4 sm:$0xff]  }
 0xc0b   : > { %v23416_v24 = vld [vmem:[#allocation7 + $0x2a4] ss:$16 sps:$4 sm:$0xff]   ;;  %v23411_v21 = vld [vmem:[#allocation7 + $0xa0] ss:$16 sps:$4 sm:$0xff]  }
 0xc12   : > { %v24264_v62 = vpop.eup %24263 }
 0xc13   : > { %v24266_v6 = vpop.eup %24265  ;;  %v13591_v63 = vadd.f32 1.0, %v24264_v62  ;;  %v23438_v62 = vld [vmem:[#allocation7 + $0x320] ss:$16 sps:$4 sm:$0xff]  }
 0xc14   : > { %v13587_v42 = vadd.f32 1.0, %v24266_v6  ;;  %v23443_v6 = vld [vmem:[#allocation7 + $0x144] ss:$16 sps:$4 sm:$0xff]  }
 0xc15   : > { %v13592_v16 = vmul.f32 0.5, %v13591_v63  ;;  %v23446_v63 = vld [vmem:[#allocation7 + $0x344] ss:$16 sps:$4 sm:$0xff]  }
 0xc16   : > { %v13588_v61 = vmul.f32 0.5, %v13587_v42  ;;  %v23444_v42 = vld [vmem:[#allocation7 + $0x340] ss:$16 sps:$4 sm:$0xff]  }
 0xc17   : > { %v13599_v20 = vmul.f32 %v13598_v56, %v13592_v16  ;;  %v23449_v16 = vld [vmem:[#allocation7 + $0x164] ss:$16 sps:$4 sm:$0xff]   ;;  %v23450_v56 = vld [vmem:[#allocation7 + $0x360] ss:$16 sps:$4 sm:$0xff]  }
 0xc43   : > { %v13511_v40 = vpop.f32.mrb[116].mxu0  ;;  %v13552_v19 = vpop.f32.mrb[116].mxu1 }
 0xc44   : > { %v13512_v41 = vadd.f32 %v13511_v40, %v13471_v22  ;;  %v13513_v51 = vpop.f32.mrb[117].mxu0  ;;  %v13554_v5 = vpop.f32.mrb[117].mxu1  ;;  %v23401_v22 = vld [vmem:[#allocation7 + $0x64] ss:$16 sps:$4 sm:$0xff]   ;;  %v23414_v40 = vld [vmem:[#allocation7 + $0x2a0] ss:$16 sps:$4 sm:$0xff]  }
 0xc45   : > { %v13514_v38 = vadd.f32 %v13513_v51, %v13473_v33  ;;  %v13515_v52 = vpop.f32.mrb[118].mxu0  ;;  %v13556_v44 = vpop.f32.mrb[118].mxu1  ;;  %v23402_v33 = vld [vmem:[#allocation7 + $0x260] ss:$16 sps:$4 sm:$0xff]  }
 0xc46   : > { %v13553_v10 = vadd.f32 %v13552_v19, %v13512_v41  ;;  %v13516_v34 = vpop.f32.mrb[119].mxu0  ;;  %v13557_v50 = vpop.f32.mrb[119].mxu1  ;;  %v23419_v19 = vld [vmem:[#allocation7 + $0xc4] ss:$16 sps:$4 sm:$0xff]   ;;  %v23420_v51 = vld [vmem:[#allocation7 + $0x2c0] ss:$16 sps:$4 sm:$0xff]  }
 0xc47   : > { %v13555_v37 = vadd.f32 %v13554_v5, %v13514_v38  ;;  %v23422_v41 = vld [vmem:[#allocation7 + $0x2c4] ss:$16 sps:$4 sm:$0xff]   ;;  %v23426_v52 = vld [vmem:[#allocation7 + $0x2e0] ss:$16 sps:$4 sm:$0xff]  }
 0xc48   : > { %v13583_v1 = vadd.f32 %v13572_v57, %v13553_v10  ;;  %v23417_v57 = vld [vmem:[#allocation7 + $0xc0] ss:$16 sps:$4 sm:$0xff]   ;;  %v23425_v5 = vld [vmem:[#allocation7 + $0xe4] ss:$16 sps:$4 sm:$0xff]  }
 0xc49   : > { %v13584_v49 = vadd.f32 %v13576_v39, %v13555_v37  ;;  %v23428_v38 = vld [vmem:[#allocation7 + $0x2e4] ss:$16 sps:$4 sm:$0xff]   ;;  %v23423_v39 = vld [vmem:[#allocation7 + $0xe0] ss:$16 sps:$4 sm:$0xff]  }
 0xc4a   : > { %24267 = vtanh.f32 %v13583_v1  ;;  %v23431_v44 = vld [vmem:[#allocation7 + $0x104] ss:$16 sps:$4 sm:$0xff]   ;;  %v23429_v34 = vld [vmem:[#allocation7 + $0x100] ss:$16 sps:$4 sm:$0xff]  }
 0xc4b   : > { %v13594_v27 = vmul.f32 0.5, %v13584_v49  ;;  %v23434_v10 = vld [vmem:[#allocation7 + $0x304] ss:$16 sps:$4 sm:$0xff]   ;;  %v23432_v50 = vld [vmem:[#allocation7 + $0x300] ss:$16 sps:$4 sm:$0xff]  }
 0xc4c   : > { %v23437_v37 = vld [vmem:[#allocation7 + $0x124] ss:$16 sps:$4 sm:$0xff]   ;;  %v23435_v49 = vld [vmem:[#allocation7 + $0x120] ss:$16 sps:$4 sm:$0xff]  }
 0xc4d   : > { %24269 = vtanh.f32 %v13594_v27  ;;  %v23440_v1 = vld [vmem:[#allocation7 + $0x324] ss:$16 sps:$4 sm:$0xff]   ;;  %v23441_v27 = vld [vmem:[#allocation7 + $0x140] ss:$16 sps:$4 sm:$0xff]  }
 0xc54   : > { %v24268_v47 = vpop.eup %24267 }
 0xc55   : > { %v13600_v8 = vmul.f32 %v24268_v47, %v13588_v61  ;;  %v23452_v61 = vld [vmem:[#allocation7 + $0x364] ss:$16 sps:$4 sm:$0xff]   ;;  %v23447_v47 = vld [vmem:[#allocation7 + $0x160] ss:$16 sps:$4 sm:$0xff]  }
 0xc57   : > { %v13601_v36 = vadd.f32 %v13600_v8, %v13599_v20  ;;  %v24270_v9 = vpop.eup %24269  ;;  %v23455_v20 = vld [vmem:[#allocation7 + $0x184] ss:$16 sps:$4 sm:$0xff]  }
 0xc58   : > { %v13596_v15 = vadd.f32 1.0, %v24270_v9  ;;  %v23458_v8 = vld [vmem:[#allocation7 + $0x384] ss:$16 sps:$4 sm:$0xff]   ;;  %v23456_v9 = vld [vmem:[#allocation7 + $0x380] ss:$16 sps:$4 sm:$0xff]  }
 0xc59   : > { %24271 = vtanh.f32 %v13601_v36  ;;  %13604 = vst [vmem:[#allocation3] sm:$0xff] %v13601_v36  ;;  %v23453_v36 = vld [vmem:[#allocation7 + $0x180] ss:$16 sps:$4 sm:$0xff]  }
 0xc5a   : > { %v13597_v0 = vmul.f32 0.5, %v13596_v15  ;;  %v23461_v15 = vld [vmem:[#allocation7 + $0x1a4] ss:$16 sps:$4 sm:$0xff]  }
 0xc63   : > { %v24272_v29 = vpop.eup %24271 }
 0xc64   : > { %v13603_v30 = vmul.f32 %v24272_v29, %v13597_v0  ;;  %v23464_v0 = vld [vmem:[#allocation7 + $0x3a4] ss:$16 sps:$4 sm:$0xff]   ;;  %v23459_v29 = vld [vmem:[#allocation7 + $0x1a0] ss:$16 sps:$4 sm:$0xff]  }
 0xc66   : > { %v13606_v46 = vpack.c.bf16 %v13603_v30, %v13603_v30  ;;  %v23462_v30 = vld [vmem:[#allocation7 + $0x3a0] ss:$16 sps:$4 sm:$0xff]  }
 0xc68   : > { %19991 = vst [vmem:[%s24707_s12 + $0x14] sm:$0xf] %v13606_v46  ;;  %14097 = vmatmul.mubr.bf16.vlgmr.msra.gmra.mrb[120].mxu0 %v13606_v46  ;;  %14138 = vmatmul.mubr.bf16.vlgmr.msra.gmra.mrb[120].mxu1 %v13606_v46  ;;  %v23465_v46 = vld [vmem:[#allocation7 + $0x1c0] ss:$16 sps:$4 sm:$0xff]  }
 0xc69   : > { %15455 = vmatpush1.bf16.msra.mxu0 %v23381_v59  ;;  %15496 = vmatpush1.bf16.msra.mxu1 %v23384_v45  ;;  %v23467_v59 = vld [vmem:[#allocation7 + $0x1c4] ss:$16 sps:$4 sm:$0xff]  }
 0xc6a   : > { %15456 = vmatprep.subr.bf16.mxu0 %v23389_v7  ;;  %15497 = vmatprep.subr.bf16.mxu1 %v23392_v12  ;;  %v23470_v45 = vld [vmem:[#allocation7 + $0x3c4] ss:$16 sps:$4 sm:$0xff]   ;;  %v23468_v7 = vld [vmem:[#allocation7 + $0x3c0] ss:$16 sps:$4 sm:$0xff]  }
 0xc6b   : > { %15486 = vmatprep.mubr.bf16.mxu0 %v25255_v17  ;;  %15527 = vmatprep.mubr.bf16.mxu1 %v25259_v18  ;;  %v23473_v12 = vld [vmem:[#allocation7 + $0x1e4] ss:$16 sps:$4 sm:$0xff]  }
 0xc6d   : > { %15457 = vmatpush1.bf16.msra.mxu0 %v23387_v13  ;;  %15498 = vmatpush1.bf16.msra.mxu1 %v23390_v4  ;;  %v23476_v13 = vld [vmem:[#allocation7 + $0x3e4] ss:$16 sps:$4 sm:$0xff]   ;;  %v23471_v4 = vld [vmem:[#allocation7 + $0x1e0] ss:$16 sps:$4 sm:$0xff]  }
 0xc6e   : > { %15458 = vmatprep.subr.bf16.mxu0 %v23395_v23  ;;  %15499 = vmatprep.subr.bf16.mxu1 %v23398_v11  ;;  %v23474_v23 = vld [vmem:[#allocation7 + $0x3e0] ss:$16 sps:$4 sm:$0xff]   ;;  %v23483_v11 = vld [vmem:[#allocation7 + $0x404] ss:$16 sps:$4 sm:$0xff]  }
 0xc71   : > { %15459 = vmatpush1.bf16.msra.mxu0 %v23393_v14  ;;  %15500 = vmatpush1.bf16.msra.mxu1 %v23396_v35  ;;  %v23486_v14 = vld [vmem:[#allocation7 + $0x604] ss:$16 sps:$4 sm:$0xff]   ;;  %v25266_v35 = vcombine.low %v25248_v60, %v25248_v60 }
 0xc72   : > { %15460 = vmatprep.subr.bf16.mxu0 %v23401_v22  ;;  %15501 = vmatprep.subr.bf16.mxu1 %v23404_v43  ;;  %v25270_v22 = vcombine.low %v25251_v53, %v25251_v53  ;;  %v25273_v43 = vld [vmem:[%s24696_s9 + $0xd0] sm:$0xff] }
 0xc73   : > { %v25280_v60 = vcombine.high %v25273_v43, %v25273_v43 }
 0xc75   : > { %15461 = vmatpush1.bf16.msra.mxu0 %v23399_v32  ;;  %15502 = vmatpush1.bf16.msra.mxu1 %v23402_v33  ;;  %v25276_v32 = vld [vmem:[%s24696_s9 + $0xd8] sm:$0xff]  ;;  %v23481_v33 = vld [vmem:[#allocation7 + $0x400] ss:$16 sps:$4 sm:$0xff]  }
 0xc76   : > { %15462 = vmatprep.subr.bf16.mxu0 %v23407_v48  ;;  %15503 = vmatprep.subr.bf16.mxu1 %v23410_v26  ;;  %v23484_v48 = vld [vmem:[#allocation7 + $0x600] ss:$16 sps:$4 sm:$0xff]   ;;  %v23489_v26 = vld [vmem:[#allocation7 + $0x424] ss:$16 sps:$4 sm:$0xff]   ;;  %v25284_v53 = vcombine.high %v25276_v32, %v25276_v32 }
 0xc79   : > { %15463 = vmatpush1.bf16.msra.mxu0 %v23405_v31  ;;  %15504 = vmatpush1.bf16.msra.mxu1 %v23408_v58  ;;  %v23492_v31 = vld [vmem:[#allocation7 + $0x624] ss:$16 sps:$4 sm:$0xff]   ;;  %v23487_v58 = vld [vmem:[#allocation7 + $0x420] ss:$16 sps:$4 sm:$0xff]  }
 0xc7a   : > { %15464 = vmatprep.subr.bf16.mxu0 %v23413_v2  ;;  %15505 = vmatprep.subr.bf16.mxu1 %v23416_v24  ;;  %v23490_v2 = vld [vmem:[#allocation7 + $0x620] ss:$16 sps:$4 sm:$0xff]   ;;  %v23495_v24 = vld [vmem:[#allocation7 + $0x444] ss:$16 sps:$4 sm:$0xff]  }
 0xc7d   : > { %15465 = vmatpush1.bf16.msra.mxu0 %v23411_v21  ;;  %15506 = vmatpush1.bf16.msra.mxu1 %v23414_v40  ;;  %v23498_v21 = vld [vmem:[#allocation7 + $0x644] ss:$16 sps:$4 sm:$0xff]   ;;  %v23493_v40 = vld [vmem:[#allocation7 + $0x440] ss:$16 sps:$4 sm:$0xff]  }
 0xc7e   : > { %15466 = vmatprep.subr.bf16.mxu0 %v23419_v19  ;;  %15507 = vmatprep.subr.bf16.mxu1 %v23422_v41  ;;  %v23496_v19 = vld [vmem:[#allocation7 + $0x640] ss:$16 sps:$4 sm:$0xff]   ;;  %v23501_v41 = vld [vmem:[#allocation7 + $0x464] ss:$16 sps:$4 sm:$0xff]  }
 0xc81   : > { %15467 = vmatpush1.bf16.msra.mxu0 %v23417_v57  ;;  %15508 = vmatpush1.bf16.msra.mxu1 %v23420_v51  ;;  %v23504_v57 = vld [vmem:[#allocation7 + $0x664] ss:$16 sps:$4 sm:$0xff]   ;;  %v23499_v51 = vld [vmem:[#allocation7 + $0x460] ss:$16 sps:$4 sm:$0xff]  }
 0xc82   : > { %15468 = vmatprep.subr.bf16.mxu0 %v23425_v5  ;;  %15509 = vmatprep.subr.bf16.mxu1 %v23428_v38  ;;  %v23502_v5 = vld [vmem:[#allocation7 + $0x660] ss:$16 sps:$4 sm:$0xff]   ;;  %v23507_v38 = vld [vmem:[#allocation7 + $0x484] ss:$16 sps:$4 sm:$0xff]  }
 0xc85   : > { %15469 = vmatpush1.bf16.msra.mxu0 %v23423_v39  ;;  %15510 = vmatpush1.bf16.msra.mxu1 %v23426_v52  ;;  %v23510_v39 = vld [vmem:[#allocation7 + $0x684] ss:$16 sps:$4 sm:$0xff]   ;;  %v23505_v52 = vld [vmem:[#allocation7 + $0x480] ss:$16 sps:$4 sm:$0xff]  }
 0xc86   : > { %15470 = vmatprep.subr.bf16.mxu0 %v23431_v44  ;;  %15511 = vmatprep.subr.bf16.mxu1 %v23434_v10  ;;  %v23508_v44 = vld [vmem:[#allocation7 + $0x680] ss:$16 sps:$4 sm:$0xff]   ;;  %v23513_v10 = vld [vmem:[#allocation7 + $0x4a4] ss:$16 sps:$4 sm:$0xff]  }
 0xc89   : > { %15471 = vmatpush1.bf16.msra.mxu0 %v23429_v34  ;;  %15512 = vmatpush1.bf16.msra.mxu1 %v23432_v50  ;;  %v23516_v34 = vld [vmem:[#allocation7 + $0x6a4] ss:$16 sps:$4 sm:$0xff]   ;;  %v23511_v50 = vld [vmem:[#allocation7 + $0x4a0] ss:$16 sps:$4 sm:$0xff]  }
 0xc8a   : > { %15472 = vmatprep.subr.bf16.mxu0 %v23437_v37  ;;  %15513 = vmatprep.subr.bf16.mxu1 %v23440_v1  ;;  %v23514_v37 = vld [vmem:[#allocation7 + $0x6a0] ss:$16 sps:$4 sm:$0xff]   ;;  %v23519_v1 = vld [vmem:[#allocation7 + $0x4c4] ss:$16 sps:$4 sm:$0xff]  }
 0xc8d   : > { %15473 = vmatpush1.bf16.msra.mxu0 %v23435_v49  ;;  %15514 = vmatpush1.bf16.msra.mxu1 %v23438_v62  ;;  %v23522_v49 = vld [vmem:[#allocation7 + $0x6c4] ss:$16 sps:$4 sm:$0xff]   ;;  %v23517_v62 = vld [vmem:[#allocation7 + $0x4c0] ss:$16 sps:$4 sm:$0xff]  }
 0xc8e   : > { %15474 = vmatprep.subr.bf16.mxu0 %v23443_v6  ;;  %15515 = vmatprep.subr.bf16.mxu1 %v23446_v63  ;;  %v23520_v6 = vld [vmem:[#allocation7 + $0x6c0] ss:$16 sps:$4 sm:$0xff]   ;;  %v23525_v63 = vld [vmem:[#allocation7 + $0x4e4] ss:$16 sps:$4 sm:$0xff]  }
 0xc91   : > { %15475 = vmatpush1.bf16.msra.mxu0 %v23441_v27  ;;  %15516 = vmatpush1.bf16.msra.mxu1 %v23444_v42  ;;  %v23528_v27 = vld [vmem:[#allocation7 + $0x6e4] ss:$16 sps:$4 sm:$0xff]   ;;  %v23523_v42 = vld [vmem:[#allocation7 + $0x4e0] ss:$16 sps:$4 sm:$0xff]  }
 0xc92   : > { %15476 = vmatprep.subr.bf16.mxu0 %v23449_v16  ;;  %15517 = vmatprep.subr.bf16.mxu1 %v23452_v61  ;;  %v23526_v16 = vld [vmem:[#allocation7 + $0x6e0] ss:$16 sps:$4 sm:$0xff]   ;;  %v23531_v61 = vld [vmem:[#allocation7 + $0x504] ss:$16 sps:$4 sm:$0xff]  }
 0xc95   : > { %15477 = vmatpush1.bf16.msra.mxu0 %v23447_v47  ;;  %15518 = vmatpush1.bf16.msra.mxu1 %v23450_v56  ;;  %v23534_v47 = vld [vmem:[#allocation7 + $0x704] ss:$16 sps:$4 sm:$0xff]   ;;  %v23529_v56 = vld [vmem:[#allocation7 + $0x500] ss:$16 sps:$4 sm:$0xff]  }
 0xc96   : > { %15478 = vmatprep.subr.bf16.mxu0 %v23455_v20  ;;  %15519 = vmatprep.subr.bf16.mxu1 %v23458_v8  ;;  %v23532_v20 = vld [vmem:[#allocation7 + $0x700] ss:$16 sps:$4 sm:$0xff]   ;;  %v23537_v8 = vld [vmem:[#allocation7 + $0x524] ss:$16 sps:$4 sm:$0xff]  }
 0xc99   : > { %15479 = vmatpush1.bf16.msra.mxu0 %v23453_v36  ;;  %15520 = vmatpush1.bf16.msra.mxu1 %v23456_v9  ;;  %v23540_v36 = vld [vmem:[#allocation7 + $0x724] ss:$16 sps:$4 sm:$0xff]   ;;  %v23535_v9 = vld [vmem:[#allocation7 + $0x520] ss:$16 sps:$4 sm:$0xff]  }
 0xc9a   : > { %15480 = vmatprep.subr.bf16.mxu0 %v23461_v15  ;;  %15521 = vmatprep.subr.bf16.mxu1 %v23464_v0  ;;  %v23538_v15 = vld [vmem:[#allocation7 + $0x720] ss:$16 sps:$4 sm:$0xff]   ;;  %v23543_v0 = vld [vmem:[#allocation7 + $0x544] ss:$16 sps:$4 sm:$0xff]  }
 0xc9d   : > { %15481 = vmatpush1.bf16.msra.mxu0 %v23459_v29  ;;  %15522 = vmatpush1.bf16.msra.mxu1 %v23462_v30  ;;  %v23546_v29 = vld [vmem:[#allocation7 + $0x744] ss:$16 sps:$4 sm:$0xff]   ;;  %v23541_v30 = vld [vmem:[#allocation7 + $0x540] ss:$16 sps:$4 sm:$0xff]  }
 0xc9e   : > { %15482 = vmatprep.subr.bf16.mxu0 %v23467_v59  ;;  %15523 = vmatprep.subr.bf16.mxu1 %v23470_v45  ;;  %v23544_v59 = vld [vmem:[#allocation7 + $0x740] ss:$16 sps:$4 sm:$0xff]   ;;  %v23549_v45 = vld [vmem:[#allocation7 + $0x564] ss:$16 sps:$4 sm:$0xff]  }
 0xca1   : > { %15483 = vmatpush1.bf16.msra.mxu0 %v23465_v46  ;;  %15524 = vmatpush1.bf16.msra.mxu1 %v23468_v7  ;;  %v23552_v46 = vld [vmem:[#allocation7 + $0x764] ss:$16 sps:$4 sm:$0xff]   ;;  %v23547_v7 = vld [vmem:[#allocation7 + $0x560] ss:$16 sps:$4 sm:$0xff]  }
 0xca2   : > { %15484 = vmatprep.subr.bf16.mxu0 %v23473_v12  ;;  %15525 = vmatprep.subr.bf16.mxu1 %v23476_v13  ;;  %v23550_v12 = vld [vmem:[#allocation7 + $0x760] ss:$16 sps:$4 sm:$0xff]   ;;  %v23555_v13 = vld [vmem:[#allocation7 + $0x584] ss:$16 sps:$4 sm:$0xff]  }
 0xca5   : > { %15485 = vmatpush1.bf16.msra.mxu0 %v23471_v4  ;;  %15526 = vmatpush1.bf16.msra.mxu1 %v23474_v23  ;;  %v23558_v4 = vld [vmem:[#allocation7 + $0x784] ss:$16 sps:$4 sm:$0xff]   ;;  %v23553_v23 = vld [vmem:[#allocation7 + $0x580] ss:$16 sps:$4 sm:$0xff]  }
 0xca6   : > { %15536 = vmatprep.subr.bf16.mxu0 %v23483_v11  ;;  %15577 = vmatprep.subr.bf16.mxu1 %v23486_v14  ;;  %v23556_v11 = vld [vmem:[#allocation7 + $0x780] ss:$16 sps:$4 sm:$0xff]   ;;  %v23561_v14 = vld [vmem:[#allocation7 + $0x5a4] ss:$16 sps:$4 sm:$0xff]  }
 0xca8   : > { %15487 = vmatmul.mubr.bf16.vlgmr.msra.gmra.mrb[124].mxu0 %v25266_v35  ;;  %15528 = vmatmul.mubr.bf16.vlgmr.msra.gmra.mrb[124].mxu1 %v25270_v22 }
 0xca9   : > { %15537 = vmatpush1.bf16.msra.mxu0 %v23481_v33  ;;  %15578 = vmatpush1.bf16.msra.mxu1 %v23484_v48  ;;  %v23564_v33 = vld [vmem:[#allocation7 + $0x7a4] ss:$16 sps:$4 sm:$0xff]   ;;  %v23559_v48 = vld [vmem:[#allocation7 + $0x5a0] ss:$16 sps:$4 sm:$0xff]  }
 0xcaa   : > { %15538 = vmatprep.subr.bf16.mxu0 %v23489_v26  ;;  %15579 = vmatprep.subr.bf16.mxu1 %v23492_v31  ;;  %v23562_v26 = vld [vmem:[#allocation7 + $0x7a0] ss:$16 sps:$4 sm:$0xff]   ;;  %v23567_v31 = vld [vmem:[#allocation7 + $0x5c4] ss:$16 sps:$4 sm:$0xff]  }
 0xcab   : > { %15568 = vmatprep.mubr.bf16.mxu0 %v25280_v60  ;;  %15609 = vmatprep.mubr.bf16.mxu1 %v25284_v53 }
 0xcad   : > { %15539 = vmatpush1.bf16.msra.mxu0 %v23487_v58  ;;  %15580 = vmatpush1.bf16.msra.mxu1 %v23490_v2  ;;  %v23570_v58 = vld [vmem:[#allocation7 + $0x7c4] ss:$16 sps:$4 sm:$0xff]   ;;  %v23565_v2 = vld [vmem:[#allocation7 + $0x5c0] ss:$16 sps:$4 sm:$0xff]  }
 0xcae   : > { %15540 = vmatprep.subr.bf16.mxu0 %v23495_v24  ;;  %15581 = vmatprep.subr.bf16.mxu1 %v23498_v21  ;;  %v23568_v24 = vld [vmem:[#allocation7 + $0x7c0] ss:$16 sps:$4 sm:$0xff]   ;;  %v23573_v21 = vld [vmem:[#allocation7 + $0x5e4] ss:$16 sps:$4 sm:$0xff]  }
 0xcb1   : > { %15541 = vmatpush1.bf16.msra.mxu0 %v23493_v40  ;;  %15582 = vmatpush1.bf16.msra.mxu1 %v23496_v19  ;;  %v23576_v40 = vld [vmem:[#allocation7 + $0x7e4] ss:$16 sps:$4 sm:$0xff]   ;;  %v23571_v19 = vld [vmem:[#allocation7 + $0x5e0] ss:$16 sps:$4 sm:$0xff]  }
 0xcb2   : > { %15542 = vmatprep.subr.bf16.mxu0 %v23501_v41  ;;  %15583 = vmatprep.subr.bf16.mxu1 %v23504_v57  ;;  %v23574_v41 = vld [vmem:[#allocation7 + $0x7e0] ss:$16 sps:$4 sm:$0xff]   ;;  %v23583_v57 = vld [vmem:[#allocation7 + $0xc] ss:$16 sps:$4 sm:$0xff]  }
 0xcb5   : > { %15543 = vmatpush1.bf16.msra.mxu0 %v23499_v51  ;;  %15584 = vmatpush1.bf16.msra.mxu1 %v23502_v5  ;;  %v23586_v51 = vld [vmem:[#allocation7 + $0x20c] ss:$16 sps:$4 sm:$0xff]   ;;  %v25292_v5 = vcombine.low %v25273_v43, %v25273_v43  ;;  %v23587_v43 = vld [vmem:[#allocation7 + $0x28] ss:$16 sps:$4 sm:$0xff]  }
 0xcb6   : > { %15544 = vmatprep.subr.bf16.mxu0 %v23507_v38  ;;  %15585 = vmatprep.subr.bf16.mxu1 %v23510_v39  ;;  %v25296_v38 = vcombine.low %v25276_v32, %v25276_v32  ;;  %v23581_v39 = vld [vmem:[#allocation7 + $0x8] ss:$16 sps:$4 sm:$0xff]   ;;  %v23595_v32 = vld [vmem:[#allocation7 + $0x4c] ss:$16 sps:$4 sm:$0xff]  }
 0xcb9   : > { %15545 = vmatpush1.bf16.msra.mxu0 %v23505_v52  ;;  %15586 = vmatpush1.bf16.msra.mxu1 %v23508_v44  ;;  %v23584_v52 = vld [vmem:[#allocation7 + $0x208] ss:$16 sps:$4 sm:$0xff]   ;;  %v23589_v44 = vld [vmem:[#allocation7 + $0x2c] ss:$16 sps:$4 sm:$0xff]  }
 0xcba   : > { %15546 = vmatprep.subr.bf16.mxu0 %v23513_v10  ;;  %15587 = vmatprep.subr.bf16.mxu1 %v23516_v34  ;;  %v23592_v10 = vld [vmem:[#allocation7 + $0x22c] ss:$16 sps:$4 sm:$0xff]   ;;  %v23590_v34 = vld [vmem:[#allocation7 + $0x228] ss:$16 sps:$4 sm:$0xff]  }
 0xcbd   : > { %15547 = vmatpush1.bf16.msra.mxu0 %v23511_v50  ;;  %15588 = vmatpush1.bf16.msra.mxu1 %v23514_v37  ;;  %v23598_v50 = vld [vmem:[#allocation7 + $0x24c] ss:$16 sps:$4 sm:$0xff]   ;;  %v23593_v37 = vld [vmem:[#allocation7 + $0x48] ss:$16 sps:$4 sm:$0xff]  }
 0xcbe   : > { %15548 = vmatprep.subr.bf16.mxu0 %v23519_v1  ;;  %15589 = vmatprep.subr.bf16.mxu1 %v23522_v49  ;;  %v23596_v1 = vld [vmem:[#allocation7 + $0x248] ss:$16 sps:$4 sm:$0xff]   ;;  %v23601_v49 = vld [vmem:[#allocation7 + $0x6c] ss:$16 sps:$4 sm:$0xff]  }
 0xcc1   : > { %15549 = vmatpush1.bf16.msra.mxu0 %v23517_v62  ;;  %15590 = vmatpush1.bf16.msra.mxu1 %v23520_v6  ;;  %v23604_v62 = vld [vmem:[#allocation7 + $0x26c] ss:$16 sps:$4 sm:$0xff]   ;;  %v23599_v6 = vld [vmem:[#allocation7 + $0x68] ss:$16 sps:$4 sm:$0xff]  }
 0xcc2   : > { %15550 = vmatprep.subr.bf16.mxu0 %v23525_v63  ;;  %15591 = vmatprep.subr.bf16.mxu1 %v23528_v27  ;;  %v23602_v63 = vld [vmem:[#allocation7 + $0x268] ss:$16 sps:$4 sm:$0xff]   ;;  %v23607_v27 = vld [vmem:[#allocation7 + $0x8c] ss:$16 sps:$4 sm:$0xff]  }
 0xcc5   : > { %15551 = vmatpush1.bf16.msra.mxu0 %v23523_v42  ;;  %15592 = vmatpush1.bf16.msra.mxu1 %v23526_v16  ;;  %v23610_v42 = vld [vmem:[#allocation7 + $0x28c] ss:$16 sps:$4 sm:$0xff]  }
 0xcc6   : > { %15552 = vmatprep.subr.bf16.mxu0 %v23531_v61  ;;  %15593 = vmatprep.subr.bf16.mxu1 %v23534_v47  ;;  %v23613_v16 = vld [vmem:[#allocation7 + $0xac] ss:$16 sps:$4 sm:$0xff]   ;;  %v23611_v47 = vld [vmem:[#allocation7 + $0xa8] ss:$16 sps:$4 sm:$0xff]  }
 0xcc7   : > { %v23616_v61 = vld [vmem:[#allocation7 + $0x2ac] ss:$16 sps:$4 sm:$0xff]  }
 0xcc9   : > { %15553 = vmatpush1.bf16.msra.mxu0 %v23529_v56  ;;  %15594 = vmatpush1.bf16.msra.mxu1 %v23532_v20  ;;  %v23614_v56 = vld [vmem:[#allocation7 + $0x2a8] ss:$16 sps:$4 sm:$0xff]   ;;  %v23619_v20 = vld [vmem:[#allocation7 + $0xcc] ss:$16 sps:$4 sm:$0xff]  }
 0xcca   : > { %15554 = vmatprep.subr.bf16.mxu0 %v23537_v8  ;;  %15595 = vmatprep.subr.bf16.mxu1 %v23540_v36  ;;  %v23622_v8 = vld [vmem:[#allocation7 + $0x2cc] ss:$16 sps:$4 sm:$0xff]   ;;  %v23617_v36 = vld [vmem:[#allocation7 + $0xc8] ss:$16 sps:$4 sm:$0xff]  }
 0xccd   : > { %15555 = vmatpush1.bf16.msra.mxu0 %v23535_v9  ;;  %15596 = vmatpush1.bf16.msra.mxu1 %v23538_v15  ;;  %v23620_v9 = vld [vmem:[#allocation7 + $0x2c8] ss:$16 sps:$4 sm:$0xff]   ;;  %v23625_v15 = vld [vmem:[#allocation7 + $0xec] ss:$16 sps:$4 sm:$0xff]  }
 0xcce   : > { %15556 = vmatprep.subr.bf16.mxu0 %v23543_v0  ;;  %15597 = vmatprep.subr.bf16.mxu1 %v23546_v29  ;;  %v23628_v0 = vld [vmem:[#allocation7 + $0x2ec] ss:$16 sps:$4 sm:$0xff]   ;;  %v23623_v29 = vld [vmem:[#allocation7 + $0xe8] ss:$16 sps:$4 sm:$0xff]  }
 0xcd1   : > { %15557 = vmatpush1.bf16.msra.mxu0 %v23541_v30  ;;  %15598 = vmatpush1.bf16.msra.mxu1 %v23544_v59  ;;  %v23626_v30 = vld [vmem:[#allocation7 + $0x2e8] ss:$16 sps:$4 sm:$0xff]   ;;  %v23631_v59 = vld [vmem:[#allocation7 + $0x10c] ss:$16 sps:$4 sm:$0xff]  }
 0xcd2   : > { %15558 = vmatprep.subr.bf16.mxu0 %v23549_v45  ;;  %15599 = vmatprep.subr.bf16.mxu1 %v23552_v46  ;;  %v23634_v45 = vld [vmem:[#allocation7 + $0x30c] ss:$16 sps:$4 sm:$0xff]   ;;  %v23629_v46 = vld [vmem:[#allocation7 + $0x108] ss:$16 sps:$4 sm:$0xff]  }
 0xcd5   : > { %15559 = vmatpush1.bf16.msra.mxu0 %v23547_v7  ;;  %15600 = vmatpush1.bf16.msra.mxu1 %v23550_v12  ;;  %v23632_v7 = vld [vmem:[#allocation7 + $0x308] ss:$16 sps:$4 sm:$0xff]   ;;  %v23637_v12 = vld [vmem:[#allocation7 + $0x12c] ss:$16 sps:$4 sm:$0xff]  }
 0xcd6   : > { %15560 = vmatprep.subr.bf16.mxu0 %v23555_v13  ;;  %15601 = vmatprep.subr.bf16.mxu1 %v23558_v4  ;;  %v23640_v13 = vld [vmem:[#allocation7 + $0x32c] ss:$16 sps:$4 sm:$0xff]   ;;  %v23635_v4 = vld [vmem:[#allocation7 + $0x128] ss:$16 sps:$4 sm:$0xff]  }
 0xcd9   : > { %15561 = vmatpush1.bf16.msra.mxu0 %v23553_v23  ;;  %15602 = vmatpush1.bf16.msra.mxu1 %v23556_v11  ;;  %v23638_v23 = vld [vmem:[#allocation7 + $0x328] ss:$16 sps:$4 sm:$0xff]   ;;  %v23643_v11 = vld [vmem:[#allocation7 + $0x14c] ss:$16 sps:$4 sm:$0xff]  }
 0xcda   : > { %15562 = vmatprep.subr.bf16.mxu0 %v23561_v14  ;;  %15603 = vmatprep.subr.bf16.mxu1 %v23564_v33  ;;  %v23646_v14 = vld [vmem:[#allocation7 + $0x34c] ss:$16 sps:$4 sm:$0xff]   ;;  %v23641_v33 = vld [vmem:[#allocation7 + $0x148] ss:$16 sps:$4 sm:$0xff]  }
 0xcdd   : > { %15563 = vmatpush1.bf16.msra.mxu0 %v23559_v48  ;;  %15604 = vmatpush1.bf16.msra.mxu1 %v23562_v26  ;;  %v23644_v48 = vld [vmem:[#allocation7 + $0x348] ss:$16 sps:$4 sm:$0xff]   ;;  %v23649_v26 = vld [vmem:[#allocation7 + $0x16c] ss:$16 sps:$4 sm:$0xff]  }
 0xcde   : > { %15564 = vmatprep.subr.bf16.mxu0 %v23567_v31  ;;  %15605 = vmatprep.subr.bf16.mxu1 %v23570_v58  ;;  %v23652_v31 = vld [vmem:[#allocation7 + $0x36c] ss:$16 sps:$4 sm:$0xff]   ;;  %v23647_v58 = vld [vmem:[#allocation7 + $0x168] ss:$16 sps:$4 sm:$0xff]  }
 0xce1   : > { %15565 = vmatpush1.bf16.msra.mxu0 %v23565_v2  ;;  %15606 = vmatpush1.bf16.msra.mxu1 %v23568_v24  ;;  %v23650_v2 = vld [vmem:[#allocation7 + $0x368] ss:$16 sps:$4 sm:$0xff]   ;;  %v23655_v24 = vld [vmem:[#allocation7 + $0x18c] ss:$16 sps:$4 sm:$0xff]  }
 0xce2   : > { %15566 = vmatprep.subr.bf16.mxu0 %v23573_v21  ;;  %15607 = vmatprep.subr.bf16.mxu1 %v23576_v40  ;;  %v23658_v21 = vld [vmem:[#allocation7 + $0x38c] ss:$16 sps:$4 sm:$0xff]   ;;  %v23653_v40 = vld [vmem:[#allocation7 + $0x188] ss:$16 sps:$4 sm:$0xff]  }
 0xce5   : > { %15567 = vmatpush1.bf16.msra.mxu0 %v23571_v19  ;;  %15608 = vmatpush1.bf16.msra.mxu1 %v23574_v41  ;;  %v23656_v19 = vld [vmem:[#allocation7 + $0x388] ss:$16 sps:$4 sm:$0xff]   ;;  %v23661_v41 = vld [vmem:[#allocation7 + $0x1ac] ss:$16 sps:$4 sm:$0xff]  }
 0xce6   : > { %15618 = vmatprep.subr.bf16.mxu0 %v23583_v57  ;;  %15659 = vmatprep.subr.bf16.mxu1 %v23586_v51  ;;  %v23664_v57 = vld [vmem:[#allocation7 + $0x3ac] ss:$16 sps:$4 sm:$0xff]   ;;  %v23659_v51 = vld [vmem:[#allocation7 + $0x1a8] ss:$16 sps:$4 sm:$0xff]  }
 0xce8   : > { %15569 = vmatmul.mubr.bf16.vlgmr.msra.gmra.mrb[128].mxu0 %v25292_v5  ;;  %15610 = vmatmul.mubr.bf16.vlgmr.msra.gmra.mrb[128].mxu1 %v25296_v38 }
 0xce9   : > { %15619 = vmatpush1.bf16.msra.mxu0 %v23581_v39  ;;  %15660 = vmatpush1.bf16.msra.mxu1 %v23584_v52  ;;  %v23662_v39 = vld [vmem:[#allocation7 + $0x3a8] ss:$16 sps:$4 sm:$0xff]   ;;  %v23667_v52 = vld [vmem:[#allocation7 + $0x1cc] ss:$16 sps:$4 sm:$0xff]  }
 0xcea   : > { %15620 = vmatprep.subr.bf16.mxu0 %v23589_v44  ;;  %15661 = vmatprep.subr.bf16.mxu1 %v23592_v10  ;;  %v23670_v44 = vld [vmem:[#allocation7 + $0x3cc] ss:$16 sps:$4 sm:$0xff]   ;;  %v23665_v10 = vld [vmem:[#allocation7 + $0x1c8] ss:$16 sps:$4 sm:$0xff]  }
 0xceb   : > { %15650 = vmatprep.mubr.bf16.mxu0 %v25255_v17  ;;  %15691 = vmatprep.mubr.bf16.mxu1 %v25259_v18  ;;  %v23605_v17 = vld [vmem:[#allocation7 + $0x88] ss:$16 sps:$4 sm:$0xff]  }
 0xcec   : > { %v23608_v18 = vld [vmem:[#allocation7 + $0x288] ss:$16 sps:$4 sm:$0xff]  }
 0xced   : > { %15621 = vmatpush1.bf16.msra.mxu0 %v23587_v43  ;;  %15662 = vmatpush1.bf16.msra.mxu1 %v23590_v34  ;;  %v23668_v43 = vld [vmem:[#allocation7 + $0x3c8] ss:$16 sps:$4 sm:$0xff]   ;;  %v23673_v34 = vld [vmem:[#allocation7 + $0x1ec] ss:$16 sps:$4 sm:$0xff]  }
 0xcee   : > { %15622 = vmatprep.subr.bf16.mxu0 %v23595_v32  ;;  %15663 = vmatprep.subr.bf16.mxu1 %v23598_v50  ;;  %v23676_v32 = vld [vmem:[#allocation7 + $0x3ec] ss:$16 sps:$4 sm:$0xff]   ;;  %v23671_v50 = vld [vmem:[#allocation7 + $0x1e8] ss:$16 sps:$4 sm:$0xff]  }
 0xcf1   : > { %15623 = vmatpush1.bf16.msra.mxu0 %v23593_v37  ;;  %15664 = vmatpush1.bf16.msra.mxu1 %v23596_v1  ;;  %v23674_v37 = vld [vmem:[#allocation7 + $0x3e8] ss:$16 sps:$4 sm:$0xff]   ;;  %v23679_v1 = vld [vmem:[#allocation7 + $0x40c] ss:$16 sps:$4 sm:$0xff]  }
 0xcf2   : > { %15624 = vmatprep.subr.bf16.mxu0 %v23601_v49  ;;  %15665 = vmatprep.subr.bf16.mxu1 %v23604_v62  ;;  %v23682_v49 = vld [vmem:[#allocation7 + $0x60c] ss:$16 sps:$4 sm:$0xff]   ;;  %v23677_v62 = vld [vmem:[#allocation7 + $0x408] ss:$16 sps:$4 sm:$0xff]  }
 0xcf5   : > { %15625 = vmatpush1.bf16.msra.mxu0 %v23599_v6  ;;  %15666 = vmatpush1.bf16.msra.mxu1 %v23602_v63  ;;  %v23680_v6 = vld [vmem:[#allocation7 + $0x608] ss:$16 sps:$4 sm:$0xff]   ;;  %v23685_v63 = vld [vmem:[#allocation7 + $0x42c] ss:$16 sps:$4 sm:$0xff]  }
 0xcf6   : > { %15626 = vmatprep.subr.bf16.mxu0 %v23607_v27  ;;  %15667 = vmatprep.subr.bf16.mxu1 %v23610_v42  ;;  %v23688_v27 = vld [vmem:[#allocation7 + $0x62c] ss:$16 sps:$4 sm:$0xff]   ;;  %v23683_v42 = vld [vmem:[#allocation7 + $0x428] ss:$16 sps:$4 sm:$0xff]  }
 0xcf9   : > { %15627 = vmatpush1.bf16.msra.mxu0 %v23605_v17  ;;  %15668 = vmatpush1.bf16.msra.mxu1 %v23608_v18  ;;  %v23686_v17 = vld [vmem:[#allocation7 + $0x628] ss:$16 sps:$4 sm:$0xff]   ;;  %v23691_v18 = vld [vmem:[#allocation7 + $0x44c] ss:$16 sps:$4 sm:$0xff]  }
 0xcfa   : > { %15628 = vmatprep.subr.bf16.mxu0 %v23613_v16  ;;  %15669 = vmatprep.subr.bf16.mxu1 %v23616_v61  ;;  %v23694_v16 = vld [vmem:[#allocation7 + $0x64c] ss:$16 sps:$4 sm:$0xff]   ;;  %v23689_v61 = vld [vmem:[#allocation7 + $0x448] ss:$16 sps:$4 sm:$0xff]  }
 0xcfd   : > { %15629 = vmatpush1.bf16.msra.mxu0 %v23611_v47  ;;  %15670 = vmatpush1.bf16.msra.mxu1 %v23614_v56  ;;  %v23692_v47 = vld [vmem:[#allocation7 + $0x648] ss:$16 sps:$4 sm:$0xff]  }
 0xcfe   : > { %15630 = vmatprep.subr.bf16.mxu0 %v23619_v20  ;;  %15671 = vmatprep.subr.bf16.mxu1 %v23622_v8  ;;  %v23695_v56 = vld [vmem:[#allocation7 + $0x468] ss:$16 sps:$4 sm:$0xff]   ;;  %v23703_v8 = vld [vmem:[#allocation7 + $0x48c] ss:$16 sps:$4 sm:$0xff]  }
 0xcff   : > { %v23698_v20 = vld [vmem:[#allocation7 + $0x668] ss:$16 sps:$4 sm:$0xff]  }
 0xd01   : > { %15631 = vmatpush1.bf16.msra.mxu0 %v23617_v36  ;;  %15672 = vmatpush1.bf16.msra.mxu1 %v23620_v9  ;;  %v23706_v36 = vld [vmem:[#allocation7 + $0x68c] ss:$16 sps:$4 sm:$0xff]  }
 0xd02   : > { %15632 = vmatprep.subr.bf16.mxu0 %v23625_v15  ;;  %15673 = vmatprep.subr.bf16.mxu1 %v23628_v0  ;;  %v23709_v9 = vld [vmem:[#allocation7 + $0x4ac] ss:$16 sps:$4 sm:$0xff]   ;;  %v23707_v0 = vld [vmem:[#allocation7 + $0x4a8] ss:$16 sps:$4 sm:$0xff]  }
 0xd03   : > { %v23712_v15 = vld [vmem:[#allocation7 + $0x6ac] ss:$16 sps:$4 sm:$0xff]  }
 0xd05   : > { %15633 = vmatpush1.bf16.msra.mxu0 %v23623_v29  ;;  %15674 = vmatpush1.bf16.msra.mxu1 %v23626_v30  ;;  %v23710_v29 = vld [vmem:[#allocation7 + $0x6a8] ss:$16 sps:$4 sm:$0xff]   ;;  %v23715_v30 = vld [vmem:[#allocation7 + $0x4cc] ss:$16 sps:$4 sm:$0xff]  }
 0xd06   : > { %15634 = vmatprep.subr.bf16.mxu0 %v23631_v59  ;;  %15675 = vmatprep.subr.bf16.mxu1 %v23634_v45  ;;  %v23718_v59 = vld [vmem:[#allocation7 + $0x6cc] ss:$16 sps:$4 sm:$0xff]  }
 0xd09   : > { %15635 = vmatpush1.bf16.msra.mxu0 %v23629_v46  ;;  %15676 = vmatpush1.bf16.msra.mxu1 %v23632_v7 }
 0xd0a   : > { %15636 = vmatprep.subr.bf16.mxu0 %v23637_v12  ;;  %15677 = vmatprep.subr.bf16.mxu1 %v23640_v13 }
 0xd0d   : > { %15637 = vmatpush1.bf16.msra.mxu0 %v23635_v4  ;;  %15678 = vmatpush1.bf16.msra.mxu1 %v23638_v23  ;;  %v23713_v23 = vld [vmem:[#allocation7 + $0x4c8] ss:$16 sps:$4 sm:$0xff]  }
 0xd0e   : > { %15638 = vmatprep.subr.bf16.mxu0 %v23643_v11  ;;  %15679 = vmatprep.subr.bf16.mxu1 %v23646_v14  ;;  %v23716_v11 = vld [vmem:[#allocation7 + $0x6c8] ss:$16 sps:$4 sm:$0xff]  }
 0xd11   : > { %15639 = vmatpush1.bf16.msra.mxu0 %v23641_v33  ;;  %15680 = vmatpush1.bf16.msra.mxu1 %v23644_v48  ;;  %v23721_v48 = vld [vmem:[#allocation7 + $0x4ec] ss:$16 sps:$4 sm:$0xff]  }
 0xd12   : > { %15640 = vmatprep.subr.bf16.mxu0 %v23649_v26  ;;  %15681 = vmatprep.subr.bf16.mxu1 %v23652_v31  ;;  %v23724_v26 = vld [vmem:[#allocation7 + $0x6ec] ss:$16 sps:$4 sm:$0xff]   ;;  %v23719_v31 = vld [vmem:[#allocation7 + $0x4e8] ss:$16 sps:$4 sm:$0xff]  }
 0xd15   : > { %15641 = vmatpush1.bf16.msra.mxu0 %v23647_v58  ;;  %15682 = vmatpush1.bf16.msra.mxu1 %v23650_v2  ;;  %v23722_v58 = vld [vmem:[#allocation7 + $0x6e8] ss:$16 sps:$4 sm:$0xff]   ;;  %v23727_v2 = vld [vmem:[#allocation7 + $0x50c] ss:$16 sps:$4 sm:$0xff]  }
 0xd16   : > { %15642 = vmatprep.subr.bf16.mxu0 %v23655_v24  ;;  %15683 = vmatprep.subr.bf16.mxu1 %v23658_v21  ;;  %v23730_v24 = vld [vmem:[#allocation7 + $0x70c] ss:$16 sps:$4 sm:$0xff]   ;;  %v23725_v21 = vld [vmem:[#allocation7 + $0x508] ss:$16 sps:$4 sm:$0xff]  }
 0xd19   : > { %15643 = vmatpush1.bf16.msra.mxu0 %v23653_v40  ;;  %15684 = vmatpush1.bf16.msra.mxu1 %v23656_v19  ;;  %v23728_v40 = vld [vmem:[#allocation7 + $0x708] ss:$16 sps:$4 sm:$0xff]   ;;  %v23733_v19 = vld [vmem:[#allocation7 + $0x52c] ss:$16 sps:$4 sm:$0xff]  }
 0xd1a   : > { %15644 = vmatprep.subr.bf16.mxu0 %v23661_v41  ;;  %15685 = vmatprep.subr.bf16.mxu1 %v23664_v57  ;;  %v23736_v41 = vld [vmem:[#allocation7 + $0x72c] ss:$16 sps:$4 sm:$0xff]   ;;  %v23731_v57 = vld [vmem:[#allocation7 + $0x528] ss:$16 sps:$4 sm:$0xff]  }
 0xd1d   : > { %15645 = vmatpush1.bf16.msra.mxu0 %v23659_v51  ;;  %15686 = vmatpush1.bf16.msra.mxu1 %v23662_v39  ;;  %v23734_v51 = vld [vmem:[#allocation7 + $0x728] ss:$16 sps:$4 sm:$0xff]   ;;  %v23739_v39 = vld [vmem:[#allocation7 + $0x54c] ss:$16 sps:$4 sm:$0xff]  }
 0xd1e   : > { %15646 = vmatprep.subr.bf16.mxu0 %v23667_v52  ;;  %15687 = vmatprep.subr.bf16.mxu1 %v23670_v44  ;;  %v23742_v52 = vld [vmem:[#allocation7 + $0x74c] ss:$16 sps:$4 sm:$0xff]   ;;  %v23737_v44 = vld [vmem:[#allocation7 + $0x548] ss:$16 sps:$4 sm:$0xff]  }
 0xd21   : > { %15647 = vmatpush1.bf16.msra.mxu0 %v23665_v10  ;;  %15688 = vmatpush1.bf16.msra.mxu1 %v23668_v43  ;;  %v23740_v10 = vld [vmem:[#allocation7 + $0x748] ss:$16 sps:$4 sm:$0xff]   ;;  %v23745_v43 = vld [vmem:[#allocation7 + $0x56c] ss:$16 sps:$4 sm:$0xff]  }
 0xd22   : > { %15648 = vmatprep.subr.bf16.mxu0 %v23673_v34  ;;  %15689 = vmatprep.subr.bf16.mxu1 %v23676_v32  ;;  %v23748_v34 = vld [vmem:[#allocation7 + $0x76c] ss:$16 sps:$4 sm:$0xff]   ;;  %v23743_v32 = vld [vmem:[#allocation7 + $0x568] ss:$16 sps:$4 sm:$0xff]  }
 0xd25   : > { %15649 = vmatpush1.bf16.msra.mxu0 %v23671_v50  ;;  %15690 = vmatpush1.bf16.msra.mxu1 %v23674_v37  ;;  %v23746_v50 = vld [vmem:[#allocation7 + $0x768] ss:$16 sps:$4 sm:$0xff]   ;;  %v23751_v37 = vld [vmem:[#allocation7 + $0x58c] ss:$16 sps:$4 sm:$0xff]  }
 0xd26   : > { %15700 = vmatprep.subr.bf16.mxu0 %v23679_v1  ;;  %15741 = vmatprep.subr.bf16.mxu1 %v23682_v49  ;;  %v23754_v1 = vld [vmem:[#allocation7 + $0x78c] ss:$16 sps:$4 sm:$0xff]   ;;  %v23749_v49 = vld [vmem:[#allocation7 + $0x588] ss:$16 sps:$4 sm:$0xff]  }
 0xd28   : > { %15651 = vmatmul.mubr.bf16.vlgmr.msra.gmra.mrb[132].mxu0 %v25266_v35  ;;  %15692 = vmatmul.mubr.bf16.vlgmr.msra.gmra.mrb[132].mxu1 %v25270_v22  ;;  %v23697_v35 = vld [vmem:[#allocation7 + $0x46c] ss:$16 sps:$4 sm:$0xff]  }
 0xd29   : > { %15701 = vmatpush1.bf16.msra.mxu0 %v23677_v62  ;;  %15742 = vmatpush1.bf16.msra.mxu1 %v23680_v6  ;;  %v23700_v22 = vld [vmem:[#allocation7 + $0x66c] ss:$16 sps:$4 sm:$0xff]   ;;  %v23752_v62 = vld [vmem:[#allocation7 + $0x788] ss:$16 sps:$4 sm:$0xff]  }
 0xd2a   : > { %15702 = vmatprep.subr.bf16.mxu0 %v23685_v63  ;;  %15743 = vmatprep.subr.bf16.mxu1 %v23688_v27  ;;  %v23757_v6 = vld [vmem:[#allocation7 + $0x5ac] ss:$16 sps:$4 sm:$0xff]   ;;  %v23755_v27 = vld [vmem:[#allocation7 + $0x5a8] ss:$16 sps:$4 sm:$0xff]  }
 0xd2b   : > { %15732 = vmatprep.mubr.bf16.mxu0 %v25280_v60  ;;  %15773 = vmatprep.mubr.bf16.mxu1 %v25284_v53  ;;  %v23701_v60 = vld [vmem:[#allocation7 + $0x488] ss:$16 sps:$4 sm:$0xff]   ;;  %v23760_v63 = vld [vmem:[#allocation7 + $0x7ac] ss:$16 sps:$4 sm:$0xff]  }
 0xd2c   : > { %v23704_v53 = vld [vmem:[#allocation7 + $0x688] ss:$16 sps:$4 sm:$0xff]  }
 0xd2d   : > { %15703 = vmatpush1.bf16.msra.mxu0 %v23683_v42  ;;  %15744 = vmatpush1.bf16.msra.mxu1 %v23686_v17  ;;  %v23758_v42 = vld [vmem:[#allocation7 + $0x7a8] ss:$16 sps:$4 sm:$0xff]   ;;  %v23763_v17 = vld [vmem:[#allocation7 + $0x5cc] ss:$16 sps:$4 sm:$0xff]  }
 0xd2e   : > { %15704 = vmatprep.subr.bf16.mxu0 %v23691_v18  ;;  %15745 = vmatprep.subr.bf16.mxu1 %v23694_v16  ;;  %v23766_v18 = vld [vmem:[#allocation7 + $0x7cc] ss:$16 sps:$4 sm:$0xff]   ;;  %v23761_v16 = vld [vmem:[#allocation7 + $0x5c8] ss:$16 sps:$4 sm:$0xff]  }
 0xd31   : > { %15705 = vmatpush1.bf16.msra.mxu0 %v23689_v61  ;;  %15746 = vmatpush1.bf16.msra.mxu1 %v23692_v47  ;;  %v23764_v61 = vld [vmem:[#allocation7 + $0x7c8] ss:$16 sps:$4 sm:$0xff]   ;;  %v23769_v47 = vld [vmem:[#allocation7 + $0x5ec] ss:$16 sps:$4 sm:$0xff]  }
 0xd32   : > { %15706 = vmatprep.subr.bf16.mxu0 %v23697_v35  ;;  %15747 = vmatprep.subr.bf16.mxu1 %v23700_v22  ;;  %v23772_v35 = vld [vmem:[#allocation7 + $0x7ec] ss:$16 sps:$4 sm:$0xff]   ;;  %v23767_v22 = vld [vmem:[#allocation7 + $0x5e8] ss:$16 sps:$4 sm:$0xff]  }
 0xd35   : > { %15707 = vmatpush1.bf16.msra.mxu0 %v23695_v56  ;;  %15748 = vmatpush1.bf16.msra.mxu1 %v23698_v20  ;;  %v23770_v56 = vld [vmem:[#allocation7 + $0x7e8] ss:$16 sps:$4 sm:$0xff]  }
 0xd36   : > { %15708 = vmatprep.subr.bf16.mxu0 %v23703_v8  ;;  %15749 = vmatprep.subr.bf16.mxu1 %v23706_v36 }
 0xd39   : > { %15709 = vmatpush1.bf16.msra.mxu0 %v23701_v60  ;;  %15750 = vmatpush1.bf16.msra.mxu1 %v23704_v53 }
 0xd3a   : > { %15710 = vmatprep.subr.bf16.mxu0 %v23709_v9  ;;  %15751 = vmatprep.subr.bf16.mxu1 %v23712_v15 }
 0xd3b   : > { %v25306_v45 = vpop.f32.mrb[120].mxu0  ;;  %v25308_v46 = vpop.f32.mrb[120].mxu1 }
 0xd3c   : > { %v25310_v7 = vpop.f32.mrb[121].mxu0  ;;  %v25312_v12 = vpop.f32.mrb[121].mxu1 }
 0xd3d   : > { %15711 = vmatpush1.bf16.msra.mxu0 %v23707_v0  ;;  %15752 = vmatpush1.bf16.msra.mxu1 %v23710_v29  ;;  %v14102_v13 = vpop.f32.mrb[122].mxu0  ;;  %v14143_v4 = vpop.f32.mrb[122].mxu1 }
 0xd3e   : > { %v14103_v14 = vpop.f32.mrb[123].mxu0  ;;  %v14144_v33 = vpop.f32.mrb[123].mxu1  ;;  %15712 = vmatprep.subr.bf16.mxu0 %v23715_v30  ;;  %15753 = vmatprep.subr.bf16.mxu1 %v23718_v59 }
 0xd41   : > { %15713 = vmatpush1.bf16.msra.mxu0 %v23713_v23  ;;  %15754 = vmatpush1.bf16.msra.mxu1 %v23716_v11 }
 0xd42   : > { %15714 = vmatprep.subr.bf16.mxu0 %v23721_v48  ;;  %15755 = vmatprep.subr.bf16.mxu1 %v23724_v26  ;;  %v23775_v48 = vld [vmem:[#allocation9 + $0x4] ss:$16 sps:$4 sm:$0xff]  }
 0xd45   : > { %15715 = vmatpush1.bf16.msra.mxu0 %v23719_v31  ;;  %15756 = vmatpush1.bf16.msra.mxu1 %v23722_v58  ;;  %v23773_v58 = vld [vmem:[#allocation9] ss:$16 sps:$4 sm:$0xff]  }
 0xd46   : > { %15716 = vmatprep.subr.bf16.mxu0 %v23727_v2  ;;  %15757 = vmatprep.subr.bf16.mxu1 %v23730_v24  ;;  %v23776_v2 = vld [vmem:[#allocation9 + $0x8] ss:$16 sps:$4 sm:$0xff]  }
 0xd49   : > { %15717 = vmatpush1.bf16.msra.mxu0 %v23725_v21  ;;  %15758 = vmatpush1.bf16.msra.mxu1 %v23728_v40  ;;  %v23781_v21 = vld [vmem:[#allocation9 + $0x24] ss:$16 sps:$4 sm:$0xff]   ;;  %v23784_v40 = vld [vmem:[#allocation9 + $0x2c] ss:$16 sps:$4 sm:$0xff]  }
 0xd4a   : > { %15718 = vmatprep.subr.bf16.mxu0 %v23733_v19  ;;  %15759 = vmatprep.subr.bf16.mxu1 %v23736_v41  ;;  %v23779_v19 = vld [vmem:[#allocation9 + $0x20] ss:$16 sps:$4 sm:$0xff]   ;;  %v23782_v41 = vld [vmem:[#allocation9 + $0x28] ss:$16 sps:$4 sm:$0xff]  }
 0xd4d   : > { %15719 = vmatpush1.bf16.msra.mxu0 %v23731_v57  ;;  %15760 = vmatpush1.bf16.msra.mxu1 %v23734_v51  ;;  %v23787_v57 = vld [vmem:[#allocation9 + $0x44] ss:$16 sps:$4 sm:$0xff]   ;;  %v23790_v51 = vld [vmem:[#allocation9 + $0x4c] ss:$16 sps:$4 sm:$0xff]  }
 0xd4e   : > { %15720 = vmatprep.subr.bf16.mxu0 %v23739_v39  ;;  %15761 = vmatprep.subr.bf16.mxu1 %v23742_v52  ;;  %v23785_v39 = vld [vmem:[#allocation9 + $0x40] ss:$16 sps:$4 sm:$0xff]   ;;  %v23788_v52 = vld [vmem:[#allocation9 + $0x48] ss:$16 sps:$4 sm:$0xff]  }
 0xd51   : > { %15721 = vmatpush1.bf16.msra.mxu0 %v23737_v44  ;;  %15762 = vmatpush1.bf16.msra.mxu1 %v23740_v10  ;;  %v23793_v44 = vld [vmem:[#allocation9 + $0x64] ss:$16 sps:$4 sm:$0xff]   ;;  %v23796_v10 = vld [vmem:[#allocation9 + $0x6c] ss:$16 sps:$4 sm:$0xff]  }
 0xd52   : > { %15722 = vmatprep.subr.bf16.mxu0 %v23745_v43  ;;  %15763 = vmatprep.subr.bf16.mxu1 %v23748_v34  ;;  %v23791_v43 = vld [vmem:[#allocation9 + $0x60] ss:$16 sps:$4 sm:$0xff]   ;;  %v23794_v34 = vld [vmem:[#allocation9 + $0x68] ss:$16 sps:$4 sm:$0xff]  }
 0xd55   : > { %15723 = vmatpush1.bf16.msra.mxu0 %v23743_v32  ;;  %15764 = vmatpush1.bf16.msra.mxu1 %v23746_v50  ;;  %v23799_v32 = vld [vmem:[#allocation9 + $0x84] ss:$16 sps:$4 sm:$0xff]   ;;  %v23802_v50 = vld [vmem:[#allocation9 + $0x8c] ss:$16 sps:$4 sm:$0xff]  }
 0xd56   : > { %15724 = vmatprep.subr.bf16.mxu0 %v23751_v37  ;;  %15765 = vmatprep.subr.bf16.mxu1 %v23754_v1  ;;  %v23797_v37 = vld [vmem:[#allocation9 + $0x80] ss:$16 sps:$4 sm:$0xff]   ;;  %v23800_v1 = vld [vmem:[#allocation9 + $0x88] ss:$16 sps:$4 sm:$0xff]  }
 0xd59   : > { %15725 = vmatpush1.bf16.msra.mxu0 %v23749_v49  ;;  %15766 = vmatpush1.bf16.msra.mxu1 %v23752_v62  ;;  %v23805_v49 = vld [vmem:[#allocation9 + $0xa4] ss:$16 sps:$4 sm:$0xff]   ;;  %v23808_v62 = vld [vmem:[#allocation9 + $0xac] ss:$16 sps:$4 sm:$0xff]  }
 0xd5a   : > { %15726 = vmatprep.subr.bf16.mxu0 %v23757_v6  ;;  %15767 = vmatprep.subr.bf16.mxu1 %v23760_v63  ;;  %v23803_v6 = vld [vmem:[#allocation9 + $0xa0] ss:$16 sps:$4 sm:$0xff]   ;;  %v23806_v63 = vld [vmem:[#allocation9 + $0xa8] ss:$16 sps:$4 sm:$0xff]  }
 0xd5d   : > { %15727 = vmatpush1.bf16.msra.mxu0 %v23755_v27  ;;  %15768 = vmatpush1.bf16.msra.mxu1 %v23758_v42  ;;  %v23811_v27 = vld [vmem:[#allocation9 + $0xc4] ss:$16 sps:$4 sm:$0xff]   ;;  %v23814_v42 = vld [vmem:[#allocation9 + $0xcc] ss:$16 sps:$4 sm:$0xff]  }
 0xd5e   : > { %15728 = vmatprep.subr.bf16.mxu0 %v23763_v17  ;;  %15769 = vmatprep.subr.bf16.mxu1 %v23766_v18  ;;  %v23809_v17 = vld [vmem:[#allocation9 + $0xc0] ss:$16 sps:$4 sm:$0xff]   ;;  %v23812_v18 = vld [vmem:[#allocation9 + $0xc8] ss:$16 sps:$4 sm:$0xff]  }
 0xd61   : > { %15729 = vmatpush1.bf16.msra.mxu0 %v23761_v16  ;;  %15770 = vmatpush1.bf16.msra.mxu1 %v23764_v61  ;;  %v23817_v16 = vld [vmem:[#allocation9 + $0xe4] ss:$16 sps:$4 sm:$0xff]   ;;  %v23820_v61 = vld [vmem:[#allocation9 + $0xec] ss:$16 sps:$4 sm:$0xff]  }
 0xd62   : > { %15730 = vmatprep.subr.bf16.mxu0 %v23769_v47  ;;  %15771 = vmatprep.subr.bf16.mxu1 %v23772_v35  ;;  %v23815_v47 = vld [vmem:[#allocation9 + $0xe0] ss:$16 sps:$4 sm:$0xff]   ;;  %v23818_v35 = vld [vmem:[#allocation9 + $0xe8] ss:$16 sps:$4 sm:$0xff]  }
 0xd65   : > { %15731 = vmatpush1.bf16.msra.mxu0 %v23767_v22  ;;  %15772 = vmatpush1.bf16.msra.mxu1 %v23770_v56  ;;  %v23823_v22 = vld [vmem:[#allocation7 + $0x4] ss:$16 sps:$4 sm:$0xff]  }
 0xd66   : > { %16287 = vmatprep.subr.bf16.mxu0 %v23775_v48  ;;  %v23826_v56 = vld [vmem:[#allocation7 + $0x204] ss:$16 sps:$4 sm:$0xff]  }
 0xd68   : > { %15733 = vmatmul.mubr.bf16.vlgmr.msra.gmra.mrb[136].mxu0 %v25292_v5  ;;  %15774 = vmatmul.mubr.bf16.vlgmr.msra.gmra.mrb[136].mxu1 %v25296_v38 }
 0xd69   : > { %16319 = vmatprep.mubr.bf16.mxu0 %v24475_v3  ;;  %16360 = vmatprep.mubr.bf16.mxu1 %v24475_v3 }
 0xd6a   : > { %16288 = vmatpush1.bf16.msra.mxu0 %v23773_v58 }
 0xd6b   : > { %16289 = vmatprep.subr.bf16.mxu0 %v23781_v21 }
 0xd6e   : > { %16290 = vmatpush1.bf16.msra.mxu0 %v23779_v19 }
 0xd6f   : > { %16291 = vmatprep.subr.bf16.mxu0 %v23787_v57 }
 0xd72   : > { %16292 = vmatpush1.bf16.msra.mxu0 %v23785_v39 }
 0xd73   : > { %16293 = vmatprep.subr.bf16.mxu0 %v23793_v44 }
 0xd76   : > { %16294 = vmatpush1.bf16.msra.mxu0 %v23791_v43 }
 0xd77   : > { %16295 = vmatprep.subr.bf16.mxu0 %v23799_v32 }
 0xd7a   : > { %16296 = vmatpush1.bf16.msra.mxu0 %v23797_v37 }
 0xd7b   : > { %v15488_v20 = vpop.f32.mrb[124].mxu0  ;;  %v15529_v8 = vpop.f32.mrb[124].mxu1  ;;  %16297 = vmatprep.subr.bf16.mxu0 %v23805_v49 }
 0xd7c   : > { %v15489_v36 = vadd.f32 %v15488_v20, %v25306_v45  ;;  %v15490_v60 = vpop.f32.mrb[125].mxu0  ;;  %v15531_v53 = vpop.f32.mrb[125].mxu1  ;;  %v23778_v45 = vld [vmem:[#allocation9 + $0xc] ss:$16 sps:$4 sm:$0xff]  }
 0xd7d   : > { %v15491_v9 = vadd.f32 %v15490_v60, %v25310_v7  ;;  %v15492_v15 = vpop.f32.mrb[126].mxu0  ;;  %v15533_v0 = vpop.f32.mrb[126].mxu1  ;;  %16328 = vmatprep.subr.bf16.mxu1 %v23778_v45 }
 0xd7e   : > { %v15530_v29 = vadd.f32 %v15529_v8, %v15489_v36  ;;  %v15493_v30 = vpop.f32.mrb[127].mxu0  ;;  %v15534_v59 = vpop.f32.mrb[127].mxu1  ;;  %16329 = vmatpush1.bf16.msra.mxu1 %v23776_v2  ;;  %16298 = vmatpush1.bf16.msra.mxu0 %v23803_v6 }
 0xd7f   : > { %v15532_v5 = vadd.f32 %v15531_v53, %v15491_v9  ;;  %16330 = vmatprep.subr.bf16.mxu1 %v23784_v40  ;;  %16299 = vmatprep.subr.bf16.mxu0 %v23811_v27 }
 0xd82   : > { %16331 = vmatpush1.bf16.msra.mxu1 %v23782_v41  ;;  %16300 = vmatpush1.bf16.msra.mxu0 %v23809_v17  ;;  %v25336_v17 = vld [vmem:[%s24696_s9 + $0xe0] sm:$0xff] }
 0xd83   : > { %16332 = vmatprep.subr.bf16.mxu1 %v23790_v51  ;;  %16301 = vmatprep.subr.bf16.mxu0 %v23817_v16  ;;  %v23821_v16 = vld [vmem:[#allocation7] ss:$16 sps:$4 sm:$0xff]  }
 0xd86   : > { %16333 = vmatpush1.bf16.msra.mxu1 %v23788_v52  ;;  %16302 = vmatpush1.bf16.msra.mxu0 %v23815_v47 }
 0xd87   : > { %16334 = vmatprep.subr.bf16.mxu1 %v23796_v10  ;;  %17677 = vmatprep.subr.bf16.mxu0 %v23823_v22  ;;  %v23832_v22 = vld [vmem:[#allocation7 + $0x224] ss:$16 sps:$4 sm:$0xff]  }
 0xd8a   : > { %16335 = vmatpush1.bf16.msra.mxu1 %v23794_v34 }
 0xd8b   : > { %16336 = vmatprep.subr.bf16.mxu1 %v23802_v50  ;;  %v15821_v50 = vld [vmem:[#allocation3] sm:$0xff] }
 0xd8e   : > { %16337 = vmatpush1.bf16.msra.mxu1 %v23800_v1 }
 0xd8f   : > { %16338 = vmatprep.subr.bf16.mxu1 %v23808_v62 }
 0xd92   : > { %16339 = vmatpush1.bf16.msra.mxu1 %v23806_v63 }
 0xd93   : > { %16340 = vmatprep.subr.bf16.mxu1 %v23814_v42 }
 0xd96   : > { %16341 = vmatpush1.bf16.msra.mxu1 %v23812_v18  ;;  %v25339_v18 = vld [vmem:[%s24696_s9 + $0xe8] sm:$0xff] }
 0xd97   : > { %16342 = vmatprep.subr.bf16.mxu1 %v23820_v61  ;;  %v23824_v61 = vld [vmem:[#allocation7 + $0x200] ss:$16 sps:$4 sm:$0xff]  }
 0xd9a   : > { %16343 = vmatpush1.bf16.msra.mxu1 %v23818_v35  ;;  %v23829_v35 = vld [vmem:[#allocation7 + $0x24] ss:$16 sps:$4 sm:$0xff]  }
 0xd9b   : > { %17718 = vmatprep.subr.bf16.mxu1 %v23826_v56  ;;  %v25343_v56 = vcombine.high %v25336_v17, %v25336_v17 }
 0xdbb   : > { %v15570_v13 = vpop.f32.mrb[128].mxu0  ;;  %v15611_v38 = vpop.f32.mrb[128].mxu1 }
 0xdbc   : > { %v15571_v4 = vadd.f32 %v15570_v13, %v15530_v29  ;;  %v15572_v23 = vpop.f32.mrb[129].mxu0  ;;  %v15613_v11 = vpop.f32.mrb[129].mxu1  ;;  %v15782_v13 = vld [vmem:[%s25475_s3] sm:$0xf] }
 0xdbd   : > { %v15573_v3 = vadd.f32 %v15572_v23, %v15532_v5  ;;  %v15574_v14 = vpop.f32.mrb[130].mxu0  ;;  %v15615_v33 = vpop.f32.mrb[130].mxu1  ;;  %v15795_v48 = vrot.slane %v15782_v13, %v24801_v25  ;;  %v15799_v58 = vrot.slane %v15782_v13, %v24803_v28 }
 0xdbe   : > { %v25320_v26 = vadd.f32 %v15611_v38, %v15571_v4  ;;  %v15575_v31 = vpop.f32.mrb[131].mxu0  ;;  %v15616_v7 = vpop.f32.mrb[131].mxu1  ;;  %v15791_v38 = vrot.slane %v15782_v13, %v24790_v54  ;;  %v15787_v4 = vrot.slane %v15782_v13, %v24795_v55  ;;  %v23850_v13 = vld [vmem:[#allocation7 + $0x284] ss:$16 sps:$4 sm:$0xff]  }
 0xdbf   : > { %v25322_v24 = vadd.f32 %v15613_v11, %v15573_v3 }
 0xdc0   : > { %v15804_v23 = vadd.f32 %v15787_v4, %v25320_v26  ;;  %v23848_v4 = vld [vmem:[#allocation7 + $0x280] ss:$16 sps:$4 sm:$0xff]  }
 0xdfb   : > { %v15652_v20 = vpop.f32.mrb[132].mxu0  ;;  %v15693_v8 = vpop.f32.mrb[132].mxu1 }
 0xdfc   : > { %v15653_v36 = vadd.f32 %v15652_v20, %v25308_v46  ;;  %v15654_v60 = vpop.f32.mrb[133].mxu0  ;;  %v15695_v53 = vpop.f32.mrb[133].mxu1  ;;  %v15805_v46 = vadd.f32 %v15791_v38, %v25322_v24  ;;  %v25347_v20 = vcombine.high %v25339_v18, %v25339_v18  ;;  %v23845_v38 = vld [vmem:[#allocation7 + $0x80] ss:$16 sps:$4 sm:$0xff]  }
 0xdfd   : > { %v15655_v9 = vadd.f32 %v15654_v60, %v25312_v12  ;;  %v15656_v15 = vpop.f32.mrb[134].mxu0  ;;  %v15697_v0 = vpop.f32.mrb[134].mxu1  ;;  %v15808_v12 = vmul.f32 0.5, %v15804_v23  ;;  %v23835_v60 = vld [vmem:[#allocation7 + $0x44] ss:$16 sps:$4 sm:$0xff]  }
 0xdfe   : > { %v15694_v29 = vadd.f32 %v15693_v8, %v15653_v36  ;;  %v15657_v30 = vpop.f32.mrb[135].mxu0  ;;  %v15698_v59 = vpop.f32.mrb[135].mxu1  ;;  %v15812_v11 = vmul.f32 0.5, %v15805_v46  ;;  %v23827_v8 = vld [vmem:[#allocation7 + $0x20] ss:$16 sps:$4 sm:$0xff]  }
 0xdff   : > { %v15696_v5 = vadd.f32 %v15695_v53, %v15655_v9  ;;  %v23830_v36 = vld [vmem:[#allocation7 + $0x220] ss:$16 sps:$4 sm:$0xff]   ;;  %v23838_v53 = vld [vmem:[#allocation7 + $0x244] ss:$16 sps:$4 sm:$0xff]  }
 0xe00   : > { %24273 = vtanh.f32 %v15812_v11  ;;  %v23833_v9 = vld [vmem:[#allocation7 + $0x40] ss:$16 sps:$4 sm:$0xff]   ;;  %v23841_v0 = vld [vmem:[#allocation7 + $0x64] ss:$16 sps:$4 sm:$0xff]  }
 0xe01   : > { %24275 = vtanh.f32 %v15808_v12  ;;  %v23836_v15 = vld [vmem:[#allocation7 + $0x240] ss:$16 sps:$4 sm:$0xff]   ;;  %v23853_v46 = vld [vmem:[#allocation7 + $0xa4] ss:$16 sps:$4 sm:$0xff]  }
 0xe02   : > { %v23839_v30 = vld [vmem:[#allocation7 + $0x60] ss:$16 sps:$4 sm:$0xff]   ;;  %v23856_v23 = vld [vmem:[#allocation7 + $0x2a4] ss:$16 sps:$4 sm:$0xff]  }
 0xe03   : > { %v23842_v59 = vld [vmem:[#allocation7 + $0x260] ss:$16 sps:$4 sm:$0xff]  }
 0xe04   : > { %v23851_v11 = vld [vmem:[#allocation7 + $0xa0] ss:$16 sps:$4 sm:$0xff]  }
 0xe05   : > { %v23854_v12 = vld [vmem:[#allocation7 + $0x2a0] ss:$16 sps:$4 sm:$0xff]  }
 0xe0a   : > { %v24274_v51 = vpop.eup %24273 }
 0xe0b   : > { %v24276_v39 = vpop.eup %24275  ;;  %v15814_v52 = vadd.f32 1.0, %v24274_v51  ;;  %v23883_v51 = vld [vmem:[#allocation7 + $0x144] ss:$16 sps:$4 sm:$0xff]  }
 0xe0c   : > { %v15810_v10 = vadd.f32 1.0, %v24276_v39  ;;  %v23886_v39 = vld [vmem:[#allocation7 + $0x344] ss:$16 sps:$4 sm:$0xff]  }
 0xe0d   : > { %v15815_v43 = vmul.f32 0.5, %v15814_v52  ;;  %v23881_v52 = vld [vmem:[#allocation7 + $0x140] ss:$16 sps:$4 sm:$0xff]  }
 0xe0e   : > { %v15811_v34 = vmul.f32 0.5, %v15810_v10  ;;  %v23889_v10 = vld [vmem:[#allocation7 + $0x164] ss:$16 sps:$4 sm:$0xff]  }
 0xe0f   : > { %v15822_v37 = vmul.f32 %v15821_v50, %v15815_v43  ;;  %v23892_v43 = vld [vmem:[#allocation7 + $0x364] ss:$16 sps:$4 sm:$0xff]  }
 0xe10   : > { %v23895_v50 = vld [vmem:[#allocation7 + $0x184] ss:$16 sps:$4 sm:$0xff]  }
 0xe3b   : > { %v15734_v3 = vpop.f32.mrb[136].mxu0  ;;  %v15775_v14 = vpop.f32.mrb[136].mxu1 }
 0xe3c   : > { %v15735_v33 = vadd.f32 %v15734_v3, %v15694_v29  ;;  %v15736_v45 = vpop.f32.mrb[137].mxu0  ;;  %v15777_v31 = vpop.f32.mrb[137].mxu1  ;;  %v23844_v29 = vld [vmem:[#allocation7 + $0x264] ss:$16 sps:$4 sm:$0xff]  }
 0xe3d   : > { %v15737_v7 = vadd.f32 %v15736_v45, %v15696_v5  ;;  %v15738_v2 = vpop.f32.mrb[138].mxu0  ;;  %v15779_v21 = vpop.f32.mrb[138].mxu1  ;;  %v23847_v5 = vld [vmem:[#allocation7 + $0x84] ss:$16 sps:$4 sm:$0xff]  }
 0xe3e   : > { %v15776_v40 = vadd.f32 %v15775_v14, %v15735_v33  ;;  %v15739_v24 = vpop.f32.mrb[139].mxu0  ;;  %v15780_v19 = vpop.f32.mrb[139].mxu1  ;;  %v23859_v3 = vld [vmem:[#allocation7 + $0xc4] ss:$16 sps:$4 sm:$0xff]   ;;  %v23857_v33 = vld [vmem:[#allocation7 + $0xc0] ss:$16 sps:$4 sm:$0xff]  }
 0xe3f   : > { %v15778_v26 = vadd.f32 %v15777_v31, %v15737_v7  ;;  %v23862_v14 = vld [vmem:[#allocation7 + $0x2c4] ss:$16 sps:$4 sm:$0xff]   ;;  %v23863_v7 = vld [vmem:[#allocation7 + $0xe0] ss:$16 sps:$4 sm:$0xff]  }
 0xe40   : > { %v15806_v41 = vadd.f32 %v15795_v48, %v15776_v40  ;;  %v23860_v48 = vld [vmem:[#allocation7 + $0x2c0] ss:$16 sps:$4 sm:$0xff]   ;;  %v23865_v45 = vld [vmem:[#allocation7 + $0xe4] ss:$16 sps:$4 sm:$0xff]  }
 0xe41   : > { %v15807_v57 = vadd.f32 %v15799_v58, %v15778_v26  ;;  %v23868_v31 = vld [vmem:[#allocation7 + $0x2e4] ss:$16 sps:$4 sm:$0xff]   ;;  %v23866_v58 = vld [vmem:[#allocation7 + $0x2e0] ss:$16 sps:$4 sm:$0xff]  }
 0xe42   : > { %24277 = vtanh.f32 %v15806_v41  ;;  %v23871_v2 = vld [vmem:[#allocation7 + $0x104] ss:$16 sps:$4 sm:$0xff]   ;;  %v23869_v40 = vld [vmem:[#allocation7 + $0x100] ss:$16 sps:$4 sm:$0xff]  }
 0xe43   : > { %v15817_v44 = vmul.f32 0.5, %v15807_v57  ;;  %v23874_v21 = vld [vmem:[#allocation7 + $0x304] ss:$16 sps:$4 sm:$0xff]   ;;  %v23872_v24 = vld [vmem:[#allocation7 + $0x300] ss:$16 sps:$4 sm:$0xff]  }
 0xe44   : > { %v23877_v19 = vld [vmem:[#allocation7 + $0x124] ss:$16 sps:$4 sm:$0xff]   ;;  %v23875_v41 = vld [vmem:[#allocation7 + $0x120] ss:$16 sps:$4 sm:$0xff]  }
 0xe45   : > { %24279 = vtanh.f32 %v15817_v44  ;;  %v23880_v26 = vld [vmem:[#allocation7 + $0x324] ss:$16 sps:$4 sm:$0xff]   ;;  %v23878_v57 = vld [vmem:[#allocation7 + $0x320] ss:$16 sps:$4 sm:$0xff]  }
 0xe46   : > { %v23884_v44 = vld [vmem:[#allocation7 + $0x340] ss:$16 sps:$4 sm:$0xff]  }
 0xe4c   : > { %v24278_v32 = vpop.eup %24277 }
 0xe4d   : > { %v15823_v1 = vmul.f32 %v24278_v32, %v15811_v34  ;;  %v23887_v34 = vld [vmem:[#allocation7 + $0x160] ss:$16 sps:$4 sm:$0xff]  }
 0xe4e   : > { %v23890_v32 = vld [vmem:[#allocation7 + $0x360] ss:$16 sps:$4 sm:$0xff]  }
 0xe4f   : > { %v15824_v49 = vadd.f32 %v15823_v1, %v15822_v37  ;;  %v24280_v62 = vpop.eup %24279  ;;  %v23898_v37 = vld [vmem:[#allocation7 + $0x384] ss:$16 sps:$4 sm:$0xff]   ;;  %v23893_v1 = vld [vmem:[#allocation7 + $0x180] ss:$16 sps:$4 sm:$0xff]  }
 0xe50   : > { %v15819_v6 = vadd.f32 1.0, %v24280_v62  ;;  %v23901_v62 = vld [vmem:[#allocation7 + $0x1a4] ss:$16 sps:$4 sm:$0xff]  }
 0xe51   : > { %24281 = vtanh.f32 %v15824_v49  ;;  %15827 = vst [vmem:[#allocation3] sm:$0xff] %v15824_v49  ;;  %v23896_v49 = vld [vmem:[#allocation7 + $0x380] ss:$16 sps:$4 sm:$0xff]  }
 0xe52   : > { %v15820_v63 = vmul.f32 0.5, %v15819_v6  ;;  %v23904_v6 = vld [vmem:[#allocation7 + $0x3a4] ss:$16 sps:$4 sm:$0xff]  }
 0xe5b   : > { %v24282_v27 = vpop.eup %24281 }
 0xe5c   : > { %v15826_v42 = vmul.f32 %v24282_v27, %v15820_v63  ;;  %v23899_v63 = vld [vmem:[#allocation7 + $0x1a0] ss:$16 sps:$4 sm:$0xff]  }
 0xe5d   : > { %v23902_v27 = vld [vmem:[#allocation7 + $0x3a0] ss:$16 sps:$4 sm:$0xff]  }
 0xe5e   : > { %v15829_v47 = vpack.c.bf16 %v15826_v42, %v15826_v42  ;;  %v23907_v42 = vld [vmem:[#allocation7 + $0x1c4] ss:$16 sps:$4 sm:$0xff]  }
 0xe60   : > { %20292 = vst [vmem:[%s24707_s12 + $0x18] sm:$0xf] %v15829_v47  ;;  %16320 = vmatmul.mubr.bf16.vlgmr.msra.gmra.mrb[140].mxu0 %v15829_v47  ;;  %16361 = vmatmul.mubr.bf16.vlgmr.msra.gmra.mrb[140].mxu1 %v15829_v47  ;;  %v23908_v47 = vld [vmem:[#allocation7 + $0x3c0] ss:$16 sps:$4 sm:$0xff]  }
 0xe61   : > { %17678 = vmatpush1.bf16.msra.mxu0 %v23821_v16  ;;  %17719 = vmatpush1.bf16.msra.mxu1 %v23824_v61  ;;  %v23910_v16 = vld [vmem:[#allocation7 + $0x3c4] ss:$16 sps:$4 sm:$0xff]   ;;  %v23905_v61 = vld [vmem:[#allocation7 + $0x1c0] ss:$16 sps:$4 sm:$0xff]  }
 0xe62   : > { %17679 = vmatprep.subr.bf16.mxu0 %v23829_v35  ;;  %17720 = vmatprep.subr.bf16.mxu1 %v23832_v22  ;;  %v23913_v35 = vld [vmem:[#allocation7 + $0x1e4] ss:$16 sps:$4 sm:$0xff]  }
 0xe63   : > { %17709 = vmatprep.mubr.bf16.mxu0 %v25343_v56  ;;  %17750 = vmatprep.mubr.bf16.mxu1 %v25347_v20  ;;  %v23916_v22 = vld [vmem:[#allocation7 + $0x3e4] ss:$16 sps:$4 sm:$0xff]  }
 0xe65   : > { %17680 = vmatpush1.bf16.msra.mxu0 %v23827_v8  ;;  %17721 = vmatpush1.bf16.msra.mxu1 %v23830_v36  ;;  %v23911_v8 = vld [vmem:[#allocation7 + $0x1e0] ss:$16 sps:$4 sm:$0xff]  }
 0xe66   : > { %17681 = vmatprep.subr.bf16.mxu0 %v23835_v60  ;;  %17722 = vmatprep.subr.bf16.mxu1 %v23838_v53  ;;  %v23914_v36 = vld [vmem:[#allocation7 + $0x3e0] ss:$16 sps:$4 sm:$0xff]   ;;  %v23923_v60 = vld [vmem:[#allocation7 + $0x404] ss:$16 sps:$4 sm:$0xff]  }
 0xe67   : > { %v23926_v53 = vld [vmem:[#allocation7 + $0x604] ss:$16 sps:$4 sm:$0xff]  }
 0xe69   : > { %17682 = vmatpush1.bf16.msra.mxu0 %v23833_v9  ;;  %17723 = vmatpush1.bf16.msra.mxu1 %v23836_v15  ;;  %v25354_v9 = vcombine.low %v25336_v17, %v25336_v17  ;;  %v25358_v15 = vcombine.low %v25339_v18, %v25339_v18 }
 0xe6a   : > { %17683 = vmatprep.subr.bf16.mxu0 %v23841_v0  ;;  %17724 = vmatprep.subr.bf16.mxu1 %v23844_v29  ;;  %v25361_v0 = vld [vmem:[%s24696_s9 + $0xf0] sm:$0xff]  ;;  %v25364_v29 = vld [vmem:[%s24696_s9 + $0xf8] sm:$0xff] }
 0xe6b   : > { %v25368_v17 = vcombine.high %v25361_v0, %v25361_v0  ;;  %v25372_v18 = vcombine.high %v25364_v29, %v25364_v29 }
 0xe6d   : > { %17684 = vmatpush1.bf16.msra.mxu0 %v23839_v30  ;;  %17725 = vmatpush1.bf16.msra.mxu1 %v23842_v59  ;;  %v23921_v30 = vld [vmem:[#allocation7 + $0x400] ss:$16 sps:$4 sm:$0xff]  }
 0xe6e   : > { %17685 = vmatprep.subr.bf16.mxu0 %v23847_v5  ;;  %17726 = vmatprep.subr.bf16.mxu1 %v23850_v13  ;;  %v23924_v59 = vld [vmem:[#allocation7 + $0x600] ss:$16 sps:$4 sm:$0xff]   ;;  %v23929_v5 = vld [vmem:[#allocation7 + $0x424] ss:$16 sps:$4 sm:$0xff]  }
 0xe6f   : > { %v23932_v13 = vld [vmem:[#allocation7 + $0x624] ss:$16 sps:$4 sm:$0xff]  }
 0xe71   : > { %17686 = vmatpush1.bf16.msra.mxu0 %v23845_v38  ;;  %17727 = vmatpush1.bf16.msra.mxu1 %v23848_v4  ;;  %v23927_v38 = vld [vmem:[#allocation7 + $0x420] ss:$16 sps:$4 sm:$0xff]  }
 0xe72   : > { %17687 = vmatprep.subr.bf16.mxu0 %v23853_v46  ;;  %17728 = vmatprep.subr.bf16.mxu1 %v23856_v23  ;;  %v23930_v4 = vld [vmem:[#allocation7 + $0x620] ss:$16 sps:$4 sm:$0xff]   ;;  %v23935_v46 = vld [vmem:[#allocation7 + $0x444] ss:$16 sps:$4 sm:$0xff]  }
 0xe73   : > { %v23938_v23 = vld [vmem:[#allocation7 + $0x644] ss:$16 sps:$4 sm:$0xff]  }
 0xe75   : > { %17688 = vmatpush1.bf16.msra.mxu0 %v23851_v11  ;;  %17729 = vmatpush1.bf16.msra.mxu1 %v23854_v12  ;;  %v23933_v11 = vld [vmem:[#allocation7 + $0x440] ss:$16 sps:$4 sm:$0xff]  }
 0xe76   : > { %17689 = vmatprep.subr.bf16.mxu0 %v23859_v3  ;;  %17730 = vmatprep.subr.bf16.mxu1 %v23862_v14  ;;  %v23936_v12 = vld [vmem:[#allocation7 + $0x640] ss:$16 sps:$4 sm:$0xff]   ;;  %v23941_v3 = vld [vmem:[#allocation7 + $0x464] ss:$16 sps:$4 sm:$0xff]  }
 0xe77   : > { %v23944_v14 = vld [vmem:[#allocation7 + $0x664] ss:$16 sps:$4 sm:$0xff]  }
 0xe79   : > { %17690 = vmatpush1.bf16.msra.mxu0 %v23857_v33  ;;  %17731 = vmatpush1.bf16.msra.mxu1 %v23860_v48  ;;  %v23939_v33 = vld [vmem:[#allocation7 + $0x460] ss:$16 sps:$4 sm:$0xff]  }
 0xe7a   : > { %17691 = vmatprep.subr.bf16.mxu0 %v23865_v45  ;;  %17732 = vmatprep.subr.bf16.mxu1 %v23868_v31  ;;  %v23942_v48 = vld [vmem:[#allocation7 + $0x660] ss:$16 sps:$4 sm:$0xff]   ;;  %v23947_v45 = vld [vmem:[#allocation7 + $0x484] ss:$16 sps:$4 sm:$0xff]  }
 0xe7b   : > { %v23950_v31 = vld [vmem:[#allocation7 + $0x684] ss:$16 sps:$4 sm:$0xff]  }
 0xe7d   : > { %17692 = vmatpush1.bf16.msra.mxu0 %v23863_v7  ;;  %17733 = vmatpush1.bf16.msra.mxu1 %v23866_v58  ;;  %v23945_v7 = vld [vmem:[#allocation7 + $0x480] ss:$16 sps:$4 sm:$0xff]  }
 0xe7e   : > { %17693 = vmatprep.subr.bf16.mxu0 %v23871_v2  ;;  %17734 = vmatprep.subr.bf16.mxu1 %v23874_v21  ;;  %v23948_v58 = vld [vmem:[#allocation7 + $0x680] ss:$16 sps:$4 sm:$0xff]   ;;  %v23953_v2 = vld [vmem:[#allocation7 + $0x4a4] ss:$16 sps:$4 sm:$0xff]  }
 0xe7f   : > { %v23956_v21 = vld [vmem:[#allocation7 + $0x6a4] ss:$16 sps:$4 sm:$0xff]  }
 0xe81   : > { %17694 = vmatpush1.bf16.msra.mxu0 %v23869_v40  ;;  %17735 = vmatpush1.bf16.msra.mxu1 %v23872_v24  ;;  %v23951_v40 = vld [vmem:[#allocation7 + $0x4a0] ss:$16 sps:$4 sm:$0xff]  }
 0xe82   : > { %17695 = vmatprep.subr.bf16.mxu0 %v23877_v19  ;;  %17736 = vmatprep.subr.bf16.mxu1 %v23880_v26  ;;  %v23954_v24 = vld [vmem:[#allocation7 + $0x6a0] ss:$16 sps:$4 sm:$0xff]   ;;  %v23959_v19 = vld [vmem:[#allocation7 + $0x4c4] ss:$16 sps:$4 sm:$0xff]  }
 0xe83   : > { %v23962_v26 = vld [vmem:[#allocation7 + $0x6c4] ss:$16 sps:$4 sm:$0xff]  }
 0xe85   : > { %17696 = vmatpush1.bf16.msra.mxu0 %v23875_v41  ;;  %17737 = vmatpush1.bf16.msra.mxu1 %v23878_v57  ;;  %v23957_v41 = vld [vmem:[#allocation7 + $0x4c0] ss:$16 sps:$4 sm:$0xff]  }
 0xe86   : > { %17697 = vmatprep.subr.bf16.mxu0 %v23883_v51  ;;  %17738 = vmatprep.subr.bf16.mxu1 %v23886_v39  ;;  %v23960_v57 = vld [vmem:[#allocation7 + $0x6c0] ss:$16 sps:$4 sm:$0xff]   ;;  %v23965_v51 = vld [vmem:[#allocation7 + $0x4e4] ss:$16 sps:$4 sm:$0xff]  }
 0xe87   : > { %v23968_v39 = vld [vmem:[#allocation7 + $0x6e4] ss:$16 sps:$4 sm:$0xff]  }
 0xe89   : > { %17698 = vmatpush1.bf16.msra.mxu0 %v23881_v52  ;;  %17739 = vmatpush1.bf16.msra.mxu1 %v23884_v44  ;;  %v23963_v52 = vld [vmem:[#allocation7 + $0x4e0] ss:$16 sps:$4 sm:$0xff]  }
 0xe8a   : > { %17699 = vmatprep.subr.bf16.mxu0 %v23889_v10  ;;  %17740 = vmatprep.subr.bf16.mxu1 %v23892_v43  ;;  %v23966_v44 = vld [vmem:[#allocation7 + $0x6e0] ss:$16 sps:$4 sm:$0xff]   ;;  %v23971_v10 = vld [vmem:[#allocation7 + $0x504] ss:$16 sps:$4 sm:$0xff]  }
 0xe8b   : > { %v23974_v43 = vld [vmem:[#allocation7 + $0x704] ss:$16 sps:$4 sm:$0xff]  }
 0xe8d   : > { %17700 = vmatpush1.bf16.msra.mxu0 %v23887_v34  ;;  %17741 = vmatpush1.bf16.msra.mxu1 %v23890_v32  ;;  %v23969_v34 = vld [vmem:[#allocation7 + $0x500] ss:$16 sps:$4 sm:$0xff]  }
 0xe8e   : > { %17701 = vmatprep.subr.bf16.mxu0 %v23895_v50  ;;  %17742 = vmatprep.subr.bf16.mxu1 %v23898_v37  ;;  %v23972_v32 = vld [vmem:[#allocation7 + $0x700] ss:$16 sps:$4 sm:$0xff]   ;;  %v23977_v50 = vld [vmem:[#allocation7 + $0x524] ss:$16 sps:$4 sm:$0xff]  }
 0xe8f   : > { %v23980_v37 = vld [vmem:[#allocation7 + $0x724] ss:$16 sps:$4 sm:$0xff]  }
 0xe91   : > { %17702 = vmatpush1.bf16.msra.mxu0 %v23893_v1  ;;  %17743 = vmatpush1.bf16.msra.mxu1 %v23896_v49  ;;  %v23975_v1 = vld [vmem:[#allocation7 + $0x520] ss:$16 sps:$4 sm:$0xff]  }
 0xe92   : > { %17703 = vmatprep.subr.bf16.mxu0 %v23901_v62  ;;  %17744 = vmatprep.subr.bf16.mxu1 %v23904_v6  ;;  %v23978_v49 = vld [vmem:[#allocation7 + $0x720] ss:$16 sps:$4 sm:$0xff]   ;;  %v23983_v62 = vld [vmem:[#allocation7 + $0x544] ss:$16 sps:$4 sm:$0xff]  }
 0xe93   : > { %v23986_v6 = vld [vmem:[#allocation7 + $0x744] ss:$16 sps:$4 sm:$0xff]  }
 0xe95   : > { %17704 = vmatpush1.bf16.msra.mxu0 %v23899_v63  ;;  %17745 = vmatpush1.bf16.msra.mxu1 %v23902_v27  ;;  %v23981_v63 = vld [vmem:[#allocation7 + $0x540] ss:$16 sps:$4 sm:$0xff]  }
 0xe96   : > { %17705 = vmatprep.subr.bf16.mxu0 %v23907_v42  ;;  %17746 = vmatprep.subr.bf16.mxu1 %v23910_v16  ;;  %v23984_v27 = vld [vmem:[#allocation7 + $0x740] ss:$16 sps:$4 sm:$0xff]   ;;  %v23989_v42 = vld [vmem:[#allocation7 + $0x564] ss:$16 sps:$4 sm:$0xff]  }
 0xe97   : > { %v23992_v16 = vld [vmem:[#allocation7 + $0x764] ss:$16 sps:$4 sm:$0xff]  }
 0xe99   : > { %17706 = vmatpush1.bf16.msra.mxu0 %v23905_v61  ;;  %17747 = vmatpush1.bf16.msra.mxu1 %v23908_v47  ;;  %v23987_v61 = vld [vmem:[#allocation7 + $0x560] ss:$16 sps:$4 sm:$0xff]  }
 0xe9a   : > { %17707 = vmatprep.subr.bf16.mxu0 %v23913_v35  ;;  %17748 = vmatprep.subr.bf16.mxu1 %v23916_v22  ;;  %v23990_v47 = vld [vmem:[#allocation7 + $0x760] ss:$16 sps:$4 sm:$0xff]   ;;  %v23995_v35 = vld [vmem:[#allocation7 + $0x584] ss:$16 sps:$4 sm:$0xff]  }
 0xe9b   : > { %v23998_v22 = vld [vmem:[#allocation7 + $0x784] ss:$16 sps:$4 sm:$0xff]  }
 0xe9d   : > { %17708 = vmatpush1.bf16.msra.mxu0 %v23911_v8  ;;  %17749 = vmatpush1.bf16.msra.mxu1 %v23914_v36  ;;  %v23993_v8 = vld [vmem:[#allocation7 + $0x580] ss:$16 sps:$4 sm:$0xff]  }
 0xe9e   : > { %17759 = vmatprep.subr.bf16.mxu0 %v23923_v60  ;;  %17800 = vmatprep.subr.bf16.mxu1 %v23926_v53  ;;  %v23996_v36 = vld [vmem:[#allocation7 + $0x780] ss:$16 sps:$4 sm:$0xff]   ;;  %v24001_v60 = vld [vmem:[#allocation7 + $0x5a4] ss:$16 sps:$4 sm:$0xff]  }
 0xe9f   : > { %v24004_v53 = vld [vmem:[#allocation7 + $0x7a4] ss:$16 sps:$4 sm:$0xff]  }
 0xea0   : > { %17710 = vmatmul.mubr.bf16.vlgmr.msra.gmra.mrb[144].mxu0 %v25354_v9  ;;  %17751 = vmatmul.mubr.bf16.vlgmr.msra.gmra.mrb[144].mxu1 %v25358_v15 }
 0xea1   : > { %17760 = vmatpush1.bf16.msra.mxu0 %v23921_v30  ;;  %17801 = vmatpush1.bf16.msra.mxu1 %v23924_v59  ;;  %v23999_v30 = vld [vmem:[#allocation7 + $0x5a0] ss:$16 sps:$4 sm:$0xff]  }
 0xea2   : > { %17761 = vmatprep.subr.bf16.mxu0 %v23929_v5  ;;  %17802 = vmatprep.subr.bf16.mxu1 %v23932_v13  ;;  %v24002_v59 = vld [vmem:[#allocation7 + $0x7a0] ss:$16 sps:$4 sm:$0xff]   ;;  %v24007_v5 = vld [vmem:[#allocation7 + $0x5c4] ss:$16 sps:$4 sm:$0xff]  }
 0xea3   : > { %17791 = vmatprep.mubr.bf16.mxu0 %v25368_v17  ;;  %17832 = vmatprep.mubr.bf16.mxu1 %v25372_v18  ;;  %v24010_v13 = vld [vmem:[#allocation7 + $0x7c4] ss:$16 sps:$4 sm:$0xff]  }
 0xea5   : > { %17762 = vmatpush1.bf16.msra.mxu0 %v23927_v38  ;;  %17803 = vmatpush1.bf16.msra.mxu1 %v23930_v4  ;;  %v24005_v38 = vld [vmem:[#allocation7 + $0x5c0] ss:$16 sps:$4 sm:$0xff]  }
 0xea6   : > { %17763 = vmatprep.subr.bf16.mxu0 %v23935_v46  ;;  %17804 = vmatprep.subr.bf16.mxu1 %v23938_v23  ;;  %v24008_v4 = vld [vmem:[#allocation7 + $0x7c0] ss:$16 sps:$4 sm:$0xff]   ;;  %v24013_v46 = vld [vmem:[#allocation7 + $0x5e4] ss:$16 sps:$4 sm:$0xff]  }
 0xea7   : > { %v24016_v23 = vld [vmem:[#allocation7 + $0x7e4] ss:$16 sps:$4 sm:$0xff]  }
 0xea9   : > { %17764 = vmatpush1.bf16.msra.mxu0 %v23933_v11  ;;  %17805 = vmatpush1.bf16.msra.mxu1 %v23936_v12  ;;  %v24011_v11 = vld [vmem:[#allocation7 + $0x5e0] ss:$16 sps:$4 sm:$0xff]  }
 0xeaa   : > { %17765 = vmatprep.subr.bf16.mxu0 %v23941_v3  ;;  %17806 = vmatprep.subr.bf16.mxu1 %v23944_v14  ;;  %v24014_v12 = vld [vmem:[#allocation7 + $0x7e0] ss:$16 sps:$4 sm:$0xff]   ;;  %v24023_v3 = vld [vmem:[#allocation7 + $0xc] ss:$16 sps:$4 sm:$0xff]  }
 0xeab   : > { %v24026_v14 = vld [vmem:[#allocation7 + $0x20c] ss:$16 sps:$4 sm:$0xff]  }
 0xead   : > { %17766 = vmatpush1.bf16.msra.mxu0 %v23939_v33  ;;  %17807 = vmatpush1.bf16.msra.mxu1 %v23942_v48  ;;  %v25380_v33 = vcombine.low %v25361_v0, %v25361_v0  ;;  %v25384_v48 = vcombine.low %v25364_v29, %v25364_v29  ;;  %v24027_v0 = vld [vmem:[#allocation7 + $0x28] ss:$16 sps:$4 sm:$0xff]   ;;  %v24035_v29 = vld [vmem:[#allocation7 + $0x4c] ss:$16 sps:$4 sm:$0xff]  }
 0xeae   : > { %17767 = vmatprep.subr.bf16.mxu0 %v23947_v45  ;;  %17808 = vmatprep.subr.bf16.mxu1 %v23950_v31  ;;  %v24021_v45 = vld [vmem:[#allocation7 + $0x8] ss:$16 sps:$4 sm:$0xff]  }
 0xeaf   : > { %v24024_v31 = vld [vmem:[#allocation7 + $0x208] ss:$16 sps:$4 sm:$0xff]  }
 0xeb1   : > { %17768 = vmatpush1.bf16.msra.mxu0 %v23945_v7  ;;  %17809 = vmatpush1.bf16.msra.mxu1 %v23948_v58  ;;  %v24029_v7 = vld [vmem:[#allocation7 + $0x2c] ss:$16 sps:$4 sm:$0xff]  }
 0xeb2   : > { %17769 = vmatprep.subr.bf16.mxu0 %v23953_v2  ;;  %17810 = vmatprep.subr.bf16.mxu1 %v23956_v21  ;;  %v24032_v58 = vld [vmem:[#allocation7 + $0x22c] ss:$16 sps:$4 sm:$0xff]   ;;  %v24030_v2 = vld [vmem:[#allocation7 + $0x228] ss:$16 sps:$4 sm:$0xff]  }
 0xeb3   : > { %v24038_v21 = vld [vmem:[#allocation7 + $0x24c] ss:$16 sps:$4 sm:$0xff]  }
 0xeb5   : > { %17770 = vmatpush1.bf16.msra.mxu0 %v23951_v40  ;;  %17811 = vmatpush1.bf16.msra.mxu1 %v23954_v24  ;;  %v24033_v40 = vld [vmem:[#allocation7 + $0x48] ss:$16 sps:$4 sm:$0xff]  }
 0xeb6   : > { %17771 = vmatprep.subr.bf16.mxu0 %v23959_v19  ;;  %17812 = vmatprep.subr.bf16.mxu1 %v23962_v26  ;;  %v24036_v24 = vld [vmem:[#allocation7 + $0x248] ss:$16 sps:$4 sm:$0xff]   ;;  %v24041_v19 = vld [vmem:[#allocation7 + $0x6c] ss:$16 sps:$4 sm:$0xff]  }
 0xeb7   : > { %v24044_v26 = vld [vmem:[#allocation7 + $0x26c] ss:$16 sps:$4 sm:$0xff]  }
 0xeb9   : > { %17772 = vmatpush1.bf16.msra.mxu0 %v23957_v41  ;;  %17813 = vmatpush1.bf16.msra.mxu1 %v23960_v57  ;;  %v24039_v41 = vld [vmem:[#allocation7 + $0x68] ss:$16 sps:$4 sm:$0xff]  }
 0xeba   : > { %17773 = vmatprep.subr.bf16.mxu0 %v23965_v51  ;;  %17814 = vmatprep.subr.bf16.mxu1 %v23968_v39  ;;  %v24042_v57 = vld [vmem:[#allocation7 + $0x268] ss:$16 sps:$4 sm:$0xff]   ;;  %v24047_v51 = vld [vmem:[#allocation7 + $0x8c] ss:$16 sps:$4 sm:$0xff]  }
 0xebb   : > { %v24050_v39 = vld [vmem:[#allocation7 + $0x28c] ss:$16 sps:$4 sm:$0xff]  }
 0xebd   : > { %17774 = vmatpush1.bf16.msra.mxu0 %v23963_v52  ;;  %17815 = vmatpush1.bf16.msra.mxu1 %v23966_v44  ;;  %v24053_v52 = vld [vmem:[#allocation7 + $0xac] ss:$16 sps:$4 sm:$0xff]  }
 0xebe   : > { %17775 = vmatprep.subr.bf16.mxu0 %v23971_v10  ;;  %17816 = vmatprep.subr.bf16.mxu1 %v23974_v43  ;;  %v24056_v44 = vld [vmem:[#allocation7 + $0x2ac] ss:$16 sps:$4 sm:$0xff]   ;;  %v24051_v10 = vld [vmem:[#allocation7 + $0xa8] ss:$16 sps:$4 sm:$0xff]  }
 0xebf   : > { %v24054_v43 = vld [vmem:[#allocation7 + $0x2a8] ss:$16 sps:$4 sm:$0xff]  }
 0xec1   : > { %17776 = vmatpush1.bf16.msra.mxu0 %v23969_v34  ;;  %17817 = vmatpush1.bf16.msra.mxu1 %v23972_v32  ;;  %v24059_v34 = vld [vmem:[#allocation7 + $0xcc] ss:$16 sps:$4 sm:$0xff]  }
 0xec2   : > { %17777 = vmatprep.subr.bf16.mxu0 %v23977_v50  ;;  %17818 = vmatprep.subr.bf16.mxu1 %v23980_v37  ;;  %v24062_v32 = vld [vmem:[#allocation7 + $0x2cc] ss:$16 sps:$4 sm:$0xff]   ;;  %v24057_v50 = vld [vmem:[#allocation7 + $0xc8] ss:$16 sps:$4 sm:$0xff]  }
 0xec3   : > { %v24060_v37 = vld [vmem:[#allocation7 + $0x2c8] ss:$16 sps:$4 sm:$0xff]  }
 0xec5   : > { %17778 = vmatpush1.bf16.msra.mxu0 %v23975_v1  ;;  %17819 = vmatpush1.bf16.msra.mxu1 %v23978_v49  ;;  %v24065_v1 = vld [vmem:[#allocation7 + $0xec] ss:$16 sps:$4 sm:$0xff]  }
 0xec6   : > { %17779 = vmatprep.subr.bf16.mxu0 %v23983_v62  ;;  %17820 = vmatprep.subr.bf16.mxu1 %v23986_v6  ;;  %v24068_v49 = vld [vmem:[#allocation7 + $0x2ec] ss:$16 sps:$4 sm:$0xff]   ;;  %v24063_v62 = vld [vmem:[#allocation7 + $0xe8] ss:$16 sps:$4 sm:$0xff]  }
 0xec7   : > { %v24066_v6 = vld [vmem:[#allocation7 + $0x2e8] ss:$16 sps:$4 sm:$0xff]  }
 0xec9   : > { %17780 = vmatpush1.bf16.msra.mxu0 %v23981_v63  ;;  %17821 = vmatpush1.bf16.msra.mxu1 %v23984_v27  ;;  %v24071_v63 = vld [vmem:[#allocation7 + $0x10c] ss:$16 sps:$4 sm:$0xff]  }
 0xeca   : > { %17781 = vmatprep.subr.bf16.mxu0 %v23989_v42  ;;  %17822 = vmatprep.subr.bf16.mxu1 %v23992_v16  ;;  %v24074_v27 = vld [vmem:[#allocation7 + $0x30c] ss:$16 sps:$4 sm:$0xff]   ;;  %v24069_v42 = vld [vmem:[#allocation7 + $0x108] ss:$16 sps:$4 sm:$0xff]  }
 0xecb   : > { %v24072_v16 = vld [vmem:[#allocation7 + $0x308] ss:$16 sps:$4 sm:$0xff]  }
 0xecd   : > { %17782 = vmatpush1.bf16.msra.mxu0 %v23987_v61  ;;  %17823 = vmatpush1.bf16.msra.mxu1 %v23990_v47  ;;  %v24077_v61 = vld [vmem:[#allocation7 + $0x12c] ss:$16 sps:$4 sm:$0xff]  }
 0xece   : > { %17783 = vmatprep.subr.bf16.mxu0 %v23995_v35  ;;  %17824 = vmatprep.subr.bf16.mxu1 %v23998_v22  ;;  %v24080_v47 = vld [vmem:[#allocation7 + $0x32c] ss:$16 sps:$4 sm:$0xff]   ;;  %v24075_v35 = vld [vmem:[#allocation7 + $0x128] ss:$16 sps:$4 sm:$0xff]  }
 0xecf   : > { %v24078_v22 = vld [vmem:[#allocation7 + $0x328] ss:$16 sps:$4 sm:$0xff]  }
 0xed1   : > { %17784 = vmatpush1.bf16.msra.mxu0 %v23993_v8  ;;  %17825 = vmatpush1.bf16.msra.mxu1 %v23996_v36  ;;  %v24083_v8 = vld [vmem:[#allocation7 + $0x14c] ss:$16 sps:$4 sm:$0xff]  }
 0xed2   : > { %17785 = vmatprep.subr.bf16.mxu0 %v24001_v60  ;;  %17826 = vmatprep.subr.bf16.mxu1 %v24004_v53  ;;  %v24086_v36 = vld [vmem:[#allocation7 + $0x34c] ss:$16 sps:$4 sm:$0xff]   ;;  %v24081_v60 = vld [vmem:[#allocation7 + $0x148] ss:$16 sps:$4 sm:$0xff]  }
 0xed3   : > { %v24084_v53 = vld [vmem:[#allocation7 + $0x348] ss:$16 sps:$4 sm:$0xff]  }
 0xed5   : > { %17786 = vmatpush1.bf16.msra.mxu0 %v23999_v30  ;;  %17827 = vmatpush1.bf16.msra.mxu1 %v24002_v59  ;;  %v24089_v30 = vld [vmem:[#allocation7 + $0x16c] ss:$16 sps:$4 sm:$0xff]  }
 0xed6   : > { %17787 = vmatprep.subr.bf16.mxu0 %v24007_v5  ;;  %17828 = vmatprep.subr.bf16.mxu1 %v24010_v13  ;;  %v24092_v59 = vld [vmem:[#allocation7 + $0x36c] ss:$16 sps:$4 sm:$0xff]   ;;  %v24087_v5 = vld [vmem:[#allocation7 + $0x168] ss:$16 sps:$4 sm:$0xff]  }
 0xed7   : > { %v24090_v13 = vld [vmem:[#allocation7 + $0x368] ss:$16 sps:$4 sm:$0xff]  }
 0xed9   : > { %17788 = vmatpush1.bf16.msra.mxu0 %v24005_v38  ;;  %17829 = vmatpush1.bf16.msra.mxu1 %v24008_v4  ;;  %v24095_v38 = vld [vmem:[#allocation7 + $0x18c] ss:$16 sps:$4 sm:$0xff]  }
 0xeda   : > { %17789 = vmatprep.subr.bf16.mxu0 %v24013_v46  ;;  %17830 = vmatprep.subr.bf16.mxu1 %v24016_v23  ;;  %v24098_v4 = vld [vmem:[#allocation7 + $0x38c] ss:$16 sps:$4 sm:$0xff]   ;;  %v24093_v46 = vld [vmem:[#allocation7 + $0x188] ss:$16 sps:$4 sm:$0xff]  }
 0xedb   : > { %v24096_v23 = vld [vmem:[#allocation7 + $0x388] ss:$16 sps:$4 sm:$0xff]  }
 0xedd   : > { %17790 = vmatpush1.bf16.msra.mxu0 %v24011_v11  ;;  %17831 = vmatpush1.bf16.msra.mxu1 %v24014_v12  ;;  %v24101_v11 = vld [vmem:[#allocation7 + $0x1ac] ss:$16 sps:$4 sm:$0xff]  }
 0xede   : > { %17841 = vmatprep.subr.bf16.mxu0 %v24023_v3  ;;  %17882 = vmatprep.subr.bf16.mxu1 %v24026_v14  ;;  %v24104_v12 = vld [vmem:[#allocation7 + $0x3ac] ss:$16 sps:$4 sm:$0xff]   ;;  %v24099_v3 = vld [vmem:[#allocation7 + $0x1a8] ss:$16 sps:$4 sm:$0xff]  }
 0xedf   : > { %v24102_v14 = vld [vmem:[#allocation7 + $0x3a8] ss:$16 sps:$4 sm:$0xff]  }
 0xee0   : > { %17792 = vmatmul.mubr.bf16.vlgmr.msra.gmra.mrb[148].mxu0 %v25380_v33  ;;  %17833 = vmatmul.mubr.bf16.vlgmr.msra.gmra.mrb[148].mxu1 %v25384_v48 }
 0xee1   : > { %17842 = vmatpush1.bf16.msra.mxu0 %v24021_v45  ;;  %17883 = vmatpush1.bf16.msra.mxu1 %v24024_v31  ;;  %v24107_v45 = vld [vmem:[#allocation7 + $0x1cc] ss:$16 sps:$4 sm:$0xff]  }
 0xee2   : > { %17843 = vmatprep.subr.bf16.mxu0 %v24029_v7  ;;  %17884 = vmatprep.subr.bf16.mxu1 %v24032_v58  ;;  %v24110_v31 = vld [vmem:[#allocation7 + $0x3cc] ss:$16 sps:$4 sm:$0xff]   ;;  %v24105_v7 = vld [vmem:[#allocation7 + $0x1c8] ss:$16 sps:$4 sm:$0xff]  }
 0xee3   : > { %17873 = vmatprep.mubr.bf16.mxu0 %v25343_v56  ;;  %17914 = vmatprep.mubr.bf16.mxu1 %v25347_v20  ;;  %v24045_v56 = vld [vmem:[#allocation7 + $0x88] ss:$16 sps:$4 sm:$0xff]  }
 0xee4   : > { %v24048_v20 = vld [vmem:[#allocation7 + $0x288] ss:$16 sps:$4 sm:$0xff]  }
 0xee5   : > { %17844 = vmatpush1.bf16.msra.mxu0 %v24027_v0  ;;  %17885 = vmatpush1.bf16.msra.mxu1 %v24030_v2  ;;  %v24108_v58 = vld [vmem:[#allocation7 + $0x3c8] ss:$16 sps:$4 sm:$0xff]   ;;  %v24113_v0 = vld [vmem:[#allocation7 + $0x1ec] ss:$16 sps:$4 sm:$0xff]  }
 0xee6   : > { %17845 = vmatprep.subr.bf16.mxu0 %v24035_v29  ;;  %17886 = vmatprep.subr.bf16.mxu1 %v24038_v21  ;;  %v24116_v2 = vld [vmem:[#allocation7 + $0x3ec] ss:$16 sps:$4 sm:$0xff]   ;;  %v24111_v29 = vld [vmem:[#allocation7 + $0x1e8] ss:$16 sps:$4 sm:$0xff]  }
 0xee7   : > { %v24114_v21 = vld [vmem:[#allocation7 + $0x3e8] ss:$16 sps:$4 sm:$0xff]  }
 0xee9   : > { %17846 = vmatpush1.bf16.msra.mxu0 %v24033_v40  ;;  %17887 = vmatpush1.bf16.msra.mxu1 %v24036_v24  ;;  %v24119_v40 = vld [vmem:[#allocation7 + $0x40c] ss:$16 sps:$4 sm:$0xff]  }
 0xeea   : > { %17847 = vmatprep.subr.bf16.mxu0 %v24041_v19  ;;  %17888 = vmatprep.subr.bf16.mxu1 %v24044_v26  ;;  %v24122_v24 = vld [vmem:[#allocation7 + $0x60c] ss:$16 sps:$4 sm:$0xff]   ;;  %v24117_v19 = vld [vmem:[#allocation7 + $0x408] ss:$16 sps:$4 sm:$0xff]  }
 0xeeb   : > { %v24120_v26 = vld [vmem:[#allocation7 + $0x608] ss:$16 sps:$4 sm:$0xff]  }
 0xeed   : > { %17848 = vmatpush1.bf16.msra.mxu0 %v24039_v41  ;;  %17889 = vmatpush1.bf16.msra.mxu1 %v24042_v57  ;;  %v24125_v41 = vld [vmem:[#allocation7 + $0x42c] ss:$16 sps:$4 sm:$0xff]  }
 0xeee   : > { %17849 = vmatprep.subr.bf16.mxu0 %v24047_v51  ;;  %17890 = vmatprep.subr.bf16.mxu1 %v24050_v39  ;;  %v24128_v57 = vld [vmem:[#allocation7 + $0x62c] ss:$16 sps:$4 sm:$0xff]   ;;  %v24123_v51 = vld [vmem:[#allocation7 + $0x428] ss:$16 sps:$4 sm:$0xff]  }
 0xeef   : > { %v24126_v39 = vld [vmem:[#allocation7 + $0x628] ss:$16 sps:$4 sm:$0xff]  }
 0xef1   : > { %17850 = vmatpush1.bf16.msra.mxu0 %v24045_v56  ;;  %17891 = vmatpush1.bf16.msra.mxu1 %v24048_v20  ;;  %v24131_v56 = vld [vmem:[#allocation7 + $0x44c] ss:$16 sps:$4 sm:$0xff]  }
 0xef2   : > { %17851 = vmatprep.subr.bf16.mxu0 %v24053_v52  ;;  %17892 = vmatprep.subr.bf16.mxu1 %v24056_v44  ;;  %v24134_v20 = vld [vmem:[#allocation7 + $0x64c] ss:$16 sps:$4 sm:$0xff]   ;;  %v24129_v52 = vld [vmem:[#allocation7 + $0x448] ss:$16 sps:$4 sm:$0xff]  }
 0xef3   : > { %v24132_v44 = vld [vmem:[#allocation7 + $0x648] ss:$16 sps:$4 sm:$0xff]  }
 0xef5   : > { %17852 = vmatpush1.bf16.msra.mxu0 %v24051_v10  ;;  %17893 = vmatpush1.bf16.msra.mxu1 %v24054_v43  ;;  %v24135_v10 = vld [vmem:[#allocation7 + $0x468] ss:$16 sps:$4 sm:$0xff]  }
 0xef6   : > { %17853 = vmatprep.subr.bf16.mxu0 %v24059_v34  ;;  %17894 = vmatprep.subr.bf16.mxu1 %v24062_v32  ;;  %v24138_v43 = vld [vmem:[#allocation7 + $0x668] ss:$16 sps:$4 sm:$0xff]   ;;  %v24143_v34 = vld [vmem:[#allocation7 + $0x48c] ss:$16 sps:$4 sm:$0xff]  }
 0xef7   : > { %v24146_v32 = vld [vmem:[#allocation7 + $0x68c] ss:$16 sps:$4 sm:$0xff]  }
 0xef9   : > { %17854 = vmatpush1.bf16.msra.mxu0 %v24057_v50  ;;  %17895 = vmatpush1.bf16.msra.mxu1 %v24060_v37  ;;  %v24149_v50 = vld [vmem:[#allocation7 + $0x4ac] ss:$16 sps:$4 sm:$0xff]  }
 0xefa   : > { %17855 = vmatprep.subr.bf16.mxu0 %v24065_v1  ;;  %17896 = vmatprep.subr.bf16.mxu1 %v24068_v49  ;;  %v24152_v37 = vld [vmem:[#allocation7 + $0x6ac] ss:$16 sps:$4 sm:$0xff]   ;;  %v24147_v1 = vld [vmem:[#allocation7 + $0x4a8] ss:$16 sps:$4 sm:$0xff]  }
 0xefb   : > { %v24150_v49 = vld [vmem:[#allocation7 + $0x6a8] ss:$16 sps:$4 sm:$0xff]  }
 0xefd   : > { %17856 = vmatpush1.bf16.msra.mxu0 %v24063_v62  ;;  %17897 = vmatpush1.bf16.msra.mxu1 %v24066_v6  ;;  %v24155_v62 = vld [vmem:[#allocation7 + $0x4cc] ss:$16 sps:$4 sm:$0xff]  }
 0xefe   : > { %17857 = vmatprep.subr.bf16.mxu0 %v24071_v63  ;;  %17898 = vmatprep.subr.bf16.mxu1 %v24074_v27  ;;  %v24158_v6 = vld [vmem:[#allocation7 + $0x6cc] ss:$16 sps:$4 sm:$0xff]  }
 0xf01   : > { %17858 = vmatpush1.bf16.msra.mxu0 %v24069_v42  ;;  %17899 = vmatpush1.bf16.msra.mxu1 %v24072_v16 }
 0xf02   : > { %17859 = vmatprep.subr.bf16.mxu0 %v24077_v61  ;;  %17900 = vmatprep.subr.bf16.mxu1 %v24080_v47 }
 0xf05   : > { %17860 = vmatpush1.bf16.msra.mxu0 %v24075_v35  ;;  %17901 = vmatpush1.bf16.msra.mxu1 %v24078_v22  ;;  %v24153_v35 = vld [vmem:[#allocation7 + $0x4c8] ss:$16 sps:$4 sm:$0xff]  }
 0xf06   : > { %17861 = vmatprep.subr.bf16.mxu0 %v24083_v8  ;;  %17902 = vmatprep.subr.bf16.mxu1 %v24086_v36  ;;  %v24156_v22 = vld [vmem:[#allocation7 + $0x6c8] ss:$16 sps:$4 sm:$0xff]  }
 0xf09   : > { %17862 = vmatpush1.bf16.msra.mxu0 %v24081_v60  ;;  %17903 = vmatpush1.bf16.msra.mxu1 %v24084_v53  ;;  %v24161_v60 = vld [vmem:[#allocation7 + $0x4ec] ss:$16 sps:$4 sm:$0xff]  }
 0xf0a   : > { %17863 = vmatprep.subr.bf16.mxu0 %v24089_v30  ;;  %17904 = vmatprep.subr.bf16.mxu1 %v24092_v59  ;;  %v24164_v53 = vld [vmem:[#allocation7 + $0x6ec] ss:$16 sps:$4 sm:$0xff]   ;;  %v24159_v30 = vld [vmem:[#allocation7 + $0x4e8] ss:$16 sps:$4 sm:$0xff]  }
 0xf0b   : > { %v24162_v59 = vld [vmem:[#allocation7 + $0x6e8] ss:$16 sps:$4 sm:$0xff]  }
 0xf0d   : > { %17864 = vmatpush1.bf16.msra.mxu0 %v24087_v5  ;;  %17905 = vmatpush1.bf16.msra.mxu1 %v24090_v13  ;;  %v24167_v5 = vld [vmem:[#allocation7 + $0x50c] ss:$16 sps:$4 sm:$0xff]  }
 0xf0e   : > { %17865 = vmatprep.subr.bf16.mxu0 %v24095_v38  ;;  %17906 = vmatprep.subr.bf16.mxu1 %v24098_v4  ;;  %v24170_v13 = vld [vmem:[#allocation7 + $0x70c] ss:$16 sps:$4 sm:$0xff]   ;;  %v24165_v38 = vld [vmem:[#allocation7 + $0x508] ss:$16 sps:$4 sm:$0xff]  }
 0xf0f   : > { %v24168_v4 = vld [vmem:[#allocation7 + $0x708] ss:$16 sps:$4 sm:$0xff]  }
 0xf11   : > { %17866 = vmatpush1.bf16.msra.mxu0 %v24093_v46  ;;  %17907 = vmatpush1.bf16.msra.mxu1 %v24096_v23  ;;  %v24173_v46 = vld [vmem:[#allocation7 + $0x52c] ss:$16 sps:$4 sm:$0xff]  }
 0xf12   : > { %17867 = vmatprep.subr.bf16.mxu0 %v24101_v11  ;;  %17908 = vmatprep.subr.bf16.mxu1 %v24104_v12  ;;  %v24176_v23 = vld [vmem:[#allocation7 + $0x72c] ss:$16 sps:$4 sm:$0xff]   ;;  %v24171_v11 = vld [vmem:[#allocation7 + $0x528] ss:$16 sps:$4 sm:$0xff]  }
 0xf13   : > { %v24174_v12 = vld [vmem:[#allocation7 + $0x728] ss:$16 sps:$4 sm:$0xff]  }
 0xf15   : > { %17868 = vmatpush1.bf16.msra.mxu0 %v24099_v3  ;;  %17909 = vmatpush1.bf16.msra.mxu1 %v24102_v14  ;;  %v24179_v3 = vld [vmem:[#allocation7 + $0x54c] ss:$16 sps:$4 sm:$0xff]  }
 0xf16   : > { %17869 = vmatprep.subr.bf16.mxu0 %v24107_v45  ;;  %17910 = vmatprep.subr.bf16.mxu1 %v24110_v31  ;;  %v24182_v14 = vld [vmem:[#allocation7 + $0x74c] ss:$16 sps:$4 sm:$0xff]   ;;  %v24177_v45 = vld [vmem:[#allocation7 + $0x548] ss:$16 sps:$4 sm:$0xff]  }
 0xf17   : > { %v24180_v31 = vld [vmem:[#allocation7 + $0x748] ss:$16 sps:$4 sm:$0xff]  }
 0xf19   : > { %17870 = vmatpush1.bf16.msra.mxu0 %v24105_v7  ;;  %17911 = vmatpush1.bf16.msra.mxu1 %v24108_v58  ;;  %v24185_v7 = vld [vmem:[#allocation7 + $0x56c] ss:$16 sps:$4 sm:$0xff]  }
 0xf1a   : > { %17871 = vmatprep.subr.bf16.mxu0 %v24113_v0  ;;  %17912 = vmatprep.subr.bf16.mxu1 %v24116_v2  ;;  %v24188_v58 = vld [vmem:[#allocation7 + $0x76c] ss:$16 sps:$4 sm:$0xff]   ;;  %v24183_v0 = vld [vmem:[#allocation7 + $0x568] ss:$16 sps:$4 sm:$0xff]  }
 0xf1b   : > { %v24186_v2 = vld [vmem:[#allocation7 + $0x768] ss:$16 sps:$4 sm:$0xff]  }
 0xf1d   : > { %17872 = vmatpush1.bf16.msra.mxu0 %v24111_v29  ;;  %17913 = vmatpush1.bf16.msra.mxu1 %v24114_v21  ;;  %v24191_v29 = vld [vmem:[#allocation7 + $0x58c] ss:$16 sps:$4 sm:$0xff]  }
 0xf1e   : > { %17923 = vmatprep.subr.bf16.mxu0 %v24119_v40  ;;  %17964 = vmatprep.subr.bf16.mxu1 %v24122_v24  ;;  %v24194_v21 = vld [vmem:[#allocation7 + $0x78c] ss:$16 sps:$4 sm:$0xff]   ;;  %v24189_v40 = vld [vmem:[#allocation7 + $0x588] ss:$16 sps:$4 sm:$0xff]  }
 0xf1f   : > { %v24192_v24 = vld [vmem:[#allocation7 + $0x788] ss:$16 sps:$4 sm:$0xff]  }
 0xf20   : > { %17874 = vmatmul.mubr.bf16.vlgmr.msra.gmra.mrb[152].mxu0 %v25354_v9  ;;  %17915 = vmatmul.mubr.bf16.vlgmr.msra.gmra.mrb[152].mxu1 %v25358_v15  ;;  %v24137_v9 = vld [vmem:[#allocation7 + $0x46c] ss:$16 sps:$4 sm:$0xff]  }
 0xf21   : > { %17924 = vmatpush1.bf16.msra.mxu0 %v24117_v19  ;;  %17965 = vmatpush1.bf16.msra.mxu1 %v24120_v26  ;;  %v24140_v15 = vld [vmem:[#allocation7 + $0x66c] ss:$16 sps:$4 sm:$0xff]  }
 0xf22   : > { %17925 = vmatprep.subr.bf16.mxu0 %v24125_v41  ;;  %17966 = vmatprep.subr.bf16.mxu1 %v24128_v57  ;;  %v24197_v19 = vld [vmem:[#allocation7 + $0x5ac] ss:$16 sps:$4 sm:$0xff]   ;;  %v24195_v41 = vld [vmem:[#allocation7 + $0x5a8] ss:$16 sps:$4 sm:$0xff]  }
 0xf23   : > { %17955 = vmatprep.mubr.bf16.mxu0 %v25368_v17  ;;  %17996 = vmatprep.mubr.bf16.mxu1 %v25372_v18  ;;  %v24141_v17 = vld [vmem:[#allocation7 + $0x488] ss:$16 sps:$4 sm:$0xff]   ;;  %v24200_v26 = vld [vmem:[#allocation7 + $0x7ac] ss:$16 sps:$4 sm:$0xff]  }
 0xf24   : > { %v24144_v18 = vld [vmem:[#allocation7 + $0x688] ss:$16 sps:$4 sm:$0xff]  }
 0xf25   : > { %17926 = vmatpush1.bf16.msra.mxu0 %v24123_v51  ;;  %17967 = vmatpush1.bf16.msra.mxu1 %v24126_v39  ;;  %v24198_v57 = vld [vmem:[#allocation7 + $0x7a8] ss:$16 sps:$4 sm:$0xff]   ;;  %v24203_v51 = vld [vmem:[#allocation7 + $0x5cc] ss:$16 sps:$4 sm:$0xff]  }
 0xf26   : > { %17927 = vmatprep.subr.bf16.mxu0 %v24131_v56  ;;  %17968 = vmatprep.subr.bf16.mxu1 %v24134_v20  ;;  %v24206_v39 = vld [vmem:[#allocation7 + $0x7cc] ss:$16 sps:$4 sm:$0xff]   ;;  %v24201_v56 = vld [vmem:[#allocation7 + $0x5c8] ss:$16 sps:$4 sm:$0xff]  }
 0xf27   : > { %v24204_v20 = vld [vmem:[#allocation7 + $0x7c8] ss:$16 sps:$4 sm:$0xff]  }
 0xf29   : > { %17928 = vmatpush1.bf16.msra.mxu0 %v24129_v52  ;;  %17969 = vmatpush1.bf16.msra.mxu1 %v24132_v44  ;;  %v24209_v52 = vld [vmem:[#allocation7 + $0x5ec] ss:$16 sps:$4 sm:$0xff]  }
 0xf2a   : > { %17929 = vmatprep.subr.bf16.mxu0 %v24137_v9  ;;  %17970 = vmatprep.subr.bf16.mxu1 %v24140_v15  ;;  %v24212_v44 = vld [vmem:[#allocation7 + $0x7ec] ss:$16 sps:$4 sm:$0xff]   ;;  %v24207_v9 = vld [vmem:[#allocation7 + $0x5e8] ss:$16 sps:$4 sm:$0xff]  }
 0xf2b   : > { %v24210_v15 = vld [vmem:[#allocation7 + $0x7e8] ss:$16 sps:$4 sm:$0xff]  }
 0xf2d   : > { %17930 = vmatpush1.bf16.msra.mxu0 %v24135_v10  ;;  %17971 = vmatpush1.bf16.msra.mxu1 %v24138_v43 }
 0xf2e   : > { %17931 = vmatprep.subr.bf16.mxu0 %v24143_v34  ;;  %17972 = vmatprep.subr.bf16.mxu1 %v24146_v32 }
 0xf31   : > { %17932 = vmatpush1.bf16.msra.mxu0 %v24141_v17  ;;  %17973 = vmatpush1.bf16.msra.mxu1 %v24144_v18 }
 0xf32   : > { %17933 = vmatprep.subr.bf16.mxu0 %v24149_v50  ;;  %17974 = vmatprep.subr.bf16.mxu1 %v24152_v37 }
 0xf33   : > { %v25394_v63 = vpop.f32.mrb[140].mxu0  ;;  %v25396_v27 = vpop.f32.mrb[140].mxu1 }
 0xf34   : > { %v25398_v42 = vpop.f32.mrb[141].mxu0  ;;  %v25400_v16 = vpop.f32.mrb[141].mxu1 }
 0xf35   : > { %17934 = vmatpush1.bf16.msra.mxu0 %v24147_v1  ;;  %17975 = vmatpush1.bf16.msra.mxu1 %v24150_v49  ;;  %v16325_v61 = vpop.f32.mrb[142].mxu0  ;;  %v16366_v47 = vpop.f32.mrb[142].mxu1 }
 0xf36   : > { %v16326_v8 = vpop.f32.mrb[143].mxu0  ;;  %v16367_v36 = vpop.f32.mrb[143].mxu1  ;;  %17935 = vmatprep.subr.bf16.mxu0 %v24155_v62  ;;  %17976 = vmatprep.subr.bf16.mxu1 %v24158_v6 }
 0xf39   : > { %17936 = vmatpush1.bf16.msra.mxu0 %v24153_v35  ;;  %17977 = vmatpush1.bf16.msra.mxu1 %v24156_v22 }
 0xf3a   : > { %17937 = vmatprep.subr.bf16.mxu0 %v24161_v60  ;;  %17978 = vmatprep.subr.bf16.mxu1 %v24164_v53 }
 0xf3d   : > { %17938 = vmatpush1.bf16.msra.mxu0 %v24159_v30  ;;  %17979 = vmatpush1.bf16.msra.mxu1 %v24162_v59 }
 0xf3e   : > { %17939 = vmatprep.subr.bf16.mxu0 %v24167_v5  ;;  %17980 = vmatprep.subr.bf16.mxu1 %v24170_v13 }
 0xf41   : > { %17940 = vmatpush1.bf16.msra.mxu0 %v24165_v38  ;;  %17981 = vmatpush1.bf16.msra.mxu1 %v24168_v4 }
 0xf42   : > { %17941 = vmatprep.subr.bf16.mxu0 %v24173_v46  ;;  %17982 = vmatprep.subr.bf16.mxu1 %v24176_v23 }
 0xf45   : > { %17942 = vmatpush1.bf16.msra.mxu0 %v24171_v11  ;;  %17983 = vmatpush1.bf16.msra.mxu1 %v24174_v12 }
 0xf46   : > { %17943 = vmatprep.subr.bf16.mxu0 %v24179_v3  ;;  %17984 = vmatprep.subr.bf16.mxu1 %v24182_v14 }
 0xf49   : > { %17944 = vmatpush1.bf16.msra.mxu0 %v24177_v45  ;;  %17985 = vmatpush1.bf16.msra.mxu1 %v24180_v31  ;;  %v18005_v45 = vld [vmem:[%s25475_s3] sm:$0xf] }
 0xf4a   : > { %17945 = vmatprep.subr.bf16.mxu0 %v24185_v7  ;;  %17986 = vmatprep.subr.bf16.mxu1 %v24188_v58  ;;  %v18014_v31 = vrot.slane %v18005_v45, %v24790_v54  ;;  %v18010_v7 = vrot.slane %v18005_v45, %v24795_v55 }
 0xf4d   : > { %17946 = vmatpush1.bf16.msra.mxu0 %v24183_v0  ;;  %17987 = vmatpush1.bf16.msra.mxu1 %v24186_v2 }
 0xf4e   : > { %17947 = vmatprep.subr.bf16.mxu0 %v24191_v29  ;;  %17988 = vmatprep.subr.bf16.mxu1 %v24194_v21 }
 0xf51   : > { %17948 = vmatpush1.bf16.msra.mxu0 %v24189_v40  ;;  %17989 = vmatpush1.bf16.msra.mxu1 %v24192_v24  ;;  %v18018_v40 = vrot.slane %v18005_v45, %v24801_v25 }
 0xf52   : > { %17949 = vmatprep.subr.bf16.mxu0 %v24197_v19  ;;  %17990 = vmatprep.subr.bf16.mxu1 %v24200_v26 }
 0xf55   : > { %17950 = vmatpush1.bf16.msra.mxu0 %v24195_v41  ;;  %17991 = vmatpush1.bf16.msra.mxu1 %v24198_v57  ;;  %v18022_v41 = vrot.slane %v18005_v45, %v24803_v28 }
 0xf56   : > { %17951 = vmatprep.subr.bf16.mxu0 %v24203_v51  ;;  %17992 = vmatprep.subr.bf16.mxu1 %v24206_v39 }
 0xf59   : > { %17952 = vmatpush1.bf16.msra.mxu0 %v24201_v56  ;;  %17993 = vmatpush1.bf16.msra.mxu1 %v24204_v20 }
 0xf5a   : > { %17953 = vmatprep.subr.bf16.mxu0 %v24209_v52  ;;  %17994 = vmatprep.subr.bf16.mxu1 %v24212_v44 }
 0xf5d   : > { %17954 = vmatpush1.bf16.msra.mxu0 %v24207_v9  ;;  %17995 = vmatpush1.bf16.msra.mxu1 %v24210_v15 }
 0xf60   : > { %17956 = vmatmul.mubr.bf16.vlgmr.msra.gmra.mrb[156].mxu0 %v25380_v33  ;;  %17997 = vmatmul.mubr.bf16.vlgmr.msra.gmra.mrb[156].mxu1 %v25384_v48 }
 0xf73   : > { %v17711_v10 = vpop.f32.mrb[144].mxu0  ;;  %v17752_v43 = vpop.f32.mrb[144].mxu1 }
 0xf74   : > { %v17712_v34 = vadd.f32 %v17711_v10, %v25394_v63  ;;  %v17713_v32 = vpop.f32.mrb[145].mxu0  ;;  %v17754_v17 = vpop.f32.mrb[145].mxu1 }
 0xf75   : > { %v17714_v18 = vadd.f32 %v17713_v32, %v25398_v42  ;;  %v17715_v50 = vpop.f32.mrb[146].mxu0  ;;  %v17756_v37 = vpop.f32.mrb[146].mxu1  ;;  %v18044_v32 = vld [vmem:[#allocation3] sm:$0xff] }
 0xf76   : > { %v17753_v1 = vadd.f32 %v17752_v43, %v17712_v34  ;;  %v17716_v49 = vpop.f32.mrb[147].mxu0  ;;  %v17757_v62 = vpop.f32.mrb[147].mxu1 }
 0xf77   : > { %v17755_v6 = vadd.f32 %v17754_v17, %v17714_v18 }
 0xfb3   : > { %v17793_v61 = vpop.f32.mrb[148].mxu0  ;;  %v17834_v47 = vpop.f32.mrb[148].mxu1 }
 0xfb4   : > { %v17794_v35 = vadd.f32 %v17793_v61, %v17753_v1  ;;  %v17795_v33 = vpop.f32.mrb[149].mxu0  ;;  %v17836_v22 = vpop.f32.mrb[149].mxu1 }
 0xfb5   : > { %v17796_v48 = vadd.f32 %v17795_v33, %v17755_v6  ;;  %v17797_v8 = vpop.f32.mrb[150].mxu0  ;;  %v17838_v36 = vpop.f32.mrb[150].mxu1 }
 0xfb6   : > { %v17835_v60 = vadd.f32 %v17834_v47, %v17794_v35  ;;  %v17798_v63 = vpop.f32.mrb[151].mxu0  ;;  %v17839_v53 = vpop.f32.mrb[151].mxu1 }
 0xfb7   : > { %v17837_v30 = vadd.f32 %v17836_v22, %v17796_v48 }
 0xfb9   : > { %v18028_v58 = vadd.f32 %v18014_v31, %v17837_v30 }
 0xfbb   : > { %v18035_v0 = vmul.f32 0.5, %v18028_v58 }
 0xfbd   : > { %24283 = vtanh.f32 %v18035_v0 }
 0xfc7   : > { %v24284_v44 = vpop.eup %24283 }
 0xfc8   : > { %v18037_v15 = vadd.f32 1.0, %v24284_v44 }
 0xfca   : > { %v18038_v43 = vmul.f32 0.5, %v18037_v15 }
 0xfcc   : > { %v18045_v17 = vmul.f32 %v18044_v32, %v18038_v43 }
 0xff3   : > { %v17875_v59 = vpop.f32.mrb[152].mxu0  ;;  %v17916_v42 = vpop.f32.mrb[152].mxu1 }
 0xff4   : > { %v17876_v5 = vadd.f32 %v17875_v59, %v25396_v27  ;;  %v17877_v13 = vpop.f32.mrb[153].mxu0  ;;  %v17918_v38 = vpop.f32.mrb[153].mxu1  ;;  %v18027_v27 = vadd.f32 %v18010_v7, %v17835_v60 }
 0xff5   : > { %v17878_v4 = vadd.f32 %v17877_v13, %v25400_v16  ;;  %v17879_v46 = vpop.f32.mrb[154].mxu0  ;;  %v17920_v23 = vpop.f32.mrb[154].mxu1 }
 0xff6   : > { %v17917_v11 = vadd.f32 %v17916_v42, %v17876_v5  ;;  %v17880_v12 = vpop.f32.mrb[155].mxu0  ;;  %v17921_v3 = vpop.f32.mrb[155].mxu1  ;;  %v18031_v2 = vmul.f32 0.5, %v18027_v27 }
 0xff7   : > { %v17919_v14 = vadd.f32 %v17918_v38, %v17878_v4 }
 0xff8   : > { %24285 = vtanh.f32 %v18031_v2 }
0x1002   : > { %v24286_v9 = vpop.eup %24285 }
0x1003   : > { %v18033_v25 = vadd.f32 1.0, %v24286_v9 }
0x1005   : > { %v18034_v34 = vmul.f32 0.5, %v18033_v25 }
0x1033   : > { %v17957_v16 = vpop.f32.mrb[156].mxu0  ;;  %v17998_v29 = vpop.f32.mrb[156].mxu1 }
0x1034   : > { %v17958_v21 = vadd.f32 %v17957_v16, %v17917_v11  ;;  %v17959_v24 = vpop.f32.mrb[157].mxu0  ;;  %v18000_v19 = vpop.f32.mrb[157].mxu1 }
0x1035   : > { %v17960_v26 = vadd.f32 %v17959_v24, %v17919_v14  ;;  %v17961_v57 = vpop.f32.mrb[158].mxu0  ;;  %v18002_v54 = vpop.f32.mrb[158].mxu1 }
0x1036   : > { %v17999_v51 = vadd.f32 %v17998_v29, %v17958_v21  ;;  %v17962_v55 = vpop.f32.mrb[159].mxu0  ;;  %v18003_v39 = vpop.f32.mrb[159].mxu1 }
0x1037   : > { %v18001_v56 = vadd.f32 %v18000_v19, %v17960_v26 }
0x1038   : > { %v18029_v20 = vadd.f32 %v18018_v40, %v17999_v51 }
0x1039   : > { %v18030_v52 = vadd.f32 %v18022_v41, %v18001_v56 }
0x103a   : > { %24287 = vtanh.f32 %v18029_v20 }
0x103b   : > { %v18040_v10 = vmul.f32 0.5, %v18030_v52 }
0x103d   : > { %24289 = vtanh.f32 %v18040_v10 }
0x1044   : > { %v24288_v28 = vpop.eup %24287 }
0x1045   : > { %v18046_v18 = vmul.f32 %v24288_v28, %v18034_v34 }
0x1047   : > { %v18047_v50 = vadd.f32 %v18046_v18, %v18045_v17  ;;  %v24290_v37 = vpop.eup %24289 }
0x1048   : > { %v18042_v1 = vadd.f32 1.0, %v24290_v37 }
0x1049   : > { %24291 = vtanh.f32 %v18047_v50  ;;  %18050 = vst [vmem:[#allocation3] sm:$0xff] %v18047_v50 }
0x104a   : > { %v18043_v49 = vmul.f32 0.5, %v18042_v1 }
0x1053   : > { %v24292_v62 = vpop.eup %24291 }
0x1054   : > { %v18049_v6 = vmul.f32 %v24292_v62, %v18043_v49 }
0x1056   : > { %18051 = vst [vmem:[#allocation2] sm:$0xff] %v18049_v6  ;;  %v18052_v61 = vpack.c.bf16 %v18049_v6, %v18049_v6 }
0x1058   : > { %20593 = vst [vmem:[%s24707_s12 + $0x1c] sm:$0xf] %v18052_v61 }
0x1059   : > { %24392 = shalt.err (!%p24389_p0)
}
0x105a   : > { %s24393_s12 = scalar_lea.hbm %s25420_s24, 512  ;;  %s24397_s23 = scalar_lea.hbm %s25476_s4, 1024 }
0x105b   : > { %p24394_p4 = scmp.ne.s32.totalorder %s25420_s24, %s24393_s12  ;;  %p24398_p7 = scmp.lt.u32.totalorder %s25420_s24, %s25476_s4 }
0x105c   : > { %p24399_p2 = scmp.lt.u32.totalorder %s24397_s23, %s24393_s12  ;;  %p24401_p12 = scmp.lt.u32.totalorder %s24393_s12, %s25420_s24 }
0x105d   : > { %p24395_p13 = pnand %p24394_p4, %p25491_p1 }
0x105e   : > { %p24400_p8 = por %p24399_p2, %p24398_p7 }
0x105f   : > { %p24396_p6 = pneg %p24395_p13 }
0x1060   : > { %p24402_p10 = por %p24401_p12, %p24400_p8 }
0x1062   : > { %p24403_p3 = pnand %p24402_p10, %p24396_p6 }
0x1064   : > { %24406 = shalt.err (!%p24403_p3)
}
0x1065   : > { %s24477_s13 = smov 64   ;;  %s24478_s14 = smov 4  }
0x1066   : > { %20612 = dma.vmem_to_hbm [thread:$0]  (%p25491_p1), %s25422_s29, 512, %s25420_s24, %s18056_s7, %s24477_s13, %s24477_s13, %s24478_s14  }
0x1067 PF: > { %s18085_s11 = sand.u32 1, %s24445_s15   ;;  %p25492_p5 = scmp.ne.s32.totalorder %s25484_s26, 0 }
0x1068   : > { %p25493_p9 = scmp.ge.s32.totalorder %s24465_s20, 2  ;;  %s18086_s28 = scalar_lea.sflag [#allocation6], %s18085_s11 }
0x106a   : > { %p20626_p11 = pnand %p25493_p9, %p25492_p5 }
0x106c   : > { %24440 = dma.done.wait (!%p20626_p11), %s18086_s28, 512  }
0x106d   : > { %24442 = vsyncadd (!%p20626_p11), %s18086_s28, 4294966784  ;;  %s21_s20 = sadd.s32 1, %s24465_s20   ;;  %s25494_s15 = smov %s24449_s16 }
0x106e   : > { %p18_p0 = scmp.ge.s32.totalorder %s21_s20, 4   ;;  %s25495_s16 = smov %s24453_s17 }
0x106f   : > { %s25496_s17 = smov %s24646_s22  ;;  %s25497_s18 = smov %s24461_s19 }
0x1070   : > { %s25498_s19 = smov %s25500_s5  ;;  %20 = sbr.rel (!%p18_p0) target bundleno = 7 (0x7), region = 107 }
0x1077   :  { %18091 = vsyncpa [#allocation5], 1 }
0x1078   :  { %18093 = vsyncpa [#allocation5 + $0x1], 1 }
0x1079   :  { %18094 = vsyncpa [#allocation8], 1 }
0x107a   :  { %18095 = vsyncpa [#allocation6], 1 }
0x107b   :  { %18097 = vsyncpa [#allocation6 + $0x1], 1 }

</bundles_post_ra>
